<compile_context>
chip_gen: v7x
topology: tpu7x:2x2x1
jax: 0.10.0
libtpu: 0.0.40
codegen_flags: <defaults>
</compile_context>

<pallas_src>
import functools
import math

import jax
import jax.numpy as jnp
from jax import lax
from jax.experimental import pallas as pl
from jax.experimental.pallas import tpu as pltpu

EPS = 1e-5                      # torch.nn.LayerNorm default eps
INV_SQRT2 = 1.0 / math.sqrt(2.0)
APPROX_RECIPROCAL = True        # EUP vrcp for softmax normalization

# per-stacked-layer parameter names, in kernel-argument order
LAYER_KEYS = ("w_qkv", "b_qkv", "w_out", "w1", "b1", "w2", "b2")


# ---------------------------------------------------------------------------
# In-kernel building blocks (operate on values; LN affines already folded)
# ---------------------------------------------------------------------------
def _ln_stats(x, axis):
    """LayerNorm normalization only (affine is folded into the next weights)."""
    mu = jnp.mean(x, axis=axis, keepdims=True)
    var = jnp.mean((x - mu) ** 2, axis=axis, keepdims=True)
    return (x - mu) * lax.rsqrt(var + EPS)


def _softmax_rows(s):
    s = s - jnp.max(s, axis=-1, keepdims=True)
    p = jnp.exp(s)
    return p * pl.reciprocal(jnp.sum(p, axis=-1, keepdims=True),
                             approx=APPROX_RECIPROCAL)


def _attn_block(x, w_qkv, b_qkv, w_out, ctx_ref, *, heads, dim_head):
    """x: (n, D) f32.  Returns x + Attention(LN(x)) (residual included)."""
    n, _ = x.shape
    inner = heads * dim_head
    scale = dim_head ** -0.5

    z = _ln_stats(x, axis=-1).astype(jnp.bfloat16)
    # one lane-dense projection for q, k and v together: (n, D) @ (D, 3*inner)
    qkv = jnp.dot(z, w_qkv, preferred_element_type=jnp.float32) + b_qkv
    qkv = qkv.astype(jnp.bfloat16)

    for h in range(heads):
        s0 = h * dim_head
        qh = qkv[:, s0:s0 + dim_head]
        kh = qkv[:, inner + s0:inner + s0 + dim_head]
        vh = qkv[:, 2 * inner + s0:2 * inner + s0 + dim_head]
        # q @ k^T, contracting the head dim directly (no transposed copy of k)
        dots = lax.dot_general(qh, kh, (((1,), (1,)), ((), ())),
                               preferred_element_type=jnp.float32) * scale
        attn = _softmax_rows(dots)
        # assemble this head's context into the lane-dense (n, inner) slab
        ctx_ref[0:n, s0:s0 + dim_head] = jnp.dot(
            attn.astype(jnp.bfloat16), vh, preferred_element_type=jnp.float32)

    # single output projection over the packed heads: (n, inner) @ (inner, D)
    ctx = ctx_ref[0:n, :].astype(jnp.bfloat16)
    return x + jnp.dot(ctx, w_out, preferred_element_type=jnp.float32)


def _ff_block(x, w1, b1, w2, b2):
    """x: (n, D).  Returns x + MLP(LN(x)) with exact-erf GELU."""
    z = _ln_stats(x, axis=-1).astype(jnp.bfloat16)
    h = jnp.dot(z, w1, preferred_element_type=jnp.float32) + b1
    h = 0.5 * h * (1.0 + lax.erf(h * INV_SQRT2))          # exact GELU
    y = jnp.dot(h.astype(jnp.bfloat16), w2, preferred_element_type=jnp.float32) + b2
    return x + y


def _seq_maxlen(x, w, b):
    """torch: Linear(64,16)(LayerNorm(64)(x.permute(0,2,1))).permute(0,2,1),
    evaluated directly in the (N, D) layout over the sequence axis."""
    z = _ln_stats(x, axis=0).astype(jnp.bfloat16)              # LN over the 64 tokens
    y = jnp.dot(w, z, preferred_element_type=jnp.float32)      # (16, 64) @ (64, D)
    return y + b                                               # b: (16, 1)


# ---------------------------------------------------------------------------
# Single fused kernel: backbone + cls / locs / w branches for one batch element
# ---------------------------------------------------------------------------
def transformer_kernel(x_ref,
                       # main stack (backbone layers + cls layer), mlp_dim hidden
                       m_wqkv, m_bqkv, m_wo, m_w1, m_b1, m_w2, m_b2,
                       # branch stack (0 = locs, 1 = w), mlp_dim // 2 hidden
                       r_wqkv, r_bqkv, r_wo, r_w1, r_b1, r_w2, r_b2,
                       # folded linear_seq_maxlen parameters
                       sm_w, sm_b,
                       # merged output: rows = [N cls | 16 loc | N w]
                       o_ref,
                       # lane-dense per-head context slab
                       ctx_ref,
                       *, depth, heads, dim_head):
    x = x_ref[0].astype(jnp.float32)              # (N, D) for this batch element
    n_seq = x.shape[0]

    def main_layer(t, l):
        t = _attn_block(t, m_wqkv[l], m_bqkv[l], m_wo[l], ctx_ref,
                        heads=heads, dim_head=dim_head)
        return _ff_block(t, m_w1[l], m_b1[l], m_w2[l], m_b2[l])

    def branch_layer(t, l):
        t = _attn_block(t, r_wqkv[l], r_bqkv[l], r_wo[l], ctx_ref,
                        heads=heads, dim_head=dim_head)
        return _ff_block(t, r_w1[l], r_b1[l], r_w2[l], r_b2[l])

    # backbone: depth-1 fused residual layers; x stays resident on-chip
    for l in range(depth - 1):
        x = main_layer(x, l)

    # classification branch (last slot of the main weight stack)
    x_cls = main_layer(x, depth - 1)
    # localisation branch: sequence-length projection 64 -> 16, then one layer
    x_loc = branch_layer(_seq_maxlen(x, sm_w[...], sm_b[...]), 0)
    # width branch
    x_w = branch_layer(x, 1)

    # single contiguous writeback (one lane-dense slab), split in the wrapper
    o_ref[0, 0:n_seq, :] = x_cls.astype(o_ref.dtype)
    o_ref[0, n_seq:n_seq + 16, :] = x_loc.astype(o_ref.dtype)
    o_ref[0, n_seq + 16:2 * n_seq + 16, :] = x_w.astype(o_ref.dtype)


def _const_index_map(ndim):
    return lambda b: (0,) * ndim


def transformer_forward(x, params, *, depth, heads, dim_head):
    B, N, D = x.shape
    assert N == 64, "linear_seq_maxlen hard-codes LayerNorm(64) + Linear(64, 16)"
    m, r = params["main"], params["branch"]
    weights = ([m[k] for k in LAYER_KEYS] + [r[k] for k in LAYER_KEYS]
               + [params["sm_w"], params["sm_b"]])

    in_specs = [pl.BlockSpec((1, N, D), lambda b: (b, 0, 0))]
    in_specs += [pl.BlockSpec(w.shape, _const_index_map(w.ndim)) for w in weights]

    n_out = 2 * N + 16                       # rows: [0:N] cls, [N:N+16] loc, rest w
    out_shape = jax.ShapeDtypeStruct((B, n_out, D), x.dtype)
    out_specs = pl.BlockSpec((1, n_out, D), lambda b: (b, 0, 0))

    kern = functools.partial(transformer_kernel, depth=depth, heads=heads,
                             dim_head=dim_head)

    # Grid over batch: weights have constant block indices (fetched once); the
    # "parallel" axis lets v7x shard batch elements across its 2 TensorCores.
    # For large B this also keeps per-step intermediates well under the 32 MiB
    # scoped VMEM on v7x (set vmem_limit_bytes explicitly if blocks grow).
    out = pl.pallas_call(
        kern,
        grid=(B,),
        in_specs=in_specs,
        out_specs=out_specs,
        out_shape=out_shape,
        scratch_shapes=[pltpu.VMEM((N, heads * dim_head), jnp.float32)],
        compiler_params=pltpu.CompilerParams(dimension_semantics=("parallel",)),
    )(x, *weights)

    return out[:, :N], out[:, N:N + 16], out[:, N + 16:]


# ---------------------------------------------------------------------------
# Parameter setup: torch-layout weights, LN affines folded, packed lane-dense
# ---------------------------------------------------------------------------
def _init_fused_layer(key, dim, hidden, heads, dim_head):
    inner = heads * dim_head
    ks = jax.random.split(key, 10)

    # Attention (norm -> to_qkv [no bias] -> softmax -> to_out [no bias])
    a_gamma = 1.0 + 0.1 * jax.random.normal(ks[0], (dim,), jnp.float32)
    a_beta = 0.1 * jax.random.normal(ks[1], (dim,), jnp.float32)
    w_qkv = 0.02 * jax.random.normal(ks[2], (dim, 3 * inner), jnp.float32)   # x @ W
    w_out = 0.02 * jax.random.normal(ks[3], (inner, dim), jnp.float32)       # (h d) rows

    # FeedForward (norm -> Linear -> GELU -> Linear)
    f_gamma = 1.0 + 0.1 * jax.random.normal(ks[4], (dim,), jnp.float32)
    f_beta = 0.1 * jax.random.normal(ks[5], (dim,), jnp.float32)
    w1 = 0.02 * jax.random.normal(ks[6], (dim, hidden), jnp.float32)
    b1 = 0.02 * jax.random.normal(ks[7], (hidden,), jnp.float32)
    w2 = 0.02 * jax.random.normal(ks[8], (hidden, dim), jnp.float32)
    b2 = 0.02 * jax.random.normal(ks[9], (dim,), jnp.float32)

    return {
        # LN affine folded (exact): (g*z + b) @ W == z @ (diag(g) W) + b @ W
        "w_qkv": (a_gamma[:, None] * w_qkv).astype(jnp.bfloat16),   # (D, 3*inner)
        "b_qkv": (a_beta @ w_qkv)[None, :],                         # (1, 3*inner) f32
        "w_out": w_out.astype(jnp.bfloat16),                        # (inner, D)
        "w1": (f_gamma[:, None] * w1).astype(jnp.bfloat16),         # (D, hidden)
        "b1": (b1 + f_beta @ w1)[None, :],                          # (1, hidden) f32
        "w2": w2.astype(jnp.bfloat16),                              # (hidden, D)
        "b2": b2[None, :],                                          # (1, D) f32
    }


def init_transformer_params(key, dim, depth, heads, dim_head, mlp_dim):
    keys = jax.random.split(key, depth + 3)

    # main stack: backbone layers (depth-1) followed by the cls layer (all mlp_dim)
    main = [_init_fused_layer(keys[i], dim, mlp_dim, heads, dim_head)
            for i in range(depth)]
    # branch stack: 0 = locs layer, 1 = w layer (both mlp_dim // 2)
    branch = [_init_fused_layer(keys[depth + i], dim, mlp_dim // 2, heads, dim_head)
              for i in range(2)]

    def stack(blocks):
        return {k: jnp.stack([blk[k] for blk in blocks], axis=0) for k in LAYER_KEYS}

    # linear_seq_maxlen: LayerNorm(64) + Linear(64, 16), affine folded into W / bias
    ks = jax.random.split(keys[depth + 2], 4)
    g = 1.0 + 0.1 * jax.random.normal(ks[0], (64,), jnp.float32)
    be = 0.1 * jax.random.normal(ks[1], (64,), jnp.float32)
    W = 0.02 * jax.random.normal(ks[2], (16, 64), jnp.float32)
    b = 0.02 * jax.random.normal(ks[3], (16,), jnp.float32)

    return {
        "main": stack(main),
        "branch": stack(branch),
        "sm_w": (W * g[None, :]).astype(jnp.bfloat16),    # (16, 64)
        "sm_b": (b + W @ be)[:, None],                    # (16, 1) f32
    }


# ---------------------------------------------------------------------------
if __name__ == "__main__":
    # N must be 64: the torch module hard-codes nn.LayerNorm(64) + nn.Linear(64, 16)
    # on the permuted sequence axis.
    B, N, DIM = 2, 64, 32
    DEPTH, HEADS, DIM_HEAD, MLP_DIM = 2, 4, 8, 64

    key = jax.random.PRNGKey(0)
    kx, kp = jax.random.split(key)
    x = jax.random.normal(kx, (B, N, DIM), jnp.float32)
    params = init_transformer_params(kp, DIM, DEPTH, HEADS, DIM_HEAD, MLP_DIM)

    fwd = jax.jit(functools.partial(transformer_forward, depth=DEPTH,
                                    heads=HEADS, dim_head=DIM_HEAD))
    x_cls, x_loc, x_w = fwd(x, params)
    jax.block_until_ready((x_cls, x_loc, x_w))

    assert x_cls.shape == (B, N, DIM)
    assert x_loc.shape == (B, 16, DIM)
    assert x_w.shape == (B, N, DIM)
    assert all(bool(jnp.all(jnp.isfinite(t))) for t in (x_cls, x_loc, x_w))
    print("KERNEL_OK")
</pallas_src>

<mosaic_0001>
module attributes {stable_mosaic.version = 11 : i64} {
  func.func @transformer_kernel(%arg0: i32, %arg1: memref<1x64x32xf32, #tpu.memory_space<vmem>>, %arg2: memref<2x32x96xbf16, #tpu.memory_space<vmem>>, %arg3: memref<2x1x96xf32, #tpu.memory_space<vmem>>, %arg4: memref<2x32x32xbf16, #tpu.memory_space<vmem>>, %arg5: memref<2x32x64xbf16, #tpu.memory_space<vmem>>, %arg6: memref<2x1x64xf32, #tpu.memory_space<vmem>>, %arg7: memref<2x64x32xbf16, #tpu.memory_space<vmem>>, %arg8: memref<2x1x32xf32, #tpu.memory_space<vmem>>, %arg9: memref<2x32x96xbf16, #tpu.memory_space<vmem>>, %arg10: memref<2x1x96xf32, #tpu.memory_space<vmem>>, %arg11: memref<2x32x32xbf16, #tpu.memory_space<vmem>>, %arg12: memref<2x32x32xbf16, #tpu.memory_space<vmem>>, %arg13: memref<2x1x32xf32, #tpu.memory_space<vmem>>, %arg14: memref<2x32x32xbf16, #tpu.memory_space<vmem>>, %arg15: memref<2x1x32xf32, #tpu.memory_space<vmem>>, %arg16: memref<16x64xbf16, #tpu.memory_space<vmem>>, %arg17: memref<16x1xf32, #tpu.memory_space<vmem>>, %arg18: memref<1x144x32xf32, #tpu.memory_space<vmem>>, %arg19: memref<64x32xf32, #tpu.memory_space<vmem>>) attributes {dimension_semantics = [#tpu.dimension_semantics<parallel>], iteration_bounds = array<i64: 2>, scalar_prefetch = 0 : i64, scratch_operands = 1 : i64, tpu.core_type = #tpu.core_type<tc>, window_params = [{transform_indices = @transform_0, window_bounds = array<i64: 1, 64, 32>}, {pipeline_mode = #tpu.pipeline_mode<synchronous>, transform_indices = @transform_1, window_bounds = array<i64: 2, 32, 96>}, {pipeline_mode = #tpu.pipeline_mode<synchronous>, transform_indices = @transform_2, window_bounds = array<i64: 2, 1, 96>}, {pipeline_mode = #tpu.pipeline_mode<synchronous>, transform_indices = @transform_3, window_bounds = array<i64: 2, 32, 32>}, {pipeline_mode = #tpu.pipeline_mode<synchronous>, transform_indices = @transform_4, window_bounds = array<i64: 2, 32, 64>}, {pipeline_mode = #tpu.pipeline_mode<synchronous>, transform_indices = @transform_5, window_bounds = array<i64: 2, 1, 64>}, {pipeline_mode = #tpu.pipeline_mode<synchronous>, transform_indices = @transform_6, window_bounds = array<i64: 2, 64, 32>}, {pipeline_mode = #tpu.pipeline_mode<synchronous>, transform_indices = @transform_7, window_bounds = array<i64: 2, 1, 32>}, {pipeline_mode = #tpu.pipeline_mode<synchronous>, transform_indices = @transform_8, window_bounds = array<i64: 2, 32, 96>}, {pipeline_mode = #tpu.pipeline_mode<synchronous>, transform_indices = @transform_9, window_bounds = array<i64: 2, 1, 96>}, {pipeline_mode = #tpu.pipeline_mode<synchronous>, transform_indices = @transform_10, window_bounds = array<i64: 2, 32, 32>}, {pipeline_mode = #tpu.pipeline_mode<synchronous>, transform_indices = @transform_11, window_bounds = array<i64: 2, 32, 32>}, {pipeline_mode = #tpu.pipeline_mode<synchronous>, transform_indices = @transform_12, window_bounds = array<i64: 2, 1, 32>}, {pipeline_mode = #tpu.pipeline_mode<synchronous>, transform_indices = @transform_13, window_bounds = array<i64: 2, 32, 32>}, {pipeline_mode = #tpu.pipeline_mode<synchronous>, transform_indices = @transform_14, window_bounds = array<i64: 2, 1, 32>}, {pipeline_mode = #tpu.pipeline_mode<synchronous>, transform_indices = @transform_15, window_bounds = array<i64: 16, 64>}, {pipeline_mode = #tpu.pipeline_mode<synchronous>, transform_indices = @transform_16, window_bounds = array<i64: 16, 1>}, {transform_indices = @transform_17, window_bounds = array<i64: 1, 144, 32>}]} {
    %c0 = arith.constant 0 : index
    %c0_0 = arith.constant 0 : index
    %c0_1 = arith.constant 0 : index
    %0 = vector.load %arg1[%c0, %c0_0, %c0_1] : memref<1x64x32xf32, #tpu.memory_space<vmem>>, vector<1x64x32xf32>
    %1 = vector.shape_cast %0 : vector<1x64x32xf32> to vector<64x32xf32>
    %c0_2 = arith.constant 0 : index
    %c0_3 = arith.constant 0 : index
    %c0_4 = arith.constant 0 : index
    %2 = vector.load %arg2[%c0_2, %c0_3, %c0_4] : memref<2x32x96xbf16, #tpu.memory_space<vmem>>, vector<1x32x96xbf16>
    %3 = vector.shape_cast %2 : vector<1x32x96xbf16> to vector<32x96xbf16>
    %c0_5 = arith.constant 0 : index
    %c0_6 = arith.constant 0 : index
    %c0_7 = arith.constant 0 : index
    %4 = vector.load %arg3[%c0_5, %c0_6, %c0_7] : memref<2x1x96xf32, #tpu.memory_space<vmem>>, vector<1x1x96xf32>
    %5 = vector.shape_cast %4 : vector<1x1x96xf32> to vector<1x96xf32>
    %c0_8 = arith.constant 0 : index
    %c0_9 = arith.constant 0 : index
    %c0_10 = arith.constant 0 : index
    %6 = vector.load %arg4[%c0_8, %c0_9, %c0_10] : memref<2x32x32xbf16, #tpu.memory_space<vmem>>, vector<1x32x32xbf16>
    %7 = vector.shape_cast %6 : vector<1x32x32xbf16> to vector<32x32xbf16>
    %cst = arith.constant dense<0.000000e+00> : vector<64xf32>
    %8 = vector.multi_reduction <add>, %1, %cst [1] : vector<64x32xf32> to vector<64xf32>
    %9 = vector.shape_cast %8 : vector<64xf32> to vector<64x1xf32>
    %cst_11 = arith.constant 3.200000e+01 : f32
    %10 = vector.broadcast %cst_11 : f32 to vector<64x1xf32>
    %11 = arith.divf %9, %10 : vector<64x1xf32>
    %12 = vector.broadcast %11 : vector<64x1xf32> to vector<64x32xf32>
    %13 = arith.subf %1, %12 : vector<64x32xf32>
    %14 = arith.mulf %13, %13 : vector<64x32xf32>
    %cst_12 = arith.constant dense<0.000000e+00> : vector<64xf32>
    %15 = vector.multi_reduction <add>, %14, %cst_12 [1] : vector<64x32xf32> to vector<64xf32>
    %16 = vector.shape_cast %15 : vector<64xf32> to vector<64x1xf32>
    %cst_13 = arith.constant 3.200000e+01 : f32
    %17 = vector.broadcast %cst_13 : f32 to vector<64x1xf32>
    %18 = arith.divf %16, %17 : vector<64x1xf32>
    %19 = vector.broadcast %11 : vector<64x1xf32> to vector<64x32xf32>
    %20 = arith.subf %1, %19 : vector<64x32xf32>
    %cst_14 = arith.constant 9.99999974E-6 : f32
    %21 = vector.broadcast %cst_14 : f32 to vector<64x1xf32>
    %22 = arith.addf %18, %21 : vector<64x1xf32>
    %23 = math.rsqrt %22 : vector<64x1xf32>
    %24 = vector.broadcast %23 : vector<64x1xf32> to vector<64x32xf32>
    %25 = arith.mulf %20, %24 : vector<64x32xf32>
    %26 = arith.truncf %25 : vector<64x32xf32> to vector<64x32xbf16>
    %cst_15 = arith.constant dense<0.000000e+00> : vector<64x96xf32>
    %27 = tpu.matmul %26, %3, %cst_15 {dimension_numbers = #tpu.dot_dimension_numbers<[1], [0], [0], [1], [0, 0, 1, 1], [], []>} : vector<64x32xbf16>, vector<32x96xbf16>, vector<64x96xf32> -> vector<64x96xf32>
    %28 = vector.broadcast %5 : vector<1x96xf32> to vector<64x96xf32>
    %29 = arith.addf %27, %28 : vector<64x96xf32>
    %30 = arith.truncf %29 : vector<64x96xf32> to vector<64x96xbf16>
    %31 = vector.extract_strided_slice %30 {offsets = [0, 0], sizes = [64, 8], strides = [1, 1]} : vector<64x96xbf16> to vector<64x8xbf16>
    %32 = vector.extract_strided_slice %30 {offsets = [0, 32], sizes = [64, 8], strides = [1, 1]} : vector<64x96xbf16> to vector<64x8xbf16>
    %33 = vector.extract_strided_slice %30 {offsets = [0, 64], sizes = [64, 8], strides = [1, 1]} : vector<64x96xbf16> to vector<64x8xbf16>
    %cst_16 = arith.constant dense<0.000000e+00> : vector<64x64xf32>
    %34 = tpu.matmul %31, %32, %cst_16 {dimension_numbers = #tpu.dot_dimension_numbers<[1], [1], [0], [0], [0, 0, 1, 0], [], []>} : vector<64x8xbf16>, vector<64x8xbf16>, vector<64x64xf32> -> vector<64x64xf32>
    %cst_17 = arith.constant 0.353553385 : f32
    %35 = vector.broadcast %cst_17 : f32 to vector<64x64xf32>
    %36 = arith.mulf %34, %35 : vector<64x64xf32>
    %cst_18 = arith.constant dense<0xFF800000> : vector<64xf32>
    %37 = vector.multi_reduction <maximumf>, %36, %cst_18 [1] : vector<64x64xf32> to vector<64xf32>
    %38 = vector.shape_cast %37 : vector<64xf32> to vector<64x1xf32>
    %39 = vector.broadcast %38 : vector<64x1xf32> to vector<64x64xf32>
    %40 = arith.subf %36, %39 : vector<64x64xf32>
    %41 = math.exp %40 : vector<64x64xf32>
    %cst_19 = arith.constant dense<0.000000e+00> : vector<64xf32>
    %42 = vector.multi_reduction <add>, %41, %cst_19 [1] : vector<64x64xf32> to vector<64xf32>
    %43 = vector.shape_cast %42 : vector<64xf32> to vector<64x1xf32>
    %44 = tpu.reciprocal %43 {approx = true} : vector<64x1xf32> -> vector<64x1xf32>
    %45 = vector.broadcast %44 : vector<64x1xf32> to vector<64x64xf32>
    %46 = arith.mulf %41, %45 : vector<64x64xf32>
    %47 = arith.truncf %46 : vector<64x64xf32> to vector<64x64xbf16>
    %cst_20 = arith.constant dense<0.000000e+00> : vector<64x8xf32>
    %48 = tpu.matmul %47, %33, %cst_20 {dimension_numbers = #tpu.dot_dimension_numbers<[1], [0], [0], [1], [0, 0, 1, 1], [], []>} : vector<64x64xbf16>, vector<64x8xbf16>, vector<64x8xf32> -> vector<64x8xf32>
    %c0_21 = arith.constant 0 : index
    %c0_22 = arith.constant 0 : index
    %49 = vector.load %arg19[%c0_21, %c0_22] : memref<64x32xf32, #tpu.memory_space<vmem>>, vector<64x8xf32>
    tpu.vector_store %arg19[%c0_21, %c0_22], %48 {strides = array<i32>} : memref<64x32xf32, #tpu.memory_space<vmem>>, vector<64x8xf32>,
    %50 = vector.extract_strided_slice %30 {offsets = [0, 8], sizes = [64, 8], strides = [1, 1]} : vector<64x96xbf16> to vector<64x8xbf16>
    %51 = vector.extract_strided_slice %30 {offsets = [0, 40], sizes = [64, 8], strides = [1, 1]} : vector<64x96xbf16> to vector<64x8xbf16>
    %52 = vector.extract_strided_slice %30 {offsets = [0, 72], sizes = [64, 8], strides = [1, 1]} : vector<64x96xbf16> to vector<64x8xbf16>
    %cst_23 = arith.constant dense<0.000000e+00> : vector<64x64xf32>
    %53 = tpu.matmul %50, %51, %cst_23 {dimension_numbers = #tpu.dot_dimension_numbers<[1], [1], [0], [0], [0, 0, 1, 0], [], []>} : vector<64x8xbf16>, vector<64x8xbf16>, vector<64x64xf32> -> vector<64x64xf32>
    %cst_24 = arith.constant 0.353553385 : f32
    %54 = vector.broadcast %cst_24 : f32 to vector<64x64xf32>
    %55 = arith.mulf %53, %54 : vector<64x64xf32>
    %cst_25 = arith.constant dense<0xFF800000> : vector<64xf32>
    %56 = vector.multi_reduction <maximumf>, %55, %cst_25 [1] : vector<64x64xf32> to vector<64xf32>
    %57 = vector.shape_cast %56 : vector<64xf32> to vector<64x1xf32>
    %58 = vector.broadcast %57 : vector<64x1xf32> to vector<64x64xf32>
    %59 = arith.subf %55, %58 : vector<64x64xf32>
    %60 = math.exp %59 : vector<64x64xf32>
    %cst_26 = arith.constant dense<0.000000e+00> : vector<64xf32>
    %61 = vector.multi_reduction <add>, %60, %cst_26 [1] : vector<64x64xf32> to vector<64xf32>
    %62 = vector.shape_cast %61 : vector<64xf32> to vector<64x1xf32>
    %63 = tpu.reciprocal %62 {approx = true} : vector<64x1xf32> -> vector<64x1xf32>
    %64 = vector.broadcast %63 : vector<64x1xf32> to vector<64x64xf32>
    %65 = arith.mulf %60, %64 : vector<64x64xf32>
    %66 = arith.truncf %65 : vector<64x64xf32> to vector<64x64xbf16>
    %cst_27 = arith.constant dense<0.000000e+00> : vector<64x8xf32>
    %67 = tpu.matmul %66, %52, %cst_27 {dimension_numbers = #tpu.dot_dimension_numbers<[1], [0], [0], [1], [0, 0, 1, 1], [], []>} : vector<64x64xbf16>, vector<64x8xbf16>, vector<64x8xf32> -> vector<64x8xf32>
    %c0_28 = arith.constant 0 : index
    %c8 = arith.constant 8 : index
    %68 = vector.load %arg19[%c0_28, %c8] : memref<64x32xf32, #tpu.memory_space<vmem>>, vector<64x8xf32>
    tpu.vector_store %arg19[%c0_28, %c8], %67 {strides = array<i32>} : memref<64x32xf32, #tpu.memory_space<vmem>>, vector<64x8xf32>,
    %69 = vector.extract_strided_slice %30 {offsets = [0, 16], sizes = [64, 8], strides = [1, 1]} : vector<64x96xbf16> to vector<64x8xbf16>
    %70 = vector.extract_strided_slice %30 {offsets = [0, 48], sizes = [64, 8], strides = [1, 1]} : vector<64x96xbf16> to vector<64x8xbf16>
    %71 = vector.extract_strided_slice %30 {offsets = [0, 80], sizes = [64, 8], strides = [1, 1]} : vector<64x96xbf16> to vector<64x8xbf16>
    %cst_29 = arith.constant dense<0.000000e+00> : vector<64x64xf32>
    %72 = tpu.matmul %69, %70, %cst_29 {dimension_numbers = #tpu.dot_dimension_numbers<[1], [1], [0], [0], [0, 0, 1, 0], [], []>} : vector<64x8xbf16>, vector<64x8xbf16>, vector<64x64xf32> -> vector<64x64xf32>
    %cst_30 = arith.constant 0.353553385 : f32
    %73 = vector.broadcast %cst_30 : f32 to vector<64x64xf32>
    %74 = arith.mulf %72, %73 : vector<64x64xf32>
    %cst_31 = arith.constant dense<0xFF800000> : vector<64xf32>
    %75 = vector.multi_reduction <maximumf>, %74, %cst_31 [1] : vector<64x64xf32> to vector<64xf32>
    %76 = vector.shape_cast %75 : vector<64xf32> to vector<64x1xf32>
    %77 = vector.broadcast %76 : vector<64x1xf32> to vector<64x64xf32>
    %78 = arith.subf %74, %77 : vector<64x64xf32>
    %79 = math.exp %78 : vector<64x64xf32>
    %cst_32 = arith.constant dense<0.000000e+00> : vector<64xf32>
    %80 = vector.multi_reduction <add>, %79, %cst_32 [1] : vector<64x64xf32> to vector<64xf32>
    %81 = vector.shape_cast %80 : vector<64xf32> to vector<64x1xf32>
    %82 = tpu.reciprocal %81 {approx = true} : vector<64x1xf32> -> vector<64x1xf32>
    %83 = vector.broadcast %82 : vector<64x1xf32> to vector<64x64xf32>
    %84 = arith.mulf %79, %83 : vector<64x64xf32>
    %85 = arith.truncf %84 : vector<64x64xf32> to vector<64x64xbf16>
    %cst_33 = arith.constant dense<0.000000e+00> : vector<64x8xf32>
    %86 = tpu.matmul %85, %71, %cst_33 {dimension_numbers = #tpu.dot_dimension_numbers<[1], [0], [0], [1], [0, 0, 1, 1], [], []>} : vector<64x64xbf16>, vector<64x8xbf16>, vector<64x8xf32> -> vector<64x8xf32>
    %c0_34 = arith.constant 0 : index
    %c16 = arith.constant 16 : index
    %87 = vector.load %arg19[%c0_34, %c16] : memref<64x32xf32, #tpu.memory_space<vmem>>, vector<64x8xf32>
    tpu.vector_store %arg19[%c0_34, %c16], %86 {strides = array<i32>} : memref<64x32xf32, #tpu.memory_space<vmem>>, vector<64x8xf32>,
    %88 = vector.extract_strided_slice %30 {offsets = [0, 24], sizes = [64, 8], strides = [1, 1]} : vector<64x96xbf16> to vector<64x8xbf16>
    %89 = vector.extract_strided_slice %30 {offsets = [0, 56], sizes = [64, 8], strides = [1, 1]} : vector<64x96xbf16> to vector<64x8xbf16>
    %90 = vector.extract_strided_slice %30 {offsets = [0, 88], sizes = [64, 8], strides = [1, 1]} : vector<64x96xbf16> to vector<64x8xbf16>
    %cst_35 = arith.constant dense<0.000000e+00> : vector<64x64xf32>
    %91 = tpu.matmul %88, %89, %cst_35 {dimension_numbers = #tpu.dot_dimension_numbers<[1], [1], [0], [0], [0, 0, 1, 0], [], []>} : vector<64x8xbf16>, vector<64x8xbf16>, vector<64x64xf32> -> vector<64x64xf32>
    %cst_36 = arith.constant 0.353553385 : f32
    %92 = vector.broadcast %cst_36 : f32 to vector<64x64xf32>
    %93 = arith.mulf %91, %92 : vector<64x64xf32>
    %cst_37 = arith.constant dense<0xFF800000> : vector<64xf32>
    %94 = vector.multi_reduction <maximumf>, %93, %cst_37 [1] : vector<64x64xf32> to vector<64xf32>
    %95 = vector.shape_cast %94 : vector<64xf32> to vector<64x1xf32>
    %96 = vector.broadcast %95 : vector<64x1xf32> to vector<64x64xf32>
    %97 = arith.subf %93, %96 : vector<64x64xf32>
    %98 = math.exp %97 : vector<64x64xf32>
    %cst_38 = arith.constant dense<0.000000e+00> : vector<64xf32>
    %99 = vector.multi_reduction <add>, %98, %cst_38 [1] : vector<64x64xf32> to vector<64xf32>
    %100 = vector.shape_cast %99 : vector<64xf32> to vector<64x1xf32>
    %101 = tpu.reciprocal %100 {approx = true} : vector<64x1xf32> -> vector<64x1xf32>
    %102 = vector.broadcast %101 : vector<64x1xf32> to vector<64x64xf32>
    %103 = arith.mulf %98, %102 : vector<64x64xf32>
    %104 = arith.truncf %103 : vector<64x64xf32> to vector<64x64xbf16>
    %cst_39 = arith.constant dense<0.000000e+00> : vector<64x8xf32>
    %105 = tpu.matmul %104, %90, %cst_39 {dimension_numbers = #tpu.dot_dimension_numbers<[1], [0], [0], [1], [0, 0, 1, 1], [], []>} : vector<64x64xbf16>, vector<64x8xbf16>, vector<64x8xf32> -> vector<64x8xf32>
    %c0_40 = arith.constant 0 : index
    %c24 = arith.constant 24 : index
    %106 = vector.load %arg19[%c0_40, %c24] : memref<64x32xf32, #tpu.memory_space<vmem>>, vector<64x8xf32>
    tpu.vector_store %arg19[%c0_40, %c24], %105 {strides = array<i32>} : memref<64x32xf32, #tpu.memory_space<vmem>>, vector<64x8xf32>,
    %c0_41 = arith.constant 0 : index
    %c0_42 = arith.constant 0 : index
    %107 = vector.load %arg19[%c0_41, %c0_42] : memref<64x32xf32, #tpu.memory_space<vmem>>, vector<64x32xf32>
    %108 = arith.truncf %107 : vector<64x32xf32> to vector<64x32xbf16>
    %cst_43 = arith.constant dense<0.000000e+00> : vector<64x32xf32>
    %109 = tpu.matmul %108, %7, %cst_43 {dimension_numbers = #tpu.dot_dimension_numbers<[1], [0], [0], [1], [0, 0, 1, 1], [], []>} : vector<64x32xbf16>, vector<32x32xbf16>, vector<64x32xf32> -> vector<64x32xf32>
    %110 = arith.addf %1, %109 : vector<64x32xf32>
    %c0_44 = arith.constant 0 : index
    %c0_45 = arith.constant 0 : index
    %c0_46 = arith.constant 0 : index
    %111 = vector.load %arg5[%c0_44, %c0_45, %c0_46] : memref<2x32x64xbf16, #tpu.memory_space<vmem>>, vector<1x32x64xbf16>
    %112 = vector.shape_cast %111 : vector<1x32x64xbf16> to vector<32x64xbf16>
    %c0_47 = arith.constant 0 : index
    %c0_48 = arith.constant 0 : index
    %c0_49 = arith.constant 0 : index
    %113 = vector.load %arg6[%c0_47, %c0_48, %c0_49] : memref<2x1x64xf32, #tpu.memory_space<vmem>>, vector<1x1x64xf32>
    %114 = vector.shape_cast %113 : vector<1x1x64xf32> to vector<1x64xf32>
    %c0_50 = arith.constant 0 : index
    %c0_51 = arith.constant 0 : index
    %c0_52 = arith.constant 0 : index
    %115 = vector.load %arg7[%c0_50, %c0_51, %c0_52] : memref<2x64x32xbf16, #tpu.memory_space<vmem>>, vector<1x64x32xbf16>
    %116 = vector.shape_cast %115 : vector<1x64x32xbf16> to vector<64x32xbf16>
    %c0_53 = arith.constant 0 : index
    %c0_54 = arith.constant 0 : index
    %c0_55 = arith.constant 0 : index
    %117 = vector.load %arg8[%c0_53, %c0_54, %c0_55] : memref<2x1x32xf32, #tpu.memory_space<vmem>>, vector<1x1x32xf32>
    %118 = vector.shape_cast %117 : vector<1x1x32xf32> to vector<1x32xf32>
    %cst_56 = arith.constant dense<0.000000e+00> : vector<64xf32>
    %119 = vector.multi_reduction <add>, %110, %cst_56 [1] : vector<64x32xf32> to vector<64xf32>
    %120 = vector.shape_cast %119 : vector<64xf32> to vector<64x1xf32>
    %cst_57 = arith.constant 3.200000e+01 : f32
    %121 = vector.broadcast %cst_57 : f32 to vector<64x1xf32>
    %122 = arith.divf %120, %121 : vector<64x1xf32>
    %123 = vector.broadcast %122 : vector<64x1xf32> to vector<64x32xf32>
    %124 = arith.subf %110, %123 : vector<64x32xf32>
    %125 = arith.mulf %124, %124 : vector<64x32xf32>
    %cst_58 = arith.constant dense<0.000000e+00> : vector<64xf32>
    %126 = vector.multi_reduction <add>, %125, %cst_58 [1] : vector<64x32xf32> to vector<64xf32>
    %127 = vector.shape_cast %126 : vector<64xf32> to vector<64x1xf32>
    %cst_59 = arith.constant 3.200000e+01 : f32
    %128 = vector.broadcast %cst_59 : f32 to vector<64x1xf32>
    %129 = arith.divf %127, %128 : vector<64x1xf32>
    %130 = vector.broadcast %122 : vector<64x1xf32> to vector<64x32xf32>
    %131 = arith.subf %110, %130 : vector<64x32xf32>
    %cst_60 = arith.constant 9.99999974E-6 : f32
    %132 = vector.broadcast %cst_60 : f32 to vector<64x1xf32>
    %133 = arith.addf %129, %132 : vector<64x1xf32>
    %134 = math.rsqrt %133 : vector<64x1xf32>
    %135 = vector.broadcast %134 : vector<64x1xf32> to vector<64x32xf32>
    %136 = arith.mulf %131, %135 : vector<64x32xf32>
    %137 = arith.truncf %136 : vector<64x32xf32> to vector<64x32xbf16>
    %cst_61 = arith.constant dense<0.000000e+00> : vector<64x64xf32>
    %138 = tpu.matmul %137, %112, %cst_61 {dimension_numbers = #tpu.dot_dimension_numbers<[1], [0], [0], [1], [0, 0, 1, 1], [], []>} : vector<64x32xbf16>, vector<32x64xbf16>, vector<64x64xf32> -> vector<64x64xf32>
    %139 = vector.broadcast %114 : vector<1x64xf32> to vector<64x64xf32>
    %140 = arith.addf %138, %139 : vector<64x64xf32>
    %cst_62 = arith.constant 5.000000e-01 : f32
    %141 = vector.broadcast %cst_62 : f32 to vector<64x64xf32>
    %142 = arith.mulf %141, %140 : vector<64x64xf32>
    %cst_63 = arith.constant 0.707106769 : f32
    %143 = vector.broadcast %cst_63 : f32 to vector<64x64xf32>
    %144 = arith.mulf %140, %143 : vector<64x64xf32>
    %145 = math.erf %144 : vector<64x64xf32>
    %cst_64 = arith.constant 1.000000e+00 : f32
    %146 = vector.broadcast %cst_64 : f32 to vector<64x64xf32>
    %147 = arith.addf %146, %145 : vector<64x64xf32>
    %148 = arith.mulf %142, %147 : vector<64x64xf32>
    %149 = arith.truncf %148 : vector<64x64xf32> to vector<64x64xbf16>
    %cst_65 = arith.constant dense<0.000000e+00> : vector<64x32xf32>
    %150 = tpu.matmul %149, %116, %cst_65 {dimension_numbers = #tpu.dot_dimension_numbers<[1], [0], [0], [1], [0, 0, 1, 1], [], []>} : vector<64x64xbf16>, vector<64x32xbf16>, vector<64x32xf32> -> vector<64x32xf32>
    %151 = vector.broadcast %118 : vector<1x32xf32> to vector<64x32xf32>
    %152 = arith.addf %150, %151 : vector<64x32xf32>
    %153 = arith.addf %110, %152 : vector<64x32xf32>
    %c1 = arith.constant 1 : index
    %c0_66 = arith.constant 0 : index
    %c0_67 = arith.constant 0 : index
    %154 = vector.load %arg2[%c1, %c0_66, %c0_67] : memref<2x32x96xbf16, #tpu.memory_space<vmem>>, vector<1x32x96xbf16>
    %155 = vector.shape_cast %154 : vector<1x32x96xbf16> to vector<32x96xbf16>
    %c1_68 = arith.constant 1 : index
    %c0_69 = arith.constant 0 : index
    %c0_70 = arith.constant 0 : index
    %156 = vector.load %arg3[%c1_68, %c0_69, %c0_70] : memref<2x1x96xf32, #tpu.memory_space<vmem>>, vector<1x1x96xf32>
    %157 = vector.shape_cast %156 : vector<1x1x96xf32> to vector<1x96xf32>
    %c1_71 = arith.constant 1 : index
    %c0_72 = arith.constant 0 : index
    %c0_73 = arith.constant 0 : index
    %158 = vector.load %arg4[%c1_71, %c0_72, %c0_73] : memref<2x32x32xbf16, #tpu.memory_space<vmem>>, vector<1x32x32xbf16>
    %159 = vector.shape_cast %158 : vector<1x32x32xbf16> to vector<32x32xbf16>
    %cst_74 = arith.constant dense<0.000000e+00> : vector<64xf32>
    %160 = vector.multi_reduction <add>, %153, %cst_74 [1] : vector<64x32xf32> to vector<64xf32>
    %161 = vector.shape_cast %160 : vector<64xf32> to vector<64x1xf32>
    %cst_75 = arith.constant 3.200000e+01 : f32
    %162 = vector.broadcast %cst_75 : f32 to vector<64x1xf32>
    %163 = arith.divf %161, %162 : vector<64x1xf32>
    %164 = vector.broadcast %163 : vector<64x1xf32> to vector<64x32xf32>
    %165 = arith.subf %153, %164 : vector<64x32xf32>
    %166 = arith.mulf %165, %165 : vector<64x32xf32>
    %cst_76 = arith.constant dense<0.000000e+00> : vector<64xf32>
    %167 = vector.multi_reduction <add>, %166, %cst_76 [1] : vector<64x32xf32> to vector<64xf32>
    %168 = vector.shape_cast %167 : vector<64xf32> to vector<64x1xf32>
    %cst_77 = arith.constant 3.200000e+01 : f32
    %169 = vector.broadcast %cst_77 : f32 to vector<64x1xf32>
    %170 = arith.divf %168, %169 : vector<64x1xf32>
    %171 = vector.broadcast %163 : vector<64x1xf32> to vector<64x32xf32>
    %172 = arith.subf %153, %171 : vector<64x32xf32>
    %cst_78 = arith.constant 9.99999974E-6 : f32
    %173 = vector.broadcast %cst_78 : f32 to vector<64x1xf32>
    %174 = arith.addf %170, %173 : vector<64x1xf32>
    %175 = math.rsqrt %174 : vector<64x1xf32>
    %176 = vector.broadcast %175 : vector<64x1xf32> to vector<64x32xf32>
    %177 = arith.mulf %172, %176 : vector<64x32xf32>
    %178 = arith.truncf %177 : vector<64x32xf32> to vector<64x32xbf16>
    %cst_79 = arith.constant dense<0.000000e+00> : vector<64x96xf32>
    %179 = tpu.matmul %178, %155, %cst_79 {dimension_numbers = #tpu.dot_dimension_numbers<[1], [0], [0], [1], [0, 0, 1, 1], [], []>} : vector<64x32xbf16>, vector<32x96xbf16>, vector<64x96xf32> -> vector<64x96xf32>
    %180 = vector.broadcast %157 : vector<1x96xf32> to vector<64x96xf32>
    %181 = arith.addf %179, %180 : vector<64x96xf32>
    %182 = arith.truncf %181 : vector<64x96xf32> to vector<64x96xbf16>
    %183 = vector.extract_strided_slice %182 {offsets = [0, 0], sizes = [64, 8], strides = [1, 1]} : vector<64x96xbf16> to vector<64x8xbf16>
    %184 = vector.extract_strided_slice %182 {offsets = [0, 32], sizes = [64, 8], strides = [1, 1]} : vector<64x96xbf16> to vector<64x8xbf16>
    %185 = vector.extract_strided_slice %182 {offsets = [0, 64], sizes = [64, 8], strides = [1, 1]} : vector<64x96xbf16> to vector<64x8xbf16>
    %cst_80 = arith.constant dense<0.000000e+00> : vector<64x64xf32>
    %186 = tpu.matmul %183, %184, %cst_80 {dimension_numbers = #tpu.dot_dimension_numbers<[1], [1], [0], [0], [0, 0, 1, 0], [], []>} : vector<64x8xbf16>, vector<64x8xbf16>, vector<64x64xf32> -> vector<64x64xf32>
    %cst_81 = arith.constant 0.353553385 : f32
    %187 = vector.broadcast %cst_81 : f32 to vector<64x64xf32>
    %188 = arith.mulf %186, %187 : vector<64x64xf32>
    %cst_82 = arith.constant dense<0xFF800000> : vector<64xf32>
    %189 = vector.multi_reduction <maximumf>, %188, %cst_82 [1] : vector<64x64xf32> to vector<64xf32>
    %190 = vector.shape_cast %189 : vector<64xf32> to vector<64x1xf32>
    %191 = vector.broadcast %190 : vector<64x1xf32> to vector<64x64xf32>
    %192 = arith.subf %188, %191 : vector<64x64xf32>
    %193 = math.exp %192 : vector<64x64xf32>
    %cst_83 = arith.constant dense<0.000000e+00> : vector<64xf32>
    %194 = vector.multi_reduction <add>, %193, %cst_83 [1] : vector<64x64xf32> to vector<64xf32>
    %195 = vector.shape_cast %194 : vector<64xf32> to vector<64x1xf32>
    %196 = tpu.reciprocal %195 {approx = true} : vector<64x1xf32> -> vector<64x1xf32>
    %197 = vector.broadcast %196 : vector<64x1xf32> to vector<64x64xf32>
    %198 = arith.mulf %193, %197 : vector<64x64xf32>
    %199 = arith.truncf %198 : vector<64x64xf32> to vector<64x64xbf16>
    %cst_84 = arith.constant dense<0.000000e+00> : vector<64x8xf32>
    %200 = tpu.matmul %199, %185, %cst_84 {dimension_numbers = #tpu.dot_dimension_numbers<[1], [0], [0], [1], [0, 0, 1, 1], [], []>} : vector<64x64xbf16>, vector<64x8xbf16>, vector<64x8xf32> -> vector<64x8xf32>
    %c0_85 = arith.constant 0 : index
    %c0_86 = arith.constant 0 : index
    %201 = vector.load %arg19[%c0_85, %c0_86] : memref<64x32xf32, #tpu.memory_space<vmem>>, vector<64x8xf32>
    tpu.vector_store %arg19[%c0_85, %c0_86], %200 {strides = array<i32>} : memref<64x32xf32, #tpu.memory_space<vmem>>, vector<64x8xf32>,
    %202 = vector.extract_strided_slice %182 {offsets = [0, 8], sizes = [64, 8], strides = [1, 1]} : vector<64x96xbf16> to vector<64x8xbf16>
    %203 = vector.extract_strided_slice %182 {offsets = [0, 40], sizes = [64, 8], strides = [1, 1]} : vector<64x96xbf16> to vector<64x8xbf16>
    %204 = vector.extract_strided_slice %182 {offsets = [0, 72], sizes = [64, 8], strides = [1, 1]} : vector<64x96xbf16> to vector<64x8xbf16>
    %cst_87 = arith.constant dense<0.000000e+00> : vector<64x64xf32>
    %205 = tpu.matmul %202, %203, %cst_87 {dimension_numbers = #tpu.dot_dimension_numbers<[1], [1], [0], [0], [0, 0, 1, 0], [], []>} : vector<64x8xbf16>, vector<64x8xbf16>, vector<64x64xf32> -> vector<64x64xf32>
    %cst_88 = arith.constant 0.353553385 : f32
    %206 = vector.broadcast %cst_88 : f32 to vector<64x64xf32>
    %207 = arith.mulf %205, %206 : vector<64x64xf32>
    %cst_89 = arith.constant dense<0xFF800000> : vector<64xf32>
    %208 = vector.multi_reduction <maximumf>, %207, %cst_89 [1] : vector<64x64xf32> to vector<64xf32>
    %209 = vector.shape_cast %208 : vector<64xf32> to vector<64x1xf32>
    %210 = vector.broadcast %209 : vector<64x1xf32> to vector<64x64xf32>
    %211 = arith.subf %207, %210 : vector<64x64xf32>
    %212 = math.exp %211 : vector<64x64xf32>
    %cst_90 = arith.constant dense<0.000000e+00> : vector<64xf32>
    %213 = vector.multi_reduction <add>, %212, %cst_90 [1] : vector<64x64xf32> to vector<64xf32>
    %214 = vector.shape_cast %213 : vector<64xf32> to vector<64x1xf32>
    %215 = tpu.reciprocal %214 {approx = true} : vector<64x1xf32> -> vector<64x1xf32>
    %216 = vector.broadcast %215 : vector<64x1xf32> to vector<64x64xf32>
    %217 = arith.mulf %212, %216 : vector<64x64xf32>
    %218 = arith.truncf %217 : vector<64x64xf32> to vector<64x64xbf16>
    %cst_91 = arith.constant dense<0.000000e+00> : vector<64x8xf32>
    %219 = tpu.matmul %218, %204, %cst_91 {dimension_numbers = #tpu.dot_dimension_numbers<[1], [0], [0], [1], [0, 0, 1, 1], [], []>} : vector<64x64xbf16>, vector<64x8xbf16>, vector<64x8xf32> -> vector<64x8xf32>
    %c0_92 = arith.constant 0 : index
    %c8_93 = arith.constant 8 : index
    %220 = vector.load %arg19[%c0_92, %c8_93] : memref<64x32xf32, #tpu.memory_space<vmem>>, vector<64x8xf32>
    tpu.vector_store %arg19[%c0_92, %c8_93], %219 {strides = array<i32>} : memref<64x32xf32, #tpu.memory_space<vmem>>, vector<64x8xf32>,
    %221 = vector.extract_strided_slice %182 {offsets = [0, 16], sizes = [64, 8], strides = [1, 1]} : vector<64x96xbf16> to vector<64x8xbf16>
    %222 = vector.extract_strided_slice %182 {offsets = [0, 48], sizes = [64, 8], strides = [1, 1]} : vector<64x96xbf16> to vector<64x8xbf16>
    %223 = vector.extract_strided_slice %182 {offsets = [0, 80], sizes = [64, 8], strides = [1, 1]} : vector<64x96xbf16> to vector<64x8xbf16>
    %cst_94 = arith.constant dense<0.000000e+00> : vector<64x64xf32>
    %224 = tpu.matmul %221, %222, %cst_94 {dimension_numbers = #tpu.dot_dimension_numbers<[1], [1], [0], [0], [0, 0, 1, 0], [], []>} : vector<64x8xbf16>, vector<64x8xbf16>, vector<64x64xf32> -> vector<64x64xf32>
    %cst_95 = arith.constant 0.353553385 : f32
    %225 = vector.broadcast %cst_95 : f32 to vector<64x64xf32>
    %226 = arith.mulf %224, %225 : vector<64x64xf32>
    %cst_96 = arith.constant dense<0xFF800000> : vector<64xf32>
    %227 = vector.multi_reduction <maximumf>, %226, %cst_96 [1] : vector<64x64xf32> to vector<64xf32>
    %228 = vector.shape_cast %227 : vector<64xf32> to vector<64x1xf32>
    %229 = vector.broadcast %228 : vector<64x1xf32> to vector<64x64xf32>
    %230 = arith.subf %226, %229 : vector<64x64xf32>
    %231 = math.exp %230 : vector<64x64xf32>
    %cst_97 = arith.constant dense<0.000000e+00> : vector<64xf32>
    %232 = vector.multi_reduction <add>, %231, %cst_97 [1] : vector<64x64xf32> to vector<64xf32>
    %233 = vector.shape_cast %232 : vector<64xf32> to vector<64x1xf32>
    %234 = tpu.reciprocal %233 {approx = true} : vector<64x1xf32> -> vector<64x1xf32>
    %235 = vector.broadcast %234 : vector<64x1xf32> to vector<64x64xf32>
    %236 = arith.mulf %231, %235 : vector<64x64xf32>
    %237 = arith.truncf %236 : vector<64x64xf32> to vector<64x64xbf16>
    %cst_98 = arith.constant dense<0.000000e+00> : vector<64x8xf32>
    %238 = tpu.matmul %237, %223, %cst_98 {dimension_numbers = #tpu.dot_dimension_numbers<[1], [0], [0], [1], [0, 0, 1, 1], [], []>} : vector<64x64xbf16>, vector<64x8xbf16>, vector<64x8xf32> -> vector<64x8xf32>
    %c0_99 = arith.constant 0 : index
    %c16_100 = arith.constant 16 : index
    %239 = vector.load %arg19[%c0_99, %c16_100] : memref<64x32xf32, #tpu.memory_space<vmem>>, vector<64x8xf32>
    tpu.vector_store %arg19[%c0_99, %c16_100], %238 {strides = array<i32>} : memref<64x32xf32, #tpu.memory_space<vmem>>, vector<64x8xf32>,
    %240 = vector.extract_strided_slice %182 {offsets = [0, 24], sizes = [64, 8], strides = [1, 1]} : vector<64x96xbf16> to vector<64x8xbf16>
    %241 = vector.extract_strided_slice %182 {offsets = [0, 56], sizes = [64, 8], strides = [1, 1]} : vector<64x96xbf16> to vector<64x8xbf16>
    %242 = vector.extract_strided_slice %182 {offsets = [0, 88], sizes = [64, 8], strides = [1, 1]} : vector<64x96xbf16> to vector<64x8xbf16>
    %cst_101 = arith.constant dense<0.000000e+00> : vector<64x64xf32>
    %243 = tpu.matmul %240, %241, %cst_101 {dimension_numbers = #tpu.dot_dimension_numbers<[1], [1], [0], [0], [0, 0, 1, 0], [], []>} : vector<64x8xbf16>, vector<64x8xbf16>, vector<64x64xf32> -> vector<64x64xf32>
    %cst_102 = arith.constant 0.353553385 : f32
    %244 = vector.broadcast %cst_102 : f32 to vector<64x64xf32>
    %245 = arith.mulf %243, %244 : vector<64x64xf32>
    %cst_103 = arith.constant dense<0xFF800000> : vector<64xf32>
    %246 = vector.multi_reduction <maximumf>, %245, %cst_103 [1] : vector<64x64xf32> to vector<64xf32>
    %247 = vector.shape_cast %246 : vector<64xf32> to vector<64x1xf32>
    %248 = vector.broadcast %247 : vector<64x1xf32> to vector<64x64xf32>
    %249 = arith.subf %245, %248 : vector<64x64xf32>
    %250 = math.exp %249 : vector<64x64xf32>
    %cst_104 = arith.constant dense<0.000000e+00> : vector<64xf32>
    %251 = vector.multi_reduction <add>, %250, %cst_104 [1] : vector<64x64xf32> to vector<64xf32>
    %252 = vector.shape_cast %251 : vector<64xf32> to vector<64x1xf32>
    %253 = tpu.reciprocal %252 {approx = true} : vector<64x1xf32> -> vector<64x1xf32>
    %254 = vector.broadcast %253 : vector<64x1xf32> to vector<64x64xf32>
    %255 = arith.mulf %250, %254 : vector<64x64xf32>
    %256 = arith.truncf %255 : vector<64x64xf32> to vector<64x64xbf16>
    %cst_105 = arith.constant dense<0.000000e+00> : vector<64x8xf32>
    %257 = tpu.matmul %256, %242, %cst_105 {dimension_numbers = #tpu.dot_dimension_numbers<[1], [0], [0], [1], [0, 0, 1, 1], [], []>} : vector<64x64xbf16>, vector<64x8xbf16>, vector<64x8xf32> -> vector<64x8xf32>
    %c0_106 = arith.constant 0 : index
    %c24_107 = arith.constant 24 : index
    %258 = vector.load %arg19[%c0_106, %c24_107] : memref<64x32xf32, #tpu.memory_space<vmem>>, vector<64x8xf32>
    tpu.vector_store %arg19[%c0_106, %c24_107], %257 {strides = array<i32>} : memref<64x32xf32, #tpu.memory_space<vmem>>, vector<64x8xf32>,
    %c0_108 = arith.constant 0 : index
    %c0_109 = arith.constant 0 : index
    %259 = vector.load %arg19[%c0_108, %c0_109] : memref<64x32xf32, #tpu.memory_space<vmem>>, vector<64x32xf32>
    %260 = arith.truncf %259 : vector<64x32xf32> to vector<64x32xbf16>
    %cst_110 = arith.constant dense<0.000000e+00> : vector<64x32xf32>
    %261 = tpu.matmul %260, %159, %cst_110 {dimension_numbers = #tpu.dot_dimension_numbers<[1], [0], [0], [1], [0, 0, 1, 1], [], []>} : vector<64x32xbf16>, vector<32x32xbf16>, vector<64x32xf32> -> vector<64x32xf32>
    %262 = arith.addf %153, %261 : vector<64x32xf32>
    %c1_111 = arith.constant 1 : index
    %c0_112 = arith.constant 0 : index
    %c0_113 = arith.constant 0 : index
    %263 = vector.load %arg5[%c1_111, %c0_112, %c0_113] : memref<2x32x64xbf16, #tpu.memory_space<vmem>>, vector<1x32x64xbf16>
    %264 = vector.shape_cast %263 : vector<1x32x64xbf16> to vector<32x64xbf16>
    %c1_114 = arith.constant 1 : index
    %c0_115 = arith.constant 0 : index
    %c0_116 = arith.constant 0 : index
    %265 = vector.load %arg6[%c1_114, %c0_115, %c0_116] : memref<2x1x64xf32, #tpu.memory_space<vmem>>, vector<1x1x64xf32>
    %266 = vector.shape_cast %265 : vector<1x1x64xf32> to vector<1x64xf32>
    %c1_117 = arith.constant 1 : index
    %c0_118 = arith.constant 0 : index
    %c0_119 = arith.constant 0 : index
    %267 = vector.load %arg7[%c1_117, %c0_118, %c0_119] : memref<2x64x32xbf16, #tpu.memory_space<vmem>>, vector<1x64x32xbf16>
    %268 = vector.shape_cast %267 : vector<1x64x32xbf16> to vector<64x32xbf16>
    %c1_120 = arith.constant 1 : index
    %c0_121 = arith.constant 0 : index
    %c0_122 = arith.constant 0 : index
    %269 = vector.load %arg8[%c1_120, %c0_121, %c0_122] : memref<2x1x32xf32, #tpu.memory_space<vmem>>, vector<1x1x32xf32>
    %270 = vector.shape_cast %269 : vector<1x1x32xf32> to vector<1x32xf32>
    %cst_123 = arith.constant dense<0.000000e+00> : vector<64xf32>
    %271 = vector.multi_reduction <add>, %262, %cst_123 [1] : vector<64x32xf32> to vector<64xf32>
    %272 = vector.shape_cast %271 : vector<64xf32> to vector<64x1xf32>
    %cst_124 = arith.constant 3.200000e+01 : f32
    %273 = vector.broadcast %cst_124 : f32 to vector<64x1xf32>
    %274 = arith.divf %272, %273 : vector<64x1xf32>
    %275 = vector.broadcast %274 : vector<64x1xf32> to vector<64x32xf32>
    %276 = arith.subf %262, %275 : vector<64x32xf32>
    %277 = arith.mulf %276, %276 : vector<64x32xf32>
    %cst_125 = arith.constant dense<0.000000e+00> : vector<64xf32>
    %278 = vector.multi_reduction <add>, %277, %cst_125 [1] : vector<64x32xf32> to vector<64xf32>
    %279 = vector.shape_cast %278 : vector<64xf32> to vector<64x1xf32>
    %cst_126 = arith.constant 3.200000e+01 : f32
    %280 = vector.broadcast %cst_126 : f32 to vector<64x1xf32>
    %281 = arith.divf %279, %280 : vector<64x1xf32>
    %282 = vector.broadcast %274 : vector<64x1xf32> to vector<64x32xf32>
    %283 = arith.subf %262, %282 : vector<64x32xf32>
    %cst_127 = arith.constant 9.99999974E-6 : f32
    %284 = vector.broadcast %cst_127 : f32 to vector<64x1xf32>
    %285 = arith.addf %281, %284 : vector<64x1xf32>
    %286 = math.rsqrt %285 : vector<64x1xf32>
    %287 = vector.broadcast %286 : vector<64x1xf32> to vector<64x32xf32>
    %288 = arith.mulf %283, %287 : vector<64x32xf32>
    %289 = arith.truncf %288 : vector<64x32xf32> to vector<64x32xbf16>
    %cst_128 = arith.constant dense<0.000000e+00> : vector<64x64xf32>
    %290 = tpu.matmul %289, %264, %cst_128 {dimension_numbers = #tpu.dot_dimension_numbers<[1], [0], [0], [1], [0, 0, 1, 1], [], []>} : vector<64x32xbf16>, vector<32x64xbf16>, vector<64x64xf32> -> vector<64x64xf32>
    %291 = vector.broadcast %266 : vector<1x64xf32> to vector<64x64xf32>
    %292 = arith.addf %290, %291 : vector<64x64xf32>
    %cst_129 = arith.constant 5.000000e-01 : f32
    %293 = vector.broadcast %cst_129 : f32 to vector<64x64xf32>
    %294 = arith.mulf %293, %292 : vector<64x64xf32>
    %cst_130 = arith.constant 0.707106769 : f32
    %295 = vector.broadcast %cst_130 : f32 to vector<64x64xf32>
    %296 = arith.mulf %292, %295 : vector<64x64xf32>
    %297 = math.erf %296 : vector<64x64xf32>
    %cst_131 = arith.constant 1.000000e+00 : f32
    %298 = vector.broadcast %cst_131 : f32 to vector<64x64xf32>
    %299 = arith.addf %298, %297 : vector<64x64xf32>
    %300 = arith.mulf %294, %299 : vector<64x64xf32>
    %301 = arith.truncf %300 : vector<64x64xf32> to vector<64x64xbf16>
    %cst_132 = arith.constant dense<0.000000e+00> : vector<64x32xf32>
    %302 = tpu.matmul %301, %268, %cst_132 {dimension_numbers = #tpu.dot_dimension_numbers<[1], [0], [0], [1], [0, 0, 1, 1], [], []>} : vector<64x64xbf16>, vector<64x32xbf16>, vector<64x32xf32> -> vector<64x32xf32>
    %303 = vector.broadcast %270 : vector<1x32xf32> to vector<64x32xf32>
    %304 = arith.addf %302, %303 : vector<64x32xf32>
    %305 = arith.addf %262, %304 : vector<64x32xf32>
    %c0_133 = arith.constant 0 : index
    %c0_134 = arith.constant 0 : index
    %306 = vector.load %arg16[%c0_133, %c0_134] : memref<16x64xbf16, #tpu.memory_space<vmem>>, vector<16x64xbf16>
    %c0_135 = arith.constant 0 : index
    %c0_136 = arith.constant 0 : index
    %307 = vector.load %arg17[%c0_135, %c0_136] : memref<16x1xf32, #tpu.memory_space<vmem>>, vector<16x1xf32>
    %cst_137 = arith.constant dense<0.000000e+00> : vector<32xf32>
    %308 = vector.multi_reduction <add>, %153, %cst_137 [0] : vector<64x32xf32> to vector<32xf32>
    %309 = vector.shape_cast %308 : vector<32xf32> to vector<1x32xf32>
    %cst_138 = arith.constant 6.400000e+01 : f32
    %310 = vector.broadcast %cst_138 : f32 to vector<1x32xf32>
    %311 = arith.divf %309, %310 : vector<1x32xf32>
    %312 = vector.broadcast %311 : vector<1x32xf32> to vector<64x32xf32>
    %313 = arith.subf %153, %312 : vector<64x32xf32>
    %314 = arith.mulf %313, %313 : vector<64x32xf32>
    %cst_139 = arith.constant dense<0.000000e+00> : vector<32xf32>
    %315 = vector.multi_reduction <add>, %314, %cst_139 [0] : vector<64x32xf32> to vector<32xf32>
    %316 = vector.shape_cast %315 : vector<32xf32> to vector<1x32xf32>
    %cst_140 = arith.constant 6.400000e+01 : f32
    %317 = vector.broadcast %cst_140 : f32 to vector<1x32xf32>
    %318 = arith.divf %316, %317 : vector<1x32xf32>
    %319 = vector.broadcast %311 : vector<1x32xf32> to vector<64x32xf32>
    %320 = arith.subf %153, %319 : vector<64x32xf32>
    %cst_141 = arith.constant 9.99999974E-6 : f32
    %321 = vector.broadcast %cst_141 : f32 to vector<1x32xf32>
    %322 = arith.addf %318, %321 : vector<1x32xf32>
    %323 = math.rsqrt %322 : vector<1x32xf32>
    %324 = vector.broadcast %323 : vector<1x32xf32> to vector<64x32xf32>
    %325 = arith.mulf %320, %324 : vector<64x32xf32>
    %326 = arith.truncf %325 : vector<64x32xf32> to vector<64x32xbf16>
    %cst_142 = arith.constant dense<0.000000e+00> : vector<16x32xf32>
    %327 = tpu.matmul %306, %326, %cst_142 {dimension_numbers = #tpu.dot_dimension_numbers<[1], [0], [0], [1], [0, 0, 1, 1], [], []>} : vector<16x64xbf16>, vector<64x32xbf16>, vector<16x32xf32> -> vector<16x32xf32>
    %328 = vector.broadcast %307 : vector<16x1xf32> to vector<16x32xf32>
    %329 = arith.addf %327, %328 : vector<16x32xf32>
    %c0_143 = arith.constant 0 : index
    %c0_144 = arith.constant 0 : index
    %c0_145 = arith.constant 0 : index
    %330 = vector.load %arg9[%c0_143, %c0_144, %c0_145] : memref<2x32x96xbf16, #tpu.memory_space<vmem>>, vector<1x32x96xbf16>
    %331 = vector.shape_cast %330 : vector<1x32x96xbf16> to vector<32x96xbf16>
    %c0_146 = arith.constant 0 : index
    %c0_147 = arith.constant 0 : index
    %c0_148 = arith.constant 0 : index
    %332 = vector.load %arg10[%c0_146, %c0_147, %c0_148] : memref<2x1x96xf32, #tpu.memory_space<vmem>>, vector<1x1x96xf32>
    %333 = vector.shape_cast %332 : vector<1x1x96xf32> to vector<1x96xf32>
    %c0_149 = arith.constant 0 : index
    %c0_150 = arith.constant 0 : index
    %c0_151 = arith.constant 0 : index
    %334 = vector.load %arg11[%c0_149, %c0_150, %c0_151] : memref<2x32x32xbf16, #tpu.memory_space<vmem>>, vector<1x32x32xbf16>
    %335 = vector.shape_cast %334 : vector<1x32x32xbf16> to vector<32x32xbf16>
    %cst_152 = arith.constant dense<0.000000e+00> : vector<16xf32>
    %336 = vector.multi_reduction <add>, %329, %cst_152 [1] : vector<16x32xf32> to vector<16xf32>
    %337 = vector.shape_cast %336 : vector<16xf32> to vector<16x1xf32>
    %cst_153 = arith.constant 3.200000e+01 : f32
    %338 = vector.broadcast %cst_153 : f32 to vector<16x1xf32>
    %339 = arith.divf %337, %338 : vector<16x1xf32>
    %340 = vector.broadcast %339 : vector<16x1xf32> to vector<16x32xf32>
    %341 = arith.subf %329, %340 : vector<16x32xf32>
    %342 = arith.mulf %341, %341 : vector<16x32xf32>
    %cst_154 = arith.constant dense<0.000000e+00> : vector<16xf32>
    %343 = vector.multi_reduction <add>, %342, %cst_154 [1] : vector<16x32xf32> to vector<16xf32>
    %344 = vector.shape_cast %343 : vector<16xf32> to vector<16x1xf32>
    %cst_155 = arith.constant 3.200000e+01 : f32
    %345 = vector.broadcast %cst_155 : f32 to vector<16x1xf32>
    %346 = arith.divf %344, %345 : vector<16x1xf32>
    %347 = vector.broadcast %339 : vector<16x1xf32> to vector<16x32xf32>
    %348 = arith.subf %329, %347 : vector<16x32xf32>
    %cst_156 = arith.constant 9.99999974E-6 : f32
    %349 = vector.broadcast %cst_156 : f32 to vector<16x1xf32>
    %350 = arith.addf %346, %349 : vector<16x1xf32>
    %351 = math.rsqrt %350 : vector<16x1xf32>
    %352 = vector.broadcast %351 : vector<16x1xf32> to vector<16x32xf32>
    %353 = arith.mulf %348, %352 : vector<16x32xf32>
    %354 = arith.truncf %353 : vector<16x32xf32> to vector<16x32xbf16>
    %cst_157 = arith.constant dense<0.000000e+00> : vector<16x96xf32>
    %355 = tpu.matmul %354, %331, %cst_157 {dimension_numbers = #tpu.dot_dimension_numbers<[1], [0], [0], [1], [0, 0, 1, 1], [], []>} : vector<16x32xbf16>, vector<32x96xbf16>, vector<16x96xf32> -> vector<16x96xf32>
    %356 = vector.broadcast %333 : vector<1x96xf32> to vector<16x96xf32>
    %357 = arith.addf %355, %356 : vector<16x96xf32>
    %358 = arith.truncf %357 : vector<16x96xf32> to vector<16x96xbf16>
    %359 = vector.extract_strided_slice %358 {offsets = [0, 0], sizes = [16, 8], strides = [1, 1]} : vector<16x96xbf16> to vector<16x8xbf16>
    %360 = vector.extract_strided_slice %358 {offsets = [0, 32], sizes = [16, 8], strides = [1, 1]} : vector<16x96xbf16> to vector<16x8xbf16>
    %361 = vector.extract_strided_slice %358 {offsets = [0, 64], sizes = [16, 8], strides = [1, 1]} : vector<16x96xbf16> to vector<16x8xbf16>
    %cst_158 = arith.constant dense<0.000000e+00> : vector<16x16xf32>
    %362 = tpu.matmul %359, %360, %cst_158 {dimension_numbers = #tpu.dot_dimension_numbers<[1], [1], [0], [0], [0, 0, 1, 0], [], []>} : vector<16x8xbf16>, vector<16x8xbf16>, vector<16x16xf32> -> vector<16x16xf32>
    %cst_159 = arith.constant 0.353553385 : f32
    %363 = vector.broadcast %cst_159 : f32 to vector<16x16xf32>
    %364 = arith.mulf %362, %363 : vector<16x16xf32>
    %cst_160 = arith.constant dense<0xFF800000> : vector<16xf32>
    %365 = vector.multi_reduction <maximumf>, %364, %cst_160 [1] : vector<16x16xf32> to vector<16xf32>
    %366 = vector.shape_cast %365 : vector<16xf32> to vector<16x1xf32>
    %367 = vector.broadcast %366 : vector<16x1xf32> to vector<16x16xf32>
    %368 = arith.subf %364, %367 : vector<16x16xf32>
    %369 = math.exp %368 : vector<16x16xf32>
    %cst_161 = arith.constant dense<0.000000e+00> : vector<16xf32>
    %370 = vector.multi_reduction <add>, %369, %cst_161 [1] : vector<16x16xf32> to vector<16xf32>
    %371 = vector.shape_cast %370 : vector<16xf32> to vector<16x1xf32>
    %372 = tpu.reciprocal %371 {approx = true} : vector<16x1xf32> -> vector<16x1xf32>
    %373 = vector.broadcast %372 : vector<16x1xf32> to vector<16x16xf32>
    %374 = arith.mulf %369, %373 : vector<16x16xf32>
    %375 = arith.truncf %374 : vector<16x16xf32> to vector<16x16xbf16>
    %cst_162 = arith.constant dense<0.000000e+00> : vector<16x8xf32>
    %376 = tpu.matmul %375, %361, %cst_162 {dimension_numbers = #tpu.dot_dimension_numbers<[1], [0], [0], [1], [0, 0, 1, 1], [], []>} : vector<16x16xbf16>, vector<16x8xbf16>, vector<16x8xf32> -> vector<16x8xf32>
    %c0_163 = arith.constant 0 : index
    %c0_164 = arith.constant 0 : index
    %377 = vector.load %arg19[%c0_163, %c0_164] : memref<64x32xf32, #tpu.memory_space<vmem>>, vector<16x8xf32>
    tpu.vector_store %arg19[%c0_163, %c0_164], %376 {strides = array<i32>} : memref<64x32xf32, #tpu.memory_space<vmem>>, vector<16x8xf32>,
    %378 = vector.extract_strided_slice %358 {offsets = [0, 8], sizes = [16, 8], strides = [1, 1]} : vector<16x96xbf16> to vector<16x8xbf16>
    %379 = vector.extract_strided_slice %358 {offsets = [0, 40], sizes = [16, 8], strides = [1, 1]} : vector<16x96xbf16> to vector<16x8xbf16>
    %380 = vector.extract_strided_slice %358 {offsets = [0, 72], sizes = [16, 8], strides = [1, 1]} : vector<16x96xbf16> to vector<16x8xbf16>
    %cst_165 = arith.constant dense<0.000000e+00> : vector<16x16xf32>
    %381 = tpu.matmul %378, %379, %cst_165 {dimension_numbers = #tpu.dot_dimension_numbers<[1], [1], [0], [0], [0, 0, 1, 0], [], []>} : vector<16x8xbf16>, vector<16x8xbf16>, vector<16x16xf32> -> vector<16x16xf32>
    %cst_166 = arith.constant 0.353553385 : f32
    %382 = vector.broadcast %cst_166 : f32 to vector<16x16xf32>
    %383 = arith.mulf %381, %382 : vector<16x16xf32>
    %cst_167 = arith.constant dense<0xFF800000> : vector<16xf32>
    %384 = vector.multi_reduction <maximumf>, %383, %cst_167 [1] : vector<16x16xf32> to vector<16xf32>
    %385 = vector.shape_cast %384 : vector<16xf32> to vector<16x1xf32>
    %386 = vector.broadcast %385 : vector<16x1xf32> to vector<16x16xf32>
    %387 = arith.subf %383, %386 : vector<16x16xf32>
    %388 = math.exp %387 : vector<16x16xf32>
    %cst_168 = arith.constant dense<0.000000e+00> : vector<16xf32>
    %389 = vector.multi_reduction <add>, %388, %cst_168 [1] : vector<16x16xf32> to vector<16xf32>
    %390 = vector.shape_cast %389 : vector<16xf32> to vector<16x1xf32>
    %391 = tpu.reciprocal %390 {approx = true} : vector<16x1xf32> -> vector<16x1xf32>
    %392 = vector.broadcast %391 : vector<16x1xf32> to vector<16x16xf32>
    %393 = arith.mulf %388, %392 : vector<16x16xf32>
    %394 = arith.truncf %393 : vector<16x16xf32> to vector<16x16xbf16>
    %cst_169 = arith.constant dense<0.000000e+00> : vector<16x8xf32>
    %395 = tpu.matmul %394, %380, %cst_169 {dimension_numbers = #tpu.dot_dimension_numbers<[1], [0], [0], [1], [0, 0, 1, 1], [], []>} : vector<16x16xbf16>, vector<16x8xbf16>, vector<16x8xf32> -> vector<16x8xf32>
    %c0_170 = arith.constant 0 : index
    %c8_171 = arith.constant 8 : index
    %396 = vector.load %arg19[%c0_170, %c8_171] : memref<64x32xf32, #tpu.memory_space<vmem>>, vector<16x8xf32>
    tpu.vector_store %arg19[%c0_170, %c8_171], %395 {strides = array<i32>} : memref<64x32xf32, #tpu.memory_space<vmem>>, vector<16x8xf32>,
    %397 = vector.extract_strided_slice %358 {offsets = [0, 16], sizes = [16, 8], strides = [1, 1]} : vector<16x96xbf16> to vector<16x8xbf16>
    %398 = vector.extract_strided_slice %358 {offsets = [0, 48], sizes = [16, 8], strides = [1, 1]} : vector<16x96xbf16> to vector<16x8xbf16>
    %399 = vector.extract_strided_slice %358 {offsets = [0, 80], sizes = [16, 8], strides = [1, 1]} : vector<16x96xbf16> to vector<16x8xbf16>
    %cst_172 = arith.constant dense<0.000000e+00> : vector<16x16xf32>
    %400 = tpu.matmul %397, %398, %cst_172 {dimension_numbers = #tpu.dot_dimension_numbers<[1], [1], [0], [0], [0, 0, 1, 0], [], []>} : vector<16x8xbf16>, vector<16x8xbf16>, vector<16x16xf32> -> vector<16x16xf32>
    %cst_173 = arith.constant 0.353553385 : f32
    %401 = vector.broadcast %cst_173 : f32 to vector<16x16xf32>
    %402 = arith.mulf %400, %401 : vector<16x16xf32>
    %cst_174 = arith.constant dense<0xFF800000> : vector<16xf32>
    %403 = vector.multi_reduction <maximumf>, %402, %cst_174 [1] : vector<16x16xf32> to vector<16xf32>
    %404 = vector.shape_cast %403 : vector<16xf32> to vector<16x1xf32>
    %405 = vector.broadcast %404 : vector<16x1xf32> to vector<16x16xf32>
    %406 = arith.subf %402, %405 : vector<16x16xf32>
    %407 = math.exp %406 : vector<16x16xf32>
    %cst_175 = arith.constant dense<0.000000e+00> : vector<16xf32>
    %408 = vector.multi_reduction <add>, %407, %cst_175 [1] : vector<16x16xf32> to vector<16xf32>
    %409 = vector.shape_cast %408 : vector<16xf32> to vector<16x1xf32>
    %410 = tpu.reciprocal %409 {approx = true} : vector<16x1xf32> -> vector<16x1xf32>
    %411 = vector.broadcast %410 : vector<16x1xf32> to vector<16x16xf32>
    %412 = arith.mulf %407, %411 : vector<16x16xf32>
    %413 = arith.truncf %412 : vector<16x16xf32> to vector<16x16xbf16>
    %cst_176 = arith.constant dense<0.000000e+00> : vector<16x8xf32>
    %414 = tpu.matmul %413, %399, %cst_176 {dimension_numbers = #tpu.dot_dimension_numbers<[1], [0], [0], [1], [0, 0, 1, 1], [], []>} : vector<16x16xbf16>, vector<16x8xbf16>, vector<16x8xf32> -> vector<16x8xf32>
    %c0_177 = arith.constant 0 : index
    %c16_178 = arith.constant 16 : index
    %415 = vector.load %arg19[%c0_177, %c16_178] : memref<64x32xf32, #tpu.memory_space<vmem>>, vector<16x8xf32>
    tpu.vector_store %arg19[%c0_177, %c16_178], %414 {strides = array<i32>} : memref<64x32xf32, #tpu.memory_space<vmem>>, vector<16x8xf32>,
    %416 = vector.extract_strided_slice %358 {offsets = [0, 24], sizes = [16, 8], strides = [1, 1]} : vector<16x96xbf16> to vector<16x8xbf16>
    %417 = vector.extract_strided_slice %358 {offsets = [0, 56], sizes = [16, 8], strides = [1, 1]} : vector<16x96xbf16> to vector<16x8xbf16>
    %418 = vector.extract_strided_slice %358 {offsets = [0, 88], sizes = [16, 8], strides = [1, 1]} : vector<16x96xbf16> to vector<16x8xbf16>
    %cst_179 = arith.constant dense<0.000000e+00> : vector<16x16xf32>
    %419 = tpu.matmul %416, %417, %cst_179 {dimension_numbers = #tpu.dot_dimension_numbers<[1], [1], [0], [0], [0, 0, 1, 0], [], []>} : vector<16x8xbf16>, vector<16x8xbf16>, vector<16x16xf32> -> vector<16x16xf32>
    %cst_180 = arith.constant 0.353553385 : f32
    %420 = vector.broadcast %cst_180 : f32 to vector<16x16xf32>
    %421 = arith.mulf %419, %420 : vector<16x16xf32>
    %cst_181 = arith.constant dense<0xFF800000> : vector<16xf32>
    %422 = vector.multi_reduction <maximumf>, %421, %cst_181 [1] : vector<16x16xf32> to vector<16xf32>
    %423 = vector.shape_cast %422 : vector<16xf32> to vector<16x1xf32>
    %424 = vector.broadcast %423 : vector<16x1xf32> to vector<16x16xf32>
    %425 = arith.subf %421, %424 : vector<16x16xf32>
    %426 = math.exp %425 : vector<16x16xf32>
    %cst_182 = arith.constant dense<0.000000e+00> : vector<16xf32>
    %427 = vector.multi_reduction <add>, %426, %cst_182 [1] : vector<16x16xf32> to vector<16xf32>
    %428 = vector.shape_cast %427 : vector<16xf32> to vector<16x1xf32>
    %429 = tpu.reciprocal %428 {approx = true} : vector<16x1xf32> -> vector<16x1xf32>
    %430 = vector.broadcast %429 : vector<16x1xf32> to vector<16x16xf32>
    %431 = arith.mulf %426, %430 : vector<16x16xf32>
    %432 = arith.truncf %431 : vector<16x16xf32> to vector<16x16xbf16>
    %cst_183 = arith.constant dense<0.000000e+00> : vector<16x8xf32>
    %433 = tpu.matmul %432, %418, %cst_183 {dimension_numbers = #tpu.dot_dimension_numbers<[1], [0], [0], [1], [0, 0, 1, 1], [], []>} : vector<16x16xbf16>, vector<16x8xbf16>, vector<16x8xf32> -> vector<16x8xf32>
    %c0_184 = arith.constant 0 : index
    %c24_185 = arith.constant 24 : index
    %434 = vector.load %arg19[%c0_184, %c24_185] : memref<64x32xf32, #tpu.memory_space<vmem>>, vector<16x8xf32>
    tpu.vector_store %arg19[%c0_184, %c24_185], %433 {strides = array<i32>} : memref<64x32xf32, #tpu.memory_space<vmem>>, vector<16x8xf32>,
    %c0_186 = arith.constant 0 : index
    %c0_187 = arith.constant 0 : index
    %435 = vector.load %arg19[%c0_186, %c0_187] : memref<64x32xf32, #tpu.memory_space<vmem>>, vector<16x32xf32>
    %436 = arith.truncf %435 : vector<16x32xf32> to vector<16x32xbf16>
    %cst_188 = arith.constant dense<0.000000e+00> : vector<16x32xf32>
    %437 = tpu.matmul %436, %335, %cst_188 {dimension_numbers = #tpu.dot_dimension_numbers<[1], [0], [0], [1], [0, 0, 1, 1], [], []>} : vector<16x32xbf16>, vector<32x32xbf16>, vector<16x32xf32> -> vector<16x32xf32>
    %438 = arith.addf %329, %437 : vector<16x32xf32>
    %c0_189 = arith.constant 0 : index
    %c0_190 = arith.constant 0 : index
    %c0_191 = arith.constant 0 : index
    %439 = vector.load %arg12[%c0_189, %c0_190, %c0_191] : memref<2x32x32xbf16, #tpu.memory_space<vmem>>, vector<1x32x32xbf16>
    %440 = vector.shape_cast %439 : vector<1x32x32xbf16> to vector<32x32xbf16>
    %c0_192 = arith.constant 0 : index
    %c0_193 = arith.constant 0 : index
    %c0_194 = arith.constant 0 : index
    %441 = vector.load %arg13[%c0_192, %c0_193, %c0_194] : memref<2x1x32xf32, #tpu.memory_space<vmem>>, vector<1x1x32xf32>
    %442 = vector.shape_cast %441 : vector<1x1x32xf32> to vector<1x32xf32>
    %c0_195 = arith.constant 0 : index
    %c0_196 = arith.constant 0 : index
    %c0_197 = arith.constant 0 : index
    %443 = vector.load %arg14[%c0_195, %c0_196, %c0_197] : memref<2x32x32xbf16, #tpu.memory_space<vmem>>, vector<1x32x32xbf16>
    %444 = vector.shape_cast %443 : vector<1x32x32xbf16> to vector<32x32xbf16>
    %c0_198 = arith.constant 0 : index
    %c0_199 = arith.constant 0 : index
    %c0_200 = arith.constant 0 : index
    %445 = vector.load %arg15[%c0_198, %c0_199, %c0_200] : memref<2x1x32xf32, #tpu.memory_space<vmem>>, vector<1x1x32xf32>
    %446 = vector.shape_cast %445 : vector<1x1x32xf32> to vector<1x32xf32>
    %cst_201 = arith.constant dense<0.000000e+00> : vector<16xf32>
    %447 = vector.multi_reduction <add>, %438, %cst_201 [1] : vector<16x32xf32> to vector<16xf32>
    %448 = vector.shape_cast %447 : vector<16xf32> to vector<16x1xf32>
    %cst_202 = arith.constant 3.200000e+01 : f32
    %449 = vector.broadcast %cst_202 : f32 to vector<16x1xf32>
    %450 = arith.divf %448, %449 : vector<16x1xf32>
    %451 = vector.broadcast %450 : vector<16x1xf32> to vector<16x32xf32>
    %452 = arith.subf %438, %451 : vector<16x32xf32>
    %453 = arith.mulf %452, %452 : vector<16x32xf32>
    %cst_203 = arith.constant dense<0.000000e+00> : vector<16xf32>
    %454 = vector.multi_reduction <add>, %453, %cst_203 [1] : vector<16x32xf32> to vector<16xf32>
    %455 = vector.shape_cast %454 : vector<16xf32> to vector<16x1xf32>
    %cst_204 = arith.constant 3.200000e+01 : f32
    %456 = vector.broadcast %cst_204 : f32 to vector<16x1xf32>
    %457 = arith.divf %455, %456 : vector<16x1xf32>
    %458 = vector.broadcast %450 : vector<16x1xf32> to vector<16x32xf32>
    %459 = arith.subf %438, %458 : vector<16x32xf32>
    %cst_205 = arith.constant 9.99999974E-6 : f32
    %460 = vector.broadcast %cst_205 : f32 to vector<16x1xf32>
    %461 = arith.addf %457, %460 : vector<16x1xf32>
    %462 = math.rsqrt %461 : vector<16x1xf32>
    %463 = vector.broadcast %462 : vector<16x1xf32> to vector<16x32xf32>
    %464 = arith.mulf %459, %463 : vector<16x32xf32>
    %465 = arith.truncf %464 : vector<16x32xf32> to vector<16x32xbf16>
    %cst_206 = arith.constant dense<0.000000e+00> : vector<16x32xf32>
    %466 = tpu.matmul %465, %440, %cst_206 {dimension_numbers = #tpu.dot_dimension_numbers<[1], [0], [0], [1], [0, 0, 1, 1], [], []>} : vector<16x32xbf16>, vector<32x32xbf16>, vector<16x32xf32> -> vector<16x32xf32>
    %467 = vector.broadcast %442 : vector<1x32xf32> to vector<16x32xf32>
    %468 = arith.addf %466, %467 : vector<16x32xf32>
    %cst_207 = arith.constant 5.000000e-01 : f32
    %469 = vector.broadcast %cst_207 : f32 to vector<16x32xf32>
    %470 = arith.mulf %469, %468 : vector<16x32xf32>
    %cst_208 = arith.constant 0.707106769 : f32
    %471 = vector.broadcast %cst_208 : f32 to vector<16x32xf32>
    %472 = arith.mulf %468, %471 : vector<16x32xf32>
    %473 = math.erf %472 : vector<16x32xf32>
    %cst_209 = arith.constant 1.000000e+00 : f32
    %474 = vector.broadcast %cst_209 : f32 to vector<16x32xf32>
    %475 = arith.addf %474, %473 : vector<16x32xf32>
    %476 = arith.mulf %470, %475 : vector<16x32xf32>
    %477 = arith.truncf %476 : vector<16x32xf32> to vector<16x32xbf16>
    %cst_210 = arith.constant dense<0.000000e+00> : vector<16x32xf32>
    %478 = tpu.matmul %477, %444, %cst_210 {dimension_numbers = #tpu.dot_dimension_numbers<[1], [0], [0], [1], [0, 0, 1, 1], [], []>} : vector<16x32xbf16>, vector<32x32xbf16>, vector<16x32xf32> -> vector<16x32xf32>
    %479 = vector.broadcast %446 : vector<1x32xf32> to vector<16x32xf32>
    %480 = arith.addf %478, %479 : vector<16x32xf32>
    %481 = arith.addf %438, %480 : vector<16x32xf32>
    %c1_211 = arith.constant 1 : index
    %c0_212 = arith.constant 0 : index
    %c0_213 = arith.constant 0 : index
    %482 = vector.load %arg9[%c1_211, %c0_212, %c0_213] : memref<2x32x96xbf16, #tpu.memory_space<vmem>>, vector<1x32x96xbf16>
    %483 = vector.shape_cast %482 : vector<1x32x96xbf16> to vector<32x96xbf16>
    %c1_214 = arith.constant 1 : index
    %c0_215 = arith.constant 0 : index
    %c0_216 = arith.constant 0 : index
    %484 = vector.load %arg10[%c1_214, %c0_215, %c0_216] : memref<2x1x96xf32, #tpu.memory_space<vmem>>, vector<1x1x96xf32>
    %485 = vector.shape_cast %484 : vector<1x1x96xf32> to vector<1x96xf32>
    %c1_217 = arith.constant 1 : index
    %c0_218 = arith.constant 0 : index
    %c0_219 = arith.constant 0 : index
    %486 = vector.load %arg11[%c1_217, %c0_218, %c0_219] : memref<2x32x32xbf16, #tpu.memory_space<vmem>>, vector<1x32x32xbf16>
    %487 = vector.shape_cast %486 : vector<1x32x32xbf16> to vector<32x32xbf16>
    %cst_220 = arith.constant dense<0.000000e+00> : vector<64xf32>
    %488 = vector.multi_reduction <add>, %153, %cst_220 [1] : vector<64x32xf32> to vector<64xf32>
    %489 = vector.shape_cast %488 : vector<64xf32> to vector<64x1xf32>
    %cst_221 = arith.constant 3.200000e+01 : f32
    %490 = vector.broadcast %cst_221 : f32 to vector<64x1xf32>
    %491 = arith.divf %489, %490 : vector<64x1xf32>
    %492 = vector.broadcast %491 : vector<64x1xf32> to vector<64x32xf32>
    %493 = arith.subf %153, %492 : vector<64x32xf32>
    %494 = arith.mulf %493, %493 : vector<64x32xf32>
    %cst_222 = arith.constant dense<0.000000e+00> : vector<64xf32>
    %495 = vector.multi_reduction <add>, %494, %cst_222 [1] : vector<64x32xf32> to vector<64xf32>
    %496 = vector.shape_cast %495 : vector<64xf32> to vector<64x1xf32>
    %cst_223 = arith.constant 3.200000e+01 : f32
    %497 = vector.broadcast %cst_223 : f32 to vector<64x1xf32>
    %498 = arith.divf %496, %497 : vector<64x1xf32>
    %499 = vector.broadcast %491 : vector<64x1xf32> to vector<64x32xf32>
    %500 = arith.subf %153, %499 : vector<64x32xf32>
    %cst_224 = arith.constant 9.99999974E-6 : f32
    %501 = vector.broadcast %cst_224 : f32 to vector<64x1xf32>
    %502 = arith.addf %498, %501 : vector<64x1xf32>
    %503 = math.rsqrt %502 : vector<64x1xf32>
    %504 = vector.broadcast %503 : vector<64x1xf32> to vector<64x32xf32>
    %505 = arith.mulf %500, %504 : vector<64x32xf32>
    %506 = arith.truncf %505 : vector<64x32xf32> to vector<64x32xbf16>
    %cst_225 = arith.constant dense<0.000000e+00> : vector<64x96xf32>
    %507 = tpu.matmul %506, %483, %cst_225 {dimension_numbers = #tpu.dot_dimension_numbers<[1], [0], [0], [1], [0, 0, 1, 1], [], []>} : vector<64x32xbf16>, vector<32x96xbf16>, vector<64x96xf32> -> vector<64x96xf32>
    %508 = vector.broadcast %485 : vector<1x96xf32> to vector<64x96xf32>
    %509 = arith.addf %507, %508 : vector<64x96xf32>
    %510 = arith.truncf %509 : vector<64x96xf32> to vector<64x96xbf16>
    %511 = vector.extract_strided_slice %510 {offsets = [0, 0], sizes = [64, 8], strides = [1, 1]} : vector<64x96xbf16> to vector<64x8xbf16>
    %512 = vector.extract_strided_slice %510 {offsets = [0, 32], sizes = [64, 8], strides = [1, 1]} : vector<64x96xbf16> to vector<64x8xbf16>
    %513 = vector.extract_strided_slice %510 {offsets = [0, 64], sizes = [64, 8], strides = [1, 1]} : vector<64x96xbf16> to vector<64x8xbf16>
    %cst_226 = arith.constant dense<0.000000e+00> : vector<64x64xf32>
    %514 = tpu.matmul %511, %512, %cst_226 {dimension_numbers = #tpu.dot_dimension_numbers<[1], [1], [0], [0], [0, 0, 1, 0], [], []>} : vector<64x8xbf16>, vector<64x8xbf16>, vector<64x64xf32> -> vector<64x64xf32>
    %cst_227 = arith.constant 0.353553385 : f32
    %515 = vector.broadcast %cst_227 : f32 to vector<64x64xf32>
    %516 = arith.mulf %514, %515 : vector<64x64xf32>
    %cst_228 = arith.constant dense<0xFF800000> : vector<64xf32>
    %517 = vector.multi_reduction <maximumf>, %516, %cst_228 [1] : vector<64x64xf32> to vector<64xf32>
    %518 = vector.shape_cast %517 : vector<64xf32> to vector<64x1xf32>
    %519 = vector.broadcast %518 : vector<64x1xf32> to vector<64x64xf32>
    %520 = arith.subf %516, %519 : vector<64x64xf32>
    %521 = math.exp %520 : vector<64x64xf32>
    %cst_229 = arith.constant dense<0.000000e+00> : vector<64xf32>
    %522 = vector.multi_reduction <add>, %521, %cst_229 [1] : vector<64x64xf32> to vector<64xf32>
    %523 = vector.shape_cast %522 : vector<64xf32> to vector<64x1xf32>
    %524 = tpu.reciprocal %523 {approx = true} : vector<64x1xf32> -> vector<64x1xf32>
    %525 = vector.broadcast %524 : vector<64x1xf32> to vector<64x64xf32>
    %526 = arith.mulf %521, %525 : vector<64x64xf32>
    %527 = arith.truncf %526 : vector<64x64xf32> to vector<64x64xbf16>
    %cst_230 = arith.constant dense<0.000000e+00> : vector<64x8xf32>
    %528 = tpu.matmul %527, %513, %cst_230 {dimension_numbers = #tpu.dot_dimension_numbers<[1], [0], [0], [1], [0, 0, 1, 1], [], []>} : vector<64x64xbf16>, vector<64x8xbf16>, vector<64x8xf32> -> vector<64x8xf32>
    %c0_231 = arith.constant 0 : index
    %c0_232 = arith.constant 0 : index
    %529 = vector.load %arg19[%c0_231, %c0_232] : memref<64x32xf32, #tpu.memory_space<vmem>>, vector<64x8xf32>
    tpu.vector_store %arg19[%c0_231, %c0_232], %528 {strides = array<i32>} : memref<64x32xf32, #tpu.memory_space<vmem>>, vector<64x8xf32>,
    %530 = vector.extract_strided_slice %510 {offsets = [0, 8], sizes = [64, 8], strides = [1, 1]} : vector<64x96xbf16> to vector<64x8xbf16>
    %531 = vector.extract_strided_slice %510 {offsets = [0, 40], sizes = [64, 8], strides = [1, 1]} : vector<64x96xbf16> to vector<64x8xbf16>
    %532 = vector.extract_strided_slice %510 {offsets = [0, 72], sizes = [64, 8], strides = [1, 1]} : vector<64x96xbf16> to vector<64x8xbf16>
    %cst_233 = arith.constant dense<0.000000e+00> : vector<64x64xf32>
    %533 = tpu.matmul %530, %531, %cst_233 {dimension_numbers = #tpu.dot_dimension_numbers<[1], [1], [0], [0], [0, 0, 1, 0], [], []>} : vector<64x8xbf16>, vector<64x8xbf16>, vector<64x64xf32> -> vector<64x64xf32>
    %cst_234 = arith.constant 0.353553385 : f32
    %534 = vector.broadcast %cst_234 : f32 to vector<64x64xf32>
    %535 = arith.mulf %533, %534 : vector<64x64xf32>
    %cst_235 = arith.constant dense<0xFF800000> : vector<64xf32>
    %536 = vector.multi_reduction <maximumf>, %535, %cst_235 [1] : vector<64x64xf32> to vector<64xf32>
    %537 = vector.shape_cast %536 : vector<64xf32> to vector<64x1xf32>
    %538 = vector.broadcast %537 : vector<64x1xf32> to vector<64x64xf32>
    %539 = arith.subf %535, %538 : vector<64x64xf32>
    %540 = math.exp %539 : vector<64x64xf32>
    %cst_236 = arith.constant dense<0.000000e+00> : vector<64xf32>
    %541 = vector.multi_reduction <add>, %540, %cst_236 [1] : vector<64x64xf32> to vector<64xf32>
    %542 = vector.shape_cast %541 : vector<64xf32> to vector<64x1xf32>
    %543 = tpu.reciprocal %542 {approx = true} : vector<64x1xf32> -> vector<64x1xf32>
    %544 = vector.broadcast %543 : vector<64x1xf32> to vector<64x64xf32>
    %545 = arith.mulf %540, %544 : vector<64x64xf32>
    %546 = arith.truncf %545 : vector<64x64xf32> to vector<64x64xbf16>
    %cst_237 = arith.constant dense<0.000000e+00> : vector<64x8xf32>
    %547 = tpu.matmul %546, %532, %cst_237 {dimension_numbers = #tpu.dot_dimension_numbers<[1], [0], [0], [1], [0, 0, 1, 1], [], []>} : vector<64x64xbf16>, vector<64x8xbf16>, vector<64x8xf32> -> vector<64x8xf32>
    %c0_238 = arith.constant 0 : index
    %c8_239 = arith.constant 8 : index
    %548 = vector.load %arg19[%c0_238, %c8_239] : memref<64x32xf32, #tpu.memory_space<vmem>>, vector<64x8xf32>
    tpu.vector_store %arg19[%c0_238, %c8_239], %547 {strides = array<i32>} : memref<64x32xf32, #tpu.memory_space<vmem>>, vector<64x8xf32>,
    %549 = vector.extract_strided_slice %510 {offsets = [0, 16], sizes = [64, 8], strides = [1, 1]} : vector<64x96xbf16> to vector<64x8xbf16>
    %550 = vector.extract_strided_slice %510 {offsets = [0, 48], sizes = [64, 8], strides = [1, 1]} : vector<64x96xbf16> to vector<64x8xbf16>
    %551 = vector.extract_strided_slice %510 {offsets = [0, 80], sizes = [64, 8], strides = [1, 1]} : vector<64x96xbf16> to vector<64x8xbf16>
    %cst_240 = arith.constant dense<0.000000e+00> : vector<64x64xf32>
    %552 = tpu.matmul %549, %550, %cst_240 {dimension_numbers = #tpu.dot_dimension_numbers<[1], [1], [0], [0], [0, 0, 1, 0], [], []>} : vector<64x8xbf16>, vector<64x8xbf16>, vector<64x64xf32> -> vector<64x64xf32>
    %cst_241 = arith.constant 0.353553385 : f32
    %553 = vector.broadcast %cst_241 : f32 to vector<64x64xf32>
    %554 = arith.mulf %552, %553 : vector<64x64xf32>
    %cst_242 = arith.constant dense<0xFF800000> : vector<64xf32>
    %555 = vector.multi_reduction <maximumf>, %554, %cst_242 [1] : vector<64x64xf32> to vector<64xf32>
    %556 = vector.shape_cast %555 : vector<64xf32> to vector<64x1xf32>
    %557 = vector.broadcast %556 : vector<64x1xf32> to vector<64x64xf32>
    %558 = arith.subf %554, %557 : vector<64x64xf32>
    %559 = math.exp %558 : vector<64x64xf32>
    %cst_243 = arith.constant dense<0.000000e+00> : vector<64xf32>
    %560 = vector.multi_reduction <add>, %559, %cst_243 [1] : vector<64x64xf32> to vector<64xf32>
    %561 = vector.shape_cast %560 : vector<64xf32> to vector<64x1xf32>
    %562 = tpu.reciprocal %561 {approx = true} : vector<64x1xf32> -> vector<64x1xf32>
    %563 = vector.broadcast %562 : vector<64x1xf32> to vector<64x64xf32>
    %564 = arith.mulf %559, %563 : vector<64x64xf32>
    %565 = arith.truncf %564 : vector<64x64xf32> to vector<64x64xbf16>
    %cst_244 = arith.constant dense<0.000000e+00> : vector<64x8xf32>
    %566 = tpu.matmul %565, %551, %cst_244 {dimension_numbers = #tpu.dot_dimension_numbers<[1], [0], [0], [1], [0, 0, 1, 1], [], []>} : vector<64x64xbf16>, vector<64x8xbf16>, vector<64x8xf32> -> vector<64x8xf32>
    %c0_245 = arith.constant 0 : index
    %c16_246 = arith.constant 16 : index
    %567 = vector.load %arg19[%c0_245, %c16_246] : memref<64x32xf32, #tpu.memory_space<vmem>>, vector<64x8xf32>
    tpu.vector_store %arg19[%c0_245, %c16_246], %566 {strides = array<i32>} : memref<64x32xf32, #tpu.memory_space<vmem>>, vector<64x8xf32>,
    %568 = vector.extract_strided_slice %510 {offsets = [0, 24], sizes = [64, 8], strides = [1, 1]} : vector<64x96xbf16> to vector<64x8xbf16>
    %569 = vector.extract_strided_slice %510 {offsets = [0, 56], sizes = [64, 8], strides = [1, 1]} : vector<64x96xbf16> to vector<64x8xbf16>
    %570 = vector.extract_strided_slice %510 {offsets = [0, 88], sizes = [64, 8], strides = [1, 1]} : vector<64x96xbf16> to vector<64x8xbf16>
    %cst_247 = arith.constant dense<0.000000e+00> : vector<64x64xf32>
    %571 = tpu.matmul %568, %569, %cst_247 {dimension_numbers = #tpu.dot_dimension_numbers<[1], [1], [0], [0], [0, 0, 1, 0], [], []>} : vector<64x8xbf16>, vector<64x8xbf16>, vector<64x64xf32> -> vector<64x64xf32>
    %cst_248 = arith.constant 0.353553385 : f32
    %572 = vector.broadcast %cst_248 : f32 to vector<64x64xf32>
    %573 = arith.mulf %571, %572 : vector<64x64xf32>
    %cst_249 = arith.constant dense<0xFF800000> : vector<64xf32>
    %574 = vector.multi_reduction <maximumf>, %573, %cst_249 [1] : vector<64x64xf32> to vector<64xf32>
    %575 = vector.shape_cast %574 : vector<64xf32> to vector<64x1xf32>
    %576 = vector.broadcast %575 : vector<64x1xf32> to vector<64x64xf32>
    %577 = arith.subf %573, %576 : vector<64x64xf32>
    %578 = math.exp %577 : vector<64x64xf32>
    %cst_250 = arith.constant dense<0.000000e+00> : vector<64xf32>
    %579 = vector.multi_reduction <add>, %578, %cst_250 [1] : vector<64x64xf32> to vector<64xf32>
    %580 = vector.shape_cast %579 : vector<64xf32> to vector<64x1xf32>
    %581 = tpu.reciprocal %580 {approx = true} : vector<64x1xf32> -> vector<64x1xf32>
    %582 = vector.broadcast %581 : vector<64x1xf32> to vector<64x64xf32>
    %583 = arith.mulf %578, %582 : vector<64x64xf32>
    %584 = arith.truncf %583 : vector<64x64xf32> to vector<64x64xbf16>
    %cst_251 = arith.constant dense<0.000000e+00> : vector<64x8xf32>
    %585 = tpu.matmul %584, %570, %cst_251 {dimension_numbers = #tpu.dot_dimension_numbers<[1], [0], [0], [1], [0, 0, 1, 1], [], []>} : vector<64x64xbf16>, vector<64x8xbf16>, vector<64x8xf32> -> vector<64x8xf32>
    %c0_252 = arith.constant 0 : index
    %c24_253 = arith.constant 24 : index
    %586 = vector.load %arg19[%c0_252, %c24_253] : memref<64x32xf32, #tpu.memory_space<vmem>>, vector<64x8xf32>
    tpu.vector_store %arg19[%c0_252, %c24_253], %585 {strides = array<i32>} : memref<64x32xf32, #tpu.memory_space<vmem>>, vector<64x8xf32>,
    %c0_254 = arith.constant 0 : index
    %c0_255 = arith.constant 0 : index
    %587 = vector.load %arg19[%c0_254, %c0_255] : memref<64x32xf32, #tpu.memory_space<vmem>>, vector<64x32xf32>
    %588 = arith.truncf %587 : vector<64x32xf32> to vector<64x32xbf16>
    %cst_256 = arith.constant dense<0.000000e+00> : vector<64x32xf32>
    %589 = tpu.matmul %588, %487, %cst_256 {dimension_numbers = #tpu.dot_dimension_numbers<[1], [0], [0], [1], [0, 0, 1, 1], [], []>} : vector<64x32xbf16>, vector<32x32xbf16>, vector<64x32xf32> -> vector<64x32xf32>
    %590 = arith.addf %153, %589 : vector<64x32xf32>
    %c1_257 = arith.constant 1 : index
    %c0_258 = arith.constant 0 : index
    %c0_259 = arith.constant 0 : index
    %591 = vector.load %arg12[%c1_257, %c0_258, %c0_259] : memref<2x32x32xbf16, #tpu.memory_space<vmem>>, vector<1x32x32xbf16>
    %592 = vector.shape_cast %591 : vector<1x32x32xbf16> to vector<32x32xbf16>
    %c1_260 = arith.constant 1 : index
    %c0_261 = arith.constant 0 : index
    %c0_262 = arith.constant 0 : index
    %593 = vector.load %arg13[%c1_260, %c0_261, %c0_262] : memref<2x1x32xf32, #tpu.memory_space<vmem>>, vector<1x1x32xf32>
    %594 = vector.shape_cast %593 : vector<1x1x32xf32> to vector<1x32xf32>
    %c1_263 = arith.constant 1 : index
    %c0_264 = arith.constant 0 : index
    %c0_265 = arith.constant 0 : index
    %595 = vector.load %arg14[%c1_263, %c0_264, %c0_265] : memref<2x32x32xbf16, #tpu.memory_space<vmem>>, vector<1x32x32xbf16>
    %596 = vector.shape_cast %595 : vector<1x32x32xbf16> to vector<32x32xbf16>
    %c1_266 = arith.constant 1 : index
    %c0_267 = arith.constant 0 : index
    %c0_268 = arith.constant 0 : index
    %597 = vector.load %arg15[%c1_266, %c0_267, %c0_268] : memref<2x1x32xf32, #tpu.memory_space<vmem>>, vector<1x1x32xf32>
    %598 = vector.shape_cast %597 : vector<1x1x32xf32> to vector<1x32xf32>
    %cst_269 = arith.constant dense<0.000000e+00> : vector<64xf32>
    %599 = vector.multi_reduction <add>, %590, %cst_269 [1] : vector<64x32xf32> to vector<64xf32>
    %600 = vector.shape_cast %599 : vector<64xf32> to vector<64x1xf32>
    %cst_270 = arith.constant 3.200000e+01 : f32
    %601 = vector.broadcast %cst_270 : f32 to vector<64x1xf32>
    %602 = arith.divf %600, %601 : vector<64x1xf32>
    %603 = vector.broadcast %602 : vector<64x1xf32> to vector<64x32xf32>
    %604 = arith.subf %590, %603 : vector<64x32xf32>
    %605 = arith.mulf %604, %604 : vector<64x32xf32>
    %cst_271 = arith.constant dense<0.000000e+00> : vector<64xf32>
    %606 = vector.multi_reduction <add>, %605, %cst_271 [1] : vector<64x32xf32> to vector<64xf32>
    %607 = vector.shape_cast %606 : vector<64xf32> to vector<64x1xf32>
    %cst_272 = arith.constant 3.200000e+01 : f32
    %608 = vector.broadcast %cst_272 : f32 to vector<64x1xf32>
    %609 = arith.divf %607, %608 : vector<64x1xf32>
    %610 = vector.broadcast %602 : vector<64x1xf32> to vector<64x32xf32>
    %611 = arith.subf %590, %610 : vector<64x32xf32>
    %cst_273 = arith.constant 9.99999974E-6 : f32
    %612 = vector.broadcast %cst_273 : f32 to vector<64x1xf32>
    %613 = arith.addf %609, %612 : vector<64x1xf32>
    %614 = math.rsqrt %613 : vector<64x1xf32>
    %615 = vector.broadcast %614 : vector<64x1xf32> to vector<64x32xf32>
    %616 = arith.mulf %611, %615 : vector<64x32xf32>
    %617 = arith.truncf %616 : vector<64x32xf32> to vector<64x32xbf16>
    %cst_274 = arith.constant dense<0.000000e+00> : vector<64x32xf32>
    %618 = tpu.matmul %617, %592, %cst_274 {dimension_numbers = #tpu.dot_dimension_numbers<[1], [0], [0], [1], [0, 0, 1, 1], [], []>} : vector<64x32xbf16>, vector<32x32xbf16>, vector<64x32xf32> -> vector<64x32xf32>
    %619 = vector.broadcast %594 : vector<1x32xf32> to vector<64x32xf32>
    %620 = arith.addf %618, %619 : vector<64x32xf32>
    %cst_275 = arith.constant 5.000000e-01 : f32
    %621 = vector.broadcast %cst_275 : f32 to vector<64x32xf32>
    %622 = arith.mulf %621, %620 : vector<64x32xf32>
    %cst_276 = arith.constant 0.707106769 : f32
    %623 = vector.broadcast %cst_276 : f32 to vector<64x32xf32>
    %624 = arith.mulf %620, %623 : vector<64x32xf32>
    %625 = math.erf %624 : vector<64x32xf32>
    %cst_277 = arith.constant 1.000000e+00 : f32
    %626 = vector.broadcast %cst_277 : f32 to vector<64x32xf32>
    %627 = arith.addf %626, %625 : vector<64x32xf32>
    %628 = arith.mulf %622, %627 : vector<64x32xf32>
    %629 = arith.truncf %628 : vector<64x32xf32> to vector<64x32xbf16>
    %cst_278 = arith.constant dense<0.000000e+00> : vector<64x32xf32>
    %630 = tpu.matmul %629, %596, %cst_278 {dimension_numbers = #tpu.dot_dimension_numbers<[1], [0], [0], [1], [0, 0, 1, 1], [], []>} : vector<64x32xbf16>, vector<32x32xbf16>, vector<64x32xf32> -> vector<64x32xf32>
    %631 = vector.broadcast %598 : vector<1x32xf32> to vector<64x32xf32>
    %632 = arith.addf %630, %631 : vector<64x32xf32>
    %633 = arith.addf %590, %632 : vector<64x32xf32>
    %c0_279 = arith.constant 0 : index
    %c0_280 = arith.constant 0 : index
    %c0_281 = arith.constant 0 : index
    %634 = vector.load %arg18[%c0_279, %c0_280, %c0_281] : memref<1x144x32xf32, #tpu.memory_space<vmem>>, vector<1x64x32xf32>
    %635 = vector.shape_cast %634 : vector<1x64x32xf32> to vector<64x32xf32>
    %636 = vector.shape_cast %305 : vector<64x32xf32> to vector<1x64x32xf32>
    tpu.vector_store %arg18[%c0_279, %c0_280, %c0_281], %636 {strides = array<i32>} : memref<1x144x32xf32, #tpu.memory_space<vmem>>, vector<1x64x32xf32>,
    %c0_282 = arith.constant 0 : index
    %c64 = arith.constant 64 : index
    %c0_283 = arith.constant 0 : index
    %637 = vector.load %arg18[%c0_282, %c64, %c0_283] : memref<1x144x32xf32, #tpu.memory_space<vmem>>, vector<1x16x32xf32>
    %638 = vector.shape_cast %637 : vector<1x16x32xf32> to vector<16x32xf32>
    %639 = vector.shape_cast %481 : vector<16x32xf32> to vector<1x16x32xf32>
    tpu.vector_store %arg18[%c0_282, %c64, %c0_283], %639 {strides = array<i32>} : memref<1x144x32xf32, #tpu.memory_space<vmem>>, vector<1x16x32xf32>,
    %c0_284 = arith.constant 0 : index
    %c80 = arith.constant 80 : index
    %c0_285 = arith.constant 0 : index
    %640 = vector.load %arg18[%c0_284, %c80, %c0_285] : memref<1x144x32xf32, #tpu.memory_space<vmem>>, vector<1x64x32xf32>
    %641 = vector.shape_cast %640 : vector<1x64x32xf32> to vector<64x32xf32>
    %642 = vector.shape_cast %633 : vector<64x32xf32> to vector<1x64x32xf32>
    tpu.vector_store %arg18[%c0_284, %c80, %c0_285], %642 {strides = array<i32>} : memref<1x144x32xf32, #tpu.memory_space<vmem>>, vector<1x64x32xf32>,
    return
  }
  func.func @transform_0(%arg0: i32) -> (i32, i32, i32) {
    %c0_i32 = arith.constant 0 : i32
    %c0_i32_0 = arith.constant 0 : i32
    %c0_i32_1 = arith.constant 0 : i32
    return %arg0, %c0_i32, %c0_i32_0 : i32, i32, i32
  }
  func.func @transform_1(%arg0: i32) -> (i32, i32, i32) {
    %c0_i32 = arith.constant 0 : i32
    %c0_i32_0 = arith.constant 0 : i32
    %c0_i32_1 = arith.constant 0 : i32
    %c0_i32_2 = arith.constant 0 : i32
    return %c0_i32, %c0_i32_0, %c0_i32_1 : i32, i32, i32
  }
  func.func @transform_2(%arg0: i32) -> (i32, i32, i32) {
    %c0_i32 = arith.constant 0 : i32
    %c0_i32_0 = arith.constant 0 : i32
    %c0_i32_1 = arith.constant 0 : i32
    %c0_i32_2 = arith.constant 0 : i32
    return %c0_i32, %c0_i32_0, %c0_i32_1 : i32, i32, i32
  }
  func.func @transform_3(%arg0: i32) -> (i32, i32, i32) {
    %c0_i32 = arith.constant 0 : i32
    %c0_i32_0 = arith.constant 0 : i32
    %c0_i32_1 = arith.constant 0 : i32
    %c0_i32_2 = arith.constant 0 : i32
    return %c0_i32, %c0_i32_0, %c0_i32_1 : i32, i32, i32
  }
  func.func @transform_4(%arg0: i32) -> (i32, i32, i32) {
    %c0_i32 = arith.constant 0 : i32
    %c0_i32_0 = arith.constant 0 : i32
    %c0_i32_1 = arith.constant 0 : i32
    %c0_i32_2 = arith.constant 0 : i32
    return %c0_i32, %c0_i32_0, %c0_i32_1 : i32, i32, i32
  }
  func.func @transform_5(%arg0: i32) -> (i32, i32, i32) {
    %c0_i32 = arith.constant 0 : i32
    %c0_i32_0 = arith.constant 0 : i32
    %c0_i32_1 = arith.constant 0 : i32
    %c0_i32_2 = arith.constant 0 : i32
    return %c0_i32, %c0_i32_0, %c0_i32_1 : i32, i32, i32
  }
  func.func @transform_6(%arg0: i32) -> (i32, i32, i32) {
    %c0_i32 = arith.constant 0 : i32
    %c0_i32_0 = arith.constant 0 : i32
    %c0_i32_1 = arith.constant 0 : i32
    %c0_i32_2 = arith.constant 0 : i32
    return %c0_i32, %c0_i32_0, %c0_i32_1 : i32, i32, i32
  }
  func.func @transform_7(%arg0: i32) -> (i32, i32, i32) {
    %c0_i32 = arith.constant 0 : i32
    %c0_i32_0 = arith.constant 0 : i32
    %c0_i32_1 = arith.constant 0 : i32
    %c0_i32_2 = arith.constant 0 : i32
    return %c0_i32, %c0_i32_0, %c0_i32_1 : i32, i32, i32
  }
  func.func @transform_8(%arg0: i32) -> (i32, i32, i32) {
    %c0_i32 = arith.constant 0 : i32
    %c0_i32_0 = arith.constant 0 : i32
    %c0_i32_1 = arith.constant 0 : i32
    %c0_i32_2 = arith.constant 0 : i32
    return %c0_i32, %c0_i32_0, %c0_i32_1 : i32, i32, i32
  }
  func.func @transform_9(%arg0: i32) -> (i32, i32, i32) {
    %c0_i32 = arith.constant 0 : i32
    %c0_i32_0 = arith.constant 0 : i32
    %c0_i32_1 = arith.constant 0 : i32
    %c0_i32_2 = arith.constant 0 : i32
    return %c0_i32, %c0_i32_0, %c0_i32_1 : i32, i32, i32
  }
  func.func @transform_10(%arg0: i32) -> (i32, i32, i32) {
    %c0_i32 = arith.constant 0 : i32
    %c0_i32_0 = arith.constant 0 : i32
    %c0_i32_1 = arith.constant 0 : i32
    %c0_i32_2 = arith.constant 0 : i32
    return %c0_i32, %c0_i32_0, %c0_i32_1 : i32, i32, i32
  }
  func.func @transform_11(%arg0: i32) -> (i32, i32, i32) {
    %c0_i32 = arith.constant 0 : i32
    %c0_i32_0 = arith.constant 0 : i32
    %c0_i32_1 = arith.constant 0 : i32
    %c0_i32_2 = arith.constant 0 : i32
    return %c0_i32, %c0_i32_0, %c0_i32_1 : i32, i32, i32
  }
  func.func @transform_12(%arg0: i32) -> (i32, i32, i32) {
    %c0_i32 = arith.constant 0 : i32
    %c0_i32_0 = arith.constant 0 : i32
    %c0_i32_1 = arith.constant 0 : i32
    %c0_i32_2 = arith.constant 0 : i32
    return %c0_i32, %c0_i32_0, %c0_i32_1 : i32, i32, i32
  }
  func.func @transform_13(%arg0: i32) -> (i32, i32, i32) {
    %c0_i32 = arith.constant 0 : i32
    %c0_i32_0 = arith.constant 0 : i32
    %c0_i32_1 = arith.constant 0 : i32
    %c0_i32_2 = arith.constant 0 : i32
    return %c0_i32, %c0_i32_0, %c0_i32_1 : i32, i32, i32
  }
  func.func @transform_14(%arg0: i32) -> (i32, i32, i32) {
    %c0_i32 = arith.constant 0 : i32
    %c0_i32_0 = arith.constant 0 : i32
    %c0_i32_1 = arith.constant 0 : i32
    %c0_i32_2 = arith.constant 0 : i32
    return %c0_i32, %c0_i32_0, %c0_i32_1 : i32, i32, i32
  }
  func.func @transform_15(%arg0: i32) -> (i32, i32) {
    %c0_i32 = arith.constant 0 : i32
    %c0_i32_0 = arith.constant 0 : i32
    %c0_i32_1 = arith.constant 0 : i32
    return %c0_i32, %c0_i32_0 : i32, i32
  }
  func.func @transform_16(%arg0: i32) -> (i32, i32) {
    %c0_i32 = arith.constant 0 : i32
    %c0_i32_0 = arith.constant 0 : i32
    %c0_i32_1 = arith.constant 0 : i32
    return %c0_i32, %c0_i32_0 : i32, i32
  }
  func.func @transform_17(%arg0: i32) -> (i32, i32, i32) {
    %c0_i32 = arith.constant 0 : i32
    %c0_i32_0 = arith.constant 0 : i32
    %c0_i32_1 = arith.constant 0 : i32
    return %arg0, %c0_i32, %c0_i32_0 : i32, i32, i32
  }
}

</mosaic_0001>

<bundles_post_ra>
// kernel: transformer_forward.1
= control target key start
LH: loop header
LB: loop body
LE: loop exit
PB: predicated region body
PF: predicated region fallthrough
CT: control target
= control target key end

     0   :  { %s9489_s24 = smov 0   ;;  %s11717_s0 = inlined_call_operand.vmem [shape: f32[2,64,32], index: 0, kind: input, shape index: {}]   ;;  %s11718_s1 = inlined_call_operand.vmem [shape: bf16[2,32,96], index: 1, kind: input, shape index: {}]   ;;  %s11719_s2 = inlined_call_operand.vmem [shape: f32[2,1,96], index: 2, kind: input, shape index: {}]   ;;  %s11720_s3 = inlined_call_operand.vmem [shape: bf16[2,32,32], index: 3, kind: input, shape index: {}]   ;;  %s11721_s4 = inlined_call_operand.vmem [shape: bf16[2,32,64], index: 4, kind: input, shape index: {}]   ;;  %s11722_s5 = inlined_call_operand.vmem [shape: f32[2,1,64], index: 5, kind: input, shape index: {}]   ;;  %s11723_s6 = inlined_call_operand.vmem [shape: bf16[2,64,32], index: 6, kind: input, shape index: {}]   ;;  %s11724_s7 = inlined_call_operand.vmem [shape: f32[2,1,32], index: 7, kind: input, shape index: {}]   ;;  %s11725_s8 = inlined_call_operand.vmem [shape: bf16[2,32,96], index: 8, kind: input, shape index: {}]   ;;  %s11726_s9 = inlined_call_operand.vmem [shape: f32[2,1,96], index: 9, kind: input, shape index: {}]   ;;  %s11727_s10 = inlined_call_operand.vmem [shape: bf16[2,32,32], index: 10, kind: input, shape index: {}]   ;;  %s11728_s11 = inlined_call_operand.vmem [shape: bf16[2,32,32], index: 11, kind: input, shape index: {}]   ;;  %s11729_s12 = inlined_call_operand.vmem [shape: f32[2,1,32], index: 12, kind: input, shape index: {}]   ;;  %s11730_s13 = inlined_call_operand.vmem [shape: bf16[2,32,32], index: 13, kind: input, shape index: {}]   ;;  %s11731_s14 = inlined_call_operand.vmem [shape: f32[2,1,32], index: 14, kind: input, shape index: {}]   ;;  %s11732_s15 = inlined_call_operand.vmem [shape: bf16[16,64], index: 15, kind: input, shape index: {}]   ;;  %s11733_s16 = inlined_call_operand.vmem [shape: f32[16,1], index: 16, kind: input, shape index: {}]   ;;  %s11734_s17 = inlined_call_operand.vmem [shape: f32[2,144,32], index: 17, kind: output, shape index: {}]  }
   0x1   :  { %11766 = sst [smem:[#allocation4_spill]] %s11717_s0 }
   0x2   :  { %11767 = sst [smem:[#allocation5_spill]] %s11718_s1 }
   0x3   :  { %11768 = sst [smem:[#allocation6_spill]] %s11719_s2 }
   0x4   :  { %11769 = sst [smem:[#allocation7_spill]] %s11720_s3 }
   0x5   :  { %11770 = sst [smem:[#allocation8_spill]] %s11721_s4 }
   0x6   :  { %11771 = sst [smem:[#allocation9_spill]] %s11722_s5 }
   0x7   :  { %11772 = sst [smem:[#allocation10_spill]] %s11723_s6 }
   0x8   :  { %11773 = sst [smem:[#allocation11_spill]] %s11732_s15 }
   0x9 LB: > { %11774 = sst [smem:[#allocation3_spill]] %s9380_s24  ;;  %s7507_s25 = sadd.s32 4294967295, %s9380_s24   ;;  %s9380_s24 = sphi %s9489_s24, %s27_s24  }
   0xa   : > { %p7511_p0 = scmp.ge.s32.totalorder %s9380_s24, 1  ;;  %p487_p1 = scmp.lt.s32.totalorder %s9380_s24, 3 }
   0xc   : > { %p488_p2 = pnand %p7511_p0, %p487_p1 }
   0xd   : > { %p539_p3 = scmp.lt.s32.totalorder (!%p488_p2), %s7507_s25, 1  ;;  %vm567_vm0 = vcmask (!%p488_p2), 261120   ;;  %s11775_s29 = sld [smem:[#allocation4_spill]] (!%p488_p2)  ;;  %vm788_vm1 = vcmask (!%p488_p2), 64512   ;;  %vm886_vm2 = vcmask (!%p488_p2), 523264   ;;  %vm1402_vm3 = vcmask (!%p488_p2), 130112  }
   0xe   : > { %491 = sbr.rel (%p488_p2) target bundleno = 14805 (0x39d5), region = 88  ;;  %s11776_s19 = sld [smem:[#allocation5_spill]] (!%p488_p2)  ;;  %vm1737_vm4 = vcmask (!%p488_p2), 195712   ;;  %vm2072_vm5 = vcmask (!%p488_p2), 261312   ;;  %vm9398_vm6 = vmmov (!%p488_p2), 0   ;;  %vm4855_vm7 = vcmask (!%p488_p2), 130048  }
   0xf   : > { %s11777_s2 = sld [smem:[#allocation6_spill]] (!%p488_p2)  ;;  %s11760_s23 = smov (!%p488_p2), 96  }
  0x10   : > { %s11762_s27 = smov (!%p488_p2), 88   ;;  %s11758_s28 = smov (!%p488_p2), 120  }
  0x11   : > { %s11746_s30 = smov (!%p488_p2), 80   ;;  %s11744_s18 = smov (!%p488_p2), 112  }
  0x12   : > { %s11742_s1 = smov (!%p488_p2), 48   ;;  %s11738_s20 = smov (!%p488_p2), 72  }
  0x13   : > { %s11736_s21 = smov (!%p488_p2), 104   ;;  %s11740_s22 = smov (!%p488_p2), 40  }
  0x14   : > { %v8771_v56 = vld [vmem:[%s11776_s19] sm:$0xff] (!%p488_p2)   ;;  %v8772_v57 = vld [vmem:[%s11776_s19 + $0x8] sm:$0xff] (!%p488_p2)   ;;  %s11778_s3 = sld [smem:[#allocation7_spill]] (!%p488_p2)  ;;  %s11779_s4 = sld [smem:[#allocation8_spill]] (!%p488_p2) }
  0x15   : > { %s11799_s25 = smov (!%p539_p3, %s7507_s25), 1  ;;  %8067 = vmatprep.subr.bf16.mxu0 %v8771_v56  ;;  %s11780_s6 = sld [smem:[#allocation10_spill]] }
  0x16   : > { %s7765_s26 = sshll.u32 %s11799_s25, 6  ;;  %8068 = vmatpush3.bf16.msra.mxu0 %v8771_v56  ;;  %s11781_s5 = sld [smem:[#allocation9_spill]] }
  0x17   : > { %s9503_s0 = scalar_lea.vmem %s11775_s29, %s7765_s26  ;;  %8069 = vmatprep.subr.bf16.mxu0 %v8772_v57  ;;  %s11756_s26 = smov 64  }
  0x18   : > { %v550_v0 = vld [vmem:[%s9503_s0] sm:$0xff]  ;;  %v552_v1 = vld [vmem:[%s9503_s0 + $0x10] sm:$0xff]  ;;  %v551_v2 = vld [vmem:[%s9503_s0 + $0x8] sm:$0xff]  ;;  %s11748_s29 = smov 56   ;;  %s11792_s15 = sld [smem:[#allocation11_spill]] }
  0x19   : > { %v568_v3 = vsel %vm567_vm0, %v550_v0, 0.0  ;;  %v574_v4 = vsel %vm567_vm0, %v552_v1, 0.0  ;;  %v553_v5 = vld [vmem:[%s9503_s0 + $0x18] sm:$0xff]  ;;  %v554_v6 = vld [vmem:[%s9503_s0 + $0x20] sm:$0xff]  ;;  %v555_v7 = vld [vmem:[%s9503_s0 + $0x28] sm:$0xff]  ;;  %v571_v8 = vsel %vm567_vm0, %v551_v2, 0.0 }
  0x1a   : > { %569 = vadd.xlane.f32.xlu0 %v568_v3  ;;  %575 = vadd.xlane.f32.xlu1 %v574_v4  ;;  %v577_v9 = vsel %vm567_vm0, %v553_v5, 0.0  ;;  %v580_v10 = vsel %vm567_vm0, %v554_v6, 0.0  ;;  %v583_v11 = vsel %vm567_vm0, %v555_v7, 0.0  ;;  %v556_v12 = vld [vmem:[%s9503_s0 + $0x30] sm:$0xff]  ;;  %v557_v13 = vld [vmem:[%s9503_s0 + $0x38] sm:$0xff]  ;;  %s11795_s24 = smov 120  }
  0x1b   : > { %v586_v14 = vsel %vm567_vm0, %v556_v12, 0.0  ;;  %v589_v15 = vsel %vm567_vm0, %v557_v13, 0.0  ;;  %8070 = vmatpush3.bf16.msra.mxu0 %v8772_v57 }
  0x1e   : > { %572 = vadd.xlane.f32.xlu0 %v571_v8  ;;  %578 = vadd.xlane.f32.xlu1 %v577_v9 }
  0x22   : > { %581 = vadd.xlane.f32.xlu0 %v580_v10  ;;  %584 = vadd.xlane.f32.xlu1 %v583_v11 }
  0x26   : > { %587 = vadd.xlane.f32.xlu0 %v586_v14  ;;  %590 = vadd.xlane.f32.xlu1 %v589_v15 }
  0xa7   : > { %v570_v16 = vpop.xlane.xlu0 %569  ;;  %v576_v17 = vpop.xlane.xlu1 %575 }
  0xa8   : > { %v593_v18 = vmul.f32 0.03125, %v570_v16  ;;  %v595_v19 = vmul.f32 0.03125, %v576_v17 }
  0xaa   : > { %v9521_v20 = vsub.f32 %v550_v0, %v593_v18  ;;  %v9523_v21 = vsub.f32 %v552_v1, %v595_v19 }
  0xab   : > { %v573_v22 = vpop.xlane.xlu0 %572  ;;  %v579_v23 = vpop.xlane.xlu1 %578 }
  0xac   : > { %v594_v24 = vmul.f32 0.03125, %v573_v22  ;;  %v596_v25 = vmul.f32 0.03125, %v579_v23  ;;  %v609_v26 = vmul.f32 %v9521_v20, %v9521_v20  ;;  %v611_v27 = vmul.f32 %v9523_v21, %v9523_v21 }
  0xae   : > { %v9529_v28 = vsub.f32 %v551_v2, %v594_v24  ;;  %v9531_v29 = vsub.f32 %v553_v5, %v596_v25  ;;  %v617_v30 = vsel %vm567_vm0, %v609_v26, 0.0  ;;  %v623_v33 = vsel %vm567_vm0, %v611_v27, 0.0 }
  0xaf   : > { %618 = vadd.xlane.f32.xlu0 %v617_v30  ;;  %v582_v31 = vpop.xlane.xlu0 %581  ;;  %v585_v32 = vpop.xlane.xlu1 %584 }
  0xb0   : > { %v597_v34 = vmul.f32 0.03125, %v582_v31  ;;  %v598_v35 = vmul.f32 0.03125, %v585_v32  ;;  %v610_v36 = vmul.f32 %v9529_v28, %v9529_v28  ;;  %v612_v37 = vmul.f32 %v9531_v29, %v9531_v29 }
  0xb2   : > { %v9539_v38 = vsub.f32 %v554_v6, %v597_v34  ;;  %v9541_v39 = vsub.f32 %v555_v7, %v598_v35  ;;  %v620_v40 = vsel %vm567_vm0, %v610_v36, 0.0  ;;  %v626_v43 = vsel %vm567_vm0, %v612_v37, 0.0 }
  0xb3   : > { %624 = vadd.xlane.f32.xlu0 %v623_v33  ;;  %621 = vadd.xlane.f32.xlu1 %v620_v40  ;;  %v588_v41 = vpop.xlane.xlu0 %587  ;;  %v591_v42 = vpop.xlane.xlu1 %590 }
  0xb4   : > { %v599_v44 = vmul.f32 0.03125, %v588_v41  ;;  %v600_v45 = vmul.f32 0.03125, %v591_v42  ;;  %v613_v46 = vmul.f32 %v9539_v38, %v9539_v38  ;;  %v614_v47 = vmul.f32 %v9541_v39, %v9541_v39  ;;  %v7515_v41 = vld [vmem:[%s11777_s2] ss:$0 sm:$0xff] }
  0xb6   : > { %v9549_v48 = vsub.f32 %v556_v12, %v599_v44  ;;  %v9551_v49 = vsub.f32 %v557_v13, %v600_v45  ;;  %v629_v50 = vsel %vm567_vm0, %v613_v46, 0.0  ;;  %v632_v51 = vsel %vm567_vm0, %v614_v47, 0.0 }
  0xb7   : > { %627 = vadd.xlane.f32.xlu1 %v626_v43  ;;  %630 = vadd.xlane.f32.xlu0 %v629_v50 }
  0xb8   : > { %v615_v52 = vmul.f32 %v9549_v48, %v9549_v48  ;;  %v616_v53 = vmul.f32 %v9551_v49, %v9551_v49 }
  0xba   : > { %v635_v54 = vsel %vm567_vm0, %v615_v52, 0.0  ;;  %v638_v55 = vsel %vm567_vm0, %v616_v53, 0.0 }
  0xbb   : > { %633 = vadd.xlane.f32.xlu1 %v632_v51  ;;  %636 = vadd.xlane.f32.xlu0 %v635_v54 }
  0xbf   : > { %639 = vadd.xlane.f32.xlu1 %v638_v55 }
 0x13c   : > { %v619_v58 = vpop.xlane.xlu0 %618 }
 0x13d   : > { %v641_v59 = vmul.f32 0.03125, %v619_v58 }
 0x13f   : > { %v649_v60 = vadd.f32 1e-05, %v641_v59 }
 0x140   : > { %v622_v61 = vpop.xlane.xlu1 %621  ;;  %v625_v62 = vpop.xlane.xlu0 %624 }
 0x141   : > { %v642_v63 = vmul.f32 0.03125, %v622_v61  ;;  %v643_v0 = vmul.f32 0.03125, %v625_v62  ;;  %8808 = vrsqrt.f32 %v649_v60 }
 0x143   : > { %v650_v1 = vadd.f32 1e-05, %v642_v63  ;;  %v651_v2 = vadd.f32 1e-05, %v643_v0 }
 0x144   : > { %v628_v3 = vpop.xlane.xlu1 %627  ;;  %v631_v4 = vpop.xlane.xlu0 %630 }
 0x145   : > { %8810 = vrsqrt.f32 %v650_v1  ;;  %v644_v5 = vmul.f32 0.03125, %v628_v3  ;;  %v645_v6 = vmul.f32 0.03125, %v631_v4 }
 0x146   : > { %8812 = vrsqrt.f32 %v651_v2 }
 0x147   : > { %v652_v7 = vadd.f32 1e-05, %v644_v5  ;;  %v653_v8 = vadd.f32 1e-05, %v645_v6 }
 0x148   : > { %v634_v9 = vpop.xlane.xlu1 %633  ;;  %v637_v10 = vpop.xlane.xlu0 %636 }
 0x149   : > { %8814 = vrsqrt.f32 %v652_v7  ;;  %v646_v11 = vmul.f32 0.03125, %v634_v9  ;;  %v647_v12 = vmul.f32 0.03125, %v637_v10 }
 0x14a   : > { %8816 = vrsqrt.f32 %v653_v8 }
 0x14b   : > { %v654_v13 = vadd.f32 1e-05, %v646_v11  ;;  %v655_v14 = vadd.f32 1e-05, %v647_v12  ;;  %v8809_v16 = vpop.eup %8808 }
 0x14c   : > { %v640_v15 = vpop.xlane.xlu1 %639  ;;  %v665_v22 = vmul.f32 %v8809_v16, %v9521_v20 }
 0x14d   : > { %8818 = vrsqrt.f32 %v654_v13  ;;  %v648_v17 = vmul.f32 0.03125, %v640_v15 }
 0x14e   : > { %8820 = vrsqrt.f32 %v655_v14 }
 0x14f   : > { %v8811_v18 = vpop.eup %8810  ;;  %v656_v19 = vadd.f32 1e-05, %v648_v17 }
 0x150   : > { %v666_v23 = vmul.f32 %v8811_v18, %v9529_v28  ;;  %v8813_v24 = vpop.eup %8812 }
 0x151   : > { %8822 = vrsqrt.f32 %v656_v19  ;;  %v667_v27 = vmul.f32 %v8813_v24, %v9523_v21 }
 0x152   : > { %v673_v25 = vpack.c.bf16 %v666_v23, %v665_v22 }
 0x153   : > { %v8815_v26 = vpop.eup %8814 }
 0x154   : > { %8071 = vmatprep.mubr.msk.bf16.mxu0 %vm567_vm0, %v673_v25  ;;  %v668_v30 = vmul.f32 %v8815_v26, %v9531_v29  ;;  %v8817_v31 = vpop.eup %8816 }
 0x155   : > { %v669_v34 = vmul.f32 %v8817_v31, %v9539_v38 }
 0x156   : > { %v674_v32 = vpack.c.bf16 %v668_v30, %v667_v27 }
 0x157   : > { %v8819_v33 = vpop.eup %8818 }
 0x158   : > { %8072 = vmatmul.mubr.msk.bf16.vlgmr.msra.gmra.mrb[0].mxu0 %vm567_vm0, %v674_v32  ;;  %v670_v20 = vmul.f32 %v8819_v33, %v9541_v39  ;;  %v8821_v28 = vpop.eup %8820 }
 0x159   : > { %v671_v37 = vmul.f32 %v8821_v28, %v9549_v48 }
 0x15a   : > { %v675_v35 = vpack.c.bf16 %v670_v20, %v669_v34 }
 0x15b   : > { %v8823_v36 = vpop.eup %8822 }
 0x15c   : > { %8075 = vmatprep.mubr.msk.bf16.mxu0 %vm567_vm0, %v675_v35  ;;  %v672_v21 = vmul.f32 %v8823_v36, %v9551_v49 }
 0x15e   : > { %v676_v40 = vpack.c.bf16 %v672_v21, %v671_v37 }
 0x160   : > { %8076 = vmatmul.mubr.msk.bf16.gmra.mrb[4].mxu0 %vm567_vm0, %v676_v40 }
 0x22b   : > { %v8073_v29 = vpop.f32.mrb[0].mxu0 }
 0x22c   : > { %v741_v38 = vpop.f32.mrb[1].mxu0  ;;  %v750_v39 = vadd.f32 %v8073_v29, %v7515_v41 }
 0x22d   : > { %v8074_v42 = vpop.f32.mrb[2].mxu0  ;;  %v742_v45 = vadd.f32 %v7515_v41, %v741_v38 }
 0x22e   : > { %v753_v43 = vadd.f32 %v8074_v42, %v7515_v41  ;;  %v744_v44 = vpop.f32.mrb[3].mxu0 }
 0x22f   : > { %v745_v46 = vadd.f32 %v7515_v41, %v744_v44 }
 0x230   : > { %v9582_v47 = vpack.c.bf16 %v753_v43, %v750_v39 }
 0x231   : > { %v9584_v48 = vpack.c.bf16 %v745_v46, %v742_v45 }
 0x232   : > { %782 = vrot.lane.b32.xlu1 %v9582_v47, %s11760_s23 }
 0x233   : > { %780 = vrot.lane.b32.xlu0 %v9584_v48, %s11760_s23  ;;  %v8077_v49 = vpop.f32.mrb[4].mxu0  ;;  %8087 = vmatprep.mubr.msk.bf16.mxu1 %vm788_vm1, %v9584_v48 }
 0x234   : > { %v757_v50 = vpop.f32.mrb[5].mxu0  ;;  %v766_v52 = vadd.f32 %v8077_v49, %v7515_v41 }
 0x235   : > { %v8078_v51 = vpop.f32.mrb[6].mxu0  ;;  %v758_v55 = vadd.f32 %v7515_v41, %v757_v50 }
 0x236   : > { %v769_v53 = vadd.f32 %v8078_v51, %v7515_v41  ;;  %v760_v54 = vpop.f32.mrb[7].mxu0 }
 0x237   : > { %v761_v56 = vadd.f32 %v7515_v41, %v760_v54 }
 0x238   : > { %v9592_v57 = vpack.c.bf16 %v769_v53, %v766_v52 }
 0x239   : > { %v9594_v58 = vpack.c.bf16 %v761_v56, %v758_v55 }
 0x23b   : > { %784 = vrot.lane.b32.xlu1 %v9594_v58, %s11760_s23 }
 0x23f   : > { %786 = vrot.lane.b32.xlu1 %v9592_v57, %s11760_s23 }
 0x2a4   : > { %v783_v61 = vpop.permute.xlu1 %782 }
 0x2a5   : > { %v781_v59 = vpop.permute.xlu0 %780  ;;  %v805_v62 = vsel %vm788_vm1, %v783_v61, 0 }
 0x2a6   : > { %8695 = vmatprep.subr.msk.bf16.mxu1 %vm788_vm1, %v781_v59  ;;  %v802_v60 = vsel %vm788_vm1, %v781_v59, 0 }
 0x2a7   : > { %8080 = vmatpush3.bf16.xpose.msra.mxu1 %v802_v60 }
 0x2a8   : > { %8696 = vmatprep.subr.msk.bf16.mxu1 %vm788_vm1, %v783_v61 }
 0x2ad   : > { %v785_v63 = vpop.permute.xlu1 %784 }
 0x2ae   : > { %v808_v0 = vsel %vm788_vm1, %v785_v63, 0 }
 0x2af   : > { %8082 = vmatpush3.bf16.xpose.msra.mxu1 %v805_v62 }
 0x2b0   : > { %8697 = vmatprep.subr.msk.bf16.mxu1 %vm788_vm1, %v785_v63 }
 0x2b1   : > { %v787_v1 = vpop.permute.xlu1 %786 }
 0x2b2   : > { %v811_v2 = vsel %vm788_vm1, %v787_v1, 0 }
 0x2b7   : > { %8084 = vmatpush3.bf16.xpose.msra.mxu1 %v808_v0 }
 0x2b8   : > { %8698 = vmatprep.subr.msk.bf16.mxu1 %vm788_vm1, %v787_v1 }
 0x2bf   : > { %8086 = vmatpush3.bf16.xpose.msra.mxu1 %v811_v2 }
 0x2c6   : > { %8088 = vmatmul.mubr.msk.bf16.vlgmr.msra.gmra.mrb[0].mxu1 %vm788_vm1, %v9582_v47 }
 0x2c7   : > { %8091 = vmatprep.mubr.msk.bf16.mxu1 %vm788_vm1, %v9594_v58 }
 0x2ce   : > { %8092 = vmatmul.mubr.msk.bf16.gmra.mrb[4].mxu1 %vm788_vm1, %v9592_v57 }
 0x399   : > { %v8089_v3 = vpop.f32.mrb[0].mxu1 }
 0x39a   : > { %v880_v4 = vmul.f32 0.35355338, %v8089_v3  ;;  %v847_v5 = vpop.f32.mrb[1].mxu1 }
 0x39b   : > { %v8090_v6 = vpop.f32.mrb[2].mxu1  ;;  %v878_v7 = vmul.f32 0.35355338, %v847_v5 }
 0x39c   : > { %v850_v8 = vpop.f32.mrb[3].mxu1  ;;  %v893_v9 = vsel %vm886_vm2, %v880_v4, -inf  ;;  %v881_v12 = vmul.f32 0.35355338, %v8090_v6 }
 0x39d   : > { %v879_v10 = vmul.f32 0.35355338, %v850_v8  ;;  %894 = vmax.xlane.f32.xlu0 %v893_v9  ;;  %v887_v13 = vsel %vm886_vm2, %v878_v7, -inf }
 0x39e   : > { %v896_v19 = vsel %vm886_vm2, %v881_v12, -inf }
 0x39f   : > { %v890_v11 = vsel %vm886_vm2, %v879_v10, -inf }
 0x3a0   : > { %891 = vmax.xlane.f32.xlu1 %v890_v11 }
 0x3a1   : > { %888 = vmax.xlane.f32.xlu0 %v887_v13  ;;  %v8093_v14 = vpop.f32.mrb[4].mxu1 }
 0x3a2   : > { %v863_v15 = vpop.f32.mrb[5].mxu1  ;;  %v884_v17 = vmul.f32 0.35355338, %v8093_v14 }
 0x3a3   : > { %v8094_v16 = vpop.f32.mrb[6].mxu1  ;;  %v882_v22 = vmul.f32 0.35355338, %v863_v15 }
 0x3a4   : > { %v866_v18 = vpop.f32.mrb[7].mxu1  ;;  %v905_v23 = vsel %vm886_vm2, %v884_v17, -inf  ;;  %v9626_v25 = vmul.f32 0.35355338, %v8094_v16 }
 0x3a5   : > { %897 = vmax.xlane.f32.xlu0 %v896_v19  ;;  %v899_v24 = vsel %vm886_vm2, %v882_v22, -inf  ;;  %v9628_v26 = vmul.f32 0.35355338, %v866_v18 }
 0x3a6   : > { %v908_v27 = vsel %vm886_vm2, %v9626_v25, -inf }
 0x3a7   : > { %v902_v30 = vsel %vm886_vm2, %v9628_v26, -inf }
 0x3a9   : > { %906 = vmax.xlane.f32.xlu0 %v905_v23 }
 0x3ad   : > { %900 = vmax.xlane.f32.xlu0 %v899_v24 }
 0x3b1   : > { %981 = vrot.lane.b32.xlu1 %v9582_v47, %s11756_s26 }
 0x3b5   : > { %983 = vrot.lane.b32.xlu1 %v9594_v58, %s11756_s26 }
 0x3c3   : > { %979 = vrot.lane.b32.xlu0 %v9584_v48, %s11756_s26 }
 0x3d9   : > { %909 = vmax.xlane.f32.xlu1 %v908_v27 }
 0x3dd   : > { %903 = vmax.xlane.f32.xlu1 %v902_v30 }
 0x3ee   : > { %985 = vrot.lane.b32.xlu1 %v9592_v57, %s11756_s26 }
 0x42a   : > { %v895_v31 = vpop.xlane.xlu0 %894 }
 0x42b   : > { %v913_v32 = vsub.f32 %v880_v4, %v895_v31 }
 0x42d   : > { %v923_v33 = vmul.f32 1.442695, %v913_v32  ;;  %v892_v34 = vpop.xlane.xlu1 %891 }
 0x42e   : > { %v889_v20 = vpop.xlane.xlu0 %888  ;;  %v912_v35 = vsub.f32 %v879_v10, %v892_v34 }
 0x42f   : > { %8824 = vpow2.f32 %v923_v33  ;;  %v911_v28 = vsub.f32 %v878_v7, %v889_v20 }
 0x430   : > { %v921_v40 = vmul.f32 1.442695, %v912_v35 }
 0x431   : > { %v919_v36 = vmul.f32 1.442695, %v911_v28  ;;  %v982_v50 = vpop.permute.xlu1 %981 }
 0x432   : > { %v898_v37 = vpop.xlane.xlu0 %897 }
 0x433   : > { %8826 = vpow2.f32 %v919_v36  ;;  %v914_v21 = vsub.f32 %v881_v12, %v898_v37 }
 0x435   : > { %v925_v29 = vmul.f32 1.442695, %v914_v21  ;;  %v984_v56 = vpop.permute.xlu1 %983 }
 0x436   : > { %v907_v41 = vpop.xlane.xlu0 %906 }
 0x437   : > { %8828 = vpow2.f32 %v925_v29  ;;  %v917_v38 = vsub.f32 %v884_v17, %v907_v41 }
 0x438   : > { %8830 = vpow2.f32 %v921_v40 }
 0x439   : > { %v9636_v42 = vpop.eup %8824  ;;  %v931_v39 = vmul.f32 1.442695, %v917_v38 }
 0x43a   : > { %v901_v43 = vpop.xlane.xlu0 %900  ;;  %v941_v44 = vsel %vm886_vm2, %v9636_v42, 0.0 }
 0x43b   : > { %8832 = vpow2.f32 %v931_v39  ;;  %v915_v45 = vsub.f32 %v882_v22, %v901_v43  ;;  %942 = vadd.xlane.f32.xlu0 %v941_v44 }
 0x43d   : > { %v9640_v46 = vpop.eup %8826  ;;  %v927_v49 = vmul.f32 1.442695, %v915_v45 }
 0x43e   : > { %v980_v51 = vpop.permute.xlu0 %979  ;;  %v935_v52 = vsel %vm886_vm2, %v9640_v46, 0.0 }
 0x43f   : > { %8834 = vpow2.f32 %v927_v49  ;;  %936 = vadd.xlane.f32.xlu0 %v935_v52  ;;  %8095 = vmatprep.subr.bf16.mxu0 %v980_v51 }
 0x440   : > { %8096 = vmatpush3.bf16.msra.mxu0 %v980_v51 }
 0x441   : > { %v8829_v53 = vpop.eup %8828  ;;  %8097 = vmatprep.subr.bf16.mxu0 %v982_v50 }
 0x442   : > { %v944_v54 = vsel %vm886_vm2, %v8829_v53, 0.0  ;;  %v8831_v55 = vpop.eup %8830 }
 0x443   : > { %945 = vadd.xlane.f32.xlu1 %v944_v54  ;;  %v938_v61 = vsel %vm886_vm2, %v8831_v55, 0.0 }
 0x444   : > { %8098 = vmatpush3.bf16.msra.mxu0 %v982_v50 }
 0x445   : > { %v9645_v59 = vpop.eup %8832  ;;  %8099 = vmatprep.subr.bf16.mxu0 %v984_v56 }
 0x446   : > { %v953_v60 = vsel %vm886_vm2, %v9645_v59, 0.0 }
 0x447   : > { %954 = vadd.xlane.f32.xlu0 %v953_v60  ;;  %939 = vadd.xlane.f32.xlu1 %v938_v61 }
 0x448   : > { %8100 = vmatpush3.bf16.msra.mxu0 %v984_v56 }
 0x449   : > { %v9650_v62 = vpop.eup %8834 }
 0x44a   : > { %v947_v63 = vsel %vm886_vm2, %v9650_v62, 0.0 }
 0x44b   : > { %948 = vadd.xlane.f32.xlu0 %v947_v63 }
 0x458   : > { %1086 = vrot.lane.b32.xlu1 %v9582_v47, %s11762_s27 }
 0x45c   : > { %1088 = vrot.lane.b32.xlu1 %v9594_v58, %s11762_s27 }
 0x466   : > { %v910_v0 = vpop.xlane.xlu1 %909 }
 0x467   : > { %v918_v1 = vsub.f32 %v9626_v25, %v910_v0 }
 0x469   : > { %v933_v2 = vmul.f32 1.442695, %v918_v1 }
 0x46a   : > { %v904_v3 = vpop.xlane.xlu1 %903 }
 0x46b   : > { %8836 = vpow2.f32 %v933_v2  ;;  %v916_v4 = vsub.f32 %v9628_v26, %v904_v3 }
 0x46d   : > { %v929_v5 = vmul.f32 1.442695, %v916_v4 }
 0x46e   : > { %v986_v6 = vpop.permute.xlu1 %985 }
 0x46f   : > { %8101 = vmatprep.subr.bf16.mxu0 %v986_v6  ;;  %8838 = vpow2.f32 %v929_v5 }
 0x470   : > { %8102 = vmatpush3.bf16.msra.mxu0 %v986_v6 }
 0x475   : > { %v8837_v7 = vpop.eup %8836 }
 0x476   : > { %v956_v8 = vsel %vm886_vm2, %v8837_v7, 0.0 }
 0x477   : > { %957 = vadd.xlane.f32.xlu0 %v956_v8 }
 0x479   : > { %v8839_v9 = vpop.eup %8838 }
 0x47a   : > { %v950_v10 = vsel %vm886_vm2, %v8839_v9, 0.0 }
 0x480   : > { %951 = vadd.xlane.f32.xlu1 %v950_v10 }
 0x48d   : > { %1084 = vrot.lane.b32.xlu0 %v9584_v48, %s11762_s27 }
 0x491   : > { %1076 = vrot.lane.b32.xlu0 %v9584_v48, %s11758_s28  ;;  %1090 = vrot.lane.b32.xlu1 %v9592_v57, %s11762_s27 }
 0x495   : > { %1080 = vrot.lane.b32.xlu0 %v9594_v58, %s11758_s28  ;;  %1078 = vrot.lane.b32.xlu1 %v9582_v47, %s11758_s28 }
 0x499   : > { %1082 = vrot.lane.b32.xlu1 %v9592_v57, %s11758_s28 }
 0x4c8   : > { %v943_v11 = vpop.xlane.xlu0 %942 }
 0x4cc   : > { %v937_v13 = vpop.xlane.xlu0 %936 }
 0x4d0   : > { %v946_v12 = vpop.xlane.xlu1 %945 }
 0x4d1   : > { %8840 = vrcp.f32 %v946_v12 }
 0x4d2   : > { %8842 = vrcp.f32 %v937_v13 }
 0x4d3   : > { %8844 = vrcp.f32 %v943_v11 }
 0x4d4   : > { %v940_v14 = vpop.xlane.xlu1 %939  ;;  %v955_v27 = vpop.xlane.xlu0 %954 }
 0x4d5   : > { %8846 = vrcp.f32 %v940_v14 }
 0x4d8   : > { %v949_v30 = vpop.xlane.xlu0 %948  ;;  %v1087_v31 = vpop.permute.xlu1 %1086 }
 0x4d9   : > { %v1108_v35 = vsel %vm788_vm1, %v1087_v31, 0 }
 0x4db   : > { %v8841_v15 = vpop.eup %8840 }
 0x4dc   : > { %v8843_v16 = vpop.eup %8842  ;;  %v970_v19 = vmul.f32 %v8841_v15, %v8829_v53  ;;  %v1089_v34 = vpop.permute.xlu1 %1088 }
 0x4dd   : > { %v8845_v17 = vpop.eup %8844  ;;  %v967_v22 = vmul.f32 %v8843_v16, %v9640_v46  ;;  %v1111_v41 = vsel %vm788_vm1, %v1089_v34, 0 }
 0x4de   : > { %v969_v24 = vmul.f32 %v8845_v17, %v9636_v42 }
 0x4df   : > { %v8847_v18 = vpop.eup %8846 }
 0x4e0   : > { %v968_v23 = vmul.f32 %v8847_v18, %v8831_v55  ;;  %v976_v26 = vpack.c.bf16 %v970_v19, %v969_v24 }
 0x4e2   : > { %v975_v25 = vpack.c.bf16 %v968_v23, %v967_v22 }
 0x4e4   : > { %8103 = vmatprep.mubr.msk.bf16.mxu0 %vm886_vm2, %v975_v25 }
 0x4e5   : > { %8104 = vmatmul.mubr.msk.bf16.vlgmr.msra.gmra.mrb[8].mxu0 %vm886_vm2, %v976_v26 }
 0x504   : > { %v958_v32 = vpop.xlane.xlu0 %957 }
 0x505   : > { %8848 = vrcp.f32 %v958_v32 }
 0x506   : > { %8850 = vrcp.f32 %v949_v30 }
 0x507   : > { %8852 = vrcp.f32 %v955_v27 }
 0x508   : > { %v1085_v33 = vpop.permute.xlu0 %1084 }
 0x509   : > { %8699 = vmatprep.subr.msk.bf16.mxu0 %vm788_vm1, %v1085_v33  ;;  %v1105_v20 = vsel %vm788_vm1, %v1085_v33, 0 }
 0x50a   : > { %8112 = vmatpush3.bf16.xpose.msra.mxu0 %v1105_v20 }
 0x50b   : > { %8700 = vmatprep.subr.msk.bf16.mxu0 %vm788_vm1, %v1087_v31 }
 0x50c   : > { %v1077_v46 = vpop.permute.xlu0 %1076 }
 0x50d   : > { %v952_v28 = vpop.xlane.xlu1 %951 }
 0x50e   : > { %8854 = vrcp.f32 %v952_v28 }
 0x50f   : > { %v8849_v36 = vpop.eup %8848 }
 0x510   : > { %v8851_v37 = vpop.eup %8850  ;;  %v974_v29 = vmul.f32 %v8849_v36, %v8837_v7  ;;  %v1081_v51 = vpop.permute.xlu0 %1080 }
 0x511   : > { %v8853_v21 = vpop.eup %8852  ;;  %v971_v38 = vmul.f32 %v8851_v37, %v9650_v62  ;;  %v1091_v39 = vpop.permute.xlu1 %1090 }
 0x512   : > { %8114 = vmatpush3.bf16.xpose.msra.mxu0 %v1108_v35  ;;  %v973_v43 = vmul.f32 %v8853_v21, %v9645_v59  ;;  %v1114_v49 = vsel %vm788_vm1, %v1091_v39, 0 }
 0x513   : > { %8701 = vmatprep.subr.msk.bf16.mxu0 %vm788_vm1, %v1089_v34 }
 0x514   : > { %v978_v45 = vpack.c.bf16 %v974_v29, %v973_v43 }
 0x515   : > { %v1079_v50 = vpop.permute.xlu1 %1078 }
 0x518   : > { %v8855_v40 = vpop.eup %8854 }
 0x519   : > { %v972_v42 = vmul.f32 %v8855_v40, %v8839_v9  ;;  %v1083_v52 = vpop.permute.xlu1 %1082 }
 0x51a   : > { %8116 = vmatpush3.bf16.xpose.msra.mxu0 %v1111_v41 }
 0x51b   : > { %8702 = vmatprep.subr.msk.bf16.mxu0 %vm788_vm1, %v1091_v39  ;;  %v977_v44 = vpack.c.bf16 %v972_v42, %v971_v38 }
 0x51d   : > { %8107 = vmatprep.mubr.msk.bf16.mxu0 %vm886_vm2, %v977_v44 }
 0x51e   : > { %8108 = vmatmul.mubr.msk.bf16.gmra.mrb[12].mxu0 %vm886_vm2, %v978_v45 }
 0x51f   : > { %8119 = vmatprep.mubr.msk.bf16.mxu0 %vm788_vm1, %v1077_v46 }
 0x522   : > { %8118 = vmatpush3.bf16.xpose.msra.mxu0 %v1114_v49 }
 0x529   : > { %8120 = vmatmul.mubr.msk.bf16.vlgmr.msra.gmra.mrb[16].mxu0 %vm788_vm1, %v1079_v50 }
 0x52a   : > { %8123 = vmatprep.mubr.msk.bf16.mxu0 %vm788_vm1, %v1081_v51 }
 0x531   : > { %8124 = vmatmul.mubr.msk.bf16.gmra.mrb[20].mxu0 %vm788_vm1, %v1083_v52 }
 0x5b8   : > { %v8105_v53 = vpop.f32.mrb[8].mxu0 }
 0x5b9   : > { %1070 = vst.msk [vmem:[#allocation2 + $0x10] sm:$0xff] %vm788_vm1, %v8105_v53  ;;  %v1037_v54 = vpop.f32.mrb[9].mxu0 }
 0x5ba   : > { %1068 = vst.msk [vmem:[#allocation2] sm:$0xff] %vm788_vm1, %v1037_v54  ;;  %v8106_v55 = vpop.f32.mrb[10].mxu0 }
 0x5bb   : > { %1071 = vst.msk [vmem:[#allocation2 + $0x18] sm:$0xff] %vm788_vm1, %v8106_v55  ;;  %v1040_v56 = vpop.f32.mrb[11].mxu0 }
 0x5bc   : > { %1069 = vst.msk [vmem:[#allocation2 + $0x8] sm:$0xff] %vm788_vm1, %v1040_v56 }
 0x5f1   : > { %v8109_v59 = vpop.f32.mrb[12].mxu0 }
 0x5f2   : > { %1074 = vst.msk [vmem:[#allocation2 + $0x30] sm:$0xff] %vm788_vm1, %v8109_v59  ;;  %v1053_v60 = vpop.f32.mrb[13].mxu0 }
 0x5f3   : > { %1072 = vst.msk [vmem:[#allocation2 + $0x20] sm:$0xff] %vm788_vm1, %v1053_v60  ;;  %v8110_v61 = vpop.f32.mrb[14].mxu0 }
 0x5f4   : > { %1075 = vst.msk [vmem:[#allocation2 + $0x38] sm:$0xff] %vm788_vm1, %v8110_v61  ;;  %v1056_v62 = vpop.f32.mrb[15].mxu0 }
 0x5f5   : > { %1073 = vst.msk [vmem:[#allocation2 + $0x28] sm:$0xff] %vm788_vm1, %v1056_v62 }
 0x5fc   : > { %v8121_v63 = vpop.f32.mrb[16].mxu0 }
 0x5fd   : > { %v1183_v0 = vmul.f32 0.35355338, %v8121_v63  ;;  %v1150_v1 = vpop.f32.mrb[17].mxu0 }
 0x5fe   : > { %v8122_v2 = vpop.f32.mrb[18].mxu0  ;;  %v1181_v3 = vmul.f32 0.35355338, %v1150_v1 }
 0x5ff   : > { %v1153_v4 = vpop.f32.mrb[19].mxu0  ;;  %v1195_v5 = vsel %vm886_vm2, %v1183_v0, -inf  ;;  %v1184_v8 = vmul.f32 0.35355338, %v8122_v2 }
 0x600   : > { %v1182_v6 = vmul.f32 0.35355338, %v1153_v4  ;;  %1196 = vmax.xlane.f32.xlu0 %v1195_v5  ;;  %v1189_v9 = vsel %vm886_vm2, %v1181_v3, -inf }
 0x601   : > { %v1198_v15 = vsel %vm886_vm2, %v1184_v8, -inf }
 0x602   : > { %v1192_v7 = vsel %vm886_vm2, %v1182_v6, -inf }
 0x603   : > { %1193 = vmax.xlane.f32.xlu1 %v1192_v7 }
 0x604   : > { %1190 = vmax.xlane.f32.xlu0 %v1189_v9  ;;  %v8125_v10 = vpop.f32.mrb[20].mxu0 }
 0x605   : > { %v1166_v11 = vpop.f32.mrb[21].mxu0  ;;  %v1187_v13 = vmul.f32 0.35355338, %v8125_v10 }
 0x606   : > { %v8126_v12 = vpop.f32.mrb[22].mxu0  ;;  %v1185_v16 = vmul.f32 0.35355338, %v1166_v11 }
 0x607   : > { %v1169_v14 = vpop.f32.mrb[23].mxu0  ;;  %v1207_v17 = vsel %vm886_vm2, %v1187_v13, -inf  ;;  %v9714_v19 = vmul.f32 0.35355338, %v8126_v12 }
 0x608   : > { %1199 = vmax.xlane.f32.xlu0 %v1198_v15  ;;  %v1201_v18 = vsel %vm886_vm2, %v1185_v16, -inf  ;;  %v9716_v22 = vmul.f32 0.35355338, %v1169_v14 }
 0x609   : > { %v1210_v23 = vsel %vm886_vm2, %v9714_v19, -inf }
 0x60a   : > { %v1204_v24 = vsel %vm886_vm2, %v9716_v22, -inf }
 0x60c   : > { %1208 = vmax.xlane.f32.xlu0 %v1207_v17 }
 0x610   : > { %1202 = vmax.xlane.f32.xlu0 %v1201_v18 }
 0x614   : > { %1283 = vrot.lane.b32.xlu1 %v9582_v47, %s11748_s29 }
 0x618   : > { %1285 = vrot.lane.b32.xlu1 %v9594_v58, %s11748_s29 }
 0x626   : > { %1281 = vrot.lane.b32.xlu0 %v9584_v48, %s11748_s29 }
 0x63c   : > { %1211 = vmax.xlane.f32.xlu1 %v1210_v23 }
 0x640   : > { %1205 = vmax.xlane.f32.xlu1 %v1204_v24 }
 0x651   : > { %1287 = vrot.lane.b32.xlu1 %v9592_v57, %s11748_s29  ;;  %s11750_s29 = smov 24  }
 0x68d   : > { %v1197_v25 = vpop.xlane.xlu0 %1196 }
 0x68e   : > { %v1215_v26 = vsub.f32 %v1183_v0, %v1197_v25 }
 0x690   : > { %v1225_v27 = vmul.f32 1.442695, %v1215_v26  ;;  %v1194_v30 = vpop.xlane.xlu1 %1193 }
 0x691   : > { %v1191_v31 = vpop.xlane.xlu0 %1190  ;;  %v1214_v33 = vsub.f32 %v1182_v6, %v1194_v30 }
 0x692   : > { %8856 = vpow2.f32 %v1225_v27  ;;  %v1213_v32 = vsub.f32 %v1181_v3, %v1191_v31 }
 0x693   : > { %v1223_v35 = vmul.f32 1.442695, %v1214_v33 }
 0x694   : > { %v1221_v34 = vmul.f32 1.442695, %v1213_v32  ;;  %v1284_v44 = vpop.permute.xlu1 %1283 }
 0x695   : > { %v1200_v20 = vpop.xlane.xlu0 %1199 }
 0x696   : > { %8858 = vpow2.f32 %v1221_v34  ;;  %v1216_v28 = vsub.f32 %v1184_v8, %v1200_v20 }
 0x698   : > { %v1227_v36 = vmul.f32 1.442695, %v1216_v28  ;;  %v1286_v52 = vpop.permute.xlu1 %1285 }
 0x699   : > { %v1209_v37 = vpop.xlane.xlu0 %1208 }
 0x69a   : > { %8860 = vpow2.f32 %v1227_v36  ;;  %v1219_v21 = vsub.f32 %v1187_v13, %v1209_v37 }
 0x69b   : > { %8862 = vpow2.f32 %v1223_v35 }
 0x69c   : > { %v9724_v40 = vpop.eup %8856  ;;  %v1233_v29 = vmul.f32 1.442695, %v1219_v21 }
 0x69d   : > { %v1203_v41 = vpop.xlane.xlu0 %1202  ;;  %v1243_v38 = vsel %vm886_vm2, %v9724_v40, 0.0 }
 0x69e   : > { %8864 = vpow2.f32 %v1233_v29  ;;  %v1217_v42 = vsub.f32 %v1185_v16, %v1203_v41  ;;  %1244 = vadd.xlane.f32.xlu0 %v1243_v38 }
 0x6a0   : > { %v9728_v39 = vpop.eup %8858  ;;  %v1229_v43 = vmul.f32 1.442695, %v1217_v42 }
 0x6a1   : > { %v1282_v45 = vpop.permute.xlu0 %1281  ;;  %v1237_v46 = vsel %vm886_vm2, %v9728_v39, 0.0 }
 0x6a2   : > { %8866 = vpow2.f32 %v1229_v43  ;;  %1238 = vadd.xlane.f32.xlu0 %v1237_v46  ;;  %8127 = vmatprep.subr.bf16.mxu1 %v1282_v45 }
 0x6a3   : > { %8128 = vmatpush3.bf16.msra.mxu1 %v1282_v45 }
 0x6a4   : > { %v8861_v49 = vpop.eup %8860  ;;  %8129 = vmatprep.subr.bf16.mxu1 %v1284_v44 }
 0x6a5   : > { %v1246_v50 = vsel %vm886_vm2, %v8861_v49, 0.0  ;;  %v8863_v51 = vpop.eup %8862 }
 0x6a6   : > { %1247 = vadd.xlane.f32.xlu1 %v1246_v50  ;;  %v1240_v55 = vsel %vm886_vm2, %v8863_v51, 0.0 }
 0x6a7   : > { %8130 = vmatpush3.bf16.msra.mxu1 %v1284_v44 }
 0x6a8   : > { %v9733_v53 = vpop.eup %8864  ;;  %8131 = vmatprep.subr.bf16.mxu1 %v1286_v52 }
 0x6a9   : > { %v1255_v54 = vsel %vm886_vm2, %v9733_v53, 0.0 }
 0x6aa   : > { %1256 = vadd.xlane.f32.xlu0 %v1255_v54  ;;  %1241 = vadd.xlane.f32.xlu1 %v1240_v55 }
 0x6ab   : > { %8132 = vmatpush3.bf16.msra.mxu1 %v1286_v52 }
 0x6ac   : > { %v9738_v56 = vpop.eup %8866 }
 0x6ad   : > { %v1249_v59 = vsel %vm886_vm2, %v9738_v56, 0.0 }
 0x6ae   : > { %1250 = vadd.xlane.f32.xlu0 %v1249_v59 }
 0x6bb   : > { %1421 = vrot.lane.b32.xlu1 %v9582_v47, %s11746_s30 }
 0x6bf   : > { %1423 = vrot.lane.b32.xlu1 %v9594_v58, %s11746_s30 }
 0x6c9   : > { %v1212_v60 = vpop.xlane.xlu1 %1211 }
 0x6ca   : > { %v1220_v61 = vsub.f32 %v9714_v19, %v1212_v60 }
 0x6cc   : > { %v1235_v62 = vmul.f32 1.442695, %v1220_v61 }
 0x6cd   : > { %v1206_v63 = vpop.xlane.xlu1 %1205 }
 0x6ce   : > { %8868 = vpow2.f32 %v1235_v62  ;;  %v1218_v0 = vsub.f32 %v9716_v22, %v1206_v63 }
 0x6d0   : > { %v1231_v1 = vmul.f32 1.442695, %v1218_v0 }
 0x6d1   : > { %v1288_v2 = vpop.permute.xlu1 %1287 }
 0x6d2   : > { %8133 = vmatprep.subr.bf16.mxu1 %v1288_v2  ;;  %8870 = vpow2.f32 %v1231_v1 }
 0x6d3   : > { %8134 = vmatpush3.bf16.msra.mxu1 %v1288_v2 }
 0x6d8   : > { %v8869_v3 = vpop.eup %8868 }
 0x6d9   : > { %v1258_v4 = vsel %vm886_vm2, %v8869_v3, 0.0 }
 0x6da   : > { %1259 = vadd.xlane.f32.xlu0 %v1258_v4 }
 0x6dc   : > { %v8871_v5 = vpop.eup %8870 }
 0x6dd   : > { %v1252_v6 = vsel %vm886_vm2, %v8871_v5, 0.0 }
 0x6e3   : > { %1253 = vadd.xlane.f32.xlu1 %v1252_v6 }
 0x6f0   : > { %1419 = vrot.lane.b32.xlu0 %v9584_v48, %s11746_s30 }
 0x6f4   : > { %1411 = vrot.lane.b32.xlu0 %v9584_v48, %s11744_s18  ;;  %1425 = vrot.lane.b32.xlu1 %v9592_v57, %s11746_s30  ;;  %s11785_s30 = smov 48  }
 0x6f8   : > { %1415 = vrot.lane.b32.xlu0 %v9594_v58, %s11744_s18  ;;  %1413 = vrot.lane.b32.xlu1 %v9582_v47, %s11744_s18 }
 0x6fc   : > { %1417 = vrot.lane.b32.xlu1 %v9592_v57, %s11744_s18  ;;  %s11786_s18 = smov 72  }
 0x72b   : > { %v1245_v7 = vpop.xlane.xlu0 %1244 }
 0x72f   : > { %v1239_v9 = vpop.xlane.xlu0 %1238 }
 0x733   : > { %v1248_v8 = vpop.xlane.xlu1 %1247 }
 0x734   : > { %8872 = vrcp.f32 %v1248_v8 }
 0x735   : > { %8874 = vrcp.f32 %v1239_v9 }
 0x736   : > { %8876 = vrcp.f32 %v1245_v7 }
 0x737   : > { %v1242_v10 = vpop.xlane.xlu1 %1241  ;;  %v1257_v23 = vpop.xlane.xlu0 %1256 }
 0x738   : > { %8878 = vrcp.f32 %v1242_v10 }
 0x73b   : > { %v1251_v24 = vpop.xlane.xlu0 %1250  ;;  %v1422_v25 = vpop.permute.xlu1 %1421 }
 0x73c   : > { %v1443_v33 = vsel %vm788_vm1, %v1422_v25, 0 }
 0x73e   : > { %v8873_v11 = vpop.eup %8872 }
 0x73f   : > { %v8875_v12 = vpop.eup %8874  ;;  %v1272_v15 = vmul.f32 %v8873_v11, %v8861_v49  ;;  %v1424_v30 = vpop.permute.xlu1 %1423 }
 0x740   : > { %v8877_v13 = vpop.eup %8876  ;;  %v1269_v16 = vmul.f32 %v8875_v12, %v9728_v39  ;;  %v1446_v37 = vsel %vm788_vm1, %v1424_v30, 0 }
 0x741   : > { %v1271_v18 = vmul.f32 %v8877_v13, %v9724_v40 }
 0x742   : > { %v8879_v14 = vpop.eup %8878 }
 0x743   : > { %v1270_v17 = vmul.f32 %v8879_v14, %v8863_v51  ;;  %v1278_v22 = vpack.c.bf16 %v1272_v15, %v1271_v18 }
 0x745   : > { %v1277_v19 = vpack.c.bf16 %v1270_v17, %v1269_v16 }
 0x747   : > { %8135 = vmatprep.mubr.msk.bf16.mxu1 %vm886_vm2, %v1277_v19 }
 0x748   : > { %8136 = vmatmul.mubr.msk.bf16.vlgmr.msra.gmra.mrb[8].mxu1 %vm886_vm2, %v1278_v22 }
 0x767   : > { %v1260_v26 = vpop.xlane.xlu0 %1259 }
 0x768   : > { %8880 = vrcp.f32 %v1260_v26 }
 0x769   : > { %8882 = vrcp.f32 %v1251_v24 }
 0x76a   : > { %8884 = vrcp.f32 %v1257_v23 }
 0x76b   : > { %v1420_v27 = vpop.permute.xlu0 %1419 }
 0x76c   : > { %8703 = vmatprep.subr.msk.bf16.mxu1 %vm788_vm1, %v1420_v27  ;;  %v1440_v31 = vsel %vm788_vm1, %v1420_v27, 0 }
 0x76d   : > { %8144 = vmatpush3.bf16.xpose.msra.mxu1 %v1440_v31 }
 0x76e   : > { %8704 = vmatprep.subr.msk.bf16.mxu1 %vm788_vm1, %v1422_v25 }
 0x76f   : > { %v1412_v39 = vpop.permute.xlu0 %1411 }
 0x770   : > { %v1254_v32 = vpop.xlane.xlu1 %1253 }
 0x771   : > { %8886 = vrcp.f32 %v1254_v32 }
 0x772   : > { %v8881_v34 = vpop.eup %8880 }
 0x773   : > { %v8883_v20 = vpop.eup %8882  ;;  %v1276_v36 = vmul.f32 %v8881_v34, %v8869_v3  ;;  %v1416_v45 = vpop.permute.xlu0 %1415 }
 0x774   : > { %v8885_v28 = vpop.eup %8884  ;;  %v1273_v21 = vmul.f32 %v8883_v20, %v9738_v56  ;;  %v1426_v29 = vpop.permute.xlu1 %1425 }
 0x775   : > { %8146 = vmatpush3.bf16.xpose.msra.mxu1 %v1443_v33  ;;  %v1275_v41 = vmul.f32 %v8885_v28, %v9733_v53  ;;  %v1449_v43 = vsel %vm788_vm1, %v1426_v29, 0 }
 0x776   : > { %8705 = vmatprep.subr.msk.bf16.mxu1 %vm788_vm1, %v1424_v30 }
 0x777   : > { %v1280_v42 = vpack.c.bf16 %v1276_v36, %v1275_v41 }
 0x778   : > { %v1414_v44 = vpop.permute.xlu1 %1413 }
 0x77b   : > { %v8887_v35 = vpop.eup %8886 }
 0x77c   : > { %v1274_v40 = vmul.f32 %v8887_v35, %v8871_v5  ;;  %v1418_v46 = vpop.permute.xlu1 %1417 }
 0x77d   : > { %8148 = vmatpush3.bf16.xpose.msra.mxu1 %v1446_v37 }
 0x77e   : > { %8706 = vmatprep.subr.msk.bf16.mxu1 %vm788_vm1, %v1426_v29  ;;  %v1279_v38 = vpack.c.bf16 %v1274_v40, %v1273_v21 }
 0x780   : > { %8139 = vmatprep.mubr.msk.bf16.mxu1 %vm886_vm2, %v1279_v38 }
 0x781   : > { %8140 = vmatmul.mubr.msk.bf16.gmra.mrb[12].mxu1 %vm886_vm2, %v1280_v42 }
 0x782   : > { %8151 = vmatprep.mubr.msk.bf16.mxu1 %vm788_vm1, %v1412_v39 }
 0x785   : > { %8150 = vmatpush3.bf16.xpose.msra.mxu1 %v1449_v43 }
 0x78c   : > { %8152 = vmatmul.mubr.msk.bf16.vlgmr.msra.gmra.mrb[16].mxu1 %vm788_vm1, %v1414_v44 }
 0x78d   : > { %8155 = vmatprep.mubr.msk.bf16.mxu1 %vm788_vm1, %v1416_v45 }
 0x794   : > { %8156 = vmatmul.mubr.msk.bf16.gmra.mrb[20].mxu1 %vm788_vm1, %v1418_v46 }
 0x81b   : > { %v9782_v49 = vpop.f32.mrb[8].mxu1 }
 0x81c   : > { %v9784_v50 = vpop.f32.mrb[9].mxu1 }
 0x81d   : > { %v9786_v51 = vpop.f32.mrb[10].mxu1 }
 0x81e   : > { %v9788_v52 = vpop.f32.mrb[11].mxu1 }
 0x854   : > { %v9790_v53 = vpop.f32.mrb[12].mxu1 }
 0x855   : > { %v9792_v54 = vpop.f32.mrb[13].mxu1 }
 0x856   : > { %v9794_v55 = vpop.f32.mrb[14].mxu1 }
 0x857   : > { %v9796_v56 = vpop.f32.mrb[15].mxu1 }
 0x85f   : > { %v8153_v59 = vpop.f32.mrb[16].mxu1 }
 0x860   : > { %v1518_v60 = vmul.f32 0.35355338, %v8153_v59  ;;  %v1485_v61 = vpop.f32.mrb[17].mxu1 }
 0x861   : > { %v8154_v62 = vpop.f32.mrb[18].mxu1  ;;  %v1516_v63 = vmul.f32 0.35355338, %v1485_v61 }
 0x862   : > { %v1488_v0 = vpop.f32.mrb[19].mxu1  ;;  %v1530_v1 = vsel %vm886_vm2, %v1518_v60, -inf  ;;  %v1519_v4 = vmul.f32 0.35355338, %v8154_v62 }
 0x863   : > { %v1517_v2 = vmul.f32 0.35355338, %v1488_v0  ;;  %1531 = vmax.xlane.f32.xlu0 %v1530_v1  ;;  %v1524_v5 = vsel %vm886_vm2, %v1516_v63, -inf }
 0x864   : > { %v1533_v11 = vsel %vm886_vm2, %v1519_v4, -inf }
 0x865   : > { %v1527_v3 = vsel %vm886_vm2, %v1517_v2, -inf }
 0x866   : > { %1528 = vmax.xlane.f32.xlu1 %v1527_v3 }
 0x867   : > { %1525 = vmax.xlane.f32.xlu0 %v1524_v5  ;;  %v8157_v6 = vpop.f32.mrb[20].mxu1 }
 0x868   : > { %v1501_v7 = vpop.f32.mrb[21].mxu1  ;;  %v1522_v9 = vmul.f32 0.35355338, %v8157_v6 }
 0x869   : > { %v8158_v8 = vpop.f32.mrb[22].mxu1  ;;  %v1520_v12 = vmul.f32 0.35355338, %v1501_v7 }
 0x86a   : > { %v1504_v10 = vpop.f32.mrb[23].mxu1  ;;  %v1542_v13 = vsel %vm886_vm2, %v1522_v9, -inf  ;;  %v9810_v15 = vmul.f32 0.35355338, %v8158_v8 }
 0x86b   : > { %1534 = vmax.xlane.f32.xlu0 %v1533_v11  ;;  %v1536_v14 = vsel %vm886_vm2, %v1520_v12, -inf  ;;  %v9812_v16 = vmul.f32 0.35355338, %v1504_v10 }
 0x86c   : > { %v1545_v17 = vsel %vm886_vm2, %v9810_v15, -inf }
 0x86d   : > { %v1539_v18 = vsel %vm886_vm2, %v9812_v16, -inf }
 0x86f   : > { %1543 = vmax.xlane.f32.xlu0 %v1542_v13 }
 0x873   : > { %1537 = vmax.xlane.f32.xlu0 %v1536_v14 }
 0x877   : > { %1618 = vrot.lane.b32.xlu1 %v9582_v47, %s11742_s1 }
 0x87b   : > { %1620 = vrot.lane.b32.xlu1 %v9594_v58, %s11742_s1 }
 0x889   : > { %1616 = vrot.lane.b32.xlu0 %v9584_v48, %s11742_s1 }
 0x89f   : > { %1546 = vmax.xlane.f32.xlu1 %v1545_v17 }
 0x8a3   : > { %1540 = vmax.xlane.f32.xlu1 %v1539_v18 }
 0x8b4   : > { %1622 = vrot.lane.b32.xlu1 %v9592_v57, %s11742_s1  ;;  %s11787_s1 = smov 104  }
 0x8f0   : > { %v1532_v19 = vpop.xlane.xlu0 %1531 }
 0x8f1   : > { %v1550_v22 = vsub.f32 %v1518_v60, %v1532_v19 }
 0x8f3   : > { %v1560_v23 = vmul.f32 1.442695, %v1550_v22  ;;  %v1529_v24 = vpop.xlane.xlu1 %1528 }
 0x8f4   : > { %v1526_v25 = vpop.xlane.xlu0 %1525  ;;  %v1549_v27 = vsub.f32 %v1517_v2, %v1529_v24 }
 0x8f5   : > { %8888 = vpow2.f32 %v1560_v23  ;;  %v1548_v26 = vsub.f32 %v1516_v63, %v1526_v25 }
 0x8f6   : > { %v1558_v33 = vmul.f32 1.442695, %v1549_v27 }
 0x8f7   : > { %v1556_v30 = vmul.f32 1.442695, %v1548_v26  ;;  %v1619_v38 = vpop.permute.xlu1 %1618 }
 0x8f8   : > { %v1535_v31 = vpop.xlane.xlu0 %1534 }
 0x8f9   : > { %8890 = vpow2.f32 %v1556_v30  ;;  %v1551_v32 = vsub.f32 %v1519_v4, %v1535_v31 }
 0x8fb   : > { %v1562_v34 = vmul.f32 1.442695, %v1551_v32  ;;  %v1621_v46 = vpop.permute.xlu1 %1620 }
 0x8fc   : > { %v1544_v20 = vpop.xlane.xlu0 %1543 }
 0x8fd   : > { %8892 = vpow2.f32 %v1562_v34  ;;  %v1554_v28 = vsub.f32 %v1522_v9, %v1544_v20 }
 0x8fe   : > { %8894 = vpow2.f32 %v1558_v33 }
 0x8ff   : > { %v9820_v35 = vpop.eup %8888  ;;  %v1568_v36 = vmul.f32 1.442695, %v1554_v28 }
 0x900   : > { %v1538_v37 = vpop.xlane.xlu0 %1537  ;;  %v1578_v21 = vsel %vm886_vm2, %v9820_v35, 0.0 }
 0x901   : > { %8896 = vpow2.f32 %v1568_v36  ;;  %v1552_v40 = vsub.f32 %v1520_v12, %v1538_v37  ;;  %1579 = vadd.xlane.f32.xlu0 %v1578_v21 }
 0x903   : > { %v9824_v29 = vpop.eup %8890  ;;  %v1564_v41 = vmul.f32 1.442695, %v1552_v40 }
 0x904   : > { %v1617_v42 = vpop.permute.xlu0 %1616  ;;  %v1572_v39 = vsel %vm886_vm2, %v9824_v29, 0.0 }
 0x905   : > { %8898 = vpow2.f32 %v1564_v41  ;;  %1573 = vadd.xlane.f32.xlu0 %v1572_v39  ;;  %8159 = vmatprep.subr.bf16.mxu0 %v1617_v42 }
 0x906   : > { %8160 = vmatpush3.bf16.msra.mxu0 %v1617_v42 }
 0x907   : > { %v8893_v43 = vpop.eup %8892  ;;  %8161 = vmatprep.subr.bf16.mxu0 %v1619_v38 }
 0x908   : > { %v1581_v44 = vsel %vm886_vm2, %v8893_v43, 0.0  ;;  %v8895_v45 = vpop.eup %8894 }
 0x909   : > { %1582 = vadd.xlane.f32.xlu1 %v1581_v44  ;;  %v1575_v61 = vsel %vm886_vm2, %v8895_v45, 0.0 }
 0x90a   : > { %8162 = vmatpush3.bf16.msra.mxu0 %v1619_v38 }
 0x90b   : > { %v9829_v59 = vpop.eup %8896  ;;  %8163 = vmatprep.subr.bf16.mxu0 %v1621_v46 }
 0x90c   : > { %v1590_v60 = vsel %vm886_vm2, %v9829_v59, 0.0 }
 0x90d   : > { %1591 = vadd.xlane.f32.xlu0 %v1590_v60  ;;  %1576 = vadd.xlane.f32.xlu1 %v1575_v61 }
 0x90e   : > { %8164 = vmatpush3.bf16.msra.mxu0 %v1621_v46 }
 0x90f   : > { %v9834_v62 = vpop.eup %8898 }
 0x910   : > { %v1584_v63 = vsel %vm886_vm2, %v9834_v62, 0.0 }
 0x911   : > { %1585 = vadd.xlane.f32.xlu0 %v1584_v63 }
 0x91e   : > { %1756 = vrot.lane.b32.xlu1 %v9582_v47, %s11738_s20 }
 0x922   : > { %1758 = vrot.lane.b32.xlu1 %v9594_v58, %s11738_s20 }
 0x92c   : > { %v1547_v0 = vpop.xlane.xlu1 %1546 }
 0x92d   : > { %v1555_v1 = vsub.f32 %v9810_v15, %v1547_v0 }
 0x92f   : > { %v1570_v2 = vmul.f32 1.442695, %v1555_v1 }
 0x930   : > { %v1541_v3 = vpop.xlane.xlu1 %1540 }
 0x931   : > { %8900 = vpow2.f32 %v1570_v2  ;;  %v1553_v4 = vsub.f32 %v9812_v16, %v1541_v3 }
 0x933   : > { %v1566_v5 = vmul.f32 1.442695, %v1553_v4 }
 0x934   : > { %v1623_v6 = vpop.permute.xlu1 %1622 }
 0x935   : > { %8165 = vmatprep.subr.bf16.mxu0 %v1623_v6  ;;  %8902 = vpow2.f32 %v1566_v5 }
 0x936   : > { %8166 = vmatpush3.bf16.msra.mxu0 %v1623_v6 }
 0x93b   : > { %v8901_v7 = vpop.eup %8900 }
 0x93c   : > { %v1593_v8 = vsel %vm886_vm2, %v8901_v7, 0.0 }
 0x93d   : > { %1594 = vadd.xlane.f32.xlu0 %v1593_v8 }
 0x93f   : > { %v8903_v9 = vpop.eup %8902 }
 0x940   : > { %v1587_v10 = vsel %vm886_vm2, %v8903_v9, 0.0 }
 0x946   : > { %1588 = vadd.xlane.f32.xlu1 %v1587_v10 }
 0x953   : > { %1754 = vrot.lane.b32.xlu0 %v9584_v48, %s11738_s20 }
 0x957   : > { %1746 = vrot.lane.b32.xlu0 %v9584_v48, %s11736_s21  ;;  %1760 = vrot.lane.b32.xlu1 %v9592_v57, %s11738_s20  ;;  %s11752_s20 = smov 16  }
 0x95b   : > { %1750 = vrot.lane.b32.xlu0 %v9594_v58, %s11736_s21  ;;  %1748 = vrot.lane.b32.xlu1 %v9582_v47, %s11736_s21 }
 0x95f   : > { %1752 = vrot.lane.b32.xlu1 %v9592_v57, %s11736_s21  ;;  %s11754_s21 = smov 8  }
 0x98e   : > { %v1580_v11 = vpop.xlane.xlu0 %1579 }
 0x992   : > { %v1574_v13 = vpop.xlane.xlu0 %1573 }
 0x996   : > { %v1583_v12 = vpop.xlane.xlu1 %1582 }
 0x997   : > { %8904 = vrcp.f32 %v1583_v12 }
 0x998   : > { %8906 = vrcp.f32 %v1574_v13 }
 0x999   : > { %8908 = vrcp.f32 %v1580_v11 }
 0x99a   : > { %v1577_v14 = vpop.xlane.xlu1 %1576  ;;  %v1592_v27 = vpop.xlane.xlu0 %1591 }
 0x99b   : > { %8910 = vrcp.f32 %v1577_v14 }
 0x99e   : > { %v1586_v30 = vpop.xlane.xlu0 %1585  ;;  %v1757_v31 = vpop.permute.xlu1 %1756 }
 0x9a1   : > { %v8905_v15 = vpop.eup %8904 }
 0x9a2   : > { %v8907_v16 = vpop.eup %8906  ;;  %v1607_v19 = vmul.f32 %v8905_v15, %v8893_v43  ;;  %v1759_v34 = vpop.permute.xlu1 %1758 }
 0x9a3   : > { %v8909_v17 = vpop.eup %8908  ;;  %v1604_v22 = vmul.f32 %v8907_v16, %v9824_v29  ;;  %v1781_v41 = vsel %vm788_vm1, %v1759_v34, 0 }
 0x9a4   : > { %v1606_v24 = vmul.f32 %v8909_v17, %v9820_v35  ;;  %v1778_v35 = vsel %vm788_vm1, %v1757_v31, 0 }
 0x9a5   : > { %v8911_v18 = vpop.eup %8910 }
 0x9a6   : > { %v1605_v23 = vmul.f32 %v8911_v18, %v8895_v45  ;;  %v1613_v26 = vpack.c.bf16 %v1607_v19, %v1606_v24 }
 0x9a8   : > { %v1612_v25 = vpack.c.bf16 %v1605_v23, %v1604_v22 }
 0x9aa   : > { %8167 = vmatprep.mubr.msk.bf16.mxu0 %vm886_vm2, %v1612_v25 }
 0x9ab   : > { %8168 = vmatmul.mubr.msk.bf16.vlgmr.msra.gmra.mrb[24].mxu0 %vm886_vm2, %v1613_v26 }
 0x9ca   : > { %v1595_v32 = vpop.xlane.xlu0 %1594 }
 0x9cb   : > { %8912 = vrcp.f32 %v1595_v32 }
 0x9cc   : > { %8914 = vrcp.f32 %v1586_v30 }
 0x9cd   : > { %8916 = vrcp.f32 %v1592_v27 }
 0x9ce   : > { %v1755_v33 = vpop.permute.xlu0 %1754 }
 0x9cf   : > { %8707 = vmatprep.subr.msk.bf16.mxu0 %vm788_vm1, %v1755_v33  ;;  %v1775_v20 = vsel %vm788_vm1, %v1755_v33, 0 }
 0x9d0   : > { %8176 = vmatpush3.bf16.xpose.msra.mxu0 %v1775_v20 }
 0x9d1   : > { %8708 = vmatprep.subr.msk.bf16.mxu0 %vm788_vm1, %v1757_v31 }
 0x9d2   : > { %v1747_v46 = vpop.permute.xlu0 %1746 }
 0x9d3   : > { %v1589_v28 = vpop.xlane.xlu1 %1588 }
 0x9d4   : > { %8918 = vrcp.f32 %v1589_v28 }
 0x9d5   : > { %v8913_v36 = vpop.eup %8912 }
 0x9d6   : > { %v8915_v37 = vpop.eup %8914  ;;  %v1611_v29 = vmul.f32 %v8913_v36, %v8901_v7 }
 0x9d7   : > { %v8917_v21 = vpop.eup %8916  ;;  %v1608_v38 = vmul.f32 %v8915_v37, %v9834_v62  ;;  %v1761_v39 = vpop.permute.xlu1 %1760 }
 0x9d8   : > { %8178 = vmatpush3.bf16.xpose.msra.mxu0 %v1778_v35  ;;  %v1610_v43 = vmul.f32 %v8917_v21, %v9829_v59  ;;  %v1784_v60 = vsel %vm788_vm1, %v1761_v39, 0  ;;  %v1751_v62 = vpop.permute.xlu0 %1750 }
 0x9d9   : > { %8709 = vmatprep.subr.msk.bf16.mxu0 %vm788_vm1, %v1759_v34 }
 0x9da   : > { %v1615_v45 = vpack.c.bf16 %v1611_v29, %v1610_v43 }
 0x9db   : > { %v1749_v61 = vpop.permute.xlu1 %1748 }
 0x9de   : > { %v8919_v40 = vpop.eup %8918 }
 0x9df   : > { %v1609_v42 = vmul.f32 %v8919_v40, %v8903_v9  ;;  %v1753_v59 = vpop.permute.xlu1 %1752 }
 0x9e0   : > { %8180 = vmatpush3.bf16.xpose.msra.mxu0 %v1781_v41 }
 0x9e1   : > { %8710 = vmatprep.subr.msk.bf16.mxu0 %vm788_vm1, %v1761_v39  ;;  %v1614_v44 = vpack.c.bf16 %v1609_v42, %v1608_v38 }
 0x9e3   : > { %8171 = vmatprep.mubr.msk.bf16.mxu0 %vm886_vm2, %v1614_v44 }
 0x9e4   : > { %8172 = vmatmul.mubr.msk.bf16.gmra.mrb[28].mxu0 %vm886_vm2, %v1615_v45 }
 0x9e5   : > { %8183 = vmatprep.mubr.msk.bf16.mxu0 %vm788_vm1, %v1747_v46 }
 0x9e8   : > { %8182 = vmatpush3.bf16.xpose.msra.mxu0 %v1784_v60 }
 0x9ef   : > { %8184 = vmatmul.mubr.msk.bf16.vlgmr.msra.gmra.mrb[32].mxu0 %vm788_vm1, %v1749_v61 }
 0x9f0   : > { %8187 = vmatprep.mubr.msk.bf16.mxu0 %vm788_vm1, %v1751_v62 }
 0x9f7   : > { %8188 = vmatmul.mubr.msk.bf16.gmra.mrb[36].mxu0 %vm788_vm1, %v1753_v59 }
 0xa7e   : > { %v9878_v63 = vpop.f32.mrb[24].mxu0 }
 0xa7f   : > { %v9880_v0 = vpop.f32.mrb[25].mxu0 }
 0xa80   : > { %v9882_v1 = vpop.f32.mrb[26].mxu0 }
 0xa81   : > { %v9884_v2 = vpop.f32.mrb[27].mxu0 }
 0xab7   : > { %v9886_v3 = vpop.f32.mrb[28].mxu0 }
 0xab8   : > { %v9888_v4 = vpop.f32.mrb[29].mxu0 }
 0xab9   : > { %v9890_v5 = vpop.f32.mrb[30].mxu0 }
 0xaba   : > { %v9892_v6 = vpop.f32.mrb[31].mxu0 }
 0xac2   : > { %v8185_v7 = vpop.f32.mrb[32].mxu0 }
 0xac3   : > { %v1820_v8 = vpop.f32.mrb[33].mxu0  ;;  %v1853_v12 = vmul.f32 0.35355338, %v8185_v7 }
 0xac4   : > { %v1851_v9 = vmul.f32 0.35355338, %v1820_v8  ;;  %v8186_v10 = vpop.f32.mrb[34].mxu0 }
 0xac5   : > { %v1823_v11 = vpop.f32.mrb[35].mxu0  ;;  %v1854_v16 = vmul.f32 0.35355338, %v8186_v10  ;;  %v1865_v18 = vsel %vm886_vm2, %v1853_v12, -inf }
 0xac6   : > { %v1852_v13 = vmul.f32 0.35355338, %v1823_v11  ;;  %v1859_v14 = vsel %vm886_vm2, %v1851_v9, -inf }
 0xac7   : > { %1860 = vmax.xlane.f32.xlu0 %v1859_v14  ;;  %v1868_v26 = vsel %vm886_vm2, %v1854_v16, -inf }
 0xac8   : > { %v1862_v15 = vsel %vm886_vm2, %v1852_v13, -inf }
 0xac9   : > { %1863 = vmax.xlane.f32.xlu1 %v1862_v15 }
 0xaca   : > { %v8189_v17 = vpop.f32.mrb[36].mxu0 }
 0xacb   : > { %1866 = vmax.xlane.f32.xlu0 %v1865_v18  ;;  %v1836_v19 = vpop.f32.mrb[37].mxu0  ;;  %v1857_v31 = vmul.f32 0.35355338, %v8189_v17 }
 0xacc   : > { %v8190_v22 = vpop.f32.mrb[38].mxu0  ;;  %v1855_v24 = vmul.f32 0.35355338, %v1836_v19 }
 0xacd   : > { %v1839_v23 = vpop.f32.mrb[39].mxu0  ;;  %v1858_v27 = vmul.f32 0.35355338, %v8190_v22  ;;  %v1877_v34 = vsel %vm886_vm2, %v1857_v31, -inf }
 0xace   : > { %v1856_v25 = vmul.f32 0.35355338, %v1839_v23  ;;  %v1871_v32 = vsel %vm886_vm2, %v1855_v24, -inf }
 0xacf   : > { %1869 = vmax.xlane.f32.xlu0 %v1868_v26  ;;  %v1880_v33 = vsel %vm886_vm2, %v1858_v27, -inf }
 0xad0   : > { %v1874_v30 = vsel %vm886_vm2, %v1856_v25, -inf }
 0xad1   : > { %1875 = vmax.xlane.f32.xlu1 %v1874_v30 }
 0xad3   : > { %1872 = vmax.xlane.f32.xlu0 %v1871_v32 }
 0xad5   : > { %1881 = vmax.xlane.f32.xlu1 %v1880_v33 }
 0xad7   : > { %1878 = vmax.xlane.f32.xlu0 %v1877_v34 }
 0xaed   : > { %1951 = vrot.lane.b32.xlu0 %v9584_v48, %s11740_s22 }
 0xb54   : > { %v1861_v20 = vpop.xlane.xlu0 %1860 }
 0xb55   : > { %v1883_v28 = vsub.f32 %v1851_v9, %v1861_v20 }
 0xb56   : > { %v1864_v35 = vpop.xlane.xlu1 %1863 }
 0xb57   : > { %v1891_v21 = vmul.f32 1.442695, %v1883_v28  ;;  %v1884_v40 = vsub.f32 %v1852_v13, %v1864_v35 }
 0xb58   : > { %v1867_v36 = vpop.xlane.xlu0 %1866 }
 0xb59   : > { %v1885_v37 = vsub.f32 %v1853_v12, %v1867_v36  ;;  %v1893_v39 = vmul.f32 1.442695, %v1884_v40 }
 0xb5b   : > { %v1895_v29 = vmul.f32 1.442695, %v1885_v37 }
 0xb5c   : > { %v1870_v41 = vpop.xlane.xlu0 %1869 }
 0xb5d   : > { %8920 = vpow2.f32 %v1895_v29  ;;  %v1886_v38 = vsub.f32 %v1854_v16, %v1870_v41 }
 0xb5e   : > { %v1876_v42 = vpop.xlane.xlu1 %1875  ;;  %8922 = vpow2.f32 %v1891_v21 }
 0xb5f   : > { %v1897_v43 = vmul.f32 1.442695, %v1886_v38  ;;  %v1888_v12 = vsub.f32 %v1856_v25, %v1876_v42 }
 0xb60   : > { %v1873_v44 = vpop.xlane.xlu0 %1872 }
 0xb61   : > { %8924 = vpow2.f32 %v1897_v43  ;;  %v1887_v45 = vsub.f32 %v1855_v24, %v1873_v44  ;;  %v1901_v17 = vmul.f32 1.442695, %v1888_v12  ;;  %v8774_v12 = vld [vmem:[%s11778_s3 + $0x8] sm:$0xff]  }
 0xb62   : > { %8926 = vpow2.f32 %v1893_v39  ;;  %v1882_v48 = vpop.xlane.xlu1 %1881 }
 0xb63   : > { %v1899_v62 = vmul.f32 1.442695, %v1887_v45  ;;  %v1890_v59 = vsub.f32 %v1858_v27, %v1882_v48 }
 0xb64   : > { %v1879_v46 = vpop.xlane.xlu0 %1878 }
 0xb65   : > { %v1889_v60 = vsub.f32 %v1857_v31, %v1879_v46  ;;  %v1905_v13 = vmul.f32 1.442695, %v1890_v59 }
 0xb67   : > { %v9904_v61 = vpop.eup %8920  ;;  %v1903_v7 = vmul.f32 1.442695, %v1889_v60 }
 0xb68   : > { %v1952_v8 = vpop.permute.xlu0 %1951  ;;  %v1913_v9 = vsel %vm886_vm2, %v9904_v61, 0.0  ;;  %v9908_v10 = vpop.eup %8922 }
 0xb69   : > { %8928 = vpow2.f32 %v1903_v7  ;;  %1914 = vadd.xlane.f32.xlu0 %v1913_v9  ;;  %8191 = vmatprep.subr.bf16.mxu1 %v1952_v8  ;;  %v1907_v14 = vsel %vm886_vm2, %v9908_v10, 0.0 }
 0xb6a   : > { %8192 = vmatpush3.bf16.msra.mxu1 %v1952_v8  ;;  %8930 = vpow2.f32 %v1899_v62 }
 0xb6b   : > { %v9910_v11 = vpop.eup %8924  ;;  %8932 = vpow2.f32 %v1905_v13 }
 0xb6c   : > { %v1916_v15 = vsel %vm886_vm2, %v9910_v11, 0.0  ;;  %v8927_v16 = vpop.eup %8926  ;;  %8934 = vpow2.f32 %v1901_v17 }
 0xb6d   : > { %1908 = vadd.xlane.f32.xlu0 %v1907_v14  ;;  %1917 = vadd.xlane.f32.xlu1 %v1916_v15  ;;  %v1910_v18 = vsel %vm886_vm2, %v8927_v16, 0.0 }
 0xb71   : > { %1911 = vadd.xlane.f32.xlu1 %v1910_v18 }
 0xb73   : > { %v9917_v19 = vpop.eup %8928 }
 0xb74   : > { %v1925_v22 = vsel %vm886_vm2, %v9917_v19, 0.0  ;;  %v9921_v23 = vpop.eup %8930 }
 0xb75   : > { %1926 = vadd.xlane.f32.xlu1 %v1925_v22  ;;  %v1919_v24 = vsel %vm886_vm2, %v9921_v23, 0.0  ;;  %v9925_v25 = vpop.eup %8932 }
 0xb76   : > { %v1928_v26 = vsel %vm886_vm2, %v9925_v25, 0.0  ;;  %v9929_v27 = vpop.eup %8934 }
 0xb77   : > { %v1922_v30 = vsel %vm886_vm2, %v9929_v27, 0.0 }
 0xb79   : > { %1920 = vadd.xlane.f32.xlu1 %v1919_v24 }
 0xb7d   : > { %1929 = vadd.xlane.f32.xlu1 %v1928_v26 }
 0xb81   : > { %1923 = vadd.xlane.f32.xlu1 %v1922_v30 }
 0xb83   : > { %1955 = vrot.lane.b32.xlu0 %v9594_v58, %s11740_s22 }
 0xb87   : > { %1957 = vrot.lane.b32.xlu0 %v9592_v57, %s11740_s22 }
 0xb8b   : > { %1378 = vrot.lane.b32.xlu0 %v9784_v50, %s11754_s21 }
 0xb8f   : > { %1382 = vrot.lane.b32.xlu0 %v9782_v49, %s11754_s21 }
 0xb92   : > { %1953 = vrot.lane.b32.xlu1 %v9582_v47, %s11740_s22  ;;  %s11788_s22 = smov 40  }
 0xb93   : > { %1713 = vrot.lane.b32.xlu0 %v9880_v0, %s11752_s20 }
 0xb96   : > { %1380 = vrot.lane.b32.xlu1 %v9788_v52, %s11754_s21 }
 0xb97   : > { %1717 = vrot.lane.b32.xlu0 %v9878_v63, %s11752_s20 }
 0xb9a   : > { %1384 = vrot.lane.b32.xlu1 %v9786_v51, %s11754_s21 }
 0xb9b   : > { %1386 = vrot.lane.b32.xlu0 %v9792_v54, %s11754_s21 }
 0xb9e   : > { %1715 = vrot.lane.b32.xlu1 %v9884_v2, %s11752_s20 }
 0xba2   : > { %1719 = vrot.lane.b32.xlu1 %v9882_v1, %s11752_s20 }
 0xba6   : > { %1388 = vrot.lane.b32.xlu1 %v9796_v56, %s11754_s21 }
 0xbf6   : > { %v1915_v47 = vpop.xlane.xlu0 %1914 }
 0xbfa   : > { %v1909_v57 = vpop.xlane.xlu0 %1908  ;;  %v1918_v58 = vpop.xlane.xlu1 %1917 }
 0xbfb   : > { %8936 = vrcp.f32 %v1909_v57 }
 0xbfe   : > { %v1956_v49 = vpop.permute.xlu0 %1955  ;;  %v1912_v50 = vpop.xlane.xlu1 %1911 }
 0xbff   : > { %8938 = vrcp.f32 %v1912_v50 }
 0xc00   : > { %8940 = vrcp.f32 %v1918_v58 }
 0xc01   : > { %8942 = vrcp.f32 %v1915_v47 }
 0xc02   : > { %v1958_v51 = vpop.permute.xlu0 %1957  ;;  %v1927_v52 = vpop.xlane.xlu1 %1926 }
 0xc05   : > { %v8937_v0 = vpop.eup %8936 }
 0xc06   : > { %v1379_v54 = vpop.permute.xlu0 %1378  ;;  %v1921_v63 = vpop.xlane.xlu1 %1920  ;;  %v1939_v56 = vmul.f32 %v8937_v0, %v9908_v10  ;;  %v8773_v10 = vld [vmem:[%s11778_s3] sm:$0xff]  }
 0xc07   : > { %1403 = vst.msk [vmem:[#allocation2] sm:$0xff] %vm1402_vm3, %v1379_v54  ;;  %8944 = vrcp.f32 %v1921_v63 }
 0xc09   : > { %v8939_v2 = vpop.eup %8938 }
 0xc0a   : > { %v1383_v1 = vpop.permute.xlu0 %1382  ;;  %v1930_v31 = vpop.xlane.xlu1 %1929  ;;  %v1940_v32 = vmul.f32 %v8939_v2, %v8927_v16 }
 0xc0b   : > { %1405 = vst.msk [vmem:[#allocation2 + $0x10] sm:$0xff] %vm1402_vm3, %v1383_v1  ;;  %v8941_v36 = vpop.eup %8940 }
 0xc0c   : > { %v1947_v33 = vpack.c.bf16 %v1940_v32, %v1939_v56  ;;  %v8943_v40 = vpop.eup %8942  ;;  %v1942_v38 = vmul.f32 %v8941_v36, %v9910_v11 }
 0xc0d   : > { %v1941_v43 = vmul.f32 %v8943_v40, %v9904_v61 }
 0xc0e   : > { %v1714_v34 = vpop.permute.xlu0 %1713  ;;  %8199 = vmatprep.mubr.msk.bf16.mxu1 %vm886_vm2, %v1947_v33  ;;  %v1924_v20 = vpop.xlane.xlu1 %1923  ;;  %v9366_v33 = vld [vmem:[%s9503_s0] sm:$0xff] }
 0xc0f   : > { %1738 = vst.msk [vmem:[#allocation2] sm:$0xff] %vm1737_vm4, %v1714_v34  ;;  %8946 = vrcp.f32 %v1924_v20  ;;  %v1948_v45 = vpack.c.bf16 %v1942_v38, %v1941_v43 }
 0xc10   : > { %8948 = vrcp.f32 %v1930_v31 }
 0xc11   : > { %8950 = vrcp.f32 %v1927_v52  ;;  %v8945_v29 = vpop.eup %8944 }
 0xc12   : > { %v1718_v28 = vpop.permute.xlu0 %1717  ;;  %v1954_v35 = vpop.permute.xlu1 %1953  ;;  %v1943_v44 = vmul.f32 %v8945_v29, %v9921_v23 }
 0xc13   : > { %1740 = vst.msk [vmem:[#allocation2 + $0x10] sm:$0xff] %vm1737_vm4, %v1718_v28  ;;  %8193 = vmatprep.subr.bf16.mxu1 %v1954_v35 }
 0xc14   : > { %8194 = vmatpush3.bf16.msra.mxu1 %v1954_v35  ;;  %v9367_v35 = vld [vmem:[%s9503_s0 + $0x10] sm:$0xff] }
 0xc15   : > { %8195 = vmatprep.subr.bf16.mxu1 %v1956_v49 }
 0xc16   : > { %v1387_v37 = vpop.permute.xlu0 %1386  ;;  %v1381_v21 = vpop.permute.xlu1 %1380 }
 0xc17   : > { %1407 = vst.msk [vmem:[#allocation2 + $0x20] sm:$0xff] %vm1402_vm3, %v1387_v37  ;;  %1404 = vst.msk [vmem:[#allocation2 + $0x8] sm:$0xff] %vm1402_vm3, %v1381_v21  ;;  %v9368_v37 = vld [vmem:[%s9503_s0 + $0x8] sm:$0xff] }
 0xc18   : > { %8196 = vmatpush3.bf16.msra.mxu1 %v1956_v49 }
 0xc19   : > { %v8947_v41 = vpop.eup %8946  ;;  %8197 = vmatprep.subr.bf16.mxu1 %v1958_v51 }
 0xc1a   : > { %v1385_v42 = vpop.permute.xlu1 %1384  ;;  %v1944_v39 = vmul.f32 %v8947_v41, %v9929_v27  ;;  %v8949_v48 = vpop.eup %8948  ;;  %v9369_v41 = vld [vmem:[%s9503_s0 + $0x18] sm:$0xff] }
 0xc1b   : > { %1406 = vst.msk [vmem:[#allocation2 + $0x18] sm:$0xff] %vm1402_vm3, %v1385_v42  ;;  %v8951_v62 = vpop.eup %8950  ;;  %v1946_v59 = vmul.f32 %v8949_v48, %v9925_v25 }
 0xc1c   : > { %8198 = vmatpush3.bf16.msra.mxu1 %v1958_v51  ;;  %v1949_v60 = vpack.c.bf16 %v1944_v39, %v1943_v44  ;;  %v1945_v61 = vmul.f32 %v8951_v62, %v9917_v19  ;;  %v9371_v62 = vld [vmem:[%s9503_s0 + $0x30] sm:$0xff] }
 0xc1d   : > { %8207 = vmatprep.subr.bf16.mxu1 %v8773_v10 }
 0xc1e   : > { %v1716_v46 = vpop.permute.xlu1 %1715  ;;  %v1950_v8 = vpack.c.bf16 %v1946_v59, %v1945_v61 }
 0xc1f   : > { %1739 = vst.msk [vmem:[#allocation2 + $0x8] sm:$0xff] %vm1737_vm4, %v1716_v46  ;;  %8200 = vmatmul.mubr.msk.bf16.vlgmr.msra.gmra.mrb[24].mxu1 %vm886_vm2, %v1948_v45  ;;  %v9370_v45 = vld [vmem:[%s9503_s0 + $0x20] sm:$0xff] }
 0xc20   : > { %8203 = vmatprep.mubr.msk.bf16.mxu1 %vm886_vm2, %v1949_v60  ;;  %8208 = vmatpush3.bf16.msra.mxu1 %v8773_v10 }
 0xc21   : > { %8209 = vmatprep.subr.bf16.mxu1 %v8774_v12 }
 0xc22   : > { %v1720_v7 = vpop.permute.xlu1 %1719 }
 0xc23   : > { %1741 = vst.msk [vmem:[#allocation2 + $0x18] sm:$0xff] %vm1737_vm4, %v1720_v7  ;;  %v9372_v7 = vld [vmem:[%s9503_s0 + $0x28] sm:$0xff] }
 0xc24   : > { %8210 = vmatpush3.bf16.msra.mxu1 %v8774_v12 }
 0xc26   : > { %v1389_v9 = vpop.permute.xlu1 %1388 }
 0xc27   : > { %1408 = vst.msk [vmem:[#allocation2 + $0x28] sm:$0xff] %vm1402_vm3, %v1389_v9  ;;  %8204 = vmatmul.mubr.msk.bf16.gmra.mrb[28].mxu1 %vm886_vm2, %v1950_v8  ;;  %v9373_v9 = vld [vmem:[%s9503_s0 + $0x38] sm:$0xff]  ;;  %s11789_s0 = smov 8  }
 0xcf2   : > { %v8201_v11 = vpop.f32.mrb[24].mxu1 }
 0xcf3   : > { %2052 = vrot.lane.b32.xlu0 %v8201_v11, %s11750_s29  ;;  %v2009_v13 = vpop.f32.mrb[25].mxu1 }
 0xcf4   : > { %v8202_v14 = vpop.f32.mrb[26].mxu1 }
 0xcf5   : > { %2054 = vrot.lane.b32.xlu1 %v8202_v14, %s11750_s29  ;;  %v2012_v15 = vpop.f32.mrb[27].mxu1 }
 0xcf7   : > { %2048 = vrot.lane.b32.xlu0 %v2009_v13, %s11750_s29 }
 0xcf9   : > { %2050 = vrot.lane.b32.xlu1 %v2012_v15, %s11750_s29 }
 0xcfa   : > { %v8205_v16 = vpop.f32.mrb[28].mxu1 }
 0xcfb   : > { %1390 = vrot.lane.b32.xlu0 %v9790_v53, %s11754_s21  ;;  %v2025_v17 = vpop.f32.mrb[29].mxu1 }
 0xcfc   : > { %v8206_v18 = vpop.f32.mrb[30].mxu1 }
 0xcfd   : > { %1392 = vrot.lane.b32.xlu1 %v9794_v55, %s11754_s21  ;;  %v2028_v19 = vpop.f32.mrb[31].mxu1  ;;  %s11784_s21 = smov 112  }
 0xcff   : > { %1721 = vrot.lane.b32.xlu0 %v9888_v4, %s11752_s20 }
 0xd01   : > { %1723 = vrot.lane.b32.xlu1 %v9892_v6, %s11752_s20 }
 0xd03   : > { %1725 = vrot.lane.b32.xlu0 %v9886_v3, %s11752_s20 }
 0xd05   : > { %1727 = vrot.lane.b32.xlu1 %v9890_v5, %s11752_s20  ;;  %s11783_s20 = smov 80  }
 0xd07   : > { %2056 = vrot.lane.b32.xlu0 %v2025_v17, %s11750_s29 }
 0xd09   : > { %2058 = vrot.lane.b32.xlu1 %v2028_v19, %s11750_s29 }
 0xd0b   : > { %2060 = vrot.lane.b32.xlu0 %v8205_v16, %s11750_s29 }
 0xd0d   : > { %2062 = vrot.lane.b32.xlu1 %v8206_v18, %s11750_s29  ;;  %s11782_s29 = smov 56  }
 0xd65   : > { %v2053_v53 = vpop.permute.xlu0 %2052 }
 0xd66   : > { %2075 = vst.msk [vmem:[#allocation2 + $0x10] sm:$0xff] %vm2072_vm5, %v2053_v53 }
 0xd67   : > { %v2055_v55 = vpop.permute.xlu1 %2054 }
 0xd68   : > { %2076 = vst.msk [vmem:[#allocation2 + $0x18] sm:$0xff] %vm2072_vm5, %v2055_v55 }
 0xd69   : > { %v2049_v4 = vpop.permute.xlu0 %2048 }
 0xd6a   : > { %2073 = vst.msk [vmem:[#allocation2] sm:$0xff] %vm2072_vm5, %v2049_v4 }
 0xd6b   : > { %v2051_v3 = vpop.permute.xlu1 %2050 }
 0xd6c   : > { %2074 = vst.msk [vmem:[#allocation2 + $0x8] sm:$0xff] %vm2072_vm5, %v2051_v3 }
 0xd6d   : > { %v1391_v5 = vpop.permute.xlu0 %1390  ;;  %v2083_v30 = vld [vmem:[#allocation2 + $0x10] sm:$0xff] }
 0xd6e   : > { %1409 = vst.msk [vmem:[#allocation2 + $0x30] sm:$0xff] %vm1402_vm3, %v1391_v5 }
 0xd6f   : > { %v1393_v6 = vpop.permute.xlu1 %1392  ;;  %v2084_v23 = vld [vmem:[#allocation2 + $0x18] sm:$0xff] }
 0xd70   : > { %1410 = vst.msk [vmem:[#allocation2 + $0x38] sm:$0xff] %vm1402_vm3, %v1393_v6  ;;  %v2090_v57 = vpack.c.bf16 %v2084_v23, %v2083_v30 }
 0xd71   : > { %v1722_v22 = vpop.permute.xlu0 %1721  ;;  %v2081_v25 = vld [vmem:[#allocation2] sm:$0xff] }
 0xd72   : > { %1742 = vst.msk [vmem:[#allocation2 + $0x20] sm:$0xff] %vm1737_vm4, %v1722_v22 }
 0xd73   : > { %v1724_v24 = vpop.permute.xlu1 %1723  ;;  %v2082_v26 = vld [vmem:[#allocation2 + $0x8] sm:$0xff] }
 0xd74   : > { %1743 = vst.msk [vmem:[#allocation2 + $0x28] sm:$0xff] %vm1737_vm4, %v1724_v24  ;;  %v2089_v27 = vpack.c.bf16 %v2082_v26, %v2081_v25 }
 0xd75   : > { %v1726_v47 = vpop.permute.xlu0 %1725 }
 0xd76   : > { %1744 = vst.msk [vmem:[#allocation2 + $0x30] sm:$0xff] %vm1737_vm4, %v1726_v47  ;;  %8211 = vmatprep.mubr.msk.bf16.mxu1 %vm567_vm0, %v2089_v27 }
 0xd77   : > { %8212 = vmatmul.mubr.msk.bf16.vlgmr.msra.gmra.mrb[32].mxu1 %vm567_vm0, %v2090_v57  ;;  %v1728_v58 = vpop.permute.xlu1 %1727 }
 0xd78   : > { %1745 = vst.msk [vmem:[#allocation2 + $0x38] sm:$0xff] %vm1737_vm4, %v1728_v58 }
 0xd79   : > { %v2057_v49 = vpop.permute.xlu0 %2056 }
 0xd7a   : > { %2077 = vst.msk [vmem:[#allocation2 + $0x20] sm:$0xff] %vm2072_vm5, %v2057_v49 }
 0xd7b   : > { %v2059_v50 = vpop.permute.xlu1 %2058 }
 0xd7c   : > { %2078 = vst.msk [vmem:[#allocation2 + $0x28] sm:$0xff] %vm2072_vm5, %v2059_v50 }
 0xd7d   : > { %v2061_v51 = vpop.permute.xlu0 %2060 }
 0xd7e   : > { %2079 = vst.msk [vmem:[#allocation2 + $0x30] sm:$0xff] %vm2072_vm5, %v2061_v51 }
 0xd7f   : > { %v2063_v52 = vpop.permute.xlu1 %2062 }
 0xd80   : > { %2080 = vst.msk [vmem:[#allocation2 + $0x38] sm:$0xff] %vm2072_vm5, %v2063_v52 }
 0xd81   : > { %v2085_v54 = vld [vmem:[#allocation2 + $0x20] sm:$0xff] }
 0xd83   : > { %v2086_v63 = vld [vmem:[#allocation2 + $0x28] sm:$0xff] }
 0xd84   : > { %v2091_v0 = vpack.c.bf16 %v2086_v63, %v2085_v54 }
 0xd85   : > { %v2087_v2 = vld [vmem:[#allocation2 + $0x30] sm:$0xff] }
 0xd86   : > { %8215 = vmatprep.mubr.msk.bf16.mxu1 %vm567_vm0, %v2091_v0 }
 0xd87   : > { %v2088_v1 = vld [vmem:[#allocation2 + $0x38] sm:$0xff] }
 0xd88   : > { %v2092_v31 = vpack.c.bf16 %v2088_v1, %v2087_v2 }
 0xd8a   : > { %8216 = vmatmul.mubr.msk.bf16.gmra.mrb[36].mxu1 %vm567_vm0, %v2092_v31 }
 0xe4a   : > { %v8213_v56 = vpop.f32.mrb[32].mxu1 }
 0xe4b   : > { %v2151_v32 = vpop.f32.mrb[33].mxu1  ;;  %v10028_v36 = vadd.f32 %v9367_v35, %v8213_v56 }
 0xe4c   : > { %v10025_v34 = vadd.f32 %v9366_v33, %v2151_v32  ;;  %v8214_v20 = vpop.f32.mrb[34].mxu1 }
 0xe4d   : > { %v2154_v28 = vpop.f32.mrb[35].mxu1  ;;  %v10038_v38 = vadd.f32 %v9369_v41, %v8214_v20  ;;  %v2210_v42 = vsel %vm567_vm0, %v10028_v36, 0.0  ;;  %v8776_v41 = vld [vmem:[%s11779_s4 + $0x8] sm:$0xff]  }
 0xe4e   : > { %v10031_v21 = vadd.f32 %v9368_v37, %v2154_v28  ;;  %v2204_v40 = vsel %vm567_vm0, %v10025_v34, 0.0 }
 0xe4f   : > { %2205 = vadd.xlane.f32.xlu0 %v2204_v40  ;;  %v2213_v39 = vsel %vm567_vm0, %v10038_v38, 0.0 }
 0xe50   : > { %v2207_v29 = vsel %vm567_vm0, %v10031_v21, 0.0 }
 0xe51   : > { %2208 = vadd.xlane.f32.xlu1 %v2207_v29  ;;  %v8775_v29 = vld [vmem:[%s11779_s4] sm:$0xff]  }
 0xe52   : > { %8219 = vmatprep.subr.bf16.mxu0 %v8775_v29 }
 0xe53   : > { %2211 = vadd.xlane.f32.xlu0 %v2210_v42  ;;  %8220 = vmatpush3.bf16.msra.mxu0 %v8775_v29 }
 0xe54   : > { %8221 = vmatprep.subr.bf16.mxu0 %v8776_v41 }
 0xe57   : > { %2214 = vadd.xlane.f32.xlu0 %v2213_v39  ;;  %8222 = vmatpush3.bf16.msra.mxu0 %v8776_v41 }
 0xe5d   : > { %v8217_v43 = vpop.f32.mrb[36].mxu1 }
 0xe5e   : > { %v2167_v44 = vpop.f32.mrb[37].mxu1  ;;  %v10048_v59 = vadd.f32 %v9371_v62, %v8217_v43 }
 0xe5f   : > { %v10045_v48 = vadd.f32 %v9370_v45, %v2167_v44  ;;  %v8218_v46 = vpop.f32.mrb[38].mxu1 }
 0xe60   : > { %v2170_v60 = vpop.f32.mrb[39].mxu1  ;;  %v10056_v10 = vadd.f32 %v9373_v9, %v8218_v46  ;;  %v2222_v12 = vsel %vm567_vm0, %v10048_v59, 0.0 }
 0xe61   : > { %v10051_v61 = vadd.f32 %v9372_v7, %v2170_v60  ;;  %v2216_v8 = vsel %vm567_vm0, %v10045_v48, 0.0 }
 0xe62   : > { %2217 = vadd.xlane.f32.xlu0 %v2216_v8  ;;  %v2225_v13 = vsel %vm567_vm0, %v10056_v10, 0.0 }
 0xe63   : > { %v2219_v11 = vsel %vm567_vm0, %v10051_v61, 0.0 }
 0xe64   : > { %2220 = vadd.xlane.f32.xlu1 %v2219_v11 }
 0xe66   : > { %2223 = vadd.xlane.f32.xlu0 %v2222_v12 }
 0xe68   : > { %2226 = vadd.xlane.f32.xlu1 %v2225_v13 }
 0xedc   : > { %v2206_v14 = vpop.xlane.xlu0 %2205 }
 0xedd   : > { %v2228_v15 = vmul.f32 0.03125, %v2206_v14 }
 0xede   : > { %v2209_v16 = vpop.xlane.xlu1 %2208 }
 0xedf   : > { %v10065_v17 = vsub.f32 %v10025_v34, %v2228_v15  ;;  %v2229_v18 = vmul.f32 0.03125, %v2209_v16 }
 0xee0   : > { %v2212_v19 = vpop.xlane.xlu0 %2211 }
 0xee1   : > { %v10068_v53 = vsub.f32 %v10031_v21, %v2229_v18  ;;  %v2230_v55 = vmul.f32 0.03125, %v2212_v19  ;;  %v2244_v4 = vmul.f32 %v10065_v17, %v10065_v17 }
 0xee3   : > { %v10073_v3 = vsub.f32 %v10028_v36, %v2230_v55  ;;  %v2252_v5 = vsel %vm567_vm0, %v2244_v4, 0.0  ;;  %v2245_v6 = vmul.f32 %v10068_v53, %v10068_v53 }
 0xee4   : > { %v2215_v22 = vpop.xlane.xlu0 %2214  ;;  %2253 = vadd.xlane.f32.xlu0 %v2252_v5 }
 0xee5   : > { %v2231_v23 = vmul.f32 0.03125, %v2215_v22  ;;  %v2255_v24 = vsel %vm567_vm0, %v2245_v6, 0.0  ;;  %v2246_v25 = vmul.f32 %v10073_v3, %v10073_v3 }
 0xee6   : > { %2256 = vadd.xlane.f32.xlu1 %v2255_v24 }
 0xee7   : > { %v10082_v26 = vsub.f32 %v10038_v38, %v2231_v23  ;;  %v2258_v27 = vsel %vm567_vm0, %v2246_v25, 0.0 }
 0xee8   : > { %2259 = vadd.xlane.f32.xlu0 %v2258_v27 }
 0xee9   : > { %v2247_v30 = vmul.f32 %v10082_v26, %v10082_v26 }
 0xeeb   : > { %v2261_v47 = vsel %vm567_vm0, %v2247_v30, 0.0 }
 0xeec   : > { %2262 = vadd.xlane.f32.xlu1 %v2261_v47 }
 0xeef   : > { %v2218_v57 = vpop.xlane.xlu0 %2217 }
 0xef0   : > { %v2232_v58 = vmul.f32 0.03125, %v2218_v57 }
 0xef1   : > { %v2221_v49 = vpop.xlane.xlu1 %2220 }
 0xef2   : > { %v10089_v50 = vsub.f32 %v10045_v48, %v2232_v58  ;;  %v2233_v51 = vmul.f32 0.03125, %v2221_v49 }
 0xef3   : > { %v2224_v52 = vpop.xlane.xlu0 %2223 }
 0xef4   : > { %v10092_v54 = vsub.f32 %v10051_v61, %v2233_v51  ;;  %v2234_v63 = vmul.f32 0.03125, %v2224_v52  ;;  %v2248_v0 = vmul.f32 %v10089_v50, %v10089_v50 }
 0xef5   : > { %v2227_v2 = vpop.xlane.xlu1 %2226 }
 0xef6   : > { %v10097_v1 = vsub.f32 %v10048_v59, %v2234_v63  ;;  %v2235_v31 = vmul.f32 0.03125, %v2227_v2  ;;  %v2264_v56 = vsel %vm567_vm0, %v2248_v0, 0.0  ;;  %v2249_v32 = vmul.f32 %v10092_v54, %v10092_v54 }
 0xef7   : > { %2265 = vadd.xlane.f32.xlu0 %v2264_v56 }
 0xef8   : > { %v10103_v33 = vsub.f32 %v10056_v10, %v2235_v31  ;;  %v2267_v20 = vsel %vm567_vm0, %v2249_v32, 0.0  ;;  %v2250_v28 = vmul.f32 %v10097_v1, %v10097_v1  ;;  %v8777_v32 = vld [vmem:[%s11780_s6] sm:$0xff]  }
 0xef9   : > { %2268 = vadd.xlane.f32.xlu1 %v2267_v20  ;;  %8231 = vmatprep.subr.bf16.mxu1 %v8777_v32 }
 0xefa   : > { %v2270_v35 = vsel %vm567_vm0, %v2250_v28, 0.0  ;;  %v2251_v37 = vmul.f32 %v10103_v33, %v10103_v33  ;;  %8232 = vmatpush3.bf16.msra.mxu1 %v8777_v32 }
 0xefb   : > { %2271 = vadd.xlane.f32.xlu0 %v2270_v35 }
 0xefc   : > { %v2273_v40 = vsel %vm567_vm0, %v2251_v37, 0.0 }
 0xefd   : > { %2274 = vadd.xlane.f32.xlu1 %v2273_v40 }
 0xf71   : > { %v2254_v42 = vpop.xlane.xlu0 %2253 }
 0xf72   : > { %v2276_v39 = vmul.f32 0.03125, %v2254_v42 }
 0xf73   : > { %v2257_v43 = vpop.xlane.xlu1 %2256 }
 0xf74   : > { %v2284_v44 = vadd.f32 1e-05, %v2276_v39  ;;  %v2277_v45 = vmul.f32 0.03125, %v2257_v43 }
 0xf75   : > { %v2260_v46 = vpop.xlane.xlu0 %2259 }
 0xf76   : > { %8952 = vrsqrt.f32 %v2284_v44  ;;  %v2285_v60 = vadd.f32 1e-05, %v2277_v45  ;;  %v2278_v62 = vmul.f32 0.03125, %v2260_v46 }
 0xf78   : > { %8954 = vrsqrt.f32 %v2285_v60  ;;  %v2286_v7 = vadd.f32 1e-05, %v2278_v62 }
 0xf79   : > { %v2263_v8 = vpop.xlane.xlu1 %2262 }
 0xf7a   : > { %v2279_v9 = vmul.f32 0.03125, %v2263_v8  ;;  %8956 = vrsqrt.f32 %v2286_v7 }
 0xf7c   : > { %v2287_v11 = vadd.f32 1e-05, %v2279_v9 }
 0xf7e   : > { %8958 = vrsqrt.f32 %v2287_v11 }
 0xf80   : > { %v8953_v12 = vpop.eup %8952 }
 0xf81   : > { %v2300_v14 = vmul.f32 %v8953_v12, %v10065_v17 }
 0xf82   : > { %v8955_v13 = vpop.eup %8954 }
 0xf83   : > { %v2301_v15 = vmul.f32 %v8955_v13, %v10068_v53 }
 0xf84   : > { %v2266_v16 = vpop.xlane.xlu0 %2265  ;;  %v8957_v18 = vpop.eup %8956 }
 0xf85   : > { %v2280_v19 = vmul.f32 0.03125, %v2266_v16  ;;  %v2308_v55 = vpack.c.bf16 %v2301_v15, %v2300_v14  ;;  %v2302_v23 = vmul.f32 %v8957_v18, %v10073_v3 }
 0xf86   : > { %v2269_v4 = vpop.xlane.xlu1 %2268 }
 0xf87   : > { %v2288_v5 = vadd.f32 1e-05, %v2280_v19  ;;  %v2281_v6 = vmul.f32 0.03125, %v2269_v4  ;;  %8223 = vmatprep.mubr.msk.bf16.mxu0 %vm567_vm0, %v2308_v55 }
 0xf88   : > { %v8959_v22 = vpop.eup %8958  ;;  %v2272_v24 = vpop.xlane.xlu0 %2271 }
 0xf89   : > { %v2303_v25 = vmul.f32 %v8959_v22, %v10082_v26  ;;  %8960 = vrsqrt.f32 %v2288_v5  ;;  %v2289_v27 = vadd.f32 1e-05, %v2281_v6  ;;  %v2282_v17 = vmul.f32 0.03125, %v2272_v24 }
 0xf8a   : > { %v2275_v30 = vpop.xlane.xlu1 %2274 }
 0xf8b   : > { %v2309_v53 = vpack.c.bf16 %v2303_v25, %v2302_v23  ;;  %8962 = vrsqrt.f32 %v2289_v27  ;;  %v2290_v47 = vadd.f32 1e-05, %v2282_v17  ;;  %v2283_v57 = vmul.f32 0.03125, %v2275_v30 }
 0xf8d   : > { %8964 = vrsqrt.f32 %v2290_v47  ;;  %v2291_v58 = vadd.f32 1e-05, %v2283_v57  ;;  %8224 = vmatmul.mubr.msk.bf16.vlgmr.msra.gmra.mrb[40].mxu0 %vm567_vm0, %v2309_v53 }
 0xf8f   : > { %8966 = vrsqrt.f32 %v2291_v58 }
 0xf93   : > { %v8961_v49 = vpop.eup %8960 }
 0xf94   : > { %v2304_v3 = vmul.f32 %v8961_v49, %v10089_v50  ;;  %v8778_v50 = vld [vmem:[%s11780_s6 + $0x8] sm:$0xff]  }
 0xf95   : > { %v8963_v51 = vpop.eup %8962  ;;  %8233 = vmatprep.subr.bf16.mxu1 %v8778_v50 }
 0xf96   : > { %v2305_v52 = vmul.f32 %v8963_v51, %v10092_v54  ;;  %8234 = vmatpush3.bf16.msra.mxu1 %v8778_v50  ;;  %v8779_v54 = vld [vmem:[%s11780_s6 + $0x10] sm:$0xff]  }
 0xf97   : > { %v8965_v26 = vpop.eup %8964  ;;  %8235 = vmatprep.subr.bf16.mxu1 %v8779_v54 }
 0xf98   : > { %v2310_v63 = vpack.c.bf16 %v2305_v52, %v2304_v3  ;;  %v2306_v2 = vmul.f32 %v8965_v26, %v10097_v1  ;;  %v8780_v1 = vld [vmem:[%s11780_s6 + $0x18] sm:$0xff]  }
 0xf99   : > { %v8967_v0 = vpop.eup %8966 }
 0xf9a   : > { %8227 = vmatprep.mubr.msk.bf16.mxu0 %vm567_vm0, %v2310_v63  ;;  %v2307_v31 = vmul.f32 %v8967_v0, %v10103_v33  ;;  %8236 = vmatpush3.bf16.msra.mxu1 %v8779_v54  ;;  %v7560_v33 = vld [vmem:[%s11781_s5] ss:$0 sm:$0xff] }
 0xf9b   : > { %8237 = vmatprep.subr.bf16.mxu1 %v8780_v1 }
 0xf9c   : > { %v2311_v56 = vpack.c.bf16 %v2307_v31, %v2306_v2 }
 0xf9e   : > { %8228 = vmatmul.mubr.msk.bf16.gmra.mrb[44].mxu0 %vm567_vm0, %v2311_v56  ;;  %8238 = vmatpush3.bf16.msra.mxu1 %v8780_v1 }
0x1060   : > { %v8225_v20 = vpop.f32.mrb[40].mxu0 }
0x1061   : > { %v2385_v28 = vadd.f32 %v8225_v20, %v7560_v33  ;;  %v2376_v35 = vpop.f32.mrb[41].mxu0 }
0x1062   : > { %v2377_v37 = vadd.f32 %v7560_v33, %v2376_v35  ;;  %v8226_v40 = vpop.f32.mrb[42].mxu0 }
0x1063   : > { %v2417_v29 = vmul.f32 0.70710677, %v2385_v28  ;;  %v2388_v41 = vadd.f32 %v8226_v40, %v7560_v33  ;;  %v2379_v42 = vpop.f32.mrb[43].mxu0  ;;  %v2409_v12 = vmul.f32 0.5, %v2385_v28  ;;  %v7567_v40 = vld [vmem:[%s11724_s7] ss:$0 sm:$0xff] }
0x1064   : > { %v2415_v39 = vmul.f32 0.70710677, %v2377_v37  ;;  %v2380_v43 = vadd.f32 %v7560_v33, %v2379_v42  ;;  %v2407_v18 = vmul.f32 0.5, %v2377_v37 }
0x1065   : > { %8968 = verf.f32 %v2417_v29  ;;  %v2418_v44 = vmul.f32 0.70710677, %v2388_v41  ;;  %v2410_v13 = vmul.f32 0.5, %v2388_v41 }
0x1066   : > { %8970 = verf.f32 %v2415_v39  ;;  %v2416_v45 = vmul.f32 0.70710677, %v2380_v43  ;;  %v2408_v19 = vmul.f32 0.5, %v2380_v43 }
0x1067   : > { %8972 = verf.f32 %v2418_v44 }
0x1068   : > { %8974 = verf.f32 %v2416_v45 }
0x106f   : > { %v8969_v46 = vpop.eup %8968 }
0x1070   : > { %v8971_v60 = vpop.eup %8970  ;;  %v2433_v62 = vadd.f32 1.0, %v8969_v46 }
0x1071   : > { %v8973_v7 = vpop.eup %8972  ;;  %v2431_v8 = vadd.f32 1.0, %v8971_v60  ;;  %v8229_v9 = vpop.f32.mrb[44].mxu0 }
0x1072   : > { %v8975_v11 = vpop.eup %8974  ;;  %v2434_v14 = vadd.f32 1.0, %v8973_v7  ;;  %v2401_v15 = vadd.f32 %v8229_v9, %v7560_v33  ;;  %v2392_v16 = vpop.f32.mrb[45].mxu0  ;;  %v2441_v6 = vmul.f32 %v2433_v62, %v2409_v12 }
0x1073   : > { %v2432_v55 = vadd.f32 1.0, %v8975_v11  ;;  %v2393_v4 = vadd.f32 %v7560_v33, %v2392_v16  ;;  %v8230_v5 = vpop.f32.mrb[46].mxu0  ;;  %v2439_v27 = vmul.f32 %v2431_v8, %v2407_v18 }
0x1074   : > { %v2442_v22 = vmul.f32 %v2434_v14, %v2410_v13  ;;  %v2421_v23 = vmul.f32 0.70710677, %v2401_v15  ;;  %v2404_v24 = vadd.f32 %v8230_v5, %v7560_v33  ;;  %v2395_v25 = vpop.f32.mrb[47].mxu0  ;;  %v2413_v2 = vmul.f32 0.5, %v2401_v15 }
0x1075   : > { %v2440_v17 = vmul.f32 %v2432_v55, %v2408_v19  ;;  %v2419_v30 = vmul.f32 0.70710677, %v2393_v4  ;;  %v2396_v53 = vadd.f32 %v7560_v33, %v2395_v25  ;;  %v2411_v32 = vmul.f32 0.5, %v2393_v4 }
0x1076   : > { %v2448_v47 = vpack.c.bf16 %v2442_v22, %v2441_v6  ;;  %8976 = verf.f32 %v2421_v23  ;;  %v2422_v57 = vmul.f32 0.70710677, %v2404_v24  ;;  %v2414_v31 = vmul.f32 0.5, %v2404_v24 }
0x1077   : > { %v2447_v58 = vpack.c.bf16 %v2440_v17, %v2439_v27  ;;  %8978 = verf.f32 %v2419_v30  ;;  %v2420_v49 = vmul.f32 0.70710677, %v2396_v53  ;;  %v2412_v50 = vmul.f32 0.5, %v2396_v53 }
0x1078   : > { %8980 = verf.f32 %v2422_v57 }
0x1079   : > { %8982 = verf.f32 %v2420_v49  ;;  %8239 = vmatprep.mubr.msk.bf16.mxu1 %vm886_vm2, %v2447_v58 }
0x107a   : > { %8240 = vmatmul.mubr.msk.bf16.vlgmr.msra.gmra.mrb[40].mxu1 %vm886_vm2, %v2448_v47 }
0x1080   : > { %v8977_v51 = vpop.eup %8976 }
0x1081   : > { %v8979_v3 = vpop.eup %8978  ;;  %v2437_v52 = vadd.f32 1.0, %v8977_v51 }
0x1082   : > { %v8981_v26 = vpop.eup %8980  ;;  %v2435_v63 = vadd.f32 1.0, %v8979_v3 }
0x1083   : > { %v8983_v0 = vpop.eup %8982  ;;  %v2438_v56 = vadd.f32 1.0, %v8981_v26  ;;  %v2445_v1 = vmul.f32 %v2437_v52, %v2413_v2 }
0x1084   : > { %v2436_v54 = vadd.f32 1.0, %v8983_v0  ;;  %v2443_v20 = vmul.f32 %v2435_v63, %v2411_v32 }
0x1085   : > { %v2446_v33 = vmul.f32 %v2438_v56, %v2414_v31 }
0x1086   : > { %v2444_v28 = vmul.f32 %v2436_v54, %v2412_v50 }
0x1087   : > { %v2450_v35 = vpack.c.bf16 %v2446_v33, %v2445_v1 }
0x1088   : > { %v2449_v37 = vpack.c.bf16 %v2444_v28, %v2443_v20 }
0x108a   : > { %8243 = vmatprep.mubr.msk.bf16.mxu1 %vm886_vm2, %v2449_v37 }
0x108b   : > { %8244 = vmatmul.mubr.msk.bf16.gmra.mrb[44].mxu1 %vm886_vm2, %v2450_v35 }
0x114d   : > { %v8241_v29 = vpop.f32.mrb[40].mxu1 }
0x114e   : > { %v2527_v41 = vpop.f32.mrb[41].mxu1  ;;  %v2536_v42 = vadd.f32 %v8241_v29, %v7567_v40 }
0x114f   : > { %v2528_v39 = vadd.f32 %v7567_v40, %v2527_v41  ;;  %v8242_v43 = vpop.f32.mrb[42].mxu1 }
0x1150   : > { %v2530_v44 = vpop.f32.mrb[43].mxu1  ;;  %v2539_v46 = vadd.f32 %v8242_v43, %v7567_v40  ;;  %v10156_v62 = vadd.f32 %v2536_v42, %v10028_v36 }
0x1151   : > { %v10153_v45 = vadd.f32 %v2528_v39, %v10025_v34  ;;  %v2531_v60 = vadd.f32 %v7567_v40, %v2530_v44 }
0x1152   : > { %v10164_v9 = vadd.f32 %v2539_v46, %v10038_v38  ;;  %v2584_v12 = vsel %vm567_vm0, %v10156_v62, 0.0 }
0x1153   : > { %v10159_v7 = vadd.f32 %v2531_v60, %v10031_v21  ;;  %v2578_v8 = vsel %vm567_vm0, %v10153_v45, 0.0 }
0x1154   : > { %2579 = vadd.xlane.f32.xlu0 %v2578_v8  ;;  %v2587_v21 = vsel %vm567_vm0, %v10164_v9, 0.0 }
0x1155   : > { %v2581_v11 = vsel %vm567_vm0, %v10159_v7, 0.0 }
0x1156   : > { %2582 = vadd.xlane.f32.xlu1 %v2581_v11  ;;  %v4578_v34 = vadd.f32 %v2581_v11, %v2578_v8 }
0x1158   : > { %2585 = vadd.xlane.f32.xlu0 %v2584_v12  ;;  %v4579_v36 = vadd.f32 %v4578_v34, %v2584_v12 }
0x115a   : > { %2588 = vadd.xlane.f32.xlu1 %v2587_v21  ;;  %v4580_v13 = vadd.f32 %v4579_v36, %v2587_v21 }
0x115e   : > { %v8245_v14 = vpop.f32.mrb[44].mxu1 }
0x115f   : > { %v2543_v15 = vpop.f32.mrb[45].mxu1  ;;  %v2552_v16 = vadd.f32 %v8245_v14, %v7567_v40  ;;  %v8781_v14 = vld [vmem:[%s11776_s19 + $0x10] sm:$0xff]  }
0x1160   : > { %v2544_v38 = vadd.f32 %v7567_v40, %v2543_v15  ;;  %v8246_v18 = vpop.f32.mrb[46].mxu1  ;;  %8247 = vmatprep.subr.bf16.mxu0 %v8781_v14  ;;  %v8782_v15 = vld [vmem:[%s11776_s19 + $0x18] sm:$0xff]   ;;  %s11791_s19 = smov 24  }
0x1161   : > { %v2546_v19 = vpop.f32.mrb[47].mxu1  ;;  %v2555_v4 = vadd.f32 %v8246_v18, %v7567_v40  ;;  %v10176_v6 = vadd.f32 %v2552_v16, %v10048_v59  ;;  %8248 = vmatpush3.bf16.msra.mxu0 %v8781_v14 }
0x1162   : > { %v10173_v55 = vadd.f32 %v2544_v38, %v10045_v48  ;;  %v2547_v5 = vadd.f32 %v7567_v40, %v2546_v19  ;;  %8249 = vmatprep.subr.bf16.mxu0 %v8782_v15 }
0x1163   : > { %v10184_v25 = vadd.f32 %v2555_v4, %v10056_v10  ;;  %v2596_v59 = vsel %vm567_vm0, %v10176_v6, 0.0 }
0x1164   : > { %v10179_v22 = vadd.f32 %v2547_v5, %v10051_v61  ;;  %v2590_v23 = vsel %vm567_vm0, %v10173_v55, 0.0 }
0x1165   : > { %2591 = vadd.xlane.f32.xlu0 %v2590_v23  ;;  %v4581_v24 = vadd.f32 %v4580_v13, %v2590_v23  ;;  %v2599_v61 = vsel %vm567_vm0, %v10184_v25, 0.0  ;;  %8250 = vmatpush3.bf16.msra.mxu0 %v8782_v15 }
0x1166   : > { %v2593_v48 = vsel %vm567_vm0, %v10179_v22, 0.0 }
0x1167   : > { %2594 = vadd.xlane.f32.xlu1 %v2593_v48  ;;  %v4582_v27 = vadd.f32 %v4581_v24, %v2593_v48 }
0x1169   : > { %2597 = vadd.xlane.f32.xlu0 %v2596_v59  ;;  %v4583_v17 = vadd.f32 %v4582_v27, %v2596_v59 }
0x116b   : > { %2600 = vadd.xlane.f32.xlu1 %v2599_v61  ;;  %v10192_v30 = vadd.f32 %v4583_v17, %v2599_v61 }
0x11e1   : > { %v2580_v53 = vpop.xlane.xlu0 %2579 }
0x11e2   : > { %v2602_v47 = vmul.f32 0.03125, %v2580_v53 }
0x11e3   : > { %v2583_v10 = vpop.xlane.xlu1 %2582 }
0x11e4   : > { %v10195_v57 = vsub.f32 %v10153_v45, %v2602_v47  ;;  %v2603_v58 = vmul.f32 0.03125, %v2583_v10 }
0x11e5   : > { %v2586_v49 = vpop.xlane.xlu0 %2585 }
0x11e6   : > { %v10198_v51 = vsub.f32 %v10159_v7, %v2603_v58  ;;  %v2604_v3 = vmul.f32 0.03125, %v2586_v49  ;;  %v2618_v52 = vmul.f32 %v10195_v57, %v10195_v57 }
0x11e7   : > { %v2589_v26 = vpop.xlane.xlu1 %2588 }
0x11e8   : > { %v10203_v63 = vsub.f32 %v10156_v62, %v2604_v3  ;;  %v2605_v0 = vmul.f32 0.03125, %v2589_v26  ;;  %v2626_v2 = vsel %vm567_vm0, %v2618_v52, 0.0  ;;  %v2619_v31 = vmul.f32 %v10198_v51, %v10198_v51 }
0x11e9   : > { %2627 = vadd.xlane.f32.xlu0 %v2626_v2 }
0x11ea   : > { %v10209_v56 = vsub.f32 %v10164_v9, %v2605_v0  ;;  %v2629_v32 = vsel %vm567_vm0, %v2619_v31, 0.0  ;;  %v2620_v50 = vmul.f32 %v10203_v63, %v10203_v63 }
0x11eb   : > { %2630 = vadd.xlane.f32.xlu1 %v2629_v32 }
0x11ec   : > { %v2632_v54 = vsel %vm567_vm0, %v2620_v50, 0.0  ;;  %v2621_v1 = vmul.f32 %v10209_v56, %v10209_v56 }
0x11ed   : > { %2633 = vadd.xlane.f32.xlu0 %v2632_v54 }
0x11ee   : > { %v2635_v33 = vsel %vm567_vm0, %v2621_v1, 0.0 }
0x11ef   : > { %2636 = vadd.xlane.f32.xlu1 %v2635_v33 }
0x11f2   : > { %v2592_v20 = vpop.xlane.xlu0 %2591 }
0x11f3   : > { %v2606_v28 = vmul.f32 0.03125, %v2592_v20 }
0x11f4   : > { %v2595_v35 = vpop.xlane.xlu1 %2594 }
0x11f5   : > { %v10219_v37 = vsub.f32 %v10173_v55, %v2606_v28  ;;  %v2607_v40 = vmul.f32 0.03125, %v2595_v35 }
0x11f6   : > { %v2598_v29 = vpop.xlane.xlu0 %2597 }
0x11f7   : > { %v10222_v41 = vsub.f32 %v10179_v22, %v2607_v40  ;;  %v2608_v42 = vmul.f32 0.03125, %v2598_v29  ;;  %v2622_v39 = vmul.f32 %v10219_v37, %v10219_v37 }
0x11f8   : > { %v2601_v43 = vpop.xlane.xlu1 %2600 }
0x11f9   : > { %v10227_v44 = vsub.f32 %v10176_v6, %v2608_v42  ;;  %v2609_v46 = vmul.f32 0.03125, %v2601_v43  ;;  %v2638_v60 = vsel %vm567_vm0, %v2622_v39, 0.0  ;;  %v2623_v8 = vmul.f32 %v10222_v41, %v10222_v41 }
0x11fa   : > { %2639 = vadd.xlane.f32.xlu0 %v2638_v60 }
0x11fb   : > { %v10233_v11 = vsub.f32 %v10184_v25, %v2609_v46  ;;  %v2641_v34 = vsel %vm567_vm0, %v2623_v8, 0.0  ;;  %v2624_v12 = vmul.f32 %v10227_v44, %v10227_v44 }
0x11fc   : > { %2642 = vadd.xlane.f32.xlu1 %v2641_v34 }
0x11fd   : > { %v2644_v36 = vsel %vm567_vm0, %v2624_v12, 0.0  ;;  %v2625_v21 = vmul.f32 %v10233_v11, %v10233_v11 }
0x11fe   : > { %2645 = vadd.xlane.f32.xlu0 %v2644_v36 }
0x11ff   : > { %v2647_v13 = vsel %vm567_vm0, %v2625_v21, 0.0 }
0x1200   : > { %2648 = vadd.xlane.f32.xlu1 %v2647_v13 }
0x1276   : > { %v2628_v16 = vpop.xlane.xlu0 %2627 }
0x1277   : > { %v2650_v38 = vmul.f32 0.03125, %v2628_v16 }
0x1278   : > { %v2631_v18 = vpop.xlane.xlu1 %2630 }
0x1279   : > { %v2658_v19 = vadd.f32 1e-05, %v2650_v38  ;;  %v2651_v4 = vmul.f32 0.03125, %v2631_v18 }
0x127a   : > { %v2634_v5 = vpop.xlane.xlu0 %2633 }
0x127b   : > { %8984 = vrsqrt.f32 %v2658_v19  ;;  %v2659_v23 = vadd.f32 1e-05, %v2651_v4  ;;  %v2652_v24 = vmul.f32 0.03125, %v2634_v5 }
0x127c   : > { %v2637_v48 = vpop.xlane.xlu1 %2636 }
0x127d   : > { %8986 = vrsqrt.f32 %v2659_v23  ;;  %v2660_v27 = vadd.f32 1e-05, %v2652_v24  ;;  %v2653_v59 = vmul.f32 0.03125, %v2637_v48 }
0x127f   : > { %8988 = vrsqrt.f32 %v2660_v27  ;;  %v2661_v17 = vadd.f32 1e-05, %v2653_v59 }
0x1281   : > { %8990 = vrsqrt.f32 %v2661_v17 }
0x1285   : > { %v8985_v61 = vpop.eup %8984 }
0x1286   : > { %v2674_v58 = vmul.f32 %v8985_v61, %v10195_v57 }
0x1287   : > { %v8987_v53 = vpop.eup %8986  ;;  %v2640_v47 = vpop.xlane.xlu0 %2639 }
0x1288   : > { %v2654_v10 = vmul.f32 0.03125, %v2640_v47  ;;  %v2675_v49 = vmul.f32 %v8987_v53, %v10198_v51 }
0x1289   : > { %v8989_v3 = vpop.eup %8988  ;;  %v2643_v52 = vpop.xlane.xlu1 %2642 }
0x128a   : > { %v2662_v26 = vadd.f32 1e-05, %v2654_v10  ;;  %v2655_v0 = vmul.f32 0.03125, %v2643_v52  ;;  %v10250_v2 = vpack.c.bf16 %v2675_v49, %v2674_v58  ;;  %v2676_v32 = vmul.f32 %v8989_v3, %v10203_v63 }
0x128b   : > { %v8991_v31 = vpop.eup %8990  ;;  %v2646_v50 = vpop.xlane.xlu0 %2645 }
0x128c   : > { %v2677_v54 = vmul.f32 %v8991_v31, %v10209_v56  ;;  %8992 = vrsqrt.f32 %v2662_v26  ;;  %v2663_v1 = vadd.f32 1e-05, %v2655_v0  ;;  %v2656_v33 = vmul.f32 0.03125, %v2646_v50  ;;  %8251 = vmatprep.mubr.msk.bf16.mxu0 %vm567_vm0, %v10250_v2 }
0x128d   : > { %v2649_v57 = vpop.xlane.xlu1 %2648 }
0x128e   : > { %v10256_v51 = vpack.c.bf16 %v2677_v54, %v2676_v32  ;;  %8994 = vrsqrt.f32 %v2663_v1  ;;  %v2664_v20 = vadd.f32 1e-05, %v2656_v33  ;;  %v2657_v28 = vmul.f32 0.03125, %v2649_v57 }
0x1290   : > { %8996 = vrsqrt.f32 %v2664_v20  ;;  %v2665_v35 = vadd.f32 1e-05, %v2657_v28  ;;  %8252 = vmatmul.mubr.msk.bf16.vlgmr.msra.gmra.mrb[48].mxu0 %vm567_vm0, %v10256_v51 }
0x1292   : > { %8998 = vrsqrt.f32 %v2665_v35 }
0x1296   : > { %v8993_v63 = vpop.eup %8992 }
0x1297   : > { %v2678_v40 = vmul.f32 %v8993_v63, %v10219_v37  ;;  %v7585_v37 = vld [vmem:[%s11777_s2 + $0x1] ss:$0 sm:$0xff] }
0x1298   : > { %v8995_v56 = vpop.eup %8994 }
0x1299   : > { %v2679_v29 = vmul.f32 %v8995_v56, %v10222_v41 }
0x129a   : > { %v8997_v42 = vpop.eup %8996 }
0x129b   : > { %v10262_v39 = vpack.c.bf16 %v2679_v29, %v2678_v40  ;;  %v2680_v46 = vmul.f32 %v8997_v42, %v10227_v44 }
0x129c   : > { %v8999_v43 = vpop.eup %8998 }
0x129d   : > { %8255 = vmatprep.mubr.msk.bf16.mxu0 %vm567_vm0, %v10262_v39  ;;  %v2681_v60 = vmul.f32 %v8999_v43, %v10233_v11 }
0x129f   : > { %v10268_v8 = vpack.c.bf16 %v2681_v60, %v2680_v46 }
0x12a1   : > { %8256 = vmatmul.mubr.msk.bf16.gmra.mrb[52].mxu0 %vm567_vm0, %v10268_v8 }
0x1363   : > { %v8253_v34 = vpop.f32.mrb[48].mxu0 }
0x1364   : > { %v2750_v41 = vpop.f32.mrb[49].mxu0  ;;  %v2759_v36 = vadd.f32 %v8253_v34, %v7585_v37 }
0x1365   : > { %v8254_v12 = vpop.f32.mrb[50].mxu0  ;;  %v2751_v14 = vadd.f32 %v7585_v37, %v2750_v41 }
0x1366   : > { %v2762_v21 = vadd.f32 %v8254_v12, %v7585_v37  ;;  %v2753_v13 = vpop.f32.mrb[51].mxu0 }
0x1367   : > { %v2754_v15 = vadd.f32 %v7585_v37, %v2753_v13 }
0x1368   : > { %v10275_v44 = vpack.c.bf16 %v2762_v21, %v2759_v36 }
0x1369   : > { %v10277_v11 = vpack.c.bf16 %v2754_v15, %v2751_v14 }
0x136a   : > { %2791 = vrot.lane.b32.xlu1 %v10275_v44, %s11760_s23 }
0x136b   : > { %2789 = vrot.lane.b32.xlu0 %v10277_v11, %s11760_s23  ;;  %8267 = vmatprep.mubr.msk.bf16.mxu1 %vm788_vm1, %v10277_v11 }
0x1374   : > { %v8257_v16 = vpop.f32.mrb[52].mxu0 }
0x1375   : > { %v2766_v38 = vpop.f32.mrb[53].mxu0  ;;  %v2775_v19 = vadd.f32 %v8257_v16, %v7585_v37 }
0x1376   : > { %v8258_v18 = vpop.f32.mrb[54].mxu0  ;;  %v2767_v23 = vadd.f32 %v7585_v37, %v2766_v38 }
0x1377   : > { %v2778_v4 = vadd.f32 %v8258_v18, %v7585_v37  ;;  %v2769_v5 = vpop.f32.mrb[55].mxu0 }
0x1378   : > { %v2770_v24 = vadd.f32 %v7585_v37, %v2769_v5 }
0x1379   : > { %v10285_v48 = vpack.c.bf16 %v2778_v4, %v2775_v19 }
0x137a   : > { %v10287_v27 = vpack.c.bf16 %v2770_v24, %v2767_v23 }
0x137c   : > { %2793 = vrot.lane.b32.xlu1 %v10287_v27, %s11760_s23 }
0x1380   : > { %2795 = vrot.lane.b32.xlu1 %v10285_v48, %s11760_s23  ;;  %s11793_s23 = smov 88  }
0x13dc   : > { %v2792_v61 = vpop.permute.xlu1 %2791 }
0x13dd   : > { %v2790_v59 = vpop.permute.xlu0 %2789  ;;  %v2813_v53 = vsel %vm788_vm1, %v2792_v61, 0 }
0x13de   : > { %8711 = vmatprep.subr.msk.bf16.mxu1 %vm788_vm1, %v2790_v59  ;;  %v2810_v17 = vsel %vm788_vm1, %v2790_v59, 0 }
0x13df   : > { %8260 = vmatpush3.bf16.xpose.msra.mxu1 %v2810_v17 }
0x13e0   : > { %8712 = vmatprep.subr.msk.bf16.mxu1 %vm788_vm1, %v2792_v61 }
0x13e7   : > { %8262 = vmatpush3.bf16.xpose.msra.mxu1 %v2813_v53 }
0x13ee   : > { %v2794_v47 = vpop.permute.xlu1 %2793 }
0x13ef   : > { %8713 = vmatprep.subr.msk.bf16.mxu1 %vm788_vm1, %v2794_v47  ;;  %v2816_v10 = vsel %vm788_vm1, %v2794_v47, 0 }
0x13f0   : > { %8264 = vmatpush3.bf16.xpose.msra.mxu1 %v2816_v10 }
0x13f2   : > { %v2796_v58 = vpop.permute.xlu1 %2795 }
0x13f3   : > { %8714 = vmatprep.subr.msk.bf16.mxu1 %vm788_vm1, %v2796_v58  ;;  %v2819_v49 = vsel %vm788_vm1, %v2796_v58, 0 }
0x13f8   : > { %8266 = vmatpush3.bf16.xpose.msra.mxu1 %v2819_v49 }
0x13ff   : > { %8268 = vmatmul.mubr.msk.bf16.vlgmr.msra.gmra.mrb[48].mxu1 %vm788_vm1, %v10275_v44 }
0x1400   : > { %8271 = vmatprep.mubr.msk.bf16.mxu1 %vm788_vm1, %v10287_v27 }
0x1407   : > { %8272 = vmatmul.mubr.msk.bf16.gmra.mrb[52].mxu1 %vm788_vm1, %v10285_v48 }
0x14d2   : > { %v8269_v3 = vpop.f32.mrb[48].mxu1 }
0x14d3   : > { %v2888_v52 = vmul.f32 0.35355338, %v8269_v3  ;;  %v2855_v26 = vpop.f32.mrb[49].mxu1 }
0x14d4   : > { %v8270_v0 = vpop.f32.mrb[50].mxu1  ;;  %v2886_v31 = vmul.f32 0.35355338, %v2855_v26 }
0x14d5   : > { %v2858_v32 = vpop.f32.mrb[51].mxu1  ;;  %v2900_v50 = vsel %vm886_vm2, %v2888_v52, -inf  ;;  %v2889_v33 = vmul.f32 0.35355338, %v8270_v0 }
0x14d6   : > { %v2887_v54 = vmul.f32 0.35355338, %v2858_v32  ;;  %2901 = vmax.xlane.f32.xlu0 %v2900_v50  ;;  %v2894_v57 = vsel %vm886_vm2, %v2886_v31, -inf }
0x14d7   : > { %v2903_v40 = vsel %vm886_vm2, %v2889_v33, -inf }
0x14d8   : > { %v2897_v1 = vsel %vm886_vm2, %v2887_v54, -inf }
0x14d9   : > { %2898 = vmax.xlane.f32.xlu1 %v2897_v1 }
0x14da   : > { %2895 = vmax.xlane.f32.xlu0 %v2894_v57  ;;  %v8273_v20 = vpop.f32.mrb[52].mxu1 }
0x14db   : > { %v2871_v28 = vpop.f32.mrb[53].mxu1  ;;  %v2892_v63 = vmul.f32 0.35355338, %v8273_v20 }
0x14dc   : > { %v8274_v35 = vpop.f32.mrb[54].mxu1  ;;  %v2890_v29 = vmul.f32 0.35355338, %v2871_v28 }
0x14dd   : > { %v2874_v56 = vpop.f32.mrb[55].mxu1  ;;  %v2912_v42 = vsel %vm886_vm2, %v2892_v63, -inf  ;;  %v2893_v46 = vmul.f32 0.35355338, %v8274_v35 }
0x14de   : > { %2904 = vmax.xlane.f32.xlu0 %v2903_v40  ;;  %v2906_v43 = vsel %vm886_vm2, %v2890_v29, -inf  ;;  %v10319_v60 = vmul.f32 0.35355338, %v2874_v56 }
0x14df   : > { %v2915_v34 = vsel %vm886_vm2, %v2893_v46, -inf }
0x14e0   : > { %v2909_v37 = vsel %vm886_vm2, %v10319_v60, -inf }
0x14e2   : > { %2913 = vmax.xlane.f32.xlu0 %v2912_v42 }
0x14e6   : > { %2907 = vmax.xlane.f32.xlu0 %v2906_v43 }
0x14ea   : > { %2988 = vrot.lane.b32.xlu1 %v10275_v44, %s11756_s26 }
0x14ee   : > { %2990 = vrot.lane.b32.xlu1 %v10287_v27, %s11756_s26 }
0x14fc   : > { %2986 = vrot.lane.b32.xlu0 %v10277_v11, %s11756_s26 }
0x1512   : > { %2916 = vmax.xlane.f32.xlu1 %v2915_v34 }
0x1516   : > { %2910 = vmax.xlane.f32.xlu1 %v2909_v37 }
0x1527   : > { %2992 = vrot.lane.b32.xlu1 %v10285_v48, %s11756_s26  ;;  %s11790_s26 = smov 16  }
0x1563   : > { %v2902_v41 = vpop.xlane.xlu0 %2901 }
0x1564   : > { %v2920_v12 = vsub.f32 %v2888_v52, %v2902_v41 }
0x1566   : > { %v2930_v36 = vmul.f32 1.442695, %v2920_v12  ;;  %v2899_v21 = vpop.xlane.xlu1 %2898 }
0x1567   : > { %v2896_v13 = vpop.xlane.xlu0 %2895  ;;  %v2919_v15 = vsub.f32 %v2887_v54, %v2899_v21 }
0x1568   : > { %9000 = vpow2.f32 %v2930_v36  ;;  %v2918_v14 = vsub.f32 %v2886_v31, %v2896_v13 }
0x1569   : > { %v2928_v19 = vmul.f32 1.442695, %v2919_v15 }
0x156a   : > { %v2926_v16 = vmul.f32 1.442695, %v2918_v14  ;;  %v2989_v58 = vpop.permute.xlu1 %2988 }
0x156b   : > { %v2905_v38 = vpop.xlane.xlu0 %2904 }
0x156c   : > { %9002 = vpow2.f32 %v2926_v16  ;;  %v2921_v18 = vsub.f32 %v2889_v33, %v2905_v38 }
0x156e   : > { %v2932_v4 = vmul.f32 1.442695, %v2921_v18  ;;  %v2991_v31 = vpop.permute.xlu1 %2990 }
0x156f   : > { %v2914_v5 = vpop.xlane.xlu0 %2913 }
0x1570   : > { %9004 = vpow2.f32 %v2932_v4  ;;  %v2924_v23 = vsub.f32 %v2892_v63, %v2914_v5 }
0x1571   : > { %9006 = vpow2.f32 %v2928_v19 }
0x1572   : > { %v10326_v24 = vpop.eup %9000  ;;  %v2938_v59 = vmul.f32 1.442695, %v2924_v23 }
0x1573   : > { %v2908_v17 = vpop.xlane.xlu0 %2907  ;;  %v2948_v61 = vsel %vm886_vm2, %v10326_v24, 0.0 }
0x1574   : > { %9008 = vpow2.f32 %v2938_v59  ;;  %v2922_v53 = vsub.f32 %v2890_v29, %v2908_v17  ;;  %2949 = vadd.xlane.f32.xlu0 %v2948_v61 }
0x1576   : > { %v10330_v47 = vpop.eup %9002  ;;  %v2934_v10 = vmul.f32 1.442695, %v2922_v53 }
0x1577   : > { %v2987_v49 = vpop.permute.xlu0 %2986  ;;  %v2942_v3 = vsel %vm886_vm2, %v10330_v47, 0.0 }
0x1578   : > { %9010 = vpow2.f32 %v2934_v10  ;;  %2943 = vadd.xlane.f32.xlu0 %v2942_v3  ;;  %8275 = vmatprep.subr.bf16.mxu0 %v2987_v49 }
0x1579   : > { %8276 = vmatpush3.bf16.msra.mxu0 %v2987_v49 }
0x157a   : > { %v9005_v52 = vpop.eup %9004  ;;  %8277 = vmatprep.subr.bf16.mxu0 %v2989_v58 }
0x157b   : > { %v2951_v26 = vsel %vm886_vm2, %v9005_v52, 0.0  ;;  %v9007_v0 = vpop.eup %9006 }
0x157c   : > { %2952 = vadd.xlane.f32.xlu1 %v2951_v26  ;;  %v2945_v54 = vsel %vm886_vm2, %v9007_v0, 0.0 }
0x157d   : > { %8278 = vmatpush3.bf16.msra.mxu0 %v2989_v58 }
0x157e   : > { %v10335_v32 = vpop.eup %9008  ;;  %8279 = vmatprep.subr.bf16.mxu0 %v2991_v31 }
0x157f   : > { %v2960_v50 = vsel %vm886_vm2, %v10335_v32, 0.0 }
0x1580   : > { %2961 = vadd.xlane.f32.xlu0 %v2960_v50  ;;  %2946 = vadd.xlane.f32.xlu1 %v2945_v54 }
0x1581   : > { %8280 = vmatpush3.bf16.msra.mxu0 %v2991_v31 }
0x1582   : > { %v10340_v1 = vpop.eup %9010 }
0x1583   : > { %v2954_v33 = vsel %vm886_vm2, %v10340_v1, 0.0 }
0x1584   : > { %2955 = vadd.xlane.f32.xlu0 %v2954_v33 }
0x1591   : > { %3093 = vrot.lane.b32.xlu1 %v10275_v44, %s11762_s27 }
0x1595   : > { %3095 = vrot.lane.b32.xlu1 %v10287_v27, %s11762_s27 }
0x159f   : > { %v2917_v57 = vpop.xlane.xlu1 %2916 }
0x15a0   : > { %v2925_v20 = vsub.f32 %v2893_v46, %v2917_v57 }
0x15a2   : > { %v2940_v28 = vmul.f32 1.442695, %v2925_v20 }
0x15a3   : > { %v2911_v35 = vpop.xlane.xlu1 %2910 }
0x15a4   : > { %9012 = vpow2.f32 %v2940_v28  ;;  %v2923_v63 = vsub.f32 %v10319_v60, %v2911_v35 }
0x15a6   : > { %v2936_v56 = vmul.f32 1.442695, %v2923_v63 }
0x15a7   : > { %v2993_v40 = vpop.permute.xlu1 %2992 }
0x15a8   : > { %8281 = vmatprep.subr.bf16.mxu0 %v2993_v40  ;;  %9014 = vpow2.f32 %v2936_v56 }
0x15a9   : > { %8282 = vmatpush3.bf16.msra.mxu0 %v2993_v40 }
0x15ae   : > { %v9013_v29 = vpop.eup %9012 }
0x15af   : > { %v2963_v42 = vsel %vm886_vm2, %v9013_v29, 0.0 }
0x15b0   : > { %2964 = vadd.xlane.f32.xlu0 %v2963_v42 }
0x15b2   : > { %v9015_v43 = vpop.eup %9014 }
0x15b3   : > { %v2957_v34 = vsel %vm886_vm2, %v9015_v43, 0.0 }
0x15b9   : > { %2958 = vadd.xlane.f32.xlu1 %v2957_v34 }
0x15c6   : > { %3091 = vrot.lane.b32.xlu0 %v10277_v11, %s11762_s27 }
0x15ca   : > { %3083 = vrot.lane.b32.xlu0 %v10277_v11, %s11758_s28  ;;  %3097 = vrot.lane.b32.xlu1 %v10285_v48, %s11762_s27  ;;  %s11796_s27 = smov 64  }
0x15ce   : > { %3087 = vrot.lane.b32.xlu0 %v10287_v27, %s11758_s28  ;;  %3085 = vrot.lane.b32.xlu1 %v10275_v44, %s11758_s28 }
0x15d2   : > { %3089 = vrot.lane.b32.xlu1 %v10285_v48, %s11758_s28 }
0x1601   : > { %v2950_v46 = vpop.xlane.xlu0 %2949 }
0x1605   : > { %v2944_v37 = vpop.xlane.xlu0 %2943 }
0x1609   : > { %v2953_v60 = vpop.xlane.xlu1 %2952 }
0x160a   : > { %9016 = vrcp.f32 %v2953_v60 }
0x160b   : > { %9018 = vrcp.f32 %v2944_v37 }
0x160c   : > { %9020 = vrcp.f32 %v2950_v46 }
0x160d   : > { %v2947_v41 = vpop.xlane.xlu1 %2946  ;;  %v2962_v4 = vpop.xlane.xlu0 %2961 }
0x160e   : > { %9022 = vrcp.f32 %v2947_v41 }
0x1611   : > { %v2956_v5 = vpop.xlane.xlu0 %2955  ;;  %v3094_v23 = vpop.permute.xlu1 %3093 }
0x1614   : > { %v9017_v12 = vpop.eup %9016 }
0x1615   : > { %v9019_v36 = vpop.eup %9018  ;;  %v2977_v14 = vmul.f32 %v9017_v12, %v9005_v52  ;;  %v3096_v61 = vpop.permute.xlu1 %3095 }
0x1616   : > { %v9021_v21 = vpop.eup %9020  ;;  %v2974_v15 = vmul.f32 %v9019_v36, %v10330_v47  ;;  %v3115_v47 = vsel %vm788_vm1, %v3094_v23, 0  ;;  %v3118_v26 = vsel %vm788_vm1, %v3096_v61, 0 }
0x1617   : > { %v2976_v38 = vmul.f32 %v9021_v21, %v10326_v24 }
0x1618   : > { %v9023_v13 = vpop.eup %9022 }
0x1619   : > { %v2975_v16 = vmul.f32 %v9023_v13, %v9007_v0  ;;  %v2983_v19 = vpack.c.bf16 %v2977_v14, %v2976_v38 }
0x161b   : > { %v2982_v18 = vpack.c.bf16 %v2975_v16, %v2974_v15 }
0x161d   : > { %8283 = vmatprep.mubr.msk.bf16.mxu0 %vm886_vm2, %v2982_v18 }
0x161e   : > { %8284 = vmatmul.mubr.msk.bf16.vlgmr.msra.gmra.mrb[56].mxu0 %vm886_vm2, %v2983_v19 }
0x163d   : > { %v2965_v59 = vpop.xlane.xlu0 %2964 }
0x163e   : > { %9024 = vrcp.f32 %v2965_v59 }
0x163f   : > { %9026 = vrcp.f32 %v2956_v5 }
0x1640   : > { %9028 = vrcp.f32 %v2962_v4 }
0x1641   : > { %v3092_v17 = vpop.permute.xlu0 %3091 }
0x1642   : > { %8715 = vmatprep.subr.msk.bf16.mxu0 %vm788_vm1, %v3092_v17  ;;  %v3112_v53 = vsel %vm788_vm1, %v3092_v17, 0 }
0x1643   : > { %8292 = vmatpush3.bf16.xpose.msra.mxu0 %v3112_v53 }
0x1644   : > { %8716 = vmatprep.subr.msk.bf16.mxu0 %vm788_vm1, %v3094_v23 }
0x1645   : > { %v3084_v20 = vpop.permute.xlu0 %3083 }
0x1646   : > { %v2959_v24 = vpop.xlane.xlu1 %2958 }
0x1647   : > { %9030 = vrcp.f32 %v2959_v24 }
0x1648   : > { %v9025_v10 = vpop.eup %9024 }
0x1649   : > { %v9027_v58 = vpop.eup %9026  ;;  %v2981_v52 = vmul.f32 %v9025_v10, %v9013_v29  ;;  %v3088_v35 = vpop.permute.xlu0 %3087 }
0x164a   : > { %v9029_v49 = vpop.eup %9028  ;;  %v2978_v0 = vmul.f32 %v9027_v58, %v10340_v1  ;;  %v3098_v50 = vpop.permute.xlu1 %3097 }
0x164b   : > { %8294 = vmatpush3.bf16.xpose.msra.mxu0 %v3115_v47  ;;  %v2980_v54 = vmul.f32 %v9029_v49, %v10335_v32  ;;  %v3121_v28 = vsel %vm788_vm1, %v3098_v50, 0 }
0x164c   : > { %8717 = vmatprep.subr.msk.bf16.mxu0 %vm788_vm1, %v3096_v61 }
0x164d   : > { %v2985_v57 = vpack.c.bf16 %v2981_v52, %v2980_v54 }
0x164e   : > { %v3086_v1 = vpop.permute.xlu1 %3085 }
0x1651   : > { %v9031_v3 = vpop.eup %9030 }
0x1652   : > { %v2979_v31 = vmul.f32 %v9031_v3, %v9015_v43  ;;  %v3090_v32 = vpop.permute.xlu1 %3089 }
0x1653   : > { %8296 = vmatpush3.bf16.xpose.msra.mxu0 %v3118_v26 }
0x1654   : > { %8718 = vmatprep.subr.msk.bf16.mxu0 %vm788_vm1, %v3098_v50  ;;  %v2984_v33 = vpack.c.bf16 %v2979_v31, %v2978_v0 }
0x1656   : > { %8287 = vmatprep.mubr.msk.bf16.mxu0 %vm886_vm2, %v2984_v33 }
0x1657   : > { %8288 = vmatmul.mubr.msk.bf16.gmra.mrb[60].mxu0 %vm886_vm2, %v2985_v57 }
0x1658   : > { %8299 = vmatprep.mubr.msk.bf16.mxu0 %vm788_vm1, %v3084_v20 }
0x165b   : > { %8298 = vmatpush3.bf16.xpose.msra.mxu0 %v3121_v28 }
0x1662   : > { %8300 = vmatmul.mubr.msk.bf16.vlgmr.msra.gmra.mrb[64].mxu0 %vm788_vm1, %v3086_v1 }
0x1663   : > { %8303 = vmatprep.mubr.msk.bf16.mxu0 %vm788_vm1, %v3088_v35 }
0x166a   : > { %8304 = vmatmul.mubr.msk.bf16.gmra.mrb[68].mxu0 %vm788_vm1, %v3090_v32 }
0x16f1   : > { %v8285_v63 = vpop.f32.mrb[56].mxu0 }
0x16f2   : > { %3077 = vst.msk [vmem:[#allocation2 + $0x10] sm:$0xff] %vm788_vm1, %v8285_v63  ;;  %v3044_v56 = vpop.f32.mrb[57].mxu0 }
0x16f3   : > { %3075 = vst.msk [vmem:[#allocation2] sm:$0xff] %vm788_vm1, %v3044_v56  ;;  %v8286_v40 = vpop.f32.mrb[58].mxu0 }
0x16f4   : > { %3078 = vst.msk [vmem:[#allocation2 + $0x18] sm:$0xff] %vm788_vm1, %v8286_v40  ;;  %v3047_v29 = vpop.f32.mrb[59].mxu0 }
0x16f5   : > { %3076 = vst.msk [vmem:[#allocation2 + $0x8] sm:$0xff] %vm788_vm1, %v3047_v29 }
0x172a   : > { %v8289_v42 = vpop.f32.mrb[60].mxu0 }
0x172b   : > { %3081 = vst.msk [vmem:[#allocation2 + $0x30] sm:$0xff] %vm788_vm1, %v8289_v42  ;;  %v3060_v43 = vpop.f32.mrb[61].mxu0 }
0x172c   : > { %3079 = vst.msk [vmem:[#allocation2 + $0x20] sm:$0xff] %vm788_vm1, %v3060_v43  ;;  %v8290_v34 = vpop.f32.mrb[62].mxu0 }
0x172d   : > { %3082 = vst.msk [vmem:[#allocation2 + $0x38] sm:$0xff] %vm788_vm1, %v8290_v34  ;;  %v3063_v46 = vpop.f32.mrb[63].mxu0 }
0x172e   : > { %3080 = vst.msk [vmem:[#allocation2 + $0x28] sm:$0xff] %vm788_vm1, %v3063_v46 }
0x1735   : > { %v8301_v60 = vpop.f32.mrb[64].mxu0 }
0x1736   : > { %v3190_v37 = vmul.f32 0.35355338, %v8301_v60  ;;  %v3157_v41 = vpop.f32.mrb[65].mxu0 }
0x1737   : > { %v8302_v12 = vpop.f32.mrb[66].mxu0  ;;  %v3188_v36 = vmul.f32 0.35355338, %v3157_v41 }
0x1738   : > { %v3160_v21 = vpop.f32.mrb[67].mxu0  ;;  %v3202_v13 = vsel %vm886_vm2, %v3190_v37, -inf  ;;  %v3191_v16 = vmul.f32 0.35355338, %v8302_v12 }
0x1739   : > { %v3189_v14 = vmul.f32 0.35355338, %v3160_v21  ;;  %3203 = vmax.xlane.f32.xlu0 %v3202_v13  ;;  %v3196_v38 = vsel %vm886_vm2, %v3188_v36, -inf }
0x173a   : > { %v3205_v59 = vsel %vm886_vm2, %v3191_v16, -inf }
0x173b   : > { %v3199_v15 = vsel %vm886_vm2, %v3189_v14, -inf }
0x173c   : > { %3200 = vmax.xlane.f32.xlu1 %v3199_v15 }
0x173d   : > { %3197 = vmax.xlane.f32.xlu0 %v3196_v38  ;;  %v8305_v18 = vpop.f32.mrb[68].mxu0 }
0x173e   : > { %v3173_v19 = vpop.f32.mrb[69].mxu0  ;;  %v3194_v5 = vmul.f32 0.35355338, %v8305_v18 }
0x173f   : > { %v8306_v4 = vpop.f32.mrb[70].mxu0  ;;  %v3192_v17 = vmul.f32 0.35355338, %v3173_v19 }
0x1740   : > { %v3176_v23 = vpop.f32.mrb[71].mxu0  ;;  %v3214_v61 = vsel %vm886_vm2, %v3194_v5, -inf  ;;  %v3195_v24 = vmul.f32 0.35355338, %v8306_v4 }
0x1741   : > { %3206 = vmax.xlane.f32.xlu0 %v3205_v59  ;;  %v3208_v53 = vsel %vm886_vm2, %v3192_v17, -inf  ;;  %v10403_v47 = vmul.f32 0.35355338, %v3176_v23 }
0x1742   : > { %v3217_v10 = vsel %vm886_vm2, %v3195_v24, -inf }
0x1743   : > { %v3211_v58 = vsel %vm886_vm2, %v10403_v47, -inf }
0x1745   : > { %3215 = vmax.xlane.f32.xlu0 %v3214_v61 }
0x1749   : > { %3209 = vmax.xlane.f32.xlu0 %v3208_v53 }
0x174d   : > { %3290 = vrot.lane.b32.xlu1 %v10275_v44, %s11782_s29 }
0x1751   : > { %3292 = vrot.lane.b32.xlu1 %v10287_v27, %s11782_s29 }
0x175f   : > { %3288 = vrot.lane.b32.xlu0 %v10277_v11, %s11782_s29 }
0x1775   : > { %3218 = vmax.xlane.f32.xlu1 %v3217_v10 }
0x1779   : > { %3212 = vmax.xlane.f32.xlu1 %v3211_v58 }
0x178a   : > { %3294 = vrot.lane.b32.xlu1 %v10285_v48, %s11782_s29 }
0x17c6   : > { %v3204_v49 = vpop.xlane.xlu0 %3203 }
0x17c7   : > { %v3222_v3 = vsub.f32 %v3190_v37, %v3204_v49 }
0x17c9   : > { %v3232_v52 = vmul.f32 1.442695, %v3222_v3  ;;  %v3201_v26 = vpop.xlane.xlu1 %3200 }
0x17ca   : > { %v3198_v0 = vpop.xlane.xlu0 %3197  ;;  %v3221_v50 = vsub.f32 %v3189_v14, %v3201_v26 }
0x17cb   : > { %9032 = vpow2.f32 %v3232_v52  ;;  %v3220_v31 = vsub.f32 %v3188_v36, %v3198_v0 }
0x17cc   : > { %v3230_v20 = vmul.f32 1.442695, %v3221_v50 }
0x17cd   : > { %v3228_v54 = vmul.f32 1.442695, %v3220_v31  ;;  %v3291_v34 = vpop.permute.xlu1 %3290 }
0x17ce   : > { %v3207_v33 = vpop.xlane.xlu0 %3206 }
0x17cf   : > { %9034 = vpow2.f32 %v3228_v54  ;;  %v3223_v57 = vsub.f32 %v3191_v16, %v3207_v33 }
0x17d1   : > { %v3234_v28 = vmul.f32 1.442695, %v3223_v57  ;;  %v3293_v36 = vpop.permute.xlu1 %3292 }
0x17d2   : > { %v3216_v1 = vpop.xlane.xlu0 %3215 }
0x17d3   : > { %9036 = vpow2.f32 %v3234_v28  ;;  %v3226_v35 = vsub.f32 %v3194_v5, %v3216_v1 }
0x17d4   : > { %9038 = vpow2.f32 %v3230_v20 }
0x17d5   : > { %v10410_v32 = vpop.eup %9032  ;;  %v3240_v63 = vmul.f32 1.442695, %v3226_v35 }
0x17d6   : > { %v3210_v56 = vpop.xlane.xlu0 %3209  ;;  %v3250_v40 = vsel %vm886_vm2, %v10410_v32, 0.0 }
0x17d7   : > { %9040 = vpow2.f32 %v3240_v63  ;;  %v3224_v29 = vsub.f32 %v3192_v17, %v3210_v56  ;;  %3251 = vadd.xlane.f32.xlu0 %v3250_v40 }
0x17d9   : > { %v10414_v42 = vpop.eup %9034  ;;  %v3236_v43 = vmul.f32 1.442695, %v3224_v29 }
0x17da   : > { %v3289_v46 = vpop.permute.xlu0 %3288  ;;  %v3244_v60 = vsel %vm886_vm2, %v10414_v42, 0.0 }
0x17db   : > { %9042 = vpow2.f32 %v3236_v43  ;;  %3245 = vadd.xlane.f32.xlu0 %v3244_v60  ;;  %8307 = vmatprep.subr.bf16.mxu1 %v3289_v46 }
0x17dc   : > { %8308 = vmatpush3.bf16.msra.mxu1 %v3289_v46 }
0x17dd   : > { %v9037_v37 = vpop.eup %9036  ;;  %8309 = vmatprep.subr.bf16.mxu1 %v3291_v34 }
0x17de   : > { %v3253_v41 = vsel %vm886_vm2, %v9037_v37, 0.0  ;;  %v9039_v12 = vpop.eup %9038 }
0x17df   : > { %3254 = vadd.xlane.f32.xlu1 %v3253_v41  ;;  %v3247_v14 = vsel %vm886_vm2, %v9039_v12, 0.0 }
0x17e0   : > { %8310 = vmatpush3.bf16.msra.mxu1 %v3291_v34 }
0x17e1   : > { %v10419_v21 = vpop.eup %9040  ;;  %8311 = vmatprep.subr.bf16.mxu1 %v3293_v36 }
0x17e2   : > { %v3262_v13 = vsel %vm886_vm2, %v10419_v21, 0.0 }
0x17e3   : > { %3263 = vadd.xlane.f32.xlu0 %v3262_v13  ;;  %3248 = vadd.xlane.f32.xlu1 %v3247_v14 }
0x17e4   : > { %8312 = vmatpush3.bf16.msra.mxu1 %v3293_v36 }
0x17e5   : > { %v10424_v15 = vpop.eup %9042 }
0x17e6   : > { %v3256_v16 = vsel %vm886_vm2, %v10424_v15, 0.0 }
0x17e7   : > { %3257 = vadd.xlane.f32.xlu0 %v3256_v16 }
0x17f4   : > { %3427 = vrot.lane.b32.xlu1 %v10275_v44, %s11783_s20 }
0x17f8   : > { %3429 = vrot.lane.b32.xlu1 %v10287_v27, %s11783_s20 }
0x1802   : > { %v3219_v38 = vpop.xlane.xlu1 %3218 }
0x1803   : > { %v3227_v18 = vsub.f32 %v3195_v24, %v3219_v38 }
0x1805   : > { %v3242_v19 = vmul.f32 1.442695, %v3227_v18 }
0x1806   : > { %v3213_v4 = vpop.xlane.xlu1 %3212 }
0x1807   : > { %9044 = vpow2.f32 %v3242_v19  ;;  %v3225_v5 = vsub.f32 %v10403_v47, %v3213_v4 }
0x1809   : > { %v3238_v23 = vmul.f32 1.442695, %v3225_v5 }
0x180a   : > { %v3295_v59 = vpop.permute.xlu1 %3294 }
0x180b   : > { %8313 = vmatprep.subr.bf16.mxu1 %v3295_v59  ;;  %9046 = vpow2.f32 %v3238_v23 }
0x180c   : > { %8314 = vmatpush3.bf16.msra.mxu1 %v3295_v59 }
0x1811   : > { %v9045_v17 = vpop.eup %9044 }
0x1812   : > { %v3265_v61 = vsel %vm886_vm2, %v9045_v17, 0.0 }
0x1813   : > { %3266 = vadd.xlane.f32.xlu0 %v3265_v61 }
0x1815   : > { %v9047_v53 = vpop.eup %9046 }
0x1816   : > { %v3259_v10 = vsel %vm886_vm2, %v9047_v53, 0.0 }
0x181c   : > { %3260 = vadd.xlane.f32.xlu1 %v3259_v10 }
0x1829   : > { %3425 = vrot.lane.b32.xlu0 %v10277_v11, %s11783_s20 }
0x182d   : > { %3417 = vrot.lane.b32.xlu0 %v10277_v11, %s11784_s21  ;;  %3431 = vrot.lane.b32.xlu1 %v10285_v48, %s11783_s20 }
0x1831   : > { %3421 = vrot.lane.b32.xlu0 %v10287_v27, %s11784_s21  ;;  %3419 = vrot.lane.b32.xlu1 %v10275_v44, %s11784_s21 }
0x1835   : > { %3423 = vrot.lane.b32.xlu1 %v10285_v48, %s11784_s21 }
0x1864   : > { %v3252_v24 = vpop.xlane.xlu0 %3251 }
0x1868   : > { %v3246_v58 = vpop.xlane.xlu0 %3245 }
0x186c   : > { %v3255_v47 = vpop.xlane.xlu1 %3254 }
0x186d   : > { %9048 = vrcp.f32 %v3255_v47 }
0x186e   : > { %9050 = vrcp.f32 %v3246_v58 }
0x186f   : > { %9052 = vrcp.f32 %v3252_v24 }
0x1870   : > { %v3249_v49 = vpop.xlane.xlu1 %3248  ;;  %v3264_v28 = vpop.xlane.xlu0 %3263 }
0x1871   : > { %9054 = vrcp.f32 %v3249_v49 }
0x1874   : > { %v3258_v1 = vpop.xlane.xlu0 %3257  ;;  %v3428_v35 = vpop.permute.xlu1 %3427 }
0x1877   : > { %v9049_v3 = vpop.eup %9048 }
0x1878   : > { %v9051_v52 = vpop.eup %9050  ;;  %v3279_v31 = vmul.f32 %v9049_v3, %v9037_v37  ;;  %v3430_v40 = vpop.permute.xlu1 %3429 }
0x1879   : > { %v9053_v26 = vpop.eup %9052  ;;  %v3276_v50 = vmul.f32 %v9051_v52, %v10414_v42  ;;  %v3449_v42 = vsel %vm788_vm1, %v3428_v35, 0  ;;  %v3452_v41 = vsel %vm788_vm1, %v3430_v40, 0 }
0x187a   : > { %v3278_v33 = vmul.f32 %v9053_v26, %v10410_v32 }
0x187b   : > { %v9055_v0 = vpop.eup %9054 }
0x187c   : > { %v3277_v54 = vmul.f32 %v9055_v0, %v9039_v12  ;;  %v3285_v20 = vpack.c.bf16 %v3279_v31, %v3278_v33 }
0x187e   : > { %v3284_v57 = vpack.c.bf16 %v3277_v54, %v3276_v50 }
0x1880   : > { %8315 = vmatprep.mubr.msk.bf16.mxu1 %vm886_vm2, %v3284_v57 }
0x1881   : > { %8316 = vmatmul.mubr.msk.bf16.vlgmr.msra.gmra.mrb[56].mxu1 %vm886_vm2, %v3285_v20 }
0x18a0   : > { %v3267_v63 = vpop.xlane.xlu0 %3266 }
0x18a1   : > { %9056 = vrcp.f32 %v3267_v63 }
0x18a2   : > { %9058 = vrcp.f32 %v3258_v1 }
0x18a3   : > { %9060 = vrcp.f32 %v3264_v28 }
0x18a4   : > { %v3426_v56 = vpop.permute.xlu0 %3425 }
0x18a5   : > { %8719 = vmatprep.subr.msk.bf16.mxu1 %vm788_vm1, %v3426_v56  ;;  %v3446_v29 = vsel %vm788_vm1, %v3426_v56, 0 }
0x18a6   : > { %8324 = vmatpush3.bf16.xpose.msra.mxu1 %v3446_v29 }
0x18a7   : > { %8720 = vmatprep.subr.msk.bf16.mxu1 %vm788_vm1, %v3428_v35 }
0x18a8   : > { %v3418_v18 = vpop.permute.xlu0 %3417 }
0x18a9   : > { %v3261_v32 = vpop.xlane.xlu1 %3260 }
0x18aa   : > { %9062 = vrcp.f32 %v3261_v32 }
0x18ab   : > { %v9057_v43 = vpop.eup %9056 }
0x18ac   : > { %v9059_v34 = vpop.eup %9058  ;;  %v3283_v37 = vmul.f32 %v9057_v43, %v9045_v17  ;;  %v3422_v4 = vpop.permute.xlu0 %3421 }
0x18ad   : > { %v9061_v46 = vpop.eup %9060  ;;  %v3280_v12 = vmul.f32 %v9059_v34, %v10424_v15  ;;  %v3432_v13 = vpop.permute.xlu1 %3431 }
0x18ae   : > { %8326 = vmatpush3.bf16.xpose.msra.mxu1 %v3449_v42  ;;  %v3282_v14 = vmul.f32 %v9061_v46, %v10419_v21  ;;  %v3455_v19 = vsel %vm788_vm1, %v3432_v13, 0 }
0x18af   : > { %8721 = vmatprep.subr.msk.bf16.mxu1 %vm788_vm1, %v3430_v40 }
0x18b0   : > { %v3287_v38 = vpack.c.bf16 %v3283_v37, %v3282_v14 }
0x18b1   : > { %v3420_v15 = vpop.permute.xlu1 %3419 }
0x18b4   : > { %v9063_v60 = vpop.eup %9062 }
0x18b5   : > { %v3281_v36 = vmul.f32 %v9063_v60, %v9047_v53  ;;  %v3424_v21 = vpop.permute.xlu1 %3423 }
0x18b6   : > { %8328 = vmatpush3.bf16.xpose.msra.mxu1 %v3452_v41 }
0x18b7   : > { %8722 = vmatprep.subr.msk.bf16.mxu1 %vm788_vm1, %v3432_v13  ;;  %v3286_v16 = vpack.c.bf16 %v3281_v36, %v3280_v12 }
0x18b9   : > { %8319 = vmatprep.mubr.msk.bf16.mxu1 %vm886_vm2, %v3286_v16 }
0x18ba   : > { %8320 = vmatmul.mubr.msk.bf16.gmra.mrb[60].mxu1 %vm886_vm2, %v3287_v38 }
0x18bb   : > { %8331 = vmatprep.mubr.msk.bf16.mxu1 %vm788_vm1, %v3418_v18 }
0x18be   : > { %8330 = vmatpush3.bf16.xpose.msra.mxu1 %v3455_v19 }
0x18c5   : > { %8332 = vmatmul.mubr.msk.bf16.vlgmr.msra.gmra.mrb[64].mxu1 %vm788_vm1, %v3420_v15 }
0x18c6   : > { %8335 = vmatprep.mubr.msk.bf16.mxu1 %vm788_vm1, %v3422_v4 }
0x18cd   : > { %8336 = vmatmul.mubr.msk.bf16.gmra.mrb[68].mxu1 %vm788_vm1, %v3424_v21 }
0x1954   : > { %v10467_v5 = vpop.f32.mrb[56].mxu1 }
0x1955   : > { %v10469_v23 = vpop.f32.mrb[57].mxu1 }
0x1956   : > { %v10471_v59 = vpop.f32.mrb[58].mxu1 }
0x1957   : > { %v10473_v17 = vpop.f32.mrb[59].mxu1 }
0x198d   : > { %v10475_v61 = vpop.f32.mrb[60].mxu1 }
0x198e   : > { %v10477_v53 = vpop.f32.mrb[61].mxu1 }
0x198f   : > { %v10479_v10 = vpop.f32.mrb[62].mxu1 }
0x1990   : > { %v10481_v24 = vpop.f32.mrb[63].mxu1 }
0x1998   : > { %v8333_v47 = vpop.f32.mrb[64].mxu1 }
0x1999   : > { %v3524_v58 = vmul.f32 0.35355338, %v8333_v47  ;;  %v3491_v49 = vpop.f32.mrb[65].mxu1 }
0x199a   : > { %v8334_v3 = vpop.f32.mrb[66].mxu1  ;;  %v3522_v52 = vmul.f32 0.35355338, %v3491_v49 }
0x199b   : > { %v3494_v26 = vpop.f32.mrb[67].mxu1  ;;  %v3536_v0 = vsel %vm886_vm2, %v3524_v58, -inf  ;;  %v3525_v54 = vmul.f32 0.35355338, %v8334_v3 }
0x199c   : > { %v3523_v31 = vmul.f32 0.35355338, %v3494_v26  ;;  %3537 = vmax.xlane.f32.xlu0 %v3536_v0  ;;  %v3530_v33 = vsel %vm886_vm2, %v3522_v52, -inf }
0x199d   : > { %v3539_v63 = vsel %vm886_vm2, %v3525_v54, -inf }
0x199e   : > { %v3533_v50 = vsel %vm886_vm2, %v3523_v31, -inf }
0x199f   : > { %3534 = vmax.xlane.f32.xlu1 %v3533_v50 }
0x19a0   : > { %3531 = vmax.xlane.f32.xlu0 %v3530_v33  ;;  %v8337_v57 = vpop.f32.mrb[68].mxu1 }
0x19a1   : > { %v3507_v20 = vpop.f32.mrb[69].mxu1  ;;  %v3528_v1 = vmul.f32 0.35355338, %v8337_v57 }
0x19a2   : > { %v8338_v28 = vpop.f32.mrb[70].mxu1  ;;  %v3526_v56 = vmul.f32 0.35355338, %v3507_v20 }
0x19a3   : > { %v3510_v35 = vpop.f32.mrb[71].mxu1  ;;  %v3548_v40 = vsel %vm886_vm2, %v3528_v1, -inf  ;;  %v3529_v32 = vmul.f32 0.35355338, %v8338_v28 }
0x19a4   : > { %3540 = vmax.xlane.f32.xlu0 %v3539_v63  ;;  %v3542_v29 = vsel %vm886_vm2, %v3526_v56, -inf  ;;  %v10495_v42 = vmul.f32 0.35355338, %v3510_v35 }
0x19a5   : > { %v3551_v43 = vsel %vm886_vm2, %v3529_v32, -inf }
0x19a6   : > { %v3545_v34 = vsel %vm886_vm2, %v10495_v42, -inf }
0x19a8   : > { %3549 = vmax.xlane.f32.xlu0 %v3548_v40 }
0x19ac   : > { %3543 = vmax.xlane.f32.xlu0 %v3542_v29 }
0x19b0   : > { %3624 = vrot.lane.b32.xlu1 %v10275_v44, %s11785_s30 }
0x19b4   : > { %3626 = vrot.lane.b32.xlu1 %v10287_v27, %s11785_s30 }
0x19c2   : > { %3622 = vrot.lane.b32.xlu0 %v10277_v11, %s11785_s30 }
0x19d8   : > { %3552 = vmax.xlane.f32.xlu1 %v3551_v43 }
0x19dc   : > { %3546 = vmax.xlane.f32.xlu1 %v3545_v34 }
0x19ed   : > { %3628 = vrot.lane.b32.xlu1 %v10285_v48, %s11785_s30 }
0x1a29   : > { %v3538_v46 = vpop.xlane.xlu0 %3537 }
0x1a2a   : > { %v3556_v60 = vsub.f32 %v3524_v58, %v3538_v46 }
0x1a2c   : > { %v3566_v37 = vmul.f32 1.442695, %v3556_v60  ;;  %v3535_v41 = vpop.xlane.xlu1 %3534 }
0x1a2d   : > { %v3532_v12 = vpop.xlane.xlu0 %3531  ;;  %v3555_v13 = vsub.f32 %v3523_v31, %v3535_v41 }
0x1a2e   : > { %9064 = vpow2.f32 %v3566_v37  ;;  %v3554_v36 = vsub.f32 %v3522_v52, %v3532_v12 }
0x1a2f   : > { %v3564_v18 = vmul.f32 1.442695, %v3555_v13 }
0x1a30   : > { %v3562_v14 = vmul.f32 1.442695, %v3554_v36  ;;  %v3625_v0 = vpop.permute.xlu1 %3624 }
0x1a31   : > { %v3541_v16 = vpop.xlane.xlu0 %3540 }
0x1a32   : > { %9066 = vpow2.f32 %v3562_v14  ;;  %v3557_v38 = vsub.f32 %v3525_v54, %v3541_v16 }
0x1a34   : > { %v3568_v19 = vmul.f32 1.442695, %v3557_v38  ;;  %v3627_v20 = vpop.permute.xlu1 %3626 }
0x1a35   : > { %v3550_v15 = vpop.xlane.xlu0 %3549 }
0x1a36   : > { %9068 = vpow2.f32 %v3568_v19  ;;  %v3560_v4 = vsub.f32 %v3528_v1, %v3550_v15 }
0x1a37   : > { %9070 = vpow2.f32 %v3564_v18 }
0x1a38   : > { %v10502_v21 = vpop.eup %9064  ;;  %v3574_v47 = vmul.f32 1.442695, %v3560_v4 }
0x1a39   : > { %v3544_v58 = vpop.xlane.xlu0 %3543  ;;  %v3584_v49 = vsel %vm886_vm2, %v10502_v21, 0.0 }
0x1a3a   : > { %9072 = vpow2.f32 %v3574_v47  ;;  %v3558_v3 = vsub.f32 %v3526_v56, %v3544_v58  ;;  %3585 = vadd.xlane.f32.xlu0 %v3584_v49 }
0x1a3c   : > { %v10506_v52 = vpop.eup %9066  ;;  %v3570_v26 = vmul.f32 1.442695, %v3558_v3 }
0x1a3d   : > { %v3623_v31 = vpop.permute.xlu0 %3622  ;;  %v3578_v50 = vsel %vm886_vm2, %v10506_v52, 0.0 }
0x1a3e   : > { %9074 = vpow2.f32 %v3570_v26  ;;  %3579 = vadd.xlane.f32.xlu0 %v3578_v50  ;;  %8339 = vmatprep.subr.bf16.mxu0 %v3623_v31 }
0x1a3f   : > { %8340 = vmatpush3.bf16.msra.mxu0 %v3623_v31 }
0x1a40   : > { %v9069_v54 = vpop.eup %9068  ;;  %8341 = vmatprep.subr.bf16.mxu0 %v3625_v0 }
0x1a41   : > { %v3587_v33 = vsel %vm886_vm2, %v9069_v54, 0.0  ;;  %v9071_v57 = vpop.eup %9070 }
0x1a42   : > { %3588 = vadd.xlane.f32.xlu1 %v3587_v33  ;;  %v3581_v35 = vsel %vm886_vm2, %v9071_v57, 0.0 }
0x1a43   : > { %8342 = vmatpush3.bf16.msra.mxu0 %v3625_v0 }
0x1a44   : > { %v10511_v28 = vpop.eup %9072  ;;  %8343 = vmatprep.subr.bf16.mxu0 %v3627_v20 }
0x1a45   : > { %v3596_v1 = vsel %vm886_vm2, %v10511_v28, 0.0 }
0x1a46   : > { %3597 = vadd.xlane.f32.xlu0 %v3596_v1  ;;  %3582 = vadd.xlane.f32.xlu1 %v3581_v35 }
0x1a47   : > { %8344 = vmatpush3.bf16.msra.mxu0 %v3627_v20 }
0x1a48   : > { %v10516_v63 = vpop.eup %9074 }
0x1a49   : > { %v3590_v56 = vsel %vm886_vm2, %v10516_v63, 0.0 }
0x1a4a   : > { %3591 = vadd.xlane.f32.xlu0 %v3590_v56 }
0x1a57   : > { %3761 = vrot.lane.b32.xlu1 %v10275_v44, %s11786_s18 }
0x1a5b   : > { %3763 = vrot.lane.b32.xlu1 %v10287_v27, %s11786_s18 }
0x1a65   : > { %v3553_v40 = vpop.xlane.xlu1 %3552 }
0x1a66   : > { %v3561_v29 = vsub.f32 %v3529_v32, %v3553_v40 }
0x1a68   : > { %v3576_v43 = vmul.f32 1.442695, %v3561_v29 }
0x1a69   : > { %v3547_v34 = vpop.xlane.xlu1 %3546 }
0x1a6a   : > { %9076 = vpow2.f32 %v3576_v43  ;;  %v3559_v46 = vsub.f32 %v10495_v42, %v3547_v34 }
0x1a6c   : > { %v3572_v60 = vmul.f32 1.442695, %v3559_v46 }
0x1a6d   : > { %v3629_v37 = vpop.permute.xlu1 %3628 }
0x1a6e   : > { %8345 = vmatprep.subr.bf16.mxu0 %v3629_v37  ;;  %9078 = vpow2.f32 %v3572_v60 }
0x1a6f   : > { %8346 = vmatpush3.bf16.msra.mxu0 %v3629_v37 }
0x1a74   : > { %v9077_v41 = vpop.eup %9076 }
0x1a75   : > { %v3599_v12 = vsel %vm886_vm2, %v9077_v41, 0.0 }
0x1a76   : > { %3600 = vadd.xlane.f32.xlu0 %v3599_v12 }
0x1a78   : > { %v9079_v36 = vpop.eup %9078 }
0x1a79   : > { %v3593_v13 = vsel %vm886_vm2, %v9079_v36, 0.0 }
0x1a7f   : > { %3594 = vadd.xlane.f32.xlu1 %v3593_v13 }
0x1a8c   : > { %3759 = vrot.lane.b32.xlu0 %v10277_v11, %s11786_s18 }
0x1a90   : > { %3751 = vrot.lane.b32.xlu0 %v10277_v11, %s11787_s1  ;;  %3765 = vrot.lane.b32.xlu1 %v10285_v48, %s11786_s18 }
0x1a94   : > { %3755 = vrot.lane.b32.xlu0 %v10287_v27, %s11787_s1  ;;  %3753 = vrot.lane.b32.xlu1 %v10275_v44, %s11787_s1 }
0x1a98   : > { %3757 = vrot.lane.b32.xlu1 %v10285_v48, %s11787_s1 }
0x1ac7   : > { %v3586_v32 = vpop.xlane.xlu0 %3585 }
0x1acb   : > { %v3580_v14 = vpop.xlane.xlu0 %3579 }
0x1acf   : > { %v3589_v42 = vpop.xlane.xlu1 %3588 }
0x1ad0   : > { %9080 = vrcp.f32 %v3589_v42 }
0x1ad1   : > { %9082 = vrcp.f32 %v3580_v14 }
0x1ad2   : > { %9084 = vrcp.f32 %v3586_v32 }
0x1ad3   : > { %v3583_v16 = vpop.xlane.xlu1 %3582  ;;  %v3598_v0 = vpop.xlane.xlu0 %3597 }
0x1ad4   : > { %9086 = vrcp.f32 %v3583_v16 }
0x1ad7   : > { %v3592_v31 = vpop.xlane.xlu0 %3591  ;;  %v3762_v50 = vpop.permute.xlu1 %3761 }
0x1ada   : > { %v9081_v38 = vpop.eup %9080 }
0x1adb   : > { %v9083_v18 = vpop.eup %9082  ;;  %v3613_v4 = vmul.f32 %v9081_v38, %v9069_v54  ;;  %v3764_v1 = vpop.permute.xlu1 %3763 }
0x1adc   : > { %v9085_v19 = vpop.eup %9084  ;;  %v3610_v47 = vmul.f32 %v9083_v18, %v10506_v52  ;;  %v3783_v52 = vsel %vm788_vm1, %v3762_v50, 0  ;;  %v3786_v43 = vsel %vm788_vm1, %v3764_v1, 0 }
0x1add   : > { %v3612_v49 = vmul.f32 %v9085_v19, %v10502_v21 }
0x1ade   : > { %v9087_v15 = vpop.eup %9086 }
0x1adf   : > { %v3611_v58 = vmul.f32 %v9087_v15, %v9071_v57  ;;  %v3619_v26 = vpack.c.bf16 %v3613_v4, %v3612_v49 }
0x1ae1   : > { %v3618_v3 = vpack.c.bf16 %v3611_v58, %v3610_v47 }
0x1ae3   : > { %8347 = vmatprep.mubr.msk.bf16.mxu0 %vm886_vm2, %v3618_v3 }
0x1ae4   : > { %8348 = vmatmul.mubr.msk.bf16.vlgmr.msra.gmra.mrb[72].mxu0 %vm886_vm2, %v3619_v26 }
0x1b03   : > { %v3601_v33 = vpop.xlane.xlu0 %3600 }
0x1b04   : > { %9088 = vrcp.f32 %v3601_v33 }
0x1b05   : > { %9090 = vrcp.f32 %v3592_v31 }
0x1b06   : > { %9092 = vrcp.f32 %v3598_v0 }
0x1b07   : > { %v3760_v20 = vpop.permute.xlu0 %3759 }
0x1b08   : > { %8723 = vmatprep.subr.msk.bf16.mxu0 %vm788_vm1, %v3760_v20  ;;  %v3780_v54 = vsel %vm788_vm1, %v3760_v20, 0 }
0x1b09   : > { %8356 = vmatpush3.bf16.xpose.msra.mxu0 %v3780_v54 }
0x1b0a   : > { %8724 = vmatprep.subr.msk.bf16.mxu0 %vm788_vm1, %v3762_v50 }
0x1b0b   : > { %v3752_v32 = vpop.permute.xlu0 %3751 }
0x1b0c   : > { %v3595_v21 = vpop.xlane.xlu1 %3594 }
0x1b0d   : > { %9094 = vrcp.f32 %v3595_v21 }
0x1b0e   : > { %v9089_v57 = vpop.eup %9088 }
0x1b0f   : > { %v9091_v35 = vpop.eup %9090  ;;  %v3617_v29 = vmul.f32 %v9089_v57, %v9077_v41 }
0x1b10   : > { %v9093_v56 = vpop.eup %9092  ;;  %v3614_v34 = vmul.f32 %v9091_v35, %v10516_v63  ;;  %v3766_v60 = vpop.permute.xlu1 %3765 }
0x1b11   : > { %8358 = vmatpush3.bf16.xpose.msra.mxu0 %v3783_v52  ;;  %v3616_v37 = vmul.f32 %v9093_v56, %v10511_v28  ;;  %v3789_v41 = vsel %vm788_vm1, %v3766_v60, 0 }
0x1b12   : > { %8725 = vmatprep.subr.msk.bf16.mxu0 %vm788_vm1, %v3764_v1 }
0x1b13   : > { %v3621_v13 = vpack.c.bf16 %v3617_v29, %v3616_v37 }
0x1b14   : > { %v3754_v63 = vpop.permute.xlu1 %3753 }
0x1b17   : > { %v9095_v40 = vpop.eup %9094 }
0x1b18   : > { %v3615_v46 = vmul.f32 %v9095_v40, %v9079_v36  ;;  %v3756_v36 = vpop.permute.xlu0 %3755  ;;  %v3758_v28 = vpop.permute.xlu1 %3757 }
0x1b19   : > { %8360 = vmatpush3.bf16.xpose.msra.mxu0 %v3786_v43 }
0x1b1a   : > { %8726 = vmatprep.subr.msk.bf16.mxu0 %vm788_vm1, %v3766_v60  ;;  %v3620_v12 = vpack.c.bf16 %v3615_v46, %v3614_v34 }
0x1b1c   : > { %8351 = vmatprep.mubr.msk.bf16.mxu0 %vm886_vm2, %v3620_v12 }
0x1b1d   : > { %8352 = vmatmul.mubr.msk.bf16.gmra.mrb[76].mxu0 %vm886_vm2, %v3621_v13 }
0x1b1e   : > { %8363 = vmatprep.mubr.msk.bf16.mxu0 %vm788_vm1, %v3752_v32 }
0x1b21   : > { %8362 = vmatpush3.bf16.xpose.msra.mxu0 %v3789_v41 }
0x1b28   : > { %8364 = vmatmul.mubr.msk.bf16.vlgmr.msra.gmra.mrb[80].mxu0 %vm788_vm1, %v3754_v63 }
0x1b29   : > { %8367 = vmatprep.mubr.msk.bf16.mxu0 %vm788_vm1, %v3756_v36 }
0x1b30   : > { %8368 = vmatmul.mubr.msk.bf16.gmra.mrb[84].mxu0 %vm788_vm1, %v3758_v28 }
0x1bb7   : > { %v10559_v42 = vpop.f32.mrb[72].mxu0 }
0x1bb8   : > { %v10561_v14 = vpop.f32.mrb[73].mxu0 }
0x1bb9   : > { %v10563_v16 = vpop.f32.mrb[74].mxu0 }
0x1bba   : > { %v10565_v38 = vpop.f32.mrb[75].mxu0 }
0x1bf0   : > { %v10567_v18 = vpop.f32.mrb[76].mxu0 }
0x1bf1   : > { %v10569_v19 = vpop.f32.mrb[77].mxu0 }
0x1bf2   : > { %v10571_v15 = vpop.f32.mrb[78].mxu0 }
0x1bf3   : > { %v10573_v4 = vpop.f32.mrb[79].mxu0 }
0x1bfb   : > { %v8365_v47 = vpop.f32.mrb[80].mxu0 }
0x1bfc   : > { %v3825_v58 = vpop.f32.mrb[81].mxu0  ;;  %v3858_v0 = vmul.f32 0.35355338, %v8365_v47 }
0x1bfd   : > { %v3856_v49 = vmul.f32 0.35355338, %v3825_v58  ;;  %v8366_v3 = vpop.f32.mrb[82].mxu0 }
0x1bfe   : > { %v3828_v26 = vpop.f32.mrb[83].mxu0  ;;  %v3859_v20 = vmul.f32 0.35355338, %v8366_v3  ;;  %v3870_v54 = vsel %vm886_vm2, %v3858_v0, -inf }
0x1bff   : > { %v3857_v31 = vmul.f32 0.35355338, %v3828_v26  ;;  %v3864_v50 = vsel %vm886_vm2, %v3856_v49, -inf }
0x1c00   : > { %3865 = vmax.xlane.f32.xlu0 %v3864_v50  ;;  %v3873_v40 = vsel %vm886_vm2, %v3859_v20, -inf }
0x1c01   : > { %v3867_v33 = vsel %vm886_vm2, %v3857_v31, -inf }
0x1c02   : > { %3868 = vmax.xlane.f32.xlu1 %v3867_v33 }
0x1c03   : > { %v8369_v1 = vpop.f32.mrb[84].mxu0 }
0x1c04   : > { %3871 = vmax.xlane.f32.xlu0 %v3870_v54  ;;  %v3841_v21 = vpop.f32.mrb[85].mxu0  ;;  %v3862_v34 = vmul.f32 0.35355338, %v8369_v1 }
0x1c05   : > { %v8370_v52 = vpop.f32.mrb[86].mxu0  ;;  %v3860_v35 = vmul.f32 0.35355338, %v3841_v21 }
0x1c06   : > { %v3844_v57 = vpop.f32.mrb[87].mxu0  ;;  %v3863_v29 = vmul.f32 0.35355338, %v8370_v52  ;;  %v3882_v37 = vsel %vm886_vm2, %v3862_v34, -inf }
0x1c07   : > { %v10578_v56 = vmul.f32 0.35355338, %v3844_v57  ;;  %v3876_v46 = vsel %vm886_vm2, %v3860_v35, -inf }
0x1c08   : > { %3874 = vmax.xlane.f32.xlu0 %v3873_v40  ;;  %v3885_v60 = vsel %vm886_vm2, %v3863_v29, -inf }
0x1c09   : > { %v3879_v43 = vsel %vm886_vm2, %v10578_v56, -inf }
0x1c0a   : > { %3880 = vmax.xlane.f32.xlu1 %v3879_v43 }
0x1c0c   : > { %3877 = vmax.xlane.f32.xlu0 %v3876_v46 }
0x1c0e   : > { %3886 = vmax.xlane.f32.xlu1 %v3885_v60 }
0x1c10   : > { %3883 = vmax.xlane.f32.xlu0 %v3882_v37 }
0x1c8d   : > { %v3866_v12 = vpop.xlane.xlu0 %3865 }
0x1c8e   : > { %v3888_v13 = vsub.f32 %v3856_v49, %v3866_v12 }
0x1c8f   : > { %v3869_v32 = vpop.xlane.xlu1 %3868 }
0x1c90   : > { %v3896_v36 = vmul.f32 1.442695, %v3888_v13  ;;  %v3889_v28 = vsub.f32 %v3857_v31, %v3869_v32 }
0x1c91   : > { %v3872_v41 = vpop.xlane.xlu0 %3871 }
0x1c92   : > { %v3890_v63 = vsub.f32 %v3858_v0, %v3872_v41  ;;  %v3898_v26 = vmul.f32 1.442695, %v3889_v28 }
0x1c94   : > { %v3900_v47 = vmul.f32 1.442695, %v3890_v63 }
0x1c95   : > { %v3875_v58 = vpop.xlane.xlu0 %3874 }
0x1c96   : > { %9096 = vpow2.f32 %v3900_v47  ;;  %v3891_v3 = vsub.f32 %v3859_v20, %v3875_v58 }
0x1c97   : > { %9098 = vpow2.f32 %v3896_v36  ;;  %v3881_v13 = vpop.xlane.xlu1 %3880 }
0x1c98   : > { %v3902_v50 = vmul.f32 1.442695, %v3891_v3  ;;  %v3893_v63 = vsub.f32 %v10578_v56, %v3881_v13 }
0x1c99   : > { %v3878_v33 = vpop.xlane.xlu0 %3877 }
0x1c9a   : > { %9100 = vpow2.f32 %v3902_v50  ;;  %v3892_v1 = vsub.f32 %v3860_v35, %v3878_v33 }
0x1c9b   : > { %9102 = vpow2.f32 %v3898_v26  ;;  %v3887_v32 = vpop.xlane.xlu1 %3886 }
0x1c9c   : > { %v3904_v49 = vmul.f32 1.442695, %v3892_v1  ;;  %v3895_v41 = vsub.f32 %v3863_v29, %v3887_v32 }
0x1c9d   : > { %v3884_v54 = vpop.xlane.xlu0 %3883 }
0x1c9e   : > { %v3894_v21 = vsub.f32 %v3862_v34, %v3884_v54  ;;  %v3910_v36 = vmul.f32 1.442695, %v3895_v41 }
0x1ca0   : > { %v10586_v52 = vpop.eup %9096  ;;  %v3908_v57 = vmul.f32 1.442695, %v3894_v21 }
0x1ca1   : > { %v3918_v0 = vsel %vm886_vm2, %v10586_v52, 0.0  ;;  %v9099_v31 = vpop.eup %9098 }
0x1ca2   : > { %9104 = vpow2.f32 %v3908_v57  ;;  %3919 = vadd.xlane.f32.xlu0 %v3918_v0  ;;  %v3912_v40 = vsel %vm886_vm2, %v9099_v31, 0.0 }
0x1ca3   : > { %9106 = vpow2.f32 %v3904_v49 }
0x1ca4   : > { %v10590_v20 = vpop.eup %9100  ;;  %9108 = vpow2.f32 %v3910_v36 }
0x1ca5   : > { %v3921_v35 = vsel %vm886_vm2, %v10590_v20, 0.0  ;;  %v9103_v43 = vpop.eup %9102 }
0x1ca6   : > { %3913 = vadd.xlane.f32.xlu0 %v3912_v40  ;;  %3922 = vadd.xlane.f32.xlu1 %v3921_v35  ;;  %v3915_v34 = vsel %vm886_vm2, %v9103_v43, 0.0 }
0x1caa   : > { %3916 = vadd.xlane.f32.xlu1 %v3915_v34 }
0x1cac   : > { %v10596_v46 = vpop.eup %9104 }
0x1cad   : > { %v3930_v60 = vsel %vm886_vm2, %v10596_v46, 0.0  ;;  %v10600_v37 = vpop.eup %9106 }
0x1cae   : > { %3931 = vadd.xlane.f32.xlu0 %v3930_v60  ;;  %v3924_v12 = vsel %vm886_vm2, %v10600_v37, 0.0 }
0x1cb2   : > { %3925 = vadd.xlane.f32.xlu0 %v3924_v12 }
0x1cbb   : > { %3958 = vrot.lane.b32.xlu1 %v10275_v44, %s11788_s22  ;;  %v3906_v44 = vmul.f32 1.442695, %v3893_v63 }
0x1cbd   : > { %9110 = vpow2.f32 %v3906_v44 }
0x1cbf   : > { %3960 = vrot.lane.b32.xlu1 %v10287_v27, %s11788_s22 }
0x1cc8   : > { %3956 = vrot.lane.b32.xlu0 %v10277_v11, %s11788_s22  ;;  %v10621_v11 = vpop.eup %9108 }
0x1cc9   : > { %v3933_v27 = vsel %vm886_vm2, %v10621_v11, 0.0 }
0x1ccc   : > { %3385 = vrot.lane.b32.xlu0 %v10469_v23, %s11789_s0 }
0x1cd0   : > { %3389 = vrot.lane.b32.xlu0 %v10467_v5, %s11789_s0  ;;  %v10627_v5 = vpop.eup %9110 }
0x1cd1   : > { %v3927_v23 = vsel %vm886_vm2, %v10627_v5, 0.0 }
0x1cd4   : > { %3719 = vrot.lane.b32.xlu0 %v10561_v14, %s11790_s26 }
0x1cd8   : > { %3723 = vrot.lane.b32.xlu0 %v10559_v42, %s11790_s26 }
0x1cdc   : > { %3393 = vrot.lane.b32.xlu0 %v10477_v53, %s11789_s0 }
0x1ce0   : > { %3397 = vrot.lane.b32.xlu0 %v10475_v61, %s11789_s0 }
0x1ce3   : > { %3934 = vadd.xlane.f32.xlu1 %v3933_v27 }
0x1ce4   : > { %3727 = vrot.lane.b32.xlu0 %v10569_v19, %s11790_s26 }
0x1ce7   : > { %3928 = vadd.xlane.f32.xlu1 %v3927_v23  ;;  %v8784_v23 = vld [vmem:[%s11778_s3 + $0x18] sm:$0xff]  }
0x1cf8   : > { %3962 = vrot.lane.b32.xlu1 %v10285_v48, %s11788_s22 }
0x1cfc   : > { %3387 = vrot.lane.b32.xlu1 %v10473_v17, %s11789_s0 }
0x1d00   : > { %3391 = vrot.lane.b32.xlu1 %v10471_v59, %s11789_s0 }
0x1d04   : > { %3721 = vrot.lane.b32.xlu1 %v10565_v38, %s11790_s26 }
0x1d08   : > { %3725 = vrot.lane.b32.xlu1 %v10563_v16, %s11790_s26 }
0x1d0c   : > { %3395 = vrot.lane.b32.xlu1 %v10481_v24, %s11789_s0 }
0x1d10   : > { %3399 = vrot.lane.b32.xlu1 %v10479_v10, %s11789_s0 }
0x1d14   : > { %3729 = vrot.lane.b32.xlu1 %v10573_v4, %s11790_s26 }
0x1d2f   : > { %v3920_v48 = vpop.xlane.xlu0 %3919 }
0x1d33   : > { %v3914_v17 = vpop.xlane.xlu0 %3913  ;;  %v3923_v61 = vpop.xlane.xlu1 %3922 }
0x1d34   : > { %9112 = vrcp.f32 %v3914_v17 }
0x1d37   : > { %v3917_v59 = vpop.xlane.xlu1 %3916 }
0x1d38   : > { %9114 = vrcp.f32 %v3917_v59 }
0x1d39   : > { %9116 = vrcp.f32 %v3923_v61 }
0x1d3a   : > { %9118 = vrcp.f32 %v3920_v48 }
0x1d3b   : > { %v3932_v53 = vpop.xlane.xlu0 %3931  ;;  %v3959_v16 = vpop.permute.xlu1 %3958 }
0x1d3e   : > { %v9113_v14 = vpop.eup %9112 }
0x1d3f   : > { %v3926_v42 = vpop.xlane.xlu0 %3925  ;;  %v3944_v56 = vmul.f32 %v9113_v14, %v9099_v31  ;;  %v3961_v4 = vpop.permute.xlu1 %3960 }
0x1d42   : > { %v9115_v38 = vpop.eup %9114 }
0x1d43   : > { %v3957_v19 = vpop.permute.xlu0 %3956  ;;  %v3945_v24 = vmul.f32 %v9115_v38, %v9103_v43  ;;  %v9117_v1 = vpop.eup %9116 }
0x1d44   : > { %8371 = vmatprep.subr.bf16.mxu1 %v3957_v19  ;;  %v9119_v21 = vpop.eup %9118  ;;  %v3947_v49 = vmul.f32 %v9117_v1, %v10590_v20 }
0x1d45   : > { %8372 = vmatpush3.bf16.msra.mxu1 %v3957_v19  ;;  %v3952_v10 = vpack.c.bf16 %v3945_v24, %v3944_v56  ;;  %v3946_v0 = vmul.f32 %v9119_v21, %v10586_v52 }
0x1d46   : > { %8373 = vmatprep.subr.bf16.mxu1 %v3959_v16 }
0x1d47   : > { %v3386_v29 = vpop.permute.xlu0 %3385  ;;  %8379 = vmatprep.mubr.msk.bf16.mxu1 %vm886_vm2, %v3952_v10  ;;  %v3953_v31 = vpack.c.bf16 %v3947_v49, %v3946_v0 }
0x1d48   : > { %3409 = vst.msk [vmem:[#allocation2] sm:$0xff] %vm1402_vm3, %v3386_v29 }
0x1d49   : > { %8374 = vmatpush3.bf16.msra.mxu1 %v3959_v16 }
0x1d4a   : > { %8375 = vmatprep.subr.bf16.mxu1 %v3961_v4 }
0x1d4b   : > { %v3390_v28 = vpop.permute.xlu0 %3389 }
0x1d4c   : > { %3411 = vst.msk [vmem:[#allocation2 + $0x10] sm:$0xff] %vm1402_vm3, %v3390_v28 }
0x1d4d   : > { %8376 = vmatpush3.bf16.msra.mxu1 %v3961_v4 }
0x1d4f   : > { %v3720_v47 = vpop.permute.xlu0 %3719 }
0x1d50   : > { %3743 = vst.msk [vmem:[#allocation2] sm:$0xff] %vm1737_vm4, %v3720_v47 }
0x1d53   : > { %v3724_v58 = vpop.permute.xlu0 %3723 }
0x1d54   : > { %3745 = vst.msk [vmem:[#allocation2 + $0x10] sm:$0xff] %vm1737_vm4, %v3724_v58 }
0x1d57   : > { %v3394_v3 = vpop.permute.xlu0 %3393 }
0x1d58   : > { %3413 = vst.msk [vmem:[#allocation2 + $0x20] sm:$0xff] %vm1402_vm3, %v3394_v3 }
0x1d5b   : > { %v3398_v26 = vpop.permute.xlu0 %3397 }
0x1d5c   : > { %3415 = vst.msk [vmem:[#allocation2 + $0x30] sm:$0xff] %vm1402_vm3, %v3398_v26 }
0x1d5f   : > { %v3728_v50 = vpop.permute.xlu0 %3727 }
0x1d60   : > { %3747 = vst.msk [vmem:[#allocation2 + $0x20] sm:$0xff] %vm1737_vm4, %v3728_v50 }
0x1d70   : > { %v3935_v33 = vpop.xlane.xlu1 %3934 }
0x1d71   : > { %9120 = vrcp.f32 %v3935_v33 }
0x1d72   : > { %9122 = vrcp.f32 %v3926_v42 }
0x1d73   : > { %9124 = vrcp.f32 %v3932_v53 }
0x1d74   : > { %v3929_v54 = vpop.xlane.xlu1 %3928 }
0x1d75   : > { %9126 = vrcp.f32 %v3929_v54 }
0x1d78   : > { %v3963_v57 = vpop.permute.xlu1 %3962 }
0x1d79   : > { %8377 = vmatprep.subr.bf16.mxu1 %v3963_v57 }
0x1d7a   : > { %8378 = vmatpush3.bf16.msra.mxu1 %v3963_v57 }
0x1d7b   : > { %v9121_v40 = vpop.eup %9120 }
0x1d7c   : > { %v3388_v35 = vpop.permute.xlu1 %3387  ;;  %v9123_v43 = vpop.eup %9122  ;;  %v3951_v12 = vmul.f32 %v9121_v40, %v10621_v11 }
0x1d7d   : > { %3410 = vst.msk [vmem:[#allocation2 + $0x8] sm:$0xff] %vm1402_vm3, %v3388_v35  ;;  %8380 = vmatmul.mubr.msk.bf16.vlgmr.msra.gmra.mrb[72].mxu1 %vm886_vm2, %v3953_v31  ;;  %v9125_v34 = vpop.eup %9124  ;;  %v3948_v20 = vmul.f32 %v9123_v43, %v10600_v37 }
0x1d7e   : > { %v3950_v52 = vmul.f32 %v9125_v34, %v10596_v46  ;;  %v8783_v46 = vld [vmem:[%s11778_s3 + $0x10] sm:$0xff]   ;;  %s8743_s3 = smul.u32 144, %s11799_s25 }
0x1d7f   : > { %v9127_v60 = vpop.eup %9126  ;;  %8387 = vmatprep.subr.bf16.mxu1 %v8783_v46 }
0x1d80   : > { %v3392_v13 = vpop.permute.xlu1 %3391  ;;  %v3949_v32 = vmul.f32 %v9127_v60, %v10627_v5  ;;  %v3955_v63 = vpack.c.bf16 %v3951_v12, %v3950_v52  ;;  %8388 = vmatpush3.bf16.msra.mxu1 %v8783_v46 }
0x1d81   : > { %3412 = vst.msk [vmem:[#allocation2 + $0x18] sm:$0xff] %vm1402_vm3, %v3392_v13  ;;  %8389 = vmatprep.subr.bf16.mxu1 %v8784_v23 }
0x1d82   : > { %v3954_v41 = vpack.c.bf16 %v3949_v32, %v3948_v20 }
0x1d84   : > { %8383 = vmatprep.mubr.msk.bf16.mxu1 %vm886_vm2, %v3954_v41  ;;  %v3722_v36 = vpop.permute.xlu1 %3721  ;;  %8390 = vmatpush3.bf16.msra.mxu1 %v8784_v23 }
0x1d85   : > { %3744 = vst.msk [vmem:[#allocation2 + $0x8] sm:$0xff] %vm1737_vm4, %v3722_v36  ;;  %8384 = vmatmul.mubr.msk.bf16.gmra.mrb[76].mxu1 %vm886_vm2, %v3955_v63 }
0x1d88   : > { %v3726_v44 = vpop.permute.xlu1 %3725 }
0x1d89   : > { %3746 = vst.msk [vmem:[#allocation2 + $0x18] sm:$0xff] %vm1737_vm4, %v3726_v44 }
0x1d8c   : > { %v3396_v11 = vpop.permute.xlu1 %3395 }
0x1d8d   : > { %3414 = vst.msk [vmem:[#allocation2 + $0x28] sm:$0xff] %vm1402_vm3, %v3396_v11 }
0x1d90   : > { %v3400_v37 = vpop.permute.xlu1 %3399 }
0x1d91   : > { %3416 = vst.msk [vmem:[#allocation2 + $0x38] sm:$0xff] %vm1402_vm3, %v3400_v37 }
0x1d94   : > { %v3730_v27 = vpop.permute.xlu1 %3729 }
0x1d95   : > { %3748 = vst.msk [vmem:[#allocation2 + $0x28] sm:$0xff] %vm1737_vm4, %v3730_v27 }
0x1e50   : > { %v8381_v5 = vpop.f32.mrb[72].mxu1 }
0x1e51   : > { %4057 = vrot.lane.b32.xlu0 %v8381_v5, %s11791_s19  ;;  %v4014_v48 = vpop.f32.mrb[73].mxu1 }
0x1e52   : > { %v8382_v17 = vpop.f32.mrb[74].mxu1 }
0x1e53   : > { %4059 = vrot.lane.b32.xlu1 %v8382_v17, %s11791_s19  ;;  %v4017_v61 = vpop.f32.mrb[75].mxu1 }
0x1e55   : > { %4053 = vrot.lane.b32.xlu0 %v4014_v48, %s11791_s19 }
0x1e57   : > { %4055 = vrot.lane.b32.xlu1 %v4017_v61, %s11791_s19 }
0x1e58   : > { %v8385_v59 = vpop.f32.mrb[76].mxu1 }
0x1e59   : > { %3731 = vrot.lane.b32.xlu0 %v10567_v18, %s11790_s26  ;;  %v4030_v53 = vpop.f32.mrb[77].mxu1 }
0x1e5a   : > { %v8386_v42 = vpop.f32.mrb[78].mxu1 }
0x1e5b   : > { %3733 = vrot.lane.b32.xlu1 %v10571_v15, %s11790_s26  ;;  %v4033_v14 = vpop.f32.mrb[79].mxu1 }
0x1e5d   : > { %4061 = vrot.lane.b32.xlu0 %v4030_v53, %s11791_s19 }
0x1e5f   : > { %4063 = vrot.lane.b32.xlu1 %v4033_v14, %s11791_s19 }
0x1e61   : > { %4065 = vrot.lane.b32.xlu0 %v8385_v59, %s11791_s19 }
0x1e63   : > { %4067 = vrot.lane.b32.xlu1 %v8386_v42, %s11791_s19 }
0x1ec3   : > { %v4058_v38 = vpop.permute.xlu0 %4057 }
0x1ec4   : > { %4079 = vst.msk [vmem:[#allocation2 + $0x10] sm:$0xff] %vm2072_vm5, %v4058_v38 }
0x1ec5   : > { %v4060_v16 = vpop.permute.xlu1 %4059 }
0x1ec6   : > { %4080 = vst.msk [vmem:[#allocation2 + $0x18] sm:$0xff] %vm2072_vm5, %v4060_v16 }
0x1ec7   : > { %v4054_v18 = vpop.permute.xlu0 %4053 }
0x1ec8   : > { %4077 = vst.msk [vmem:[#allocation2] sm:$0xff] %vm2072_vm5, %v4054_v18 }
0x1ec9   : > { %v4056_v19 = vpop.permute.xlu1 %4055 }
0x1eca   : > { %4078 = vst.msk [vmem:[#allocation2 + $0x8] sm:$0xff] %vm2072_vm5, %v4056_v19 }
0x1ecb   : > { %v3732_v15 = vpop.permute.xlu0 %3731  ;;  %v4087_v58 = vld [vmem:[#allocation2 + $0x10] sm:$0xff] }
0x1ecc   : > { %3749 = vst.msk [vmem:[#allocation2 + $0x30] sm:$0xff] %vm1737_vm4, %v3732_v15 }
0x1ecd   : > { %v3734_v56 = vpop.permute.xlu1 %3733  ;;  %v4088_v10 = vld [vmem:[#allocation2 + $0x18] sm:$0xff] }
0x1ece   : > { %3750 = vst.msk [vmem:[#allocation2 + $0x38] sm:$0xff] %vm1737_vm4, %v3734_v56  ;;  %v4094_v26 = vpack.c.bf16 %v4088_v10, %v4087_v58 }
0x1ecf   : > { %v4062_v24 = vpop.permute.xlu0 %4061  ;;  %v4085_v4 = vld [vmem:[#allocation2] sm:$0xff] }
0x1ed0   : > { %4081 = vst.msk [vmem:[#allocation2 + $0x20] sm:$0xff] %vm2072_vm5, %v4062_v24 }
0x1ed1   : > { %v4064_v29 = vpop.permute.xlu1 %4063  ;;  %v4086_v28 = vld [vmem:[#allocation2 + $0x8] sm:$0xff] }
0x1ed2   : > { %4082 = vst.msk [vmem:[#allocation2 + $0x28] sm:$0xff] %vm2072_vm5, %v4064_v29  ;;  %v4093_v47 = vpack.c.bf16 %v4086_v28, %v4085_v4 }
0x1ed3   : > { %v4066_v3 = vpop.permute.xlu0 %4065 }
0x1ed4   : > { %4083 = vst.msk [vmem:[#allocation2 + $0x30] sm:$0xff] %vm2072_vm5, %v4066_v3  ;;  %8391 = vmatprep.mubr.msk.bf16.mxu1 %vm567_vm0, %v4093_v47 }
0x1ed5   : > { %8392 = vmatmul.mubr.msk.bf16.vlgmr.msra.gmra.mrb[80].mxu1 %vm567_vm0, %v4094_v26  ;;  %v4068_v50 = vpop.permute.xlu1 %4067 }
0x1ed6   : > { %4084 = vst.msk [vmem:[#allocation2 + $0x38] sm:$0xff] %vm2072_vm5, %v4068_v50 }
0x1ed7   : > { %v4089_v33 = vld [vmem:[#allocation2 + $0x20] sm:$0xff] }
0x1ed9   : > { %v4090_v1 = vld [vmem:[#allocation2 + $0x28] sm:$0xff] }
0x1eda   : > { %v4095_v54 = vpack.c.bf16 %v4090_v1, %v4089_v33 }
0x1edb   : > { %v4091_v21 = vld [vmem:[#allocation2 + $0x30] sm:$0xff] }
0x1edc   : > { %8395 = vmatprep.mubr.msk.bf16.mxu1 %vm567_vm0, %v4095_v54 }
0x1edd   : > { %v4092_v49 = vld [vmem:[#allocation2 + $0x38] sm:$0xff] }
0x1ede   : > { %v4096_v57 = vpack.c.bf16 %v4092_v49, %v4091_v21 }
0x1ee0   : > { %8396 = vmatmul.mubr.msk.bf16.gmra.mrb[84].mxu1 %vm567_vm0, %v4096_v57 }
0x1fa8   : > { %v8393_v0 = vpop.f32.mrb[80].mxu1 }
0x1fa9   : > { %v4155_v31 = vpop.f32.mrb[81].mxu1  ;;  %v10709_v34 = vadd.f32 %v8393_v0, %v10156_v62 }
0x1faa   : > { %v10706_v40 = vadd.f32 %v4155_v31, %v10153_v45  ;;  %v8394_v35 = vpop.f32.mrb[82].mxu1 }
0x1fab   : > { %v4158_v43 = vpop.f32.mrb[83].mxu1  ;;  %v10719_v20 = vadd.f32 %v8394_v35, %v10164_v9  ;;  %v4218_v32 = vsel %vm567_vm0, %v10709_v34, 0.0 }
0x1fac   : > { %v10712_v60 = vadd.f32 %v4158_v43, %v10159_v7  ;;  %v4212_v12 = vsel %vm567_vm0, %v10706_v40, 0.0 }
0x1fad   : > { %4213 = vadd.xlane.f32.xlu0 %v4212_v12  ;;  %v4221_v63 = vsel %vm567_vm0, %v10719_v20, 0.0 }
0x1fae   : > { %v4215_v13 = vsel %vm567_vm0, %v10712_v60, 0.0 }
0x1faf   : > { %4216 = vadd.xlane.f32.xlu1 %v4215_v13 }
0x1fb1   : > { %4219 = vadd.xlane.f32.xlu0 %v4218_v32 }
0x1fb3   : > { %v8397_v52 = vpop.f32.mrb[84].mxu1 }
0x1fb4   : > { %v4171_v41 = vpop.f32.mrb[85].mxu1  ;;  %v10734_v46 = vadd.f32 %v8397_v52, %v10176_v6 }
0x1fb5   : > { %v10726_v36 = vadd.f32 %v4171_v41, %v10173_v55  ;;  %4222 = vadd.xlane.f32.xlu0 %v4221_v63  ;;  %v8398_v44 = vpop.f32.mrb[86].mxu1 }
0x1fb6   : > { %v4174_v11 = vpop.f32.mrb[87].mxu1  ;;  %v10737_v5 = vadd.f32 %v8398_v44, %v10184_v25  ;;  %v4230_v48 = vsel %vm567_vm0, %v10734_v46, 0.0 }
0x1fb7   : > { %v10729_v37 = vadd.f32 %v4174_v11, %v10179_v22  ;;  %v4224_v27 = vsel %vm567_vm0, %v10726_v36, 0.0 }
0x1fb8   : > { %v4233_v17 = vsel %vm567_vm0, %v10737_v5, 0.0 }
0x1fb9   : > { %4225 = vadd.xlane.f32.xlu0 %v4224_v27  ;;  %v4227_v23 = vsel %vm567_vm0, %v10729_v37, 0.0 }
0x1fba   : > { %4228 = vadd.xlane.f32.xlu1 %v4227_v23  ;;  %v8785_v23 = vld [vmem:[%s11779_s4 + $0x10] sm:$0xff]  }
0x1fbb   : > { %8399 = vmatprep.subr.bf16.mxu0 %v8785_v23 }
0x1fbc   : > { %8400 = vmatpush3.bf16.msra.mxu0 %v8785_v23 }
0x1fbd   : > { %4231 = vadd.xlane.f32.xlu0 %v4230_v48  ;;  %v8786_v48 = vld [vmem:[%s11779_s4 + $0x18] sm:$0xff]  }
0x1fbe   : > { %4234 = vadd.xlane.f32.xlu1 %v4233_v17  ;;  %8401 = vmatprep.subr.bf16.mxu0 %v8786_v48  ;;  %v9396_v17 = vmov 0.0  }
0x1fc0   : > { %8402 = vmatpush3.bf16.msra.mxu0 %v8786_v48 }
0x1fc1   : > { %8427 = vmatprep.subr.bf16.mxu0 %v9396_v17 }
0x203a   : > { %v4214_v61 = vpop.xlane.xlu0 %4213 }
0x203b   : > { %v4236_v59 = vmul.f32 0.03125, %v4214_v61  ;;  %v4585_v61 = vrot.slane %v10192_v30, 4 }
0x203c   : > { %v4217_v53 = vpop.xlane.xlu1 %4216 }
0x203d   : > { %v10746_v42 = vsub.f32 %v10706_v40, %v4236_v59  ;;  %v4237_v14 = vmul.f32 0.03125, %v4217_v53  ;;  %v4586_v59 = vadd.f32 %v4585_v61, %v10192_v30  ;;  %v4576_v53 = vld [vmem:[%s11733_s16] sm:$0xff] }
0x203e   : > { %v4220_v38 = vpop.xlane.xlu0 %4219 }
0x203f   : > { %v10749_v16 = vsub.f32 %v10712_v60, %v4237_v14  ;;  %v4238_v18 = vmul.f32 0.03125, %v4220_v38  ;;  %v4252_v19 = vmul.f32 %v10746_v42, %v10746_v42  ;;  %v4577_v14 = vld [vmem:[%s11733_s16 + $0x8] sm:$0xff]  ;;  %v4587_v38 = vrot.slane %v4586_v59, 2 }
0x2041   : > { %v10754_v15 = vsub.f32 %v10709_v34, %v4238_v18  ;;  %v4260_v56 = vsel %vm567_vm0, %v4252_v19, 0.0  ;;  %v4253_v24 = vmul.f32 %v10749_v16, %v10749_v16  ;;  %v9397_v18 = vmov 0  }
0x2042   : > { %v4223_v10 = vpop.xlane.xlu0 %4222  ;;  %4261 = vadd.xlane.f32.xlu0 %v4260_v56  ;;  %8770 = vset.pattern.permute.xlu1 %v9397_v18  ;;  %v4588_v19 = vadd.f32 %v4587_v38, %v4586_v59 }
0x2043   : > { %v4239_v29 = vmul.f32 0.03125, %v4223_v10  ;;  %v4263_v4 = vsel %vm567_vm0, %v4253_v24, 0.0  ;;  %v4254_v28 = vmul.f32 %v10754_v15, %v10754_v15  ;;  %8769 = vset.pattern.permute.xlu0 %v9397_v18 }
0x2044   : > { %4264 = vadd.xlane.f32.xlu1 %v4263_v4  ;;  %v4589_v56 = vrot.slane %v4588_v19, 1 }
0x2045   : > { %v10763_v47 = vsub.f32 %v10719_v20, %v4239_v29  ;;  %v4266_v58 = vsel %vm567_vm0, %v4254_v28, 0.0 }
0x2046   : > { %4267 = vadd.xlane.f32.xlu0 %v4266_v58  ;;  %v4226_v3 = vpop.xlane.xlu0 %4225  ;;  %v4590_v24 = vadd.f32 %v4589_v56, %v4588_v19 }
0x2047   : > { %v4240_v26 = vmul.f32 0.03125, %v4226_v3  ;;  %v4229_v50 = vpop.xlane.xlu1 %4228  ;;  %v4255_v33 = vmul.f32 %v10763_v47, %v10763_v47 }
0x2048   : > { %v4241_v1 = vmul.f32 0.03125, %v4229_v50  ;;  %v4592_v10 = vmul.f32 0.015625, %v4590_v24 }
0x2049   : > { %v10769_v54 = vsub.f32 %v10726_v36, %v4240_v26  ;;  %v4269_v21 = vsel %vm567_vm0, %v4255_v33, 0.0 }
0x204a   : > { %v10773_v49 = vsub.f32 %v10729_v37, %v4241_v1  ;;  %v4232_v57 = vpop.xlane.xlu0 %4231  ;;  %4270 = vadd.xlane.f32.xlu1 %v4269_v21  ;;  %v10809_v30 = vsub.f32 %v10153_v45, %v4592_v10  ;;  %v10812_v29 = vsub.f32 %v10159_v7, %v4592_v10  ;;  %v10819_v58 = vsub.f32 %v10156_v62, %v4592_v10 }
0x204b   : > { %v4242_v0 = vmul.f32 0.03125, %v4232_v57  ;;  %v4235_v31 = vpop.xlane.xlu1 %4234  ;;  %v4256_v35 = vmul.f32 %v10769_v54, %v10769_v54  ;;  %v10824_v50 = vsub.f32 %v10164_v9, %v4592_v10  ;;  %v10829_v21 = vsub.f32 %v10173_v55, %v4592_v10 }
0x204c   : > { %v4243_v43 = vmul.f32 0.03125, %v4235_v31  ;;  %v4257_v12 = vmul.f32 %v10773_v49, %v10773_v49  ;;  %v4601_v4 = vmul.f32 %v10809_v30, %v10809_v30  ;;  %v4602_v28 = vmul.f32 %v10812_v29, %v10812_v29 }
0x204d   : > { %v10780_v13 = vsub.f32 %v10734_v46, %v4242_v0  ;;  %v4272_v32 = vsel %vm567_vm0, %v4256_v35, 0.0  ;;  %v4603_v33 = vmul.f32 %v10819_v58, %v10819_v58  ;;  %v4604_v57 = vmul.f32 %v10824_v50, %v10824_v50 }
0x204e   : > { %v10784_v52 = vsub.f32 %v10737_v5, %v4243_v43  ;;  %4273 = vadd.xlane.f32.xlu0 %v4272_v32  ;;  %v4275_v41 = vsel %vm567_vm0, %v4257_v12, 0.0  ;;  %v4609_v3 = vsel %vm567_vm0, %v4601_v4, 0.0  ;;  %v4610_v26 = vsel %vm567_vm0, %v4602_v28, 0.0 }
0x204f   : > { %4276 = vadd.xlane.f32.xlu1 %v4275_v41  ;;  %v4258_v63 = vmul.f32 %v10780_v13, %v10780_v13  ;;  %v4611_v1 = vadd.f32 %v4610_v26, %v4609_v3  ;;  %v4612_v0 = vsel %vm567_vm0, %v4603_v33, 0.0  ;;  %v10835_v35 = vsub.f32 %v10179_v22, %v4592_v10 }
0x2050   : > { %v4259_v44 = vmul.f32 %v10784_v52, %v10784_v52  ;;  %v4605_v43 = vmul.f32 %v10829_v21, %v10829_v21  ;;  %v4614_v12 = vsel %vm567_vm0, %v4604_v57, 0.0  ;;  %v10848_v23 = vsub.f32 %v10184_v25, %v4592_v10 }
0x2051   : > { %v4278_v11 = vsel %vm567_vm0, %v4258_v63, 0.0  ;;  %v4613_v31 = vadd.f32 %v4612_v0, %v4611_v1  ;;  %v4606_v41 = vmul.f32 %v10835_v35, %v10835_v35  ;;  %v10843_v63 = vsub.f32 %v10176_v6, %v4592_v10 }
0x2052   : > { %4279 = vadd.xlane.f32.xlu0 %v4278_v11  ;;  %v4281_v27 = vsel %vm567_vm0, %v4259_v44, 0.0  ;;  %v4616_v44 = vsel %vm567_vm0, %v4605_v43, 0.0  ;;  %v4608_v59 = vmul.f32 %v10848_v23, %v10848_v23 }
0x2053   : > { %4282 = vadd.xlane.f32.xlu1 %v4281_v27  ;;  %v4615_v32 = vadd.f32 %v4614_v12, %v4613_v31  ;;  %v4618_v27 = vsel %vm567_vm0, %v4606_v41, 0.0  ;;  %v4607_v48 = vmul.f32 %v10843_v63, %v10843_v63 }
0x2054   : > { %v4622_v38 = vsel %vm567_vm0, %v4608_v59, 0.0 }
0x2055   : > { %v4617_v11 = vadd.f32 %v4616_v44, %v4615_v32 }
0x2057   : > { %v4619_v61 = vadd.f32 %v4618_v27, %v4617_v11 }
0x2064   : > { %4652 = vperm.xlu1 %8770, %v4577_v14  }
0x2068   : > { %4647 = vperm.xlu0 %8769, %v4576_v53   ;;  %v4620_v53 = vsel %vm567_vm0, %v4607_v48, 0.0 }
0x2069   : > { %v4621_v14 = vadd.f32 %v4620_v53, %v4619_v61 }
0x206b   : > { %v4623_v18 = vadd.f32 %v4622_v38, %v4621_v14 }
0x206d   : > { %v4624_v19 = vrot.slane %v4623_v18, 4 }
0x206f   : > { %v4625_v56 = vadd.f32 %v4624_v19, %v4623_v18 }
0x2071   : > { %v4626_v24 = vrot.slane %v4625_v56, 2 }
0x2073   : > { %v4627_v4 = vadd.f32 %v4626_v24, %v4625_v56 }
0x2075   : > { %v4628_v28 = vrot.slane %v4627_v4, 1 }
0x2077   : > { %v4629_v10 = vadd.f32 %v4628_v28, %v4627_v4 }
0x2079   : > { %v4630_v1 = vmul.f32 0.015625, %v4629_v10 }
0x207b   : > { %v4631_v32 = vadd.f32 1e-05, %v4630_v1 }
0x20cf   : > { %v4262_v3 = vpop.xlane.xlu0 %4261 }
0x20d0   : > { %v4284_v26 = vmul.f32 0.03125, %v4262_v3 }
0x20d1   : > { %v4265_v33 = vpop.xlane.xlu1 %4264 }
0x20d2   : > { %v4292_v57 = vadd.f32 1e-05, %v4284_v26  ;;  %v4285_v0 = vmul.f32 0.03125, %v4265_v33 }
0x20d3   : > { %v4268_v31 = vpop.xlane.xlu0 %4267 }
0x20d4   : > { %9128 = vrsqrt.f32 %v4292_v57  ;;  %v4293_v43 = vadd.f32 1e-05, %v4285_v0  ;;  %v4286_v12 = vmul.f32 0.03125, %v4268_v31 }
0x20d6   : > { %9130 = vrsqrt.f32 %v4293_v43  ;;  %v4294_v41 = vadd.f32 1e-05, %v4286_v12 }
0x20d7   : > { %v4271_v44 = vpop.xlane.xlu1 %4270  ;;  %9132 = vrsqrt.f32 %v4631_v32 }
0x20d8   : > { %v4287_v11 = vmul.f32 0.03125, %v4271_v44  ;;  %9134 = vrsqrt.f32 %v4294_v41 }
0x20da   : > { %v4295_v27 = vadd.f32 1e-05, %v4287_v11 }
0x20db   : > { %v4274_v48 = vpop.xlane.xlu0 %4273 }
0x20dc   : > { %9136 = vrsqrt.f32 %v4295_v27  ;;  %v4288_v61 = vmul.f32 0.03125, %v4274_v48  ;;  %v4277_v59 = vpop.xlane.xlu1 %4276 }
0x20dd   : > { %v4289_v53 = vmul.f32 0.03125, %v4277_v59 }
0x20de   : > { %v9129_v14 = vpop.eup %9128  ;;  %v4296_v38 = vadd.f32 1e-05, %v4288_v61 }
0x20df   : > { %v4297_v18 = vadd.f32 1e-05, %v4289_v53  ;;  %v4280_v19 = vpop.xlane.xlu0 %4279  ;;  %v4308_v10 = vmul.f32 %v9129_v14, %v10746_v42 }
0x20e0   : > { %v9131_v56 = vpop.eup %9130  ;;  %9138 = vrsqrt.f32 %v4296_v38  ;;  %v4290_v24 = vmul.f32 0.03125, %v4280_v19  ;;  %v4283_v4 = vpop.xlane.xlu1 %4282  ;;  %v7644_v19 = vld [vmem:[%s11781_s5 + $0x1] ss:$0 sm:$0xff] }
0x20e1   : > { %9140 = vrsqrt.f32 %v4297_v18  ;;  %v4291_v28 = vmul.f32 0.03125, %v4283_v4  ;;  %v4309_v3 = vmul.f32 %v9131_v56, %v10749_v16  ;;  %v9133_v33 = vpop.eup %9132 }
0x20e2   : > { %v4298_v26 = vadd.f32 1e-05, %v4290_v24  ;;  %v9135_v0 = vpop.eup %9134  ;;  %v4633_v43 = vmul.f32 %v9133_v33, %v10809_v30  ;;  %v4634_v12 = vmul.f32 %v9133_v33, %v10812_v29  ;;  %v4635_v11 = vmul.f32 %v9133_v33, %v10819_v58 }
0x20e3   : > { %v4299_v1 = vadd.f32 1e-05, %v4291_v28  ;;  %v4316_v57 = vpack.c.bf16 %v4309_v3, %v4308_v10  ;;  %v4310_v32 = vmul.f32 %v9135_v0, %v10754_v15  ;;  %v4636_v27 = vmul.f32 %v9133_v33, %v10824_v50 }
0x20e4   : > { %9142 = vrsqrt.f32 %v4298_v26  ;;  %v4641_v44 = vpack.c.bf16 %v4634_v12, %v4633_v43  ;;  %v4637_v59 = vmul.f32 %v9133_v33, %v10829_v21  ;;  %v4638_v53 = vmul.f32 %v9133_v33, %v10835_v35  ;;  %v8789_v35 = vld [vmem:[%s11780_s6 + $0x28] sm:$0xff]  }
0x20e5   : > { %9144 = vrsqrt.f32 %v4299_v1  ;;  %8403 = vmatprep.mubr.msk.bf16.mxu0 %vm567_vm0, %v4316_v57  ;;  %v4642_v29 = vpack.c.bf16 %v4636_v27, %v4635_v11  ;;  %v4639_v38 = vmul.f32 %v9133_v33, %v10843_v63  ;;  %v4640_v18 = vmul.f32 %v9133_v33, %v10848_v23  ;;  %v8790_v63 = vld [vmem:[%s11780_s6 + $0x30] sm:$0xff]   ;;  %v8791_v23 = vld [vmem:[%s11780_s6 + $0x38] sm:$0xff]  }
0x20e6   : > { %v9137_v31 = vpop.eup %9136 }
0x20e7   : > { %v4311_v42 = vmul.f32 %v9137_v31, %v10763_v47  ;;  %v4644_v21 = vpack.c.bf16 %v4640_v18, %v4639_v38  ;;  %v4653_v18 = vpop.permute.xlu1 %4652 }
0x20e9   : > { %v4317_v41 = vpack.c.bf16 %v4311_v42, %v4310_v32 }
0x20ea   : > { %v9139_v16 = vpop.eup %9138 }
0x20eb   : > { %v9141_v48 = vpop.eup %9140  ;;  %8404 = vmatmul.mubr.msk.bf16.vlgmr.msra.gmra.mrb[88].mxu0 %vm567_vm0, %v4317_v41  ;;  %v4312_v61 = vmul.f32 %v9139_v16, %v10769_v54 }
0x20ec   : > { %8428 = vmatpush3.bf16.msra.mxu0 %v4641_v44  ;;  %v4313_v30 = vmul.f32 %v9141_v48, %v10773_v49  ;;  %v4643_v49 = vpack.c.bf16 %v4638_v53, %v4637_v59  ;;  %v4648_v59 = vpop.permute.xlu0 %4647 }
0x20ed   : > { %8429 = vmatprep.subr.bf16.mxu0 %v9396_v17 }
0x20ee   : > { %v9143_v15 = vpop.eup %9142  ;;  %v4318_v47 = vpack.c.bf16 %v4313_v30, %v4312_v61 }
0x20ef   : > { %v9145_v58 = vpop.eup %9144  ;;  %v4314_v50 = vmul.f32 %v9143_v15, %v10780_v13  ;;  %v8787_v13 = vld [vmem:[%s11792_s15] sm:$0xff]   ;;  %s10937_s15 = scalar_lea.vmem %s11734_s17, %s8743_s3  ;;  %s11794_s3 = smov 96  }
0x20f0   : > { %8430 = vmatpush3.bf16.msra.mxu0 %v4642_v29  ;;  %8407 = vmatprep.mubr.msk.bf16.mxu0 %vm567_vm0, %v4318_v47  ;;  %v4315_v54 = vmul.f32 %v9145_v58, %v10784_v52  ;;  %v8788_v52 = vld [vmem:[%s11780_s6 + $0x20] sm:$0xff]  }
0x20f1   : > { %8431 = vmatprep.subr.bf16.mxu0 %v9396_v17  ;;  %8411 = vmatprep.subr.bf16.mxu1 %v8788_v52 }
0x20f2   : > { %v4319_v14 = vpack.c.bf16 %v4315_v54, %v4314_v50  ;;  %8412 = vmatpush3.bf16.msra.mxu1 %v8788_v52 }
0x20f3   : > { %8413 = vmatprep.subr.bf16.mxu1 %v8789_v35 }
0x20f4   : > { %8432 = vmatpush3.bf16.msra.mxu0 %v4643_v49 }
0x20f5   : > { %8408 = vmatmul.mubr.msk.bf16.gmra.mrb[92].mxu0 %vm567_vm0, %v4319_v14  ;;  %8433 = vmatprep.subr.bf16.mxu0 %v9396_v17 }
0x20f6   : > { %8435 = vmatprep.mubr.msk.bf16.mxu0 %vm9398_vm6, %v9396_v17  ;;  %8414 = vmatpush3.bf16.msra.mxu1 %v8789_v35 }
0x20f7   : > { %8415 = vmatprep.subr.bf16.mxu1 %v8790_v63 }
0x20f8   : > { %8434 = vmatpush3.bf16.msra.mxu0 %v4644_v21 }
0x20f9   : > { %8439 = vmatprep.subr.bf16.mxu0 %v9396_v17 }
0x20fa   : > { %8416 = vmatpush3.bf16.msra.mxu1 %v8790_v63 }
0x20fb   : > { %8417 = vmatprep.subr.bf16.mxu1 %v8791_v23 }
0x20fd   : > { %8436 = vmatmul.mubr.msk.bf16.vlgmr.msra.gmra.mrb[96].mxu0 %vm886_vm2, %v8787_v13 }
0x20fe   : > { %8443 = vmatprep.mubr.msk.bf16.mxu0 %vm9398_vm6, %v9396_v17  ;;  %8418 = vmatpush3.bf16.msra.mxu1 %v8791_v23 }
0x20ff   : > { %8447 = vmatprep.subr.bf16.mxu1 %v9396_v17 }
0x21be   : > { %v8405_v56 = vpop.f32.mrb[88].mxu0 }
0x21bf   : > { %v4393_v24 = vadd.f32 %v8405_v56, %v7644_v19  ;;  %v4384_v4 = vpop.f32.mrb[89].mxu0 }
0x21c0   : > { %v4385_v28 = vadd.f32 %v7644_v19, %v4384_v4  ;;  %v8406_v10 = vpop.f32.mrb[90].mxu0 }
0x21c1   : > { %v4425_v3 = vmul.f32 0.70710677, %v4393_v24  ;;  %v4396_v26 = vadd.f32 %v8406_v10, %v7644_v19  ;;  %v4387_v33 = vpop.f32.mrb[91].mxu0  ;;  %v4417_v54 = vmul.f32 0.5, %v4393_v24 }
0x21c2   : > { %v4423_v1 = vmul.f32 0.70710677, %v4385_v28  ;;  %v4388_v57 = vadd.f32 %v7644_v19, %v4387_v33  ;;  %v4415_v21 = vmul.f32 0.5, %v4385_v28 }
0x21c3   : > { %9146 = verf.f32 %v4425_v3  ;;  %v4426_v0 = vmul.f32 0.70710677, %v4396_v26  ;;  %v4418_v49 = vmul.f32 0.5, %v4396_v26 }
0x21c4   : > { %9148 = verf.f32 %v4423_v1  ;;  %v4424_v31 = vmul.f32 0.70710677, %v4388_v57  ;;  %v4416_v13 = vmul.f32 0.5, %v4388_v57 }
0x21c5   : > { %9150 = verf.f32 %v4426_v0 }
0x21c6   : > { %9152 = verf.f32 %v4424_v31 }
0x21c8   : > { %v8409_v43 = vpop.f32.mrb[92].mxu0 }
0x21c9   : > { %v4409_v12 = vadd.f32 %v8409_v43, %v7644_v19  ;;  %v4400_v32 = vpop.f32.mrb[93].mxu0 }
0x21ca   : > { %v4401_v42 = vadd.f32 %v7644_v19, %v4400_v32  ;;  %v8410_v41 = vpop.f32.mrb[94].mxu0 }
0x21cb   : > { %v4429_v16 = vmul.f32 0.70710677, %v4409_v12  ;;  %v4412_v44 = vadd.f32 %v8410_v41, %v7644_v19  ;;  %v4403_v11 = vpop.f32.mrb[95].mxu0 }
0x21cc   : > { %v4427_v27 = vmul.f32 0.70710677, %v4401_v42  ;;  %v4404_v48 = vadd.f32 %v7644_v19, %v4403_v11 }
0x21cd   : > { %v9147_v61 = vpop.eup %9146  ;;  %9154 = verf.f32 %v4429_v16  ;;  %v4430_v30 = vmul.f32 0.70710677, %v4412_v44  ;;  %v4421_v16 = vmul.f32 0.5, %v4409_v12  ;;  %v4422_v11 = vmul.f32 0.5, %v4412_v44 }
0x21ce   : > { %v9149_v15 = vpop.eup %9148  ;;  %v4441_v29 = vadd.f32 1.0, %v9147_v61  ;;  %9156 = verf.f32 %v4427_v27  ;;  %v4428_v47 = vmul.f32 0.70710677, %v4404_v48  ;;  %v4419_v61 = vmul.f32 0.5, %v4401_v42 }
0x21cf   : > { %v9151_v53 = vpop.eup %9150  ;;  %v4439_v58 = vadd.f32 1.0, %v9149_v15  ;;  %9158 = verf.f32 %v4430_v30  ;;  %v4420_v30 = vmul.f32 0.5, %v4404_v48 }
0x21d0   : > { %v9153_v50 = vpop.eup %9152  ;;  %v4442_v14 = vadd.f32 1.0, %v9151_v53  ;;  %9160 = verf.f32 %v4428_v47  ;;  %v4697_v38 = vpop.f32.mrb[96].mxu0  ;;  %v4449_v23 = vmul.f32 %v4441_v29, %v4417_v54 }
0x21d1   : > { %v4440_v52 = vadd.f32 1.0, %v9153_v50  ;;  %v10904_v35 = vadd.f32 %v4697_v38, %v4648_v59  ;;  %v8437_v63 = vpop.f32.mrb[97].mxu0  ;;  %v4447_v4 = vmul.f32 %v4439_v58, %v4415_v21 }
0x21d2   : > { %v4450_v19 = vmul.f32 %v4442_v14, %v4418_v49  ;;  %v4700_v56 = vpop.f32.mrb[98].mxu0  ;;  %v7651_v63 = vld [vmem:[%s11724_s7 + $0x1] ss:$0 sm:$0xff] }
0x21d3   : > { %v4448_v10 = vmul.f32 %v4440_v52, %v4416_v13  ;;  %v10906_v3 = vadd.f32 %v4700_v56, %v4653_v18  ;;  %v8438_v33 = vpop.f32.mrb[99].mxu0  ;;  %v4713_v24 = vsel %vm567_vm0, %v10904_v35, 0.0  ;;  %v8792_v13 = vld [vmem:[%s11725_s8] sm:$0xff]   ;;  %v8793_v52 = vld [vmem:[%s11725_s8 + $0x8] sm:$0xff]  }
0x21d4   : > { %v4456_v26 = vpack.c.bf16 %v4450_v19, %v4449_v23  ;;  %4714 = vadd.xlane.f32.xlu1 %v4713_v24  ;;  %8440 = vmatpush3.bf16.msra.mxu0 %v8792_v13 }
0x21d5   : > { %v4455_v1 = vpack.c.bf16 %v4448_v10, %v4447_v4  ;;  %v4716_v28 = vsel %vm567_vm0, %v10906_v3, 0.0  ;;  %8441 = vmatprep.subr.bf16.mxu0 %v9396_v17 }
0x21d6   : > { %4717 = vadd.xlane.f32.xlu0 %v4716_v28 }
0x21d7   : > { %v9155_v57 = vpop.eup %9154  ;;  %8419 = vmatprep.mubr.msk.bf16.mxu1 %vm886_vm2, %v4455_v1 }
0x21d8   : > { %v9157_v0 = vpop.eup %9156  ;;  %v4445_v31 = vadd.f32 1.0, %v9155_v57  ;;  %8420 = vmatmul.mubr.msk.bf16.vlgmr.msra.gmra.mrb[88].mxu1 %vm886_vm2, %v4456_v26  ;;  %8442 = vmatpush3.bf16.msra.mxu0 %v8793_v52 }
0x21d9   : > { %v9159_v43 = vpop.eup %9158  ;;  %v4443_v32 = vadd.f32 1.0, %v9157_v0  ;;  %8453 = vmatprep.subr.bf16.mxu0 %v9396_v17 }
0x21da   : > { %v9161_v41 = vpop.eup %9160  ;;  %v4446_v27 = vadd.f32 1.0, %v9159_v43  ;;  %v4453_v29 = vmul.f32 %v4445_v31, %v4421_v16 }
0x21db   : > { %v4444_v15 = vadd.f32 1.0, %v9161_v41  ;;  %v4451_v59 = vmul.f32 %v4443_v32, %v4419_v61 }
0x21dc   : > { %v4454_v47 = vmul.f32 %v4446_v27, %v4422_v11 }
0x21dd   : > { %v4452_v53 = vmul.f32 %v4444_v15, %v4420_v30 }
0x21de   : > { %v4458_v58 = vpack.c.bf16 %v4454_v47, %v4453_v29 }
0x21df   : > { %v4457_v50 = vpack.c.bf16 %v4452_v53, %v4451_v59 }
0x21e1   : > { %8423 = vmatprep.mubr.msk.bf16.mxu1 %vm886_vm2, %v4457_v50 }
0x21e2   : > { %8424 = vmatmul.mubr.msk.bf16.gmra.mrb[92].mxu1 %vm886_vm2, %v4458_v58 }
0x21e3   : > { %8449 = vmatprep.mubr.msk.bf16.mxu1 %vm9398_vm6, %v9396_v17 }
0x2261   : > { %v4715_v54 = vpop.xlane.xlu1 %4714 }
0x2262   : > { %v4719_v12 = vmul.f32 0.03125, %v4715_v54 }
0x2263   : > { %v4718_v44 = vpop.xlane.xlu0 %4717 }
0x2264   : > { %v4721_v42 = vsub.f32 %v10904_v35, %v4719_v12  ;;  %v4720_v48 = vmul.f32 0.03125, %v4718_v44 }
0x2266   : > { %v4722_v49 = vsub.f32 %v10906_v3, %v4720_v48  ;;  %v4723_v14 = vmul.f32 %v4721_v42, %v4721_v42 }
0x2268   : > { %v4725_v38 = vsel %vm567_vm0, %v4723_v14, 0.0  ;;  %v4724_v18 = vmul.f32 %v4722_v49, %v4722_v49 }
0x2269   : > { %4726 = vadd.xlane.f32.xlu1 %v4725_v38 }
0x226a   : > { %v4728_v21 = vsel %vm567_vm0, %v4724_v18, 0.0 }
0x226d   : > { %4729 = vadd.xlane.f32.xlu1 %v4728_v21 }
0x22ab   : > { %v8421_v23 = vpop.f32.mrb[88].mxu1 }
0x22ac   : > { %v4544_v19 = vadd.f32 %v8421_v23, %v7651_v63  ;;  %v4535_v56 = vpop.f32.mrb[89].mxu1 }
0x22ad   : > { %v4536_v4 = vadd.f32 %v7651_v63, %v4535_v56  ;;  %v8422_v10 = vpop.f32.mrb[90].mxu1 }
0x22ae   : > { %v4568_v33 = vadd.f32 %v4544_v19, %v10709_v34  ;;  %v4547_v24 = vadd.f32 %v8422_v10, %v7651_v63  ;;  %v4538_v26 = vpop.f32.mrb[91].mxu1 }
0x22af   : > { %v4566_v1 = vadd.f32 %v4536_v4, %v10706_v40  ;;  %v4539_v28 = vadd.f32 %v7651_v63, %v4538_v26 }
0x22b0   : > { %7436 = vst.msk [vmem:[%s10937_s15 + $0x10] sm:$0xff] %vm567_vm0, %v4568_v33  ;;  %v4569_v57 = vadd.f32 %v4547_v24, %v10719_v20 }
0x22b1   : > { %7434 = vst.msk [vmem:[%s10937_s15] sm:$0xff] %vm567_vm0, %v4566_v1  ;;  %v4567_v0 = vadd.f32 %v4539_v28, %v10712_v60 }
0x22b2   : > { %7437 = vst.msk [vmem:[%s10937_s15 + $0x18] sm:$0xff] %vm567_vm0, %v4569_v57 }
0x22b3   : > { %7435 = vst.msk [vmem:[%s10937_s15 + $0x8] sm:$0xff] %vm567_vm0, %v4567_v0 }
0x22b5   : > { %v8425_v34 = vpop.f32.mrb[92].mxu1 }
0x22b6   : > { %v4560_v31 = vadd.f32 %v8425_v34, %v7651_v63  ;;  %v4551_v40 = vpop.f32.mrb[93].mxu1 }
0x22b7   : > { %v4552_v43 = vadd.f32 %v7651_v63, %v4551_v40  ;;  %v8426_v32 = vpop.f32.mrb[94].mxu1 }
0x22b8   : > { %v4572_v41 = vadd.f32 %v4560_v31, %v10734_v46  ;;  %v4563_v16 = vadd.f32 %v8426_v32, %v7651_v63  ;;  %v4554_v20 = vpop.f32.mrb[95].mxu1 }
0x22b9   : > { %v4570_v11 = vadd.f32 %v4552_v43, %v10726_v36  ;;  %v4555_v27 = vadd.f32 %v7651_v63, %v4554_v20 }
0x22ba   : > { %7440 = vst.msk [vmem:[%s10937_s15 + $0x30] sm:$0xff] %vm567_vm0, %v4572_v41  ;;  %v4573_v60 = vadd.f32 %v4563_v16, %v10737_v5 }
0x22bb   : > { %7438 = vst.msk [vmem:[%s10937_s15 + $0x20] sm:$0xff] %vm567_vm0, %v4570_v11  ;;  %v4571_v61 = vadd.f32 %v4555_v27, %v10729_v37  ;;  %v7662_v37 = vld [vmem:[%s11726_s9] ss:$0 sm:$0xff] }
0x22bc   : > { %7441 = vst.msk [vmem:[%s10937_s15 + $0x38] sm:$0xff] %vm567_vm0, %v4573_v60 }
0x22bd   : > { %7439 = vst.msk [vmem:[%s10937_s15 + $0x28] sm:$0xff] %vm567_vm0, %v4571_v61 }
0x22f6   : > { %v4727_v30 = vpop.xlane.xlu1 %4726 }
0x22f7   : > { %v4731_v15 = vmul.f32 0.03125, %v4727_v30 }
0x22f9   : > { %v4733_v46 = vadd.f32 1e-05, %v4731_v15 }
0x22fa   : > { %v4730_v29 = vpop.xlane.xlu1 %4729 }
0x22fb   : > { %v4732_v47 = vmul.f32 0.03125, %v4730_v29  ;;  %9162 = vrsqrt.f32 %v4733_v46 }
0x22fd   : > { %v4734_v36 = vadd.f32 1e-05, %v4732_v47 }
0x22ff   : > { %9164 = vrsqrt.f32 %v4734_v36 }
0x2305   : > { %v9163_v59 = vpop.eup %9162 }
0x2306   : > { %v4737_v58 = vmul.f32 %v9163_v59, %v4721_v42 }
0x2309   : > { %v9165_v53 = vpop.eup %9164 }
0x230a   : > { %v4738_v5 = vmul.f32 %v9165_v53, %v4722_v49 }
0x230c   : > { %v4739_v50 = vpack.c.bf16 %v4738_v5, %v4737_v58 }
0x230e   : > { %8444 = vmatmul.mubr.msk.bf16.vlgmr.msra.gmra.mrb[100].mxu0 %vm567_vm0, %v4739_v50 }
0x230f   : > { %8455 = vmatprep.mubr.msk.bf16.mxu0 %vm9398_vm6, %v9396_v17 }
0x23e1   : > { %v4795_v54 = vpop.f32.mrb[100].mxu0 }
0x23e2   : > { %v8445_v12 = vpop.f32.mrb[101].mxu0  ;;  %v4796_v48 = vadd.f32 %v7662_v37, %v4795_v54 }
0x23e3   : > { %v4798_v44 = vpop.f32.mrb[102].mxu0 }
0x23e4   : > { %v4799_v14 = vadd.f32 %v7662_v37, %v4798_v44  ;;  %v8446_v38 = vpop.f32.mrb[103].mxu0 }
0x23e6   : > { %v10969_v18 = vpack.c.bf16 %v4799_v14, %v4796_v48 }
0x23e8   : > { %4930 = vrot.lane.b32.xlu0 %v10969_v18, %s11793_s23  ;;  %4804 = vrot.lane.b32.xlu1 %v10969_v18, %s11794_s3 }
0x23ec   : > { %4928 = vrot.lane.b32.xlu1 %v10969_v18, %s11795_s24 }
0x23f0   : > { %5063 = vrot.lane.b32.xlu1 %v10969_v18, %s11783_s20 }
0x23f4   : > { %5061 = vrot.lane.b32.xlu1 %v10969_v18, %s11784_s21 }
0x23f8   : > { %5196 = vrot.lane.b32.xlu1 %v10969_v18, %s11786_s18 }
0x23fc   : > { %5194 = vrot.lane.b32.xlu1 %v10969_v18, %s11787_s1 }
0x245a   : > { %v4805_v42 = vpop.permute.xlu1 %4804  ;;  %v4931_v13 = vpop.permute.xlu0 %4930 }
0x245b   : > { %v4810_v49 = vsel %vm788_vm1, %v4805_v42, 0  ;;  %v4936_v52 = vsel %vm788_vm1, %v4931_v13, 0 }
0x245c   : > { %8448 = vmatpush3.bf16.xpose.msra.mxu1 %v4810_v49 }
0x245d   : > { %8459 = vmatprep.subr.bf16.mxu1 %v9396_v17 }
0x245e   : > { %v4929_v21 = vpop.permute.xlu1 %4928 }
0x2462   : > { %v5064_v63 = vpop.permute.xlu1 %5063 }
0x2463   : > { %8450 = vmatmul.mubr.msk.bf16.vlgmr.msra.gmra.mrb[96].mxu1 %vm788_vm1, %v10969_v18  ;;  %v5069_v19 = vsel %vm788_vm1, %v5064_v63, 0 }
0x2464   : > { %8460 = vmatpush3.bf16.xpose.msra.mxu1 %v4936_v52  ;;  %8461 = vmatprep.mubr.msk.bf16.mxu1 %vm9398_vm6, %v9396_v17 }
0x2465   : > { %8471 = vmatprep.subr.bf16.mxu1 %v9396_v17 }
0x2466   : > { %v5062_v23 = vpop.permute.xlu1 %5061 }
0x246a   : > { %v5197_v56 = vpop.permute.xlu1 %5196 }
0x246b   : > { %8462 = vmatmul.mubr.msk.bf16.vlgmr.msra.gmra.mrb[100].mxu1 %vm788_vm1, %v4929_v21  ;;  %v5202_v4 = vsel %vm788_vm1, %v5197_v56, 0 }
0x246c   : > { %8472 = vmatpush3.bf16.xpose.msra.mxu1 %v5069_v19  ;;  %8473 = vmatprep.mubr.msk.bf16.mxu1 %vm9398_vm6, %v9396_v17 }
0x246d   : > { %8483 = vmatprep.subr.bf16.mxu1 %v9396_v17 }
0x246e   : > { %v5195_v10 = vpop.permute.xlu1 %5194 }
0x2473   : > { %8474 = vmatmul.mubr.msk.bf16.vlgmr.msra.gmra.mrb[104].mxu1 %vm788_vm1, %v5062_v23 }
0x2474   : > { %8484 = vmatpush3.bf16.xpose.msra.mxu1 %v5202_v4  ;;  %8485 = vmatprep.mubr.msk.bf16.mxu1 %vm9398_vm6, %v9396_v17 }
0x2475   : > { %8495 = vmatprep.subr.bf16.mxu1 %v9396_v17 }
0x247b   : > { %8486 = vmatmul.mubr.msk.bf16.vlgmr.msra.gmra.mrb[108].mxu1 %vm788_vm1, %v5195_v10 }
0x247c   : > { %8499 = vmatprep.mubr.msk.bf16.mxu1 %vm9398_vm6, %v9396_v17 }
0x2536   : > { %v4846_v33 = vpop.f32.mrb[96].mxu1 }
0x2537   : > { %v4853_v24 = vmul.f32 0.35355338, %v4846_v33  ;;  %v8451_v26 = vpop.f32.mrb[97].mxu1 }
0x2538   : > { %v4849_v1 = vpop.f32.mrb[98].mxu1 }
0x2539   : > { %v4854_v28 = vmul.f32 0.35355338, %v4849_v1  ;;  %v8452_v57 = vpop.f32.mrb[99].mxu1  ;;  %v4856_v0 = vsel %vm4855_vm7, %v4853_v24, -inf }
0x253a   : > { %4857 = vmax.xlane.f32.xlu0 %v4856_v0 }
0x253b   : > { %v4859_v34 = vsel %vm4855_vm7, %v4854_v28, -inf }
0x253c   : > { %4860 = vmax.xlane.f32.xlu1 %v4859_v34 }
0x253e   : > { %v4972_v31 = vpop.f32.mrb[100].mxu1 }
0x253f   : > { %v4979_v40 = vmul.f32 0.35355338, %v4972_v31  ;;  %v8463_v43 = vpop.f32.mrb[101].mxu1 }
0x2540   : > { %v4975_v32 = vpop.f32.mrb[102].mxu1 }
0x2541   : > { %v4980_v41 = vmul.f32 0.35355338, %v4975_v32  ;;  %v8464_v16 = vpop.f32.mrb[103].mxu1  ;;  %v4981_v20 = vsel %vm4855_vm7, %v4979_v40, -inf }
0x2542   : > { %4982 = vmax.xlane.f32.xlu0 %v4981_v20 }
0x2543   : > { %v4984_v11 = vsel %vm4855_vm7, %v4980_v41, -inf }
0x2546   : > { %4985 = vmax.xlane.f32.xlu0 %v4984_v11  ;;  %v5105_v27 = vpop.f32.mrb[104].mxu1 }
0x2547   : > { %v5112_v60 = vmul.f32 0.35355338, %v5105_v27  ;;  %v8475_v61 = vpop.f32.mrb[105].mxu1 }
0x2548   : > { %v5108_v30 = vpop.f32.mrb[106].mxu1 }
0x2549   : > { %v5113_v15 = vmul.f32 0.35355338, %v5108_v30  ;;  %v8476_v46 = vpop.f32.mrb[107].mxu1  ;;  %v5114_v29 = vsel %vm4855_vm7, %v5112_v60, -inf }
0x254a   : > { %5115 = vmax.xlane.f32.xlu1 %v5114_v29 }
0x254b   : > { %v5117_v47 = vsel %vm4855_vm7, %v5113_v15, -inf }
0x254c   : > { %5118 = vmax.xlane.f32.xlu0 %v5117_v47 }
0x254e   : > { %v5238_v36 = vpop.f32.mrb[108].mxu1 }
0x254f   : > { %v5245_v59 = vmul.f32 0.35355338, %v5238_v36  ;;  %v8487_v53 = vpop.f32.mrb[109].mxu1 }
0x2550   : > { %v5241_v58 = vpop.f32.mrb[110].mxu1 }
0x2551   : > { %v5246_v5 = vmul.f32 0.35355338, %v5241_v58  ;;  %v8488_v50 = vpop.f32.mrb[111].mxu1  ;;  %v5247_v37 = vsel %vm4855_vm7, %v5245_v59, -inf }
0x2552   : > { %5248 = vmax.xlane.f32.xlu1 %v5247_v37 }
0x2553   : > { %v5250_v54 = vsel %vm4855_vm7, %v5246_v5, -inf }
0x2554   : > { %5251 = vmax.xlane.f32.xlu0 %v5250_v54 }
0x2563   : > { %4879 = vrot.lane.b32.xlu1 %v10969_v18, %s11796_s27 }
0x25c7   : > { %v4858_v12 = vpop.xlane.xlu0 %4857 }
0x25c8   : > { %v4862_v44 = vsub.f32 %v4853_v24, %v4858_v12 }
0x25c9   : > { %v4861_v48 = vpop.xlane.xlu1 %4860 }
0x25ca   : > { %v4864_v14 = vmul.f32 1.442695, %v4862_v44  ;;  %v4863_v38 = vsub.f32 %v4854_v28, %v4861_v48 }
0x25cc   : > { %9166 = vpow2.f32 %v4864_v14  ;;  %v4866_v42 = vmul.f32 1.442695, %v4863_v38 }
0x25ce   : > { %9168 = vpow2.f32 %v4866_v42 }
0x25cf   : > { %v4983_v49 = vpop.xlane.xlu0 %4982 }
0x25d0   : > { %v4987_v21 = vsub.f32 %v4979_v40, %v4983_v49 }
0x25d2   : > { %v4989_v13 = vmul.f32 1.442695, %v4987_v21 }
0x25d3   : > { %v4986_v52 = vpop.xlane.xlu0 %4985 }
0x25d4   : > { %9170 = vpow2.f32 %v4989_v13  ;;  %v4988_v63 = vsub.f32 %v4980_v41, %v4986_v52 }
0x25d6   : > { %v9167_v23 = vpop.eup %9166  ;;  %v4991_v19 = vmul.f32 1.442695, %v4988_v63 }
0x25d7   : > { %v5116_v56 = vpop.xlane.xlu1 %5115  ;;  %v4868_v4 = vsel %vm4855_vm7, %v9167_v23, 0.0 }
0x25d8   : > { %v9169_v10 = vpop.eup %9168  ;;  %9172 = vpow2.f32 %v4991_v19  ;;  %v5120_v33 = vsub.f32 %v5112_v60, %v5116_v56  ;;  %4869 = vadd.xlane.f32.xlu1 %v4868_v4 }
0x25d9   : > { %v5119_v24 = vpop.xlane.xlu0 %5118  ;;  %v4871_v26 = vsel %vm4855_vm7, %v9169_v10, 0.0 }
0x25da   : > { %v5122_v1 = vmul.f32 1.442695, %v5120_v33  ;;  %v5121_v28 = vsub.f32 %v5113_v15, %v5119_v24  ;;  %4872 = vadd.xlane.f32.xlu0 %v4871_v26 }
0x25dc   : > { %9174 = vpow2.f32 %v5122_v1  ;;  %v5124_v57 = vmul.f32 1.442695, %v5121_v28 }
0x25de   : > { %v9171_v0 = vpop.eup %9170  ;;  %9176 = vpow2.f32 %v5124_v57 }
0x25df   : > { %v5249_v34 = vpop.xlane.xlu1 %5248  ;;  %v4993_v31 = vsel %vm4855_vm7, %v9171_v0, 0.0 }
0x25e0   : > { %v5253_v40 = vsub.f32 %v5245_v59, %v5249_v34  ;;  %4994 = vadd.xlane.f32.xlu1 %v4993_v31 }
0x25e1   : > { %v5252_v43 = vpop.xlane.xlu0 %5251 }
0x25e2   : > { %v9173_v32 = vpop.eup %9172  ;;  %v5255_v41 = vmul.f32 1.442695, %v5253_v40  ;;  %v5254_v16 = vsub.f32 %v5246_v5, %v5252_v43 }
0x25e3   : > { %v4880_v20 = vpop.permute.xlu1 %4879  ;;  %v4996_v11 = vsel %vm4855_vm7, %v9173_v32, 0.0 }
0x25e4   : > { %9178 = vpow2.f32 %v5255_v41  ;;  %v5257_v27 = vmul.f32 1.442695, %v5254_v16  ;;  %4997 = vadd.xlane.f32.xlu0 %v4996_v11  ;;  %8454 = vmatpush3.bf16.msra.mxu0 %v4880_v20  ;;  %v8794_v11 = vld [vmem:[%s11727_s10] sm:$0xff]  }
0x25e5   : > { %8465 = vmatprep.subr.bf16.mxu0 %v9396_v17  ;;  %8496 = vmatpush3.bf16.msra.mxu1 %v8794_v11  ;;  %v8799_v11 = vld [vmem:[%s11725_s8 + $0x18] sm:$0xff]  }
0x25e6   : > { %v9175_v60 = vpop.eup %9174  ;;  %9180 = vpow2.f32 %v5257_v27  ;;  %8497 = vmatprep.subr.bf16.mxu1 %v9396_v17 }
0x25e7   : > { %v5126_v61 = vsel %vm4855_vm7, %v9175_v60, 0.0 }
0x25e8   : > { %v9177_v30 = vpop.eup %9176  ;;  %5127 = vadd.xlane.f32.xlu1 %v5126_v61 }
0x25e9   : > { %v5129_v15 = vsel %vm4855_vm7, %v9177_v30, 0.0 }
0x25ea   : > { %5130 = vadd.xlane.f32.xlu0 %v5129_v15 }
0x25ee   : > { %v9179_v46 = vpop.eup %9178 }
0x25ef   : > { %v5259_v29 = vsel %vm4855_vm7, %v9179_v46, 0.0 }
0x25f0   : > { %v9181_v47 = vpop.eup %9180  ;;  %5260 = vadd.xlane.f32.xlu1 %v5259_v29 }
0x25f1   : > { %v5262_v36 = vsel %vm4855_vm7, %v9181_v47, 0.0 }
0x25f2   : > { %5263 = vadd.xlane.f32.xlu0 %v5262_v36 }
0x2601   : > { %5137 = vrot.lane.b32.xlu1 %v10969_v18, %s11785_s30 }
0x2605   : > { %5270 = vrot.lane.b32.xlu1 %v10969_v18, %s11788_s22 }
0x2608   : > { %5004 = vrot.lane.b32.xlu0 %v10969_v18, %s11782_s29 }
0x2665   : > { %v4870_v59 = vpop.xlane.xlu1 %4869 }
0x2666   : > { %9182 = vrcp.f32 %v4870_v59 }
0x2667   : > { %v4873_v53 = vpop.xlane.xlu0 %4872 }
0x2668   : > { %9184 = vrcp.f32 %v4873_v53 }
0x266d   : > { %v4995_v12 = vpop.xlane.xlu1 %4994 }
0x2670   : > { %v9183_v58 = vpop.eup %9182 }
0x2671   : > { %v4998_v5 = vpop.xlane.xlu0 %4997  ;;  %v4876_v37 = vmul.f32 %v9183_v58, %v9167_v23 }
0x2672   : > { %v9185_v50 = vpop.eup %9184  ;;  %9186 = vrcp.f32 %v4998_v5 }
0x2673   : > { %v4877_v54 = vmul.f32 %v9185_v50, %v9169_v10  ;;  %9188 = vrcp.f32 %v4995_v12 }
0x2675   : > { %v4878_v44 = vpack.c.bf16 %v4877_v54, %v4876_v37  ;;  %v5128_v18 = vpop.xlane.xlu1 %5127 }
0x2677   : > { %8456 = vmatmul.mubr.msk.bf16.vlgmr.msra.gmra.mrb[104].mxu0 %vm4855_vm7, %v4878_v44  ;;  %v5131_v48 = vpop.xlane.xlu0 %5130 }
0x2678   : > { %8467 = vmatprep.mubr.msk.bf16.mxu0 %vm9398_vm6, %v9396_v17  ;;  %9190 = vrcp.f32 %v5131_v48 }
0x2679   : > { %9192 = vrcp.f32 %v5128_v18 }
0x267c   : > { %v9187_v14 = vpop.eup %9186 }
0x267d   : > { %v9189_v42 = vpop.eup %9188  ;;  %v5002_v49 = vmul.f32 %v9187_v14, %v9173_v32  ;;  %v5261_v21 = vpop.xlane.xlu1 %5260 }
0x267e   : > { %v5001_v13 = vmul.f32 %v9189_v42, %v9171_v0 }
0x267f   : > { %v5264_v38 = vpop.xlane.xlu0 %5263 }
0x2680   : > { %9194 = vrcp.f32 %v5264_v38  ;;  %v5003_v63 = vpack.c.bf16 %v5002_v49, %v5001_v13 }
0x2681   : > { %9196 = vrcp.f32 %v5261_v21  ;;  %v5138_v19 = vpop.permute.xlu1 %5137 }
0x2682   : > { %v9191_v23 = vpop.eup %9190 }
0x2683   : > { %v5005_v52 = vpop.permute.xlu0 %5004  ;;  %v9193_v56 = vpop.eup %9192  ;;  %v5135_v4 = vmul.f32 %v9191_v23, %v9177_v30 }
0x2684   : > { %8466 = vmatpush3.bf16.msra.mxu0 %v5005_v52  ;;  %v5134_v10 = vmul.f32 %v9193_v56, %v9175_v60  ;;  %v8795_v60 = vld [vmem:[%s11727_s10 + $0x8] sm:$0xff]  }
0x2685   : > { %8477 = vmatprep.subr.bf16.mxu0 %v9396_v17  ;;  %v5271_v26 = vpop.permute.xlu1 %5270  ;;  %8498 = vmatpush3.bf16.msra.mxu1 %v8795_v60 }
0x2686   : > { %v5136_v33 = vpack.c.bf16 %v5135_v4, %v5134_v10  ;;  %8511 = vmatprep.subr.bf16.mxu1 %v9396_v17 }
0x2687   : > { %8468 = vmatmul.mubr.msk.bf16.vlgmr.msra.gmra.mrb[108].mxu0 %vm4855_vm7, %v5003_v63 }
0x2688   : > { %8478 = vmatpush3.bf16.msra.mxu0 %v5138_v19  ;;  %8479 = vmatprep.mubr.msk.bf16.mxu0 %vm9398_vm6, %v9396_v17 }
0x2689   : > { %8489 = vmatprep.subr.bf16.mxu0 %v9396_v17 }
0x268a   : > { %v9195_v24 = vpop.eup %9194 }
0x268b   : > { %v9197_v1 = vpop.eup %9196  ;;  %v5268_v28 = vmul.f32 %v9195_v24, %v9181_v47  ;;  %v8796_v24 = vld [vmem:[%s11728_s11] sm:$0xff]  }
0x268c   : > { %v5267_v57 = vmul.f32 %v9197_v1, %v9179_v46  ;;  %v8798_v1 = vld [vmem:[%s11725_s8 + $0x10] sm:$0xff]  }
0x268e   : > { %v5269_v0 = vpack.c.bf16 %v5268_v28, %v5267_v57 }
0x268f   : > { %8480 = vmatmul.mubr.msk.bf16.vlgmr.msra.gmra.mrb[112].mxu0 %vm4855_vm7, %v5136_v33 }
0x2690   : > { %8490 = vmatpush3.bf16.msra.mxu0 %v5271_v26  ;;  %8491 = vmatprep.mubr.msk.bf16.mxu0 %vm9398_vm6, %v9396_v17  ;;  %v8797_v26 = vld [vmem:[%s11728_s11 + $0x8] sm:$0xff]  }
0x2691   : > { %8503 = vmatprep.subr.bf16.mxu0 %v9396_v17 }
0x2697   : > { %8492 = vmatmul.mubr.msk.bf16.vlgmr.msra.gmra.mrb[116].mxu0 %vm4855_vm7, %v5269_v0 }
0x2698   : > { %8507 = vmatprep.mubr.msk.bf16.mxu0 %vm9398_vm6, %v9396_v17  ;;  %8504 = vmatpush3.bf16.msra.mxu0 %v8796_v24 }
0x2699   : > { %8505 = vmatprep.subr.bf16.mxu0 %v9396_v17 }
0x269c   : > { %8506 = vmatpush3.bf16.msra.mxu0 %v8797_v26 }
0x269d   : > { %8519 = vmatprep.subr.bf16.mxu0 %v8798_v1 }
0x274a   : > { %v4919_v34 = vpop.f32.mrb[104].mxu0 }
0x274b   : > { %4926 = vst.msk [vmem:[#allocation2] sm:$0xff] %vm788_vm1, %v4919_v34  ;;  %v8457_v31 = vpop.f32.mrb[105].mxu0 }
0x274c   : > { %v4922_v40 = vpop.f32.mrb[106].mxu0 }
0x274d   : > { %4927 = vst.msk [vmem:[#allocation2 + $0x8] sm:$0xff] %vm788_vm1, %v4922_v40  ;;  %v8458_v43 = vpop.f32.mrb[107].mxu0 }
0x275a   : > { %v5044_v32 = vpop.f32.mrb[108].mxu0 }
0x275b   : > { %5053 = vrot.lane.b32.xlu0 %v5044_v32, %s11789_s0  ;;  %v8469_v41 = vpop.f32.mrb[109].mxu0 }
0x275c   : > { %v5047_v16 = vpop.f32.mrb[110].mxu0 }
0x275d   : > { %5055 = vrot.lane.b32.xlu1 %v5047_v16, %s11789_s0  ;;  %v8470_v20 = vpop.f32.mrb[111].mxu0 }
0x2762   : > { %v5177_v27 = vpop.f32.mrb[112].mxu0 }
0x2763   : > { %5186 = vrot.lane.b32.xlu0 %v5177_v27, %s11790_s26  ;;  %v8481_v61 = vpop.f32.mrb[113].mxu0  ;;  %v8800_v27 = vld [vmem:[%s11730_s13] sm:$0xff]  }
0x2764   : > { %v5180_v30 = vpop.f32.mrb[114].mxu0 }
0x2765   : > { %5188 = vrot.lane.b32.xlu1 %v5180_v30, %s11790_s26  ;;  %v8482_v15 = vpop.f32.mrb[115].mxu0 }
0x276a   : > { %v5310_v46 = vpop.f32.mrb[116].mxu0 }
0x276b   : > { %5319 = vrot.lane.b32.xlu0 %v5310_v46, %s11791_s19  ;;  %v8493_v29 = vpop.f32.mrb[117].mxu0 }
0x276c   : > { %v5313_v47 = vpop.f32.mrb[118].mxu0 }
0x276d   : > { %5321 = vrot.lane.b32.xlu1 %v5313_v47, %s11791_s19  ;;  %v8494_v36 = vpop.f32.mrb[119].mxu0  ;;  %v7694_v47 = vld [vmem:[%s11726_s9 + $0x1] ss:$0 sm:$0xff] }
0x27cd   : > { %v5054_v59 = vpop.permute.xlu0 %5053 }
0x27ce   : > { %5059 = vst.msk [vmem:[#allocation2] sm:$0xff] %vm1402_vm3, %v5054_v59 }
0x27cf   : > { %v5056_v53 = vpop.permute.xlu1 %5055 }
0x27d0   : > { %5060 = vst.msk [vmem:[#allocation2 + $0x8] sm:$0xff] %vm1402_vm3, %v5056_v53 }
0x27d5   : > { %v5187_v58 = vpop.permute.xlu0 %5186 }
0x27d6   : > { %5192 = vst.msk [vmem:[#allocation2] sm:$0xff] %vm1737_vm4, %v5187_v58 }
0x27d7   : > { %v5189_v5 = vpop.permute.xlu1 %5188 }
0x27d8   : > { %5193 = vst.msk [vmem:[#allocation2 + $0x8] sm:$0xff] %vm1737_vm4, %v5189_v5 }
0x27dd   : > { %v5320_v50 = vpop.permute.xlu0 %5319 }
0x27de   : > { %5325 = vst.msk [vmem:[#allocation2] sm:$0xff] %vm2072_vm5, %v5320_v50 }
0x27df   : > { %v5322_v37 = vpop.permute.xlu1 %5321 }
0x27e0   : > { %5326 = vst.msk [vmem:[#allocation2 + $0x8] sm:$0xff] %vm2072_vm5, %v5322_v37 }
0x27e5   : > { %v5327_v54 = vld [vmem:[#allocation2] sm:$0xff] }
0x27e7   : > { %v5328_v12 = vld [vmem:[#allocation2 + $0x8] sm:$0xff] }
0x27e8   : > { %v5329_v44 = vpack.c.bf16 %v5328_v12, %v5327_v54 }
0x27ea   : > { %8500 = vmatmul.mubr.msk.bf16.vlgmr.msra.gmra.mrb[112].mxu1 %vm567_vm0, %v5329_v44 }
0x27eb   : > { %8515 = vmatprep.mubr.msk.bf16.mxu1 %vm9398_vm6, %v9396_v17  ;;  %8512 = vmatpush3.bf16.msra.mxu1 %v8800_v27 }
0x27ec   : > { %8513 = vmatprep.subr.bf16.mxu1 %v9396_v17 }
0x28bd   : > { %v5379_v48 = vpop.f32.mrb[112].mxu1 }
0x28be   : > { %v11072_v18 = vadd.f32 %v5379_v48, %v10904_v35  ;;  %v8501_v14 = vpop.f32.mrb[113].mxu1 }
0x28bf   : > { %v5382_v38 = vpop.f32.mrb[114].mxu1 }
0x28c0   : > { %v11075_v42 = vadd.f32 %v5382_v38, %v10906_v3  ;;  %v8502_v49 = vpop.f32.mrb[115].mxu1  ;;  %v5398_v21 = vsel %vm567_vm0, %v11072_v18, 0.0 }
0x28c1   : > { %5399 = vadd.xlane.f32.xlu0 %v5398_v21 }
0x28c2   : > { %v5401_v13 = vsel %vm567_vm0, %v11075_v42, 0.0 }
0x28c3   : > { %5402 = vadd.xlane.f32.xlu1 %v5401_v13 }
0x294e   : > { %v5400_v52 = vpop.xlane.xlu0 %5399 }
0x294f   : > { %v5404_v63 = vmul.f32 0.03125, %v5400_v52 }
0x2950   : > { %v5403_v23 = vpop.xlane.xlu1 %5402 }
0x2951   : > { %v5406_v35 = vsub.f32 %v11072_v18, %v5404_v63  ;;  %v5405_v19 = vmul.f32 0.03125, %v5403_v23 }
0x2953   : > { %v5407_v56 = vsub.f32 %v11075_v42, %v5405_v19  ;;  %v5408_v4 = vmul.f32 %v5406_v35, %v5406_v35 }
0x2955   : > { %v5410_v3 = vsel %vm567_vm0, %v5408_v4, 0.0  ;;  %v5409_v10 = vmul.f32 %v5407_v56, %v5407_v56 }
0x2956   : > { %5411 = vadd.xlane.f32.xlu0 %v5410_v3 }
0x2957   : > { %v5413_v33 = vsel %vm567_vm0, %v5409_v10, 0.0 }
0x295a   : > { %5414 = vadd.xlane.f32.xlu0 %v5413_v33 }
0x29e3   : > { %v5412_v28 = vpop.xlane.xlu0 %5411 }
0x29e4   : > { %v5416_v57 = vmul.f32 0.03125, %v5412_v28 }
0x29e6   : > { %v5418_v0 = vadd.f32 1e-05, %v5416_v57 }
0x29e7   : > { %v5415_v34 = vpop.xlane.xlu0 %5414 }
0x29e8   : > { %v5417_v31 = vmul.f32 0.03125, %v5415_v34  ;;  %9198 = vrsqrt.f32 %v5418_v0 }
0x29ea   : > { %v5419_v40 = vadd.f32 1e-05, %v5417_v31 }
0x29ec   : > { %9200 = vrsqrt.f32 %v5419_v40 }
0x29f2   : > { %v9199_v43 = vpop.eup %9198 }
0x29f3   : > { %v5422_v41 = vmul.f32 %v9199_v43, %v5406_v35 }
0x29f6   : > { %v9201_v32 = vpop.eup %9200 }
0x29f7   : > { %v5423_v16 = vmul.f32 %v9201_v32, %v5407_v56  ;;  %v7681_v32 = vld [vmem:[%s11731_s14] ss:$0 sm:$0xff] }
0x29f9   : > { %v5424_v20 = vpack.c.bf16 %v5423_v16, %v5422_v41 }
0x29fb   : > { %8508 = vmatmul.mubr.msk.bf16.vlgmr.msra.gmra.mrb[120].mxu0 %vm567_vm0, %v5424_v20 }
0x29fc   : > { %8520 = vmatpush3.bf16.msra.mxu0 %v8798_v1  ;;  %8523 = vmatprep.mubr.msk.bf16.mxu0 %vm567_vm0, %v10250_v2  ;;  %v8801_v2 = vld [vmem:[%s11730_s13 + $0x8] sm:$0xff]  }
0x29fd   : > { %8521 = vmatprep.subr.bf16.mxu0 %v8799_v11  ;;  %8514 = vmatpush3.bf16.msra.mxu1 %v8801_v2 }
0x2a00   : > { %8522 = vmatpush3.bf16.msra.mxu0 %v8799_v11 }
0x2a03   : > { %8524 = vmatmul.mubr.msk.bf16.vlgmr.msra.gmra.mrb[124].mxu0 %vm567_vm0, %v10256_v51  ;;  %v7677_v51 = vld [vmem:[%s11729_s12] ss:$0 sm:$0xff] }
0x2a04   : > { %8527 = vmatprep.mubr.msk.bf16.mxu0 %vm567_vm0, %v10262_v39 }
0x2a0b   : > { %8528 = vmatmul.mubr.msk.bf16.gmra.mrb[128].mxu0 %vm567_vm0, %v10268_v8 }
0x2ace   : > { %v5480_v39 = vpop.f32.mrb[120].mxu0 }
0x2acf   : > { %v5481_v60 = vadd.f32 %v7677_v51, %v5480_v39  ;;  %v8509_v61 = vpop.f32.mrb[121].mxu0 }
0x2ad0   : > { %v5483_v8 = vpop.f32.mrb[122].mxu0 }
0x2ad1   : > { %v5489_v30 = vmul.f32 0.70710677, %v5481_v60  ;;  %v5484_v15 = vadd.f32 %v7677_v51, %v5483_v8  ;;  %v8510_v46 = vpop.f32.mrb[123].mxu0  ;;  %v5487_v21 = vmul.f32 0.5, %v5481_v60 }
0x2ad3   : > { %9202 = verf.f32 %v5489_v30  ;;  %v5490_v29 = vmul.f32 0.70710677, %v5484_v15  ;;  %v5488_v13 = vmul.f32 0.5, %v5484_v15 }
0x2ad5   : > { %9204 = verf.f32 %v5490_v29 }
0x2ad6   : > { %v8525_v17 = vpop.f32.mrb[124].mxu0 }
0x2ad7   : > { %v5626_v36 = vpop.f32.mrb[125].mxu0  ;;  %v5635_v53 = vadd.f32 %v8525_v17, %v7694_v47 }
0x2ad8   : > { %v8526_v59 = vpop.f32.mrb[126].mxu0  ;;  %v5627_v50 = vadd.f32 %v7694_v47, %v5626_v36 }
0x2ad9   : > { %v5638_v58 = vadd.f32 %v8526_v59, %v7694_v47  ;;  %v5629_v5 = vpop.f32.mrb[127].mxu0 }
0x2ada   : > { %v5630_v37 = vadd.f32 %v7694_v47, %v5629_v5 }
0x2adb   : > { %v11120_v54 = vpack.c.bf16 %v5638_v58, %v5635_v53 }
0x2adc   : > { %v11122_v12 = vpack.c.bf16 %v5630_v37, %v5627_v50 }
0x2add   : > { %v9203_v44 = vpop.eup %9202  ;;  %5667 = vrot.lane.b32.xlu0 %v11120_v54, %s11794_s3 }
0x2ade   : > { %v5493_v48 = vadd.f32 1.0, %v9203_v44  ;;  %v8529_v14 = vpop.f32.mrb[128].mxu0  ;;  %5665 = vrot.lane.b32.xlu1 %v11122_v12, %s11794_s3 }
0x2adf   : > { %v9205_v38 = vpop.eup %9204  ;;  %v5642_v49 = vpop.f32.mrb[129].mxu0  ;;  %v5651_v23 = vadd.f32 %v8529_v14, %v7694_v47 }
0x2ae0   : > { %v5494_v52 = vadd.f32 1.0, %v9205_v38  ;;  %v8530_v63 = vpop.f32.mrb[130].mxu0  ;;  %v5495_v56 = vmul.f32 %v5493_v48, %v5487_v21  ;;  %v5643_v3 = vadd.f32 %v7694_v47, %v5642_v49 }
0x2ae1   : > { %v5654_v35 = vadd.f32 %v8530_v63, %v7694_v47  ;;  %v5645_v19 = vpop.f32.mrb[131].mxu0 }
0x2ae2   : > { %v5496_v4 = vmul.f32 %v5494_v52, %v5488_v13  ;;  %v5646_v10 = vadd.f32 %v7694_v47, %v5645_v19 }
0x2ae3   : > { %v11128_v33 = vpack.c.bf16 %v5654_v35, %v5651_v23 }
0x2ae4   : > { %v5497_v24 = vpack.c.bf16 %v5496_v4, %v5495_v56  ;;  %v11130_v26 = vpack.c.bf16 %v5646_v10, %v5643_v3 }
0x2ae6   : > { %8516 = vmatmul.mubr.msk.bf16.vlgmr.msra.gmra.mrb[116].mxu1 %vm567_vm0, %v5497_v24  ;;  %5669 = vrot.lane.b32.xlu1 %v11130_v26, %s11794_s3 }
0x2ae7   : > { %8539 = vmatprep.mubr.msk.bf16.mxu1 %vm788_vm1, %v11122_v12 }
0x2aea   : > { %5671 = vrot.lane.b32.xlu1 %v11128_v33, %s11794_s3 }
0x2b4f   : > { %v5668_v57 = vpop.permute.xlu0 %5667 }
0x2b50   : > { %v5666_v1 = vpop.permute.xlu1 %5665  ;;  %v5689_v0 = vsel %vm788_vm1, %v5668_v57, 0 }
0x2b51   : > { %8727 = vmatprep.subr.msk.bf16.mxu1 %vm788_vm1, %v5666_v1  ;;  %v5686_v28 = vsel %vm788_vm1, %v5666_v1, 0 }
0x2b52   : > { %8532 = vmatpush3.bf16.xpose.msra.mxu1 %v5686_v28 }
0x2b53   : > { %8728 = vmatprep.subr.msk.bf16.mxu1 %vm788_vm1, %v5668_v57 }
0x2b58   : > { %v5670_v34 = vpop.permute.xlu1 %5669 }
0x2b59   : > { %v5692_v31 = vsel %vm788_vm1, %v5670_v34, 0 }
0x2b5a   : > { %8534 = vmatpush3.bf16.xpose.msra.mxu1 %v5689_v0 }
0x2b5b   : > { %8729 = vmatprep.subr.msk.bf16.mxu1 %vm788_vm1, %v5670_v34 }
0x2b5c   : > { %v5672_v40 = vpop.permute.xlu1 %5671 }
0x2b5d   : > { %v5695_v43 = vsel %vm788_vm1, %v5672_v40, 0 }
0x2b62   : > { %8536 = vmatpush3.bf16.xpose.msra.mxu1 %v5692_v31 }
0x2b63   : > { %8730 = vmatprep.subr.msk.bf16.mxu1 %vm788_vm1, %v5672_v40 }
0x2b6a   : > { %8538 = vmatpush3.bf16.xpose.msra.mxu1 %v5695_v43 }
0x2b71   : > { %8540 = vmatmul.mubr.msk.bf16.vlgmr.msra.gmra.mrb[120].mxu1 %vm788_vm1, %v11120_v54 }
0x2b72   : > { %8543 = vmatprep.mubr.msk.bf16.mxu1 %vm788_vm1, %v11130_v26 }
0x2b79   : > { %8544 = vmatmul.mubr.msk.bf16.gmra.mrb[124].mxu1 %vm788_vm1, %v11128_v33 }
0x2bb9   : > { %v5553_v41 = vpop.f32.mrb[116].mxu1 }
0x2bba   : > { %v5554_v16 = vadd.f32 %v7681_v32, %v5553_v41  ;;  %v8517_v20 = vpop.f32.mrb[117].mxu1 }
0x2bbb   : > { %v5556_v11 = vpop.f32.mrb[118].mxu1 }
0x2bbc   : > { %v5560_v27 = vadd.f32 %v5554_v16, %v11072_v18  ;;  %v5557_v2 = vadd.f32 %v7681_v32, %v5556_v11  ;;  %v8518_v51 = vpop.f32.mrb[119].mxu1 }
0x2bbe   : > { %7442 = vst.msk [vmem:[%s10937_s15 + $0x40] sm:$0xff] %vm567_vm0, %v5560_v27  ;;  %v5561_v39 = vadd.f32 %v5557_v2, %v11075_v42 }
0x2bc0   : > { %7443 = vst.msk [vmem:[%s10937_s15 + $0x48] sm:$0xff] %vm567_vm0, %v5561_v39 }
0x2c44   : > { %v8541_v60 = vpop.f32.mrb[120].mxu1 }
0x2c45   : > { %v5764_v61 = vmul.f32 0.35355338, %v8541_v60  ;;  %v5731_v8 = vpop.f32.mrb[121].mxu1 }
0x2c46   : > { %v8542_v30 = vpop.f32.mrb[122].mxu1  ;;  %v5762_v15 = vmul.f32 0.35355338, %v5731_v8 }
0x2c47   : > { %v5734_v46 = vpop.f32.mrb[123].mxu1  ;;  %v5776_v29 = vsel %vm886_vm2, %v5764_v61, -inf  ;;  %v5765_v47 = vmul.f32 0.35355338, %v8542_v30 }
0x2c48   : > { %v5763_v17 = vmul.f32 0.35355338, %v5734_v46  ;;  %5777 = vmax.xlane.f32.xlu0 %v5776_v29  ;;  %v5770_v36 = vsel %vm886_vm2, %v5762_v15, -inf }
0x2c49   : > { %v5779_v37 = vsel %vm886_vm2, %v5765_v47, -inf }
0x2c4a   : > { %v5773_v18 = vsel %vm886_vm2, %v5763_v17, -inf }
0x2c4b   : > { %5774 = vmax.xlane.f32.xlu1 %v5773_v18 }
0x2c4c   : > { %5771 = vmax.xlane.f32.xlu0 %v5770_v36  ;;  %v8545_v42 = vpop.f32.mrb[124].mxu1 }
0x2c4d   : > { %v5768_v59 = vmul.f32 0.35355338, %v8545_v42  ;;  %v5747_v53 = vpop.f32.mrb[125].mxu1 }
0x2c4e   : > { %v8546_v58 = vpop.f32.mrb[126].mxu1  ;;  %v5766_v5 = vmul.f32 0.35355338, %v5747_v53 }
0x2c4f   : > { %v5750_v50 = vpop.f32.mrb[127].mxu1  ;;  %v5788_v44 = vsel %vm886_vm2, %v5768_v59, -inf  ;;  %v5769_v38 = vmul.f32 0.35355338, %v8546_v58 }
0x2c50   : > { %v11167_v48 = vmul.f32 0.35355338, %v5750_v50  ;;  %5780 = vmax.xlane.f32.xlu0 %v5779_v37  ;;  %5789 = vmax.xlane.f32.xlu1 %v5788_v44  ;;  %v5782_v49 = vsel %vm886_vm2, %v5766_v5, -inf }
0x2c51   : > { %v5791_v21 = vsel %vm886_vm2, %v5769_v38, -inf }
0x2c52   : > { %v5785_v14 = vsel %vm886_vm2, %v11167_v48, -inf }
0x2c54   : > { %5783 = vmax.xlane.f32.xlu1 %v5782_v49  ;;  %5786 = vmax.xlane.f32.xlu0 %v5785_v14 }
0x2c58   : > { %5792 = vmax.xlane.f32.xlu0 %v5791_v21 }
0x2c65   : > { %5862 = vrot.lane.b32.xlu1 %v11122_v12, %s11796_s27 }
0x2c69   : > { %5866 = vrot.lane.b32.xlu1 %v11130_v26, %s11796_s27 }
0x2c6d   : > { %5868 = vrot.lane.b32.xlu1 %v11128_v33, %s11796_s27 }
0x2c6e   : > { %5864 = vrot.lane.b32.xlu0 %v11120_v54, %s11796_s27 }
0x2c71   : > { %5967 = vrot.lane.b32.xlu1 %v11122_v12, %s11793_s23 }
0x2cd5   : > { %v5778_v13 = vpop.xlane.xlu0 %5777 }
0x2cd6   : > { %v5796_v52 = vsub.f32 %v5764_v61, %v5778_v13 }
0x2cd8   : > { %v5806_v63 = vmul.f32 1.442695, %v5796_v52  ;;  %v5775_v23 = vpop.xlane.xlu1 %5774 }
0x2cd9   : > { %v5772_v35 = vpop.xlane.xlu0 %5771  ;;  %v5795_v56 = vsub.f32 %v5763_v17, %v5775_v23 }
0x2cda   : > { %9206 = vpow2.f32 %v5806_v63  ;;  %v5794_v19 = vsub.f32 %v5762_v15, %v5772_v35 }
0x2cdb   : > { %v5804_v1 = vmul.f32 1.442695, %v5795_v56 }
0x2cdc   : > { %v5802_v4 = vmul.f32 1.442695, %v5794_v19 }
0x2cdd   : > { %v5781_v3 = vpop.xlane.xlu0 %5780  ;;  %v5790_v10 = vpop.xlane.xlu1 %5789 }
0x2cde   : > { %9208 = vpow2.f32 %v5802_v4  ;;  %v5797_v24 = vsub.f32 %v5765_v47, %v5781_v3  ;;  %v5800_v57 = vsub.f32 %v5768_v59, %v5790_v10 }
0x2ce0   : > { %v5808_v28 = vmul.f32 1.442695, %v5797_v24  ;;  %v5814_v40 = vmul.f32 1.442695, %v5800_v57 }
0x2ce1   : > { %v5784_v0 = vpop.xlane.xlu1 %5783  ;;  %v5787_v34 = vpop.xlane.xlu0 %5786 }
0x2ce2   : > { %9210 = vpow2.f32 %v5808_v28  ;;  %v5798_v43 = vsub.f32 %v5766_v5, %v5784_v0  ;;  %v5799_v53 = vsub.f32 %v11167_v48, %v5787_v34 }
0x2ce3   : > { %9212 = vpow2.f32 %v5804_v1 }
0x2ce4   : > { %v11183_v31 = vpop.eup %9206  ;;  %9214 = vpow2.f32 %v5814_v40  ;;  %v5810_v11 = vmul.f32 1.442695, %v5798_v43  ;;  %v5812_v58 = vmul.f32 1.442695, %v5799_v53 }
0x2ce5   : > { %v5863_v32 = vpop.permute.xlu1 %5862  ;;  %v5793_v41 = vpop.xlane.xlu0 %5792  ;;  %v5824_v16 = vsel %vm886_vm2, %v11183_v31, 0.0 }
0x2ce6   : > { %5825 = vadd.xlane.f32.xlu1 %v5824_v16  ;;  %8547 = vmatprep.subr.bf16.mxu0 %v5863_v32  ;;  %v5801_v27 = vsub.f32 %v5769_v38, %v5793_v41  ;;  %9216 = vpow2.f32 %v5810_v11 }
0x2ce7   : > { %8548 = vmatpush3.bf16.msra.mxu0 %v5863_v32 }
0x2ce8   : > { %v11187_v20 = vpop.eup %9208  ;;  %v5816_v61 = vmul.f32 1.442695, %v5801_v27 }
0x2ce9   : > { %v5867_v2 = vpop.permute.xlu1 %5866  ;;  %v5865_v51 = vpop.permute.xlu0 %5864  ;;  %v5818_v39 = vsel %vm886_vm2, %v11187_v20, 0.0 }
0x2cea   : > { %5819 = vadd.xlane.f32.xlu1 %v5818_v39  ;;  %8549 = vmatprep.subr.bf16.mxu0 %v5865_v51  ;;  %9218 = vpow2.f32 %v5816_v61 }
0x2ceb   : > { %8550 = vmatpush3.bf16.msra.mxu0 %v5865_v51  ;;  %9220 = vpow2.f32 %v5812_v58 }
0x2cec   : > { %v9211_v60 = vpop.eup %9210  ;;  %8551 = vmatprep.subr.bf16.mxu0 %v5867_v2 }
0x2ced   : > { %v5869_v8 = vpop.permute.xlu1 %5868  ;;  %v5827_v30 = vsel %vm886_vm2, %v9211_v60, 0.0  ;;  %v9213_v15 = vpop.eup %9212 }
0x2cee   : > { %5828 = vadd.xlane.f32.xlu0 %v5827_v30  ;;  %v5821_v46 = vsel %vm886_vm2, %v9213_v15, 0.0  ;;  %v11193_v29 = vpop.eup %9214 }
0x2cef   : > { %8552 = vmatpush3.bf16.msra.mxu0 %v5867_v2  ;;  %v5836_v18 = vsel %vm886_vm2, %v11193_v29, 0.0 }
0x2cf0   : > { %8553 = vmatprep.subr.bf16.mxu0 %v5869_v8  ;;  %v11198_v47 = vpop.eup %9216 }
0x2cf1   : > { %v5968_v17 = vpop.permute.xlu1 %5967  ;;  %v5830_v36 = vsel %vm886_vm2, %v11198_v47, 0.0 }
0x2cf2   : > { %5822 = vadd.xlane.f32.xlu0 %v5821_v46  ;;  %v5988_v1 = vsel %vm788_vm1, %v5968_v17, 0 }
0x2cf3   : > { %8554 = vmatpush3.bf16.msra.mxu0 %v5869_v8 }
0x2cf4   : > { %8731 = vmatprep.subr.msk.bf16.mxu0 %vm788_vm1, %v5968_v17  ;;  %v11202_v42 = vpop.eup %9218 }
0x2cf5   : > { %v5839_v59 = vsel %vm886_vm2, %v11202_v42, 0.0  ;;  %v9221_v5 = vpop.eup %9220 }
0x2cf6   : > { %5837 = vadd.xlane.f32.xlu0 %v5836_v18  ;;  %v5833_v50 = vsel %vm886_vm2, %v9221_v5, 0.0 }
0x2cfa   : > { %5831 = vadd.xlane.f32.xlu0 %v5830_v36 }
0x2cfb   : > { %5971 = vrot.lane.b32.xlu1 %v11130_v26, %s11793_s23 }
0x2cfe   : > { %5840 = vadd.xlane.f32.xlu0 %v5839_v59 }
0x2d14   : > { %5969 = vrot.lane.b32.xlu0 %v11120_v54, %s11793_s23 }
0x2d18   : > { %5959 = vrot.lane.b32.xlu0 %v11122_v12, %s11795_s24 }
0x2d1c   : > { %5963 = vrot.lane.b32.xlu0 %v11130_v26, %s11795_s24 }
0x2d1f   : > { %5834 = vadd.xlane.f32.xlu1 %v5833_v50 }
0x2d30   : > { %5973 = vrot.lane.b32.xlu1 %v11128_v33, %s11793_s23 }
0x2d34   : > { %5961 = vrot.lane.b32.xlu1 %v11120_v54, %s11795_s24 }
0x2d38   : > { %5965 = vrot.lane.b32.xlu1 %v11128_v33, %s11795_s24 }
0x2d73   : > { %v5826_v37 = vpop.xlane.xlu1 %5825 }
0x2d77   : > { %v5820_v44 = vpop.xlane.xlu1 %5819 }
0x2d7b   : > { %v5829_v48 = vpop.xlane.xlu0 %5828  ;;  %v5972_v57 = vpop.permute.xlu1 %5971 }
0x2d7c   : > { %9222 = vrcp.f32 %v5829_v48  ;;  %v5994_v0 = vsel %vm788_vm1, %v5972_v57, 0 }
0x2d7d   : > { %9224 = vrcp.f32 %v5820_v44 }
0x2d7e   : > { %9226 = vrcp.f32 %v5826_v37 }
0x2d7f   : > { %v5823_v14 = vpop.xlane.xlu0 %5822 }
0x2d80   : > { %9228 = vrcp.f32 %v5823_v14 }
0x2d83   : > { %v5838_v38 = vpop.xlane.xlu0 %5837 }
0x2d86   : > { %v9223_v49 = vpop.eup %9222 }
0x2d87   : > { %v5832_v21 = vpop.xlane.xlu0 %5831  ;;  %v9225_v13 = vpop.eup %9224  ;;  %v5853_v23 = vmul.f32 %v9223_v49, %v9211_v60 }
0x2d88   : > { %v9227_v52 = vpop.eup %9226  ;;  %v5850_v19 = vmul.f32 %v9225_v13, %v11187_v20 }
0x2d89   : > { %v5852_v4 = vmul.f32 %v9227_v52, %v11183_v31 }
0x2d8a   : > { %v9229_v63 = vpop.eup %9228 }
0x2d8b   : > { %v5841_v35 = vpop.xlane.xlu0 %5840  ;;  %v5851_v56 = vmul.f32 %v9229_v63, %v9213_v15  ;;  %v5859_v10 = vpack.c.bf16 %v5853_v23, %v5852_v4 }
0x2d8c   : > { %9230 = vrcp.f32 %v5841_v35 }
0x2d8d   : > { %v5858_v3 = vpack.c.bf16 %v5851_v56, %v5850_v19  ;;  %9232 = vrcp.f32 %v5832_v21 }
0x2d8e   : > { %9234 = vrcp.f32 %v5838_v38 }
0x2d8f   : > { %8555 = vmatprep.mubr.msk.bf16.mxu0 %vm886_vm2, %v5858_v3  ;;  %v5970_v24 = vpop.permute.xlu0 %5969 }
0x2d90   : > { %8556 = vmatmul.mubr.msk.bf16.vlgmr.msra.gmra.mrb[132].mxu0 %vm886_vm2, %v5859_v10  ;;  %v5991_v28 = vsel %vm788_vm1, %v5970_v24, 0 }
0x2d91   : > { %8564 = vmatpush3.bf16.xpose.msra.mxu0 %v5988_v1 }
0x2d92   : > { %8732 = vmatprep.subr.msk.bf16.mxu0 %vm788_vm1, %v5970_v24 }
0x2d93   : > { %v5960_v60 = vpop.permute.xlu0 %5959 }
0x2d96   : > { %v9231_v43 = vpop.eup %9230 }
0x2d97   : > { %v9233_v32 = vpop.eup %9232  ;;  %v5857_v20 = vmul.f32 %v9231_v43, %v11202_v42  ;;  %v5964_v8 = vpop.permute.xlu0 %5963 }
0x2d98   : > { %v9235_v41 = vpop.eup %9234  ;;  %v5854_v11 = vmul.f32 %v9233_v32, %v11198_v47 }
0x2d99   : > { %8566 = vmatpush3.bf16.xpose.msra.mxu0 %v5991_v28  ;;  %v5856_v2 = vmul.f32 %v9235_v41, %v11193_v29 }
0x2d9a   : > { %8733 = vmatprep.subr.msk.bf16.mxu0 %vm788_vm1, %v5972_v57 }
0x2d9b   : > { %v5861_v39 = vpack.c.bf16 %v5857_v20, %v5856_v2 }
0x2da1   : > { %8568 = vmatpush3.bf16.xpose.msra.mxu0 %v5994_v0 }
0x2dac   : > { %v5835_v34 = vpop.xlane.xlu1 %5834 }
0x2dad   : > { %9236 = vrcp.f32 %v5835_v34 }
0x2db0   : > { %v5974_v31 = vpop.permute.xlu1 %5973 }
0x2db1   : > { %8734 = vmatprep.subr.msk.bf16.mxu0 %vm788_vm1, %v5974_v31  ;;  %v5997_v40 = vsel %vm788_vm1, %v5974_v31, 0 }
0x2db2   : > { %8570 = vmatpush3.bf16.xpose.msra.mxu0 %v5997_v40 }
0x2db4   : > { %v5962_v61 = vpop.permute.xlu1 %5961 }
0x2db7   : > { %v9237_v16 = vpop.eup %9236 }
0x2db8   : > { %v5855_v27 = vmul.f32 %v9237_v16, %v9221_v5  ;;  %v5966_v30 = vpop.permute.xlu1 %5965 }
0x2dba   : > { %v5860_v51 = vpack.c.bf16 %v5855_v27, %v5854_v11 }
0x2dbc   : > { %8559 = vmatprep.mubr.msk.bf16.mxu0 %vm886_vm2, %v5860_v51 }
0x2dbd   : > { %8560 = vmatmul.mubr.msk.bf16.gmra.mrb[136].mxu0 %vm886_vm2, %v5861_v39 }
0x2dbe   : > { %8571 = vmatprep.mubr.msk.bf16.mxu0 %vm788_vm1, %v5960_v60 }
0x2dc5   : > { %8572 = vmatmul.mubr.msk.bf16.vlgmr.msra.gmra.mrb[140].mxu0 %vm788_vm1, %v5962_v61 }
0x2dc6   : > { %8575 = vmatprep.mubr.msk.bf16.mxu0 %vm788_vm1, %v5964_v8 }
0x2dcd   : > { %8576 = vmatmul.mubr.msk.bf16.gmra.mrb[144].mxu0 %vm788_vm1, %v5966_v30 }
0x2e63   : > { %v8557_v15 = vpop.f32.mrb[132].mxu0 }
0x2e64   : > { %5953 = vst.msk [vmem:[#allocation2 + $0x10] sm:$0xff] %vm788_vm1, %v8557_v15  ;;  %v5920_v46 = vpop.f32.mrb[133].mxu0 }
0x2e65   : > { %5951 = vst.msk [vmem:[#allocation2] sm:$0xff] %vm788_vm1, %v5920_v46  ;;  %v8558_v29 = vpop.f32.mrb[134].mxu0 }
0x2e66   : > { %5954 = vst.msk [vmem:[#allocation2 + $0x18] sm:$0xff] %vm788_vm1, %v8558_v29  ;;  %v5923_v17 = vpop.f32.mrb[135].mxu0 }
0x2e67   : > { %5952 = vst.msk [vmem:[#allocation2 + $0x8] sm:$0xff] %vm788_vm1, %v5923_v17 }
0x2e90   : > { %v8561_v18 = vpop.f32.mrb[136].mxu0 }
0x2e91   : > { %5957 = vst.msk [vmem:[#allocation2 + $0x30] sm:$0xff] %vm788_vm1, %v8561_v18  ;;  %v5936_v47 = vpop.f32.mrb[137].mxu0 }
0x2e92   : > { %5955 = vst.msk [vmem:[#allocation2 + $0x20] sm:$0xff] %vm788_vm1, %v5936_v47  ;;  %v8562_v36 = vpop.f32.mrb[138].mxu0 }
0x2e93   : > { %5958 = vst.msk [vmem:[#allocation2 + $0x38] sm:$0xff] %vm788_vm1, %v8562_v36  ;;  %v5939_v42 = vpop.f32.mrb[139].mxu0 }
0x2e94   : > { %5956 = vst.msk [vmem:[#allocation2 + $0x28] sm:$0xff] %vm788_vm1, %v5939_v42 }
0x2e98   : > { %v8573_v59 = vpop.f32.mrb[140].mxu0 }
0x2e99   : > { %v6066_v53 = vmul.f32 0.35355338, %v8573_v59  ;;  %v6033_v58 = vpop.f32.mrb[141].mxu0 }
0x2e9a   : > { %v8574_v5 = vpop.f32.mrb[142].mxu0  ;;  %v6064_v50 = vmul.f32 0.35355338, %v6033_v58 }
0x2e9b   : > { %v6036_v37 = vpop.f32.mrb[143].mxu0  ;;  %v6078_v44 = vsel %vm886_vm2, %v6066_v53, -inf  ;;  %v6067_v38 = vmul.f32 0.35355338, %v8574_v5 }
0x2e9c   : > { %v6065_v48 = vmul.f32 0.35355338, %v6036_v37  ;;  %6079 = vmax.xlane.f32.xlu0 %v6078_v44  ;;  %v6072_v49 = vsel %vm886_vm2, %v6064_v50, -inf }
0x2e9d   : > { %v6081_v19 = vsel %vm886_vm2, %v6067_v38, -inf }
0x2e9e   : > { %v6075_v14 = vsel %vm886_vm2, %v6065_v48, -inf }
0x2e9f   : > { %6076 = vmax.xlane.f32.xlu1 %v6075_v14 }
0x2ea0   : > { %6073 = vmax.xlane.f32.xlu0 %v6072_v49  ;;  %v8577_v21 = vpop.f32.mrb[144].mxu0 }
0x2ea1   : > { %v6070_v13 = vmul.f32 0.35355338, %v8577_v21  ;;  %v6049_v52 = vpop.f32.mrb[145].mxu0 }
0x2ea2   : > { %v8578_v63 = vpop.f32.mrb[146].mxu0  ;;  %v6068_v23 = vmul.f32 0.35355338, %v6049_v52 }
0x2ea3   : > { %v6052_v35 = vpop.f32.mrb[147].mxu0  ;;  %v6090_v56 = vsel %vm886_vm2, %v6070_v13, -inf  ;;  %v6071_v10 = vmul.f32 0.35355338, %v8578_v63 }
0x2ea4   : > { %v11255_v4 = vmul.f32 0.35355338, %v6052_v35  ;;  %6082 = vmax.xlane.f32.xlu0 %v6081_v19  ;;  %6091 = vmax.xlane.f32.xlu1 %v6090_v56  ;;  %v6084_v24 = vsel %vm886_vm2, %v6068_v23, -inf }
0x2ea5   : > { %v6093_v1 = vsel %vm886_vm2, %v6071_v10, -inf }
0x2ea6   : > { %v6087_v3 = vsel %vm886_vm2, %v11255_v4, -inf }
0x2ea8   : > { %6085 = vmax.xlane.f32.xlu1 %v6084_v24  ;;  %6088 = vmax.xlane.f32.xlu0 %v6087_v3 }
0x2eac   : > { %6094 = vmax.xlane.f32.xlu0 %v6093_v1 }
0x2eb9   : > { %6164 = vrot.lane.b32.xlu1 %v11122_v12, %s11782_s29 }
0x2ebd   : > { %6168 = vrot.lane.b32.xlu1 %v11130_v26, %s11782_s29 }
0x2ec1   : > { %6170 = vrot.lane.b32.xlu1 %v11128_v33, %s11782_s29 }
0x2ec2   : > { %6166 = vrot.lane.b32.xlu0 %v11120_v54, %s11782_s29 }
0x2ec5   : > { %6301 = vrot.lane.b32.xlu1 %v11122_v12, %s11783_s20 }
0x2f29   : > { %v6080_v28 = vpop.xlane.xlu0 %6079 }
0x2f2a   : > { %v6098_v57 = vsub.f32 %v6066_v53, %v6080_v28 }
0x2f2c   : > { %v6108_v0 = vmul.f32 1.442695, %v6098_v57  ;;  %v6077_v34 = vpop.xlane.xlu1 %6076 }
0x2f2d   : > { %v6074_v31 = vpop.xlane.xlu0 %6073  ;;  %v6097_v32 = vsub.f32 %v6065_v48, %v6077_v34 }
0x2f2e   : > { %9238 = vpow2.f32 %v6108_v0  ;;  %v6096_v40 = vsub.f32 %v6064_v50, %v6074_v31 }
0x2f2f   : > { %v6106_v27 = vmul.f32 1.442695, %v6097_v32 }
0x2f30   : > { %v6104_v43 = vmul.f32 1.442695, %v6096_v40 }
0x2f31   : > { %v6092_v41 = vpop.xlane.xlu1 %6091  ;;  %v6083_v16 = vpop.xlane.xlu0 %6082 }
0x2f32   : > { %9240 = vpow2.f32 %v6104_v43  ;;  %v6099_v20 = vsub.f32 %v6067_v38, %v6083_v16  ;;  %v6102_v2 = vsub.f32 %v6070_v13, %v6092_v41 }
0x2f34   : > { %v6110_v11 = vmul.f32 1.442695, %v6099_v20  ;;  %v6116_v61 = vmul.f32 1.442695, %v6102_v2 }
0x2f35   : > { %v6086_v51 = vpop.xlane.xlu1 %6085  ;;  %v6089_v39 = vpop.xlane.xlu0 %6088 }
0x2f36   : > { %9242 = vpow2.f32 %v6110_v11  ;;  %v6100_v8 = vsub.f32 %v6068_v23, %v6086_v51  ;;  %v6101_v52 = vsub.f32 %v11255_v4, %v6089_v39 }
0x2f37   : > { %9244 = vpow2.f32 %v6106_v27 }
0x2f38   : > { %v11271_v60 = vpop.eup %9238  ;;  %9246 = vpow2.f32 %v6116_v61  ;;  %v6112_v17 = vmul.f32 1.442695, %v6100_v8  ;;  %v6114_v63 = vmul.f32 1.442695, %v6101_v52 }
0x2f39   : > { %v6165_v30 = vpop.permute.xlu1 %6164  ;;  %v6095_v15 = vpop.xlane.xlu0 %6094  ;;  %v6126_v46 = vsel %vm886_vm2, %v11271_v60, 0.0 }
0x2f3a   : > { %8579 = vmatprep.subr.bf16.mxu1 %v6165_v30  ;;  %6127 = vadd.xlane.f32.xlu1 %v6126_v46  ;;  %v6103_v18 = vsub.f32 %v6071_v10, %v6095_v15  ;;  %9248 = vpow2.f32 %v6112_v17 }
0x2f3b   : > { %8580 = vmatpush3.bf16.msra.mxu1 %v6165_v30 }
0x2f3c   : > { %v11275_v29 = vpop.eup %9240  ;;  %v6118_v53 = vmul.f32 1.442695, %v6103_v18 }
0x2f3d   : > { %v6169_v47 = vpop.permute.xlu1 %6168  ;;  %v6167_v36 = vpop.permute.xlu0 %6166  ;;  %v6120_v42 = vsel %vm886_vm2, %v11275_v29, 0.0 }
0x2f3e   : > { %6121 = vadd.xlane.f32.xlu1 %v6120_v42  ;;  %8581 = vmatprep.subr.bf16.mxu1 %v6167_v36  ;;  %9250 = vpow2.f32 %v6118_v53 }
0x2f3f   : > { %8582 = vmatpush3.bf16.msra.mxu1 %v6167_v36  ;;  %9252 = vpow2.f32 %v6114_v63 }
0x2f40   : > { %8583 = vmatprep.subr.bf16.mxu1 %v6169_v47  ;;  %v9243_v59 = vpop.eup %9242 }
0x2f41   : > { %v6171_v58 = vpop.permute.xlu1 %6170  ;;  %v6129_v5 = vsel %vm886_vm2, %v9243_v59, 0.0  ;;  %v9245_v50 = vpop.eup %9244 }
0x2f42   : > { %6130 = vadd.xlane.f32.xlu0 %v6129_v5  ;;  %v6123_v37 = vsel %vm886_vm2, %v9245_v50, 0.0  ;;  %v11281_v44 = vpop.eup %9246 }
0x2f43   : > { %8584 = vmatpush3.bf16.msra.mxu1 %v6169_v47  ;;  %v6138_v14 = vsel %vm886_vm2, %v11281_v44, 0.0 }
0x2f44   : > { %8585 = vmatprep.subr.bf16.mxu1 %v6171_v58  ;;  %v11286_v38 = vpop.eup %9248 }
0x2f45   : > { %v6302_v48 = vpop.permute.xlu1 %6301  ;;  %v6132_v49 = vsel %vm886_vm2, %v11286_v38, 0.0 }
0x2f46   : > { %6124 = vadd.xlane.f32.xlu0 %v6123_v37  ;;  %v6322_v11 = vsel %vm788_vm1, %v6302_v48, 0 }
0x2f47   : > { %8586 = vmatpush3.bf16.msra.mxu1 %v6171_v58 }
0x2f48   : > { %8735 = vmatprep.subr.msk.bf16.mxu1 %vm788_vm1, %v6302_v48  ;;  %v11290_v21 = vpop.eup %9250 }
0x2f49   : > { %v6141_v13 = vsel %vm886_vm2, %v11290_v21, 0.0  ;;  %v9253_v23 = vpop.eup %9252 }
0x2f4a   : > { %6139 = vadd.xlane.f32.xlu0 %v6138_v14  ;;  %v6135_v35 = vsel %vm886_vm2, %v9253_v23, 0.0 }
0x2f4e   : > { %6133 = vadd.xlane.f32.xlu0 %v6132_v49 }
0x2f4f   : > { %6305 = vrot.lane.b32.xlu1 %v11130_v26, %s11783_s20 }
0x2f52   : > { %6142 = vadd.xlane.f32.xlu0 %v6141_v13 }
0x2f68   : > { %6303 = vrot.lane.b32.xlu0 %v11120_v54, %s11783_s20 }
0x2f6c   : > { %6293 = vrot.lane.b32.xlu0 %v11122_v12, %s11784_s21 }
0x2f70   : > { %6297 = vrot.lane.b32.xlu0 %v11130_v26, %s11784_s21 }
0x2f73   : > { %6136 = vadd.xlane.f32.xlu1 %v6135_v35 }
0x2f84   : > { %6307 = vrot.lane.b32.xlu1 %v11128_v33, %s11783_s20 }
0x2f88   : > { %6295 = vrot.lane.b32.xlu1 %v11120_v54, %s11784_s21 }
0x2f8c   : > { %6299 = vrot.lane.b32.xlu1 %v11128_v33, %s11784_s21 }
0x2fc7   : > { %v6128_v19 = vpop.xlane.xlu1 %6127 }
0x2fcb   : > { %v6122_v56 = vpop.xlane.xlu1 %6121 }
0x2fcf   : > { %v6131_v4 = vpop.xlane.xlu0 %6130  ;;  %v6306_v2 = vpop.permute.xlu1 %6305 }
0x2fd0   : > { %9254 = vrcp.f32 %v6131_v4  ;;  %v6328_v51 = vsel %vm788_vm1, %v6306_v2, 0 }
0x2fd1   : > { %9256 = vrcp.f32 %v6122_v56 }
0x2fd2   : > { %9258 = vrcp.f32 %v6128_v19 }
0x2fd3   : > { %v6125_v3 = vpop.xlane.xlu0 %6124 }
0x2fd4   : > { %9260 = vrcp.f32 %v6125_v3 }
0x2fd7   : > { %v6140_v10 = vpop.xlane.xlu0 %6139 }
0x2fda   : > { %v9255_v24 = vpop.eup %9254 }
0x2fdb   : > { %v6134_v1 = vpop.xlane.xlu0 %6133  ;;  %v9257_v28 = vpop.eup %9256  ;;  %v6155_v34 = vmul.f32 %v9255_v24, %v9243_v59 }
0x2fdc   : > { %v9259_v57 = vpop.eup %9258  ;;  %v6152_v40 = vmul.f32 %v9257_v28, %v11275_v29 }
0x2fdd   : > { %v6154_v32 = vmul.f32 %v9259_v57, %v11271_v60 }
0x2fde   : > { %v9261_v0 = vpop.eup %9260 }
0x2fdf   : > { %v6143_v31 = vpop.xlane.xlu0 %6142  ;;  %v6153_v43 = vmul.f32 %v9261_v0, %v9245_v50  ;;  %v6161_v16 = vpack.c.bf16 %v6155_v34, %v6154_v32 }
0x2fe0   : > { %9262 = vrcp.f32 %v6143_v31 }
0x2fe1   : > { %v6160_v41 = vpack.c.bf16 %v6153_v43, %v6152_v40  ;;  %9264 = vrcp.f32 %v6134_v1 }
0x2fe2   : > { %9266 = vrcp.f32 %v6140_v10 }
0x2fe3   : > { %8587 = vmatprep.mubr.msk.bf16.mxu1 %vm886_vm2, %v6160_v41  ;;  %v6304_v20 = vpop.permute.xlu0 %6303 }
0x2fe4   : > { %8588 = vmatmul.mubr.msk.bf16.vlgmr.msra.gmra.mrb[128].mxu1 %vm886_vm2, %v6161_v16  ;;  %v6325_v27 = vsel %vm788_vm1, %v6304_v20, 0 }
0x2fe5   : > { %8596 = vmatpush3.bf16.xpose.msra.mxu1 %v6322_v11 }
0x2fe6   : > { %8736 = vmatprep.subr.msk.bf16.mxu1 %vm788_vm1, %v6304_v20 }
0x2fe7   : > { %v6294_v59 = vpop.permute.xlu0 %6293 }
0x2fea   : > { %v9263_v8 = vpop.eup %9262 }
0x2feb   : > { %v9265_v30 = vpop.eup %9264  ;;  %v6159_v29 = vmul.f32 %v9263_v8, %v11290_v21  ;;  %v6298_v58 = vpop.permute.xlu0 %6297 }
0x2fec   : > { %v9267_v15 = vpop.eup %9266  ;;  %v6156_v17 = vmul.f32 %v9265_v30, %v11286_v38 }
0x2fed   : > { %8598 = vmatpush3.bf16.xpose.msra.mxu1 %v6325_v27  ;;  %v6158_v47 = vmul.f32 %v9267_v15, %v11281_v44 }
0x2fee   : > { %8737 = vmatprep.subr.msk.bf16.mxu1 %vm788_vm1, %v6306_v2 }
0x2fef   : > { %v6163_v42 = vpack.c.bf16 %v6159_v29, %v6158_v47 }
0x2ff5   : > { %8600 = vmatpush3.bf16.xpose.msra.mxu1 %v6328_v51 }
0x3000   : > { %v6137_v39 = vpop.xlane.xlu1 %6136 }
0x3001   : > { %9268 = vrcp.f32 %v6137_v39 }
0x3004   : > { %v6308_v60 = vpop.permute.xlu1 %6307 }
0x3005   : > { %v6331_v61 = vsel %vm788_vm1, %v6308_v60, 0  ;;  %8738 = vmatprep.subr.msk.bf16.mxu1 %vm788_vm1, %v6308_v60 }
0x3006   : > { %8602 = vmatpush3.bf16.xpose.msra.mxu1 %v6331_v61 }
0x3008   : > { %v6296_v53 = vpop.permute.xlu1 %6295 }
0x300b   : > { %v9269_v46 = vpop.eup %9268 }
0x300c   : > { %v6157_v18 = vmul.f32 %v9269_v46, %v9253_v23  ;;  %v6300_v5 = vpop.permute.xlu1 %6299 }
0x300e   : > { %v6162_v36 = vpack.c.bf16 %v6157_v18, %v6156_v17 }
0x3010   : > { %8591 = vmatprep.mubr.msk.bf16.mxu1 %vm886_vm2, %v6162_v36 }
0x3011   : > { %8592 = vmatmul.mubr.msk.bf16.gmra.mrb[132].mxu1 %vm886_vm2, %v6163_v42 }
0x3012   : > { %8603 = vmatprep.mubr.msk.bf16.mxu1 %vm788_vm1, %v6294_v59 }
0x3019   : > { %8604 = vmatmul.mubr.msk.bf16.vlgmr.msra.gmra.mrb[136].mxu1 %vm788_vm1, %v6296_v53 }
0x301a   : > { %8607 = vmatprep.mubr.msk.bf16.mxu1 %vm788_vm1, %v6298_v58 }
0x3021   : > { %8608 = vmatmul.mubr.msk.bf16.gmra.mrb[140].mxu1 %vm788_vm1, %v6300_v5 }
0x30b7   : > { %v11330_v50 = vpop.f32.mrb[128].mxu1 }
0x30b8   : > { %v11332_v37 = vpop.f32.mrb[129].mxu1 }
0x30b9   : > { %v11334_v44 = vpop.f32.mrb[130].mxu1 }
0x30ba   : > { %v11336_v48 = vpop.f32.mrb[131].mxu1 }
0x30e4   : > { %v11338_v14 = vpop.f32.mrb[132].mxu1 }
0x30e5   : > { %v11340_v38 = vpop.f32.mrb[133].mxu1 }
0x30e6   : > { %v11342_v49 = vpop.f32.mrb[134].mxu1 }
0x30e7   : > { %v11344_v21 = vpop.f32.mrb[135].mxu1 }
0x30ec   : > { %v8605_v13 = vpop.f32.mrb[136].mxu1 }
0x30ed   : > { %v6400_v52 = vmul.f32 0.35355338, %v8605_v13  ;;  %v6367_v63 = vpop.f32.mrb[137].mxu1 }
0x30ee   : > { %v8606_v23 = vpop.f32.mrb[138].mxu1  ;;  %v6398_v35 = vmul.f32 0.35355338, %v6367_v63 }
0x30ef   : > { %v6370_v19 = vpop.f32.mrb[139].mxu1  ;;  %v6412_v56 = vsel %vm886_vm2, %v6400_v52, -inf  ;;  %v6401_v10 = vmul.f32 0.35355338, %v8606_v23 }
0x30f0   : > { %v6399_v4 = vmul.f32 0.35355338, %v6370_v19  ;;  %6413 = vmax.xlane.f32.xlu0 %v6412_v56  ;;  %v6406_v24 = vsel %vm886_vm2, %v6398_v35, -inf }
0x30f1   : > { %v6415_v40 = vsel %vm886_vm2, %v6401_v10, -inf }
0x30f2   : > { %v6409_v3 = vsel %vm886_vm2, %v6399_v4, -inf }
0x30f3   : > { %6410 = vmax.xlane.f32.xlu1 %v6409_v3 }
0x30f4   : > { %6407 = vmax.xlane.f32.xlu0 %v6406_v24  ;;  %v8609_v1 = vpop.f32.mrb[140].mxu1 }
0x30f5   : > { %v6404_v28 = vmul.f32 0.35355338, %v8609_v1  ;;  %v6383_v57 = vpop.f32.mrb[141].mxu1 }
0x30f6   : > { %v8610_v0 = vpop.f32.mrb[142].mxu1  ;;  %v6402_v34 = vmul.f32 0.35355338, %v6383_v57 }
0x30f7   : > { %v6386_v31 = vpop.f32.mrb[143].mxu1  ;;  %v6424_v43 = vsel %vm886_vm2, %v6404_v28, -inf  ;;  %v6405_v16 = vmul.f32 0.35355338, %v8610_v0 }
0x30f8   : > { %v11351_v32 = vmul.f32 0.35355338, %v6386_v31  ;;  %6416 = vmax.xlane.f32.xlu0 %v6415_v40  ;;  %6425 = vmax.xlane.f32.xlu1 %v6424_v43  ;;  %v6418_v20 = vsel %vm886_vm2, %v6402_v34, -inf }
0x30f9   : > { %v6427_v11 = vsel %vm886_vm2, %v6405_v16, -inf }
0x30fa   : > { %v6421_v41 = vsel %vm886_vm2, %v11351_v32, -inf }
0x30fc   : > { %6419 = vmax.xlane.f32.xlu1 %v6418_v20  ;;  %6422 = vmax.xlane.f32.xlu0 %v6421_v41 }
0x3100   : > { %6428 = vmax.xlane.f32.xlu0 %v6427_v11 }
0x310d   : > { %6498 = vrot.lane.b32.xlu1 %v11122_v12, %s11785_s30 }
0x3111   : > { %6502 = vrot.lane.b32.xlu1 %v11130_v26, %s11785_s30 }
0x3115   : > { %6504 = vrot.lane.b32.xlu1 %v11128_v33, %s11785_s30 }
0x3116   : > { %6500 = vrot.lane.b32.xlu0 %v11120_v54, %s11785_s30 }
0x3119   : > { %6635 = vrot.lane.b32.xlu1 %v11122_v12, %s11786_s18 }
0x317d   : > { %v6414_v27 = vpop.xlane.xlu0 %6413 }
0x317e   : > { %v6432_v2 = vsub.f32 %v6400_v52, %v6414_v27 }
0x3180   : > { %v6442_v51 = vmul.f32 1.442695, %v6432_v2  ;;  %v6411_v39 = vpop.xlane.xlu1 %6410 }
0x3181   : > { %v6408_v60 = vpop.xlane.xlu0 %6407  ;;  %v6431_v30 = vsub.f32 %v6399_v4, %v6411_v39 }
0x3182   : > { %9270 = vpow2.f32 %v6442_v51  ;;  %v6430_v61 = vsub.f32 %v6398_v35, %v6408_v60 }
0x3183   : > { %v6440_v18 = vmul.f32 1.442695, %v6431_v30 }
0x3184   : > { %v6438_v8 = vmul.f32 1.442695, %v6430_v61 }
0x3185   : > { %v6426_v15 = vpop.xlane.xlu1 %6425  ;;  %v6417_v46 = vpop.xlane.xlu0 %6416 }
0x3186   : > { %9272 = vpow2.f32 %v6438_v8  ;;  %v6433_v29 = vsub.f32 %v6401_v10, %v6417_v46  ;;  %v6436_v47 = vsub.f32 %v6404_v28, %v6426_v15 }
0x3188   : > { %v6444_v17 = vmul.f32 1.442695, %v6433_v29  ;;  %v6450_v53 = vmul.f32 1.442695, %v6436_v47 }
0x3189   : > { %v6420_v36 = vpop.xlane.xlu1 %6419  ;;  %v6423_v42 = vpop.xlane.xlu0 %6422 }
0x318a   : > { %9274 = vpow2.f32 %v6444_v17  ;;  %v6434_v58 = vsub.f32 %v6402_v34, %v6420_v36  ;;  %v6435_v20 = vsub.f32 %v11351_v32, %v6423_v42 }
0x318b   : > { %9276 = vpow2.f32 %v6440_v18 }
0x318c   : > { %v11367_v59 = vpop.eup %9270  ;;  %9278 = vpow2.f32 %v6450_v53  ;;  %v6446_v23 = vmul.f32 1.442695, %v6434_v58  ;;  %v6448_v11 = vmul.f32 1.442695, %v6435_v20 }
0x318d   : > { %v6499_v5 = vpop.permute.xlu1 %6498  ;;  %v6429_v13 = vpop.xlane.xlu0 %6428  ;;  %v6460_v52 = vsel %vm886_vm2, %v11367_v59, 0.0 }
0x318e   : > { %8611 = vmatprep.subr.bf16.mxu0 %v6499_v5  ;;  %6461 = vadd.xlane.f32.xlu1 %v6460_v52  ;;  %v6437_v35 = vsub.f32 %v6405_v16, %v6429_v13  ;;  %9280 = vpow2.f32 %v6446_v23 }
0x318f   : > { %8612 = vmatpush3.bf16.msra.mxu0 %v6499_v5 }
0x3190   : > { %v11371_v63 = vpop.eup %9272  ;;  %v6452_v10 = vmul.f32 1.442695, %v6437_v35 }
0x3191   : > { %v6503_v19 = vpop.permute.xlu1 %6502  ;;  %v6501_v56 = vpop.permute.xlu0 %6500  ;;  %v6454_v4 = vsel %vm886_vm2, %v11371_v63, 0.0 }
0x3192   : > { %6455 = vadd.xlane.f32.xlu1 %v6454_v4  ;;  %8613 = vmatprep.subr.bf16.mxu0 %v6501_v56  ;;  %9282 = vpow2.f32 %v6452_v10 }
0x3193   : > { %8614 = vmatpush3.bf16.msra.mxu0 %v6501_v56  ;;  %9284 = vpow2.f32 %v6448_v11 }
0x3194   : > { %8615 = vmatprep.subr.bf16.mxu0 %v6503_v19  ;;  %v9275_v3 = vpop.eup %9274 }
0x3195   : > { %v6505_v24 = vpop.permute.xlu1 %6504  ;;  %v6463_v1 = vsel %vm886_vm2, %v9275_v3, 0.0  ;;  %v9277_v28 = vpop.eup %9276 }
0x3196   : > { %6464 = vadd.xlane.f32.xlu0 %v6463_v1  ;;  %v6457_v57 = vsel %vm886_vm2, %v9277_v28, 0.0  ;;  %v11377_v0 = vpop.eup %9278 }
0x3197   : > { %8616 = vmatpush3.bf16.msra.mxu0 %v6503_v19  ;;  %v6472_v31 = vsel %vm886_vm2, %v11377_v0, 0.0 }
0x3198   : > { %8617 = vmatprep.subr.bf16.mxu0 %v6505_v24  ;;  %v11382_v40 = vpop.eup %9280 }
0x3199   : > { %v6636_v34 = vpop.permute.xlu1 %6635  ;;  %v6466_v43 = vsel %vm886_vm2, %v11382_v40, 0.0 }
0x319a   : > { %6458 = vadd.xlane.f32.xlu0 %v6457_v57  ;;  %v6656_v13 = vsel %vm788_vm1, %v6636_v34, 0 }
0x319b   : > { %8618 = vmatpush3.bf16.msra.mxu0 %v6505_v24 }
0x319c   : > { %8739 = vmatprep.subr.msk.bf16.mxu0 %vm788_vm1, %v6636_v34  ;;  %v11386_v41 = vpop.eup %9282 }
0x319d   : > { %v6475_v16 = vsel %vm886_vm2, %v11386_v41, 0.0  ;;  %v9285_v27 = vpop.eup %9284 }
0x319e   : > { %6473 = vadd.xlane.f32.xlu0 %v6472_v31  ;;  %v6469_v2 = vsel %vm886_vm2, %v9285_v27, 0.0 }
0x31a2   : > { %6467 = vadd.xlane.f32.xlu0 %v6466_v43 }
0x31a3   : > { %6639 = vrot.lane.b32.xlu1 %v11130_v26, %s11786_s18 }
0x31a6   : > { %6476 = vadd.xlane.f32.xlu0 %v6475_v16 }
0x31bc   : > { %6637 = vrot.lane.b32.xlu0 %v11120_v54, %s11786_s18 }
0x31c0   : > { %6627 = vrot.lane.b32.xlu0 %v11122_v12, %s11787_s1 }
0x31c4   : > { %6631 = vrot.lane.b32.xlu0 %v11130_v26, %s11787_s1 }
0x31c7   : > { %6470 = vadd.xlane.f32.xlu1 %v6469_v2 }
0x31d8   : > { %6641 = vrot.lane.b32.xlu1 %v11128_v33, %s11786_s18 }
0x31dc   : > { %6629 = vrot.lane.b32.xlu1 %v11120_v54, %s11787_s1 }
0x31e0   : > { %6633 = vrot.lane.b32.xlu1 %v11128_v33, %s11787_s1 }
0x321b   : > { %v6462_v32 = vpop.xlane.xlu1 %6461 }
0x321f   : > { %v6456_v51 = vpop.xlane.xlu1 %6455 }
0x3223   : > { %v6465_v39 = vpop.xlane.xlu0 %6464  ;;  %v6640_v23 = vpop.permute.xlu1 %6639 }
0x3224   : > { %9286 = vrcp.f32 %v6465_v39 }
0x3225   : > { %9288 = vrcp.f32 %v6456_v51 }
0x3226   : > { %9290 = vrcp.f32 %v6462_v32 }
0x3227   : > { %v6459_v60 = vpop.xlane.xlu0 %6458 }
0x3228   : > { %9292 = vrcp.f32 %v6459_v60 }
0x322b   : > { %v6474_v61 = vpop.xlane.xlu0 %6473 }
0x322e   : > { %v9287_v8 = vpop.eup %9286 }
0x322f   : > { %v6468_v30 = vpop.xlane.xlu0 %6467  ;;  %v9289_v15 = vpop.eup %9288  ;;  %v6489_v17 = vmul.f32 %v9287_v8, %v9275_v3 }
0x3230   : > { %v9291_v46 = vpop.eup %9290  ;;  %v6486_v47 = vmul.f32 %v9289_v15, %v11371_v63 }
0x3231   : > { %v6488_v42 = vmul.f32 %v9291_v46, %v11367_v59  ;;  %v6662_v59 = vsel %vm788_vm1, %v6640_v23, 0 }
0x3232   : > { %v9293_v29 = vpop.eup %9292 }
0x3233   : > { %v6477_v18 = vpop.xlane.xlu0 %6476  ;;  %v6487_v36 = vmul.f32 %v9293_v29, %v9277_v28  ;;  %v6495_v58 = vpack.c.bf16 %v6489_v17, %v6488_v42 }
0x3234   : > { %9294 = vrcp.f32 %v6477_v18 }
0x3235   : > { %v6494_v53 = vpack.c.bf16 %v6487_v36, %v6486_v47  ;;  %9296 = vrcp.f32 %v6468_v30 }
0x3236   : > { %9298 = vrcp.f32 %v6474_v61 }
0x3237   : > { %8619 = vmatprep.mubr.msk.bf16.mxu0 %vm886_vm2, %v6494_v53  ;;  %v6638_v5 = vpop.permute.xlu0 %6637 }
0x3238   : > { %8620 = vmatmul.mubr.msk.bf16.vlgmr.msra.gmra.mrb[148].mxu0 %vm886_vm2, %v6495_v58  ;;  %v6659_v52 = vsel %vm788_vm1, %v6638_v5, 0 }
0x3239   : > { %8628 = vmatpush3.bf16.xpose.msra.mxu0 %v6656_v13 }
0x323a   : > { %8740 = vmatprep.subr.msk.bf16.mxu0 %vm788_vm1, %v6638_v5 }
0x323b   : > { %v6628_v43 = vpop.permute.xlu0 %6627 }
0x323e   : > { %v9295_v56 = vpop.eup %9294 }
0x323f   : > { %v9297_v4 = vpop.eup %9296  ;;  %v6493_v24 = vmul.f32 %v9295_v56, %v11386_v41  ;;  %v6632_v20 = vpop.permute.xlu0 %6631 }
0x3240   : > { %v9299_v3 = vpop.eup %9298  ;;  %v6490_v1 = vmul.f32 %v9297_v4, %v11382_v40 }
0x3241   : > { %8630 = vmatpush3.bf16.xpose.msra.mxu0 %v6659_v52  ;;  %v6492_v57 = vmul.f32 %v9299_v3, %v11377_v0 }
0x3242   : > { %8741 = vmatprep.subr.msk.bf16.mxu0 %vm788_vm1, %v6640_v23 }
0x3243   : > { %v6497_v31 = vpack.c.bf16 %v6493_v24, %v6492_v57 }
0x3249   : > { %8632 = vmatpush3.bf16.xpose.msra.mxu0 %v6662_v59 }
0x3254   : > { %v6471_v63 = vpop.xlane.xlu1 %6470 }
0x3255   : > { %9300 = vrcp.f32 %v6471_v63 }
0x3258   : > { %v6642_v35 = vpop.permute.xlu1 %6641 }
0x3259   : > { %v6665_v19 = vsel %vm788_vm1, %v6642_v35, 0  ;;  %8742 = vmatprep.subr.msk.bf16.mxu0 %vm788_vm1, %v6642_v35 }
0x325a   : > { %8634 = vmatpush3.bf16.xpose.msra.mxu0 %v6665_v19 }
0x325c   : > { %v6630_v16 = vpop.permute.xlu1 %6629 }
0x325f   : > { %v9301_v10 = vpop.eup %9300 }
0x3260   : > { %v6491_v28 = vmul.f32 %v9301_v10, %v9285_v27  ;;  %v6634_v41 = vpop.permute.xlu1 %6633 }
0x3262   : > { %v6496_v34 = vpack.c.bf16 %v6491_v28, %v6490_v1 }
0x3264   : > { %8623 = vmatprep.mubr.msk.bf16.mxu0 %vm886_vm2, %v6496_v34 }
0x3265   : > { %8624 = vmatmul.mubr.msk.bf16.gmra.mrb[152].mxu0 %vm886_vm2, %v6497_v31 }
0x3266   : > { %8635 = vmatprep.mubr.msk.bf16.mxu0 %vm788_vm1, %v6628_v43 }
0x326d   : > { %8636 = vmatmul.mubr.msk.bf16.vlgmr.msra.gmra.mrb[156].mxu0 %vm788_vm1, %v6630_v16 }
0x326e   : > { %8639 = vmatprep.mubr.msk.bf16.mxu0 %vm788_vm1, %v6632_v20 }
0x3275   : > { %8640 = vmatmul.mubr.msk.bf16.gmra.mrb[160].mxu0 %vm788_vm1, %v6634_v41 }
0x330b   : > { %v11426_v40 = vpop.f32.mrb[148].mxu0 }
0x330c   : > { %v11428_v0 = vpop.f32.mrb[149].mxu0 }
0x330d   : > { %v11430_v11 = vpop.f32.mrb[150].mxu0 }
0x330e   : > { %v11432_v27 = vpop.f32.mrb[151].mxu0 }
0x3338   : > { %v11434_v2 = vpop.f32.mrb[152].mxu0 }
0x3339   : > { %v11436_v32 = vpop.f32.mrb[153].mxu0 }
0x333a   : > { %v11438_v51 = vpop.f32.mrb[154].mxu0 }
0x333b   : > { %v11440_v39 = vpop.f32.mrb[155].mxu0 }
0x3340   : > { %v8637_v60 = vpop.f32.mrb[156].mxu0 }
0x3341   : > { %v6701_v61 = vpop.f32.mrb[157].mxu0  ;;  %v6734_v46 = vmul.f32 0.35355338, %v8637_v60 }
0x3342   : > { %v6732_v8 = vmul.f32 0.35355338, %v6701_v61  ;;  %v8638_v30 = vpop.f32.mrb[158].mxu0 }
0x3343   : > { %v6704_v15 = vpop.f32.mrb[159].mxu0  ;;  %v6735_v47 = vmul.f32 0.35355338, %v8638_v30  ;;  %v6746_v42 = vsel %vm886_vm2, %v6734_v46, -inf }
0x3344   : > { %v6733_v29 = vmul.f32 0.35355338, %v6704_v15  ;;  %v6740_v17 = vsel %vm886_vm2, %v6732_v8, -inf }
0x3345   : > { %6741 = vmax.xlane.f32.xlu0 %v6740_v17  ;;  %v6749_v59 = vsel %vm886_vm2, %v6735_v47, -inf }
0x3346   : > { %v6743_v18 = vsel %vm886_vm2, %v6733_v29, -inf }
0x3347   : > { %6744 = vmax.xlane.f32.xlu1 %v6743_v18 }
0x3348   : > { %v8641_v36 = vpop.f32.mrb[160].mxu0 }
0x3349   : > { %6747 = vmax.xlane.f32.xlu0 %v6746_v42  ;;  %v6717_v53 = vpop.f32.mrb[161].mxu0  ;;  %v6738_v52 = vmul.f32 0.35355338, %v8641_v36 }
0x334a   : > { %v6736_v58 = vmul.f32 0.35355338, %v6717_v53  ;;  %v8642_v5 = vpop.f32.mrb[162].mxu0 }
0x334b   : > { %v6720_v13 = vpop.f32.mrb[163].mxu0  ;;  %v6739_v35 = vmul.f32 0.35355338, %v8642_v5  ;;  %v6758_v19 = vsel %vm886_vm2, %v6738_v52, -inf }
0x334c   : > { %v6737_v23 = vmul.f32 0.35355338, %v6720_v13  ;;  %v6752_v63 = vsel %vm886_vm2, %v6736_v58, -inf }
0x334d   : > { %6750 = vmax.xlane.f32.xlu0 %v6749_v59  ;;  %6753 = vmax.xlane.f32.xlu1 %v6752_v63  ;;  %v6761_v4 = vsel %vm886_vm2, %v6739_v35, -inf }
0x334e   : > { %v6755_v56 = vsel %vm886_vm2, %v6737_v23, -inf }
0x3351   : > { %6759 = vmax.xlane.f32.xlu1 %v6758_v19  ;;  %6756 = vmax.xlane.f32.xlu0 %v6755_v56 }
0x3355   : > { %6762 = vmax.xlane.f32.xlu0 %v6761_v4 }
0x3362   : > { %6832 = vrot.lane.b32.xlu1 %v11122_v12, %s11788_s22 }
0x33d2   : > { %v6742_v3 = vpop.xlane.xlu0 %6741 }
0x33d3   : > { %v6764_v10 = vsub.f32 %v6732_v8, %v6742_v3 }
0x33d4   : > { %v6745_v24 = vpop.xlane.xlu1 %6744 }
0x33d5   : > { %v6772_v57 = vmul.f32 1.442695, %v6764_v10  ;;  %v6765_v31 = vsub.f32 %v6733_v29, %v6745_v24 }
0x33d6   : > { %v6748_v1 = vpop.xlane.xlu0 %6747 }
0x33d7   : > { %v6766_v28 = vsub.f32 %v6734_v46, %v6748_v1  ;;  %v6774_v61 = vmul.f32 1.442695, %v6765_v31 }
0x33d9   : > { %v6776_v34 = vmul.f32 1.442695, %v6766_v28 }
0x33da   : > { %v6754_v43 = vpop.xlane.xlu1 %6753  ;;  %v6751_v16 = vpop.xlane.xlu0 %6750 }
0x33db   : > { %9302 = vpow2.f32 %v6776_v34  ;;  %v6767_v20 = vsub.f32 %v6735_v47, %v6751_v16  ;;  %v6768_v41 = vsub.f32 %v6736_v58, %v6754_v43 }
0x33dc   : > { %9304 = vpow2.f32 %v6772_v57 }
0x33dd   : > { %v6778_v60 = vmul.f32 1.442695, %v6767_v20  ;;  %v6780_v12 = vmul.f32 1.442695, %v6768_v41 }
0x33de   : > { %v6760_v30 = vpop.xlane.xlu1 %6759  ;;  %v6757_v15 = vpop.xlane.xlu0 %6756 }
0x33df   : > { %v6770_v17 = vsub.f32 %v6738_v52, %v6760_v30  ;;  %9306 = vpow2.f32 %v6778_v60  ;;  %v6769_v18 = vsub.f32 %v6737_v23, %v6757_v15 }
0x33e0   : > { %9308 = vpow2.f32 %v6774_v61 }
0x33e1   : > { %v6784_v8 = vmul.f32 1.442695, %v6770_v17  ;;  %v6782_v53 = vmul.f32 1.442695, %v6769_v18 }
0x33e2   : > { %v6833_v46 = vpop.permute.xlu1 %6832  ;;  %v6763_v36 = vpop.xlane.xlu0 %6762 }
0x33e3   : > { %9310 = vpow2.f32 %v6784_v8  ;;  %v6771_v29 = vsub.f32 %v6739_v35, %v6763_v36  ;;  %8643 = vmatprep.subr.bf16.mxu1 %v6833_v46 }
0x33e4   : > { %8644 = vmatpush3.bf16.msra.mxu1 %v6833_v46  ;;  %9312 = vpow2.f32 %v6780_v12 }
0x33e5   : > { %v11452_v42 = vpop.eup %9302  ;;  %v6786_v47 = vmul.f32 1.442695, %v6771_v29 }
0x33e6   : > { %v6794_v58 = vsel %vm886_vm2, %v11452_v42, 0.0  ;;  %v9305_v5 = vpop.eup %9304 }
0x33e7   : > { %9314 = vpow2.f32 %v6786_v47  ;;  %6795 = vadd.xlane.f32.xlu1 %v6794_v58  ;;  %v6788_v52 = vsel %vm886_vm2, %v9305_v5, 0.0 }
0x33e8   : > { %9316 = vpow2.f32 %v6782_v53 }
0x33e9   : > { %v11456_v13 = vpop.eup %9306 }
0x33ea   : > { %v6797_v23 = vsel %vm886_vm2, %v11456_v13, 0.0  ;;  %v9309_v59 = vpop.eup %9308 }
0x33eb   : > { %6789 = vadd.xlane.f32.xlu1 %v6788_v52  ;;  %6798 = vadd.xlane.f32.xlu0 %v6797_v23  ;;  %v6791_v56 = vsel %vm886_vm2, %v9309_v59, 0.0 }
0x33ed   : > { %v11461_v63 = vpop.eup %9310 }
0x33ee   : > { %v6806_v35 = vsel %vm886_vm2, %v11461_v63, 0.0  ;;  %v11465_v19 = vpop.eup %9312 }
0x33ef   : > { %6807 = vadd.xlane.f32.xlu1 %v6806_v35  ;;  %6792 = vadd.xlane.f32.xlu0 %v6791_v56  ;;  %v6800_v3 = vsel %vm886_vm2, %v11465_v19, 0.0 }
0x33f1   : > { %v11468_v4 = vpop.eup %9314 }
0x33f2   : > { %v6809_v10 = vsel %vm886_vm2, %v11468_v4, 0.0  ;;  %v11474_v24 = vpop.eup %9316 }
0x33f3   : > { %6801 = vadd.xlane.f32.xlu1 %v6800_v3  ;;  %6810 = vadd.xlane.f32.xlu0 %v6809_v10  ;;  %v6803_v1 = vsel %vm886_vm2, %v11474_v24, 0.0 }
0x33f7   : > { %6804 = vadd.xlane.f32.xlu0 %v6803_v1 }
0x3404   : > { %6836 = vrot.lane.b32.xlu1 %v11130_v26, %s11788_s22 }
0x3408   : > { %6838 = vrot.lane.b32.xlu1 %v11128_v33, %s11788_s22 }
0x340c   : > { %6263 = vrot.lane.b32.xlu1 %v11336_v48, %s11789_s0 }
0x340d   : > { %6834 = vrot.lane.b32.xlu0 %v11120_v54, %s11788_s22 }
0x3410   : > { %6267 = vrot.lane.b32.xlu1 %v11334_v44, %s11789_s0 }
0x3411   : > { %6261 = vrot.lane.b32.xlu0 %v11332_v37, %s11789_s0 }
0x3414   : > { %6597 = vrot.lane.b32.xlu1 %v11432_v27, %s11790_s26 }
0x3415   : > { %6265 = vrot.lane.b32.xlu0 %v11330_v50, %s11789_s0 }
0x3418   : > { %6601 = vrot.lane.b32.xlu1 %v11430_v11, %s11790_s26 }
0x3419   : > { %6595 = vrot.lane.b32.xlu0 %v11428_v0, %s11790_s26 }
0x341c   : > { %6271 = vrot.lane.b32.xlu1 %v11344_v21, %s11789_s0 }
0x341d   : > { %6599 = vrot.lane.b32.xlu0 %v11426_v40, %s11790_s26 }
0x3420   : > { %6275 = vrot.lane.b32.xlu1 %v11342_v49, %s11789_s0 }
0x3421   : > { %6269 = vrot.lane.b32.xlu0 %v11340_v38, %s11789_s0 }
0x3424   : > { %6605 = vrot.lane.b32.xlu1 %v11440_v39, %s11790_s26 }
0x3425   : > { %6273 = vrot.lane.b32.xlu0 %v11338_v14, %s11789_s0 }
0x3429   : > { %6603 = vrot.lane.b32.xlu0 %v11436_v32, %s11790_s26 }
0x3474   : > { %v6796_v54 = vpop.xlane.xlu1 %6795 }
0x3478   : > { %v6790_v33 = vpop.xlane.xlu1 %6789  ;;  %v6799_v26 = vpop.xlane.xlu0 %6798 }
0x3479   : > { %9318 = vrcp.f32 %v6790_v33 }
0x347c   : > { %v6808_v50 = vpop.xlane.xlu1 %6807  ;;  %v6793_v37 = vpop.xlane.xlu0 %6792 }
0x347d   : > { %9320 = vrcp.f32 %v6793_v37 }
0x347e   : > { %9322 = vrcp.f32 %v6799_v26 }
0x347f   : > { %9324 = vrcp.f32 %v6796_v54 }
0x3480   : > { %v6802_v44 = vpop.xlane.xlu1 %6801  ;;  %v6811_v48 = vpop.xlane.xlu0 %6810 }
0x3481   : > { %9326 = vrcp.f32 %v6802_v44 }
0x3483   : > { %v9319_v21 = vpop.eup %9318 }
0x3484   : > { %v6837_v38 = vpop.permute.xlu1 %6836  ;;  %v6805_v49 = vpop.xlane.xlu0 %6804  ;;  %v6820_v11 = vmul.f32 %v9319_v21, %v9305_v5 }
0x3485   : > { %9328 = vrcp.f32 %v6805_v49 }
0x3486   : > { %9330 = vrcp.f32 %v6811_v48 }
0x3487   : > { %v9321_v14 = vpop.eup %9320  ;;  %9332 = vrcp.f32 %v6808_v50 }
0x3488   : > { %v6839_v40 = vpop.permute.xlu1 %6838  ;;  %v6835_v0 = vpop.permute.xlu0 %6834  ;;  %v6821_v27 = vmul.f32 %v9321_v14, %v9309_v59 }
0x3489   : > { %8645 = vmatprep.subr.bf16.mxu1 %v6835_v0  ;;  %v9323_v28 = vpop.eup %9322 }
0x348a   : > { %8646 = vmatpush3.bf16.msra.mxu1 %v6835_v0  ;;  %v6828_v32 = vpack.c.bf16 %v6821_v27, %v6820_v11  ;;  %v9325_v34 = vpop.eup %9324  ;;  %v6823_v16 = vmul.f32 %v9323_v28, %v11456_v13 }
0x348b   : > { %8647 = vmatprep.subr.bf16.mxu1 %v6837_v38  ;;  %v9327_v31 = vpop.eup %9326  ;;  %v6822_v61 = vmul.f32 %v9325_v34, %v11452_v42 }
0x348c   : > { %v6264_v39 = vpop.permute.xlu1 %6263  ;;  %8651 = vmatprep.mubr.msk.bf16.mxu1 %vm886_vm2, %v6828_v32  ;;  %v6262_v57 = vpop.permute.xlu0 %6261  ;;  %v6824_v30 = vmul.f32 %v9327_v31, %v11465_v19  ;;  %v8803_v19 = vld [vmem:[%s11727_s10 + $0x18] sm:$0xff]  }
0x348d   : > { %6286 = vst.msk [vmem:[#allocation2 + $0x8] sm:$0xff] %vm1402_vm3, %v6264_v39  ;;  %6285 = vst.msk [vmem:[#allocation2] sm:$0xff] %vm1402_vm3, %v6262_v57  ;;  %v6829_v15 = vpack.c.bf16 %v6823_v16, %v6822_v61 }
0x348e   : > { %8648 = vmatpush3.bf16.msra.mxu1 %v6837_v38 }
0x348f   : > { %v9329_v43 = vpop.eup %9328  ;;  %8649 = vmatprep.subr.bf16.mxu1 %v6839_v40 }
0x3490   : > { %v6268_v20 = vpop.permute.xlu1 %6267  ;;  %v6266_v41 = vpop.permute.xlu0 %6265  ;;  %v6825_v60 = vmul.f32 %v9329_v43, %v11474_v24 }
0x3491   : > { %6288 = vst.msk [vmem:[#allocation2 + $0x18] sm:$0xff] %vm1402_vm3, %v6268_v20  ;;  %6287 = vst.msk [vmem:[#allocation2 + $0x10] sm:$0xff] %vm1402_vm3, %v6266_v41  ;;  %v9331_v12 = vpop.eup %9330 }
0x3492   : > { %8650 = vmatpush3.bf16.msra.mxu1 %v6839_v40  ;;  %v6830_v18 = vpack.c.bf16 %v6825_v60, %v6824_v30  ;;  %v9333_v46 = vpop.eup %9332  ;;  %v6827_v29 = vmul.f32 %v9331_v12, %v11468_v4 }
0x3493   : > { %v6826_v47 = vmul.f32 %v9333_v46, %v11461_v63  ;;  %v8802_v63 = vld [vmem:[%s11727_s10 + $0x10] sm:$0xff]  }
0x3494   : > { %v6598_v17 = vpop.permute.xlu1 %6597  ;;  %v6596_v8 = vpop.permute.xlu0 %6595  ;;  %8659 = vmatprep.subr.bf16.mxu1 %v8802_v63 }
0x3495   : > { %6620 = vst.msk [vmem:[#allocation2 + $0x8] sm:$0xff] %vm1737_vm4, %v6598_v17  ;;  %6619 = vst.msk [vmem:[#allocation2] sm:$0xff] %vm1737_vm4, %v6596_v8  ;;  %8652 = vmatmul.mubr.msk.bf16.vlgmr.msra.gmra.mrb[144].mxu1 %vm886_vm2, %v6829_v15  ;;  %v6831_v58 = vpack.c.bf16 %v6827_v29, %v6826_v47 }
0x3496   : > { %8655 = vmatprep.mubr.msk.bf16.mxu1 %vm886_vm2, %v6830_v18  ;;  %8660 = vmatpush3.bf16.msra.mxu1 %v8802_v63 }
0x3497   : > { %8661 = vmatprep.subr.bf16.mxu1 %v8803_v19 }
0x3498   : > { %v6602_v36 = vpop.permute.xlu1 %6601  ;;  %v6600_v42 = vpop.permute.xlu0 %6599 }
0x3499   : > { %6622 = vst.msk [vmem:[#allocation2 + $0x18] sm:$0xff] %vm1737_vm4, %v6602_v36  ;;  %6621 = vst.msk [vmem:[#allocation2 + $0x10] sm:$0xff] %vm1737_vm4, %v6600_v42 }
0x349a   : > { %8662 = vmatpush3.bf16.msra.mxu1 %v8803_v19 }
0x349c   : > { %v6272_v53 = vpop.permute.xlu1 %6271  ;;  %v6270_v5 = vpop.permute.xlu0 %6269 }
0x349d   : > { %6290 = vst.msk [vmem:[#allocation2 + $0x28] sm:$0xff] %vm1402_vm3, %v6272_v53  ;;  %6289 = vst.msk [vmem:[#allocation2 + $0x20] sm:$0xff] %vm1402_vm3, %v6270_v5  ;;  %8656 = vmatmul.mubr.msk.bf16.gmra.mrb[148].mxu1 %vm886_vm2, %v6831_v58 }
0x34a0   : > { %v6276_v13 = vpop.permute.xlu1 %6275  ;;  %v6274_v52 = vpop.permute.xlu0 %6273 }
0x34a1   : > { %6292 = vst.msk [vmem:[#allocation2 + $0x38] sm:$0xff] %vm1402_vm3, %v6276_v13  ;;  %6291 = vst.msk [vmem:[#allocation2 + $0x30] sm:$0xff] %vm1402_vm3, %v6274_v52 }
0x34a4   : > { %v6606_v23 = vpop.permute.xlu1 %6605  ;;  %v6604_v59 = vpop.permute.xlu0 %6603 }
0x34a5   : > { %6624 = vst.msk [vmem:[#allocation2 + $0x28] sm:$0xff] %vm1737_vm4, %v6606_v23  ;;  %6623 = vst.msk [vmem:[#allocation2 + $0x20] sm:$0xff] %vm1737_vm4, %v6604_v59 }
0x3568   : > { %v8653_v35 = vpop.f32.mrb[144].mxu1 }
0x3569   : > { %6933 = vrot.lane.b32.xlu0 %v8653_v35, %s11791_s19  ;;  %v6890_v56 = vpop.f32.mrb[145].mxu1 }
0x356a   : > { %v8654_v4 = vpop.f32.mrb[146].mxu1 }
0x356b   : > { %6935 = vrot.lane.b32.xlu1 %v8654_v4, %s11791_s19  ;;  %v6893_v3 = vpop.f32.mrb[147].mxu1 }
0x356d   : > { %6929 = vrot.lane.b32.xlu0 %v6890_v56, %s11791_s19 }
0x356f   : > { %6931 = vrot.lane.b32.xlu1 %v6893_v3, %s11791_s19 }
0x3570   : > { %v8657_v10 = vpop.f32.mrb[148].mxu1 }
0x3571   : > { %6607 = vrot.lane.b32.xlu0 %v11434_v2, %s11790_s26  ;;  %v6906_v24 = vpop.f32.mrb[149].mxu1 }
0x3572   : > { %v8658_v1 = vpop.f32.mrb[150].mxu1 }
0x3573   : > { %6609 = vrot.lane.b32.xlu1 %v11438_v51, %s11790_s26  ;;  %v6909_v54 = vpop.f32.mrb[151].mxu1 }
0x3575   : > { %6937 = vrot.lane.b32.xlu0 %v6906_v24, %s11791_s19 }
0x3577   : > { %6939 = vrot.lane.b32.xlu1 %v6909_v54, %s11791_s19 }
0x3579   : > { %6941 = vrot.lane.b32.xlu0 %v8657_v10, %s11791_s19 }
0x357b   : > { %6943 = vrot.lane.b32.xlu1 %v8658_v1, %s11791_s19 }
0x35db   : > { %v6934_v33 = vpop.permute.xlu0 %6933 }
0x35dc   : > { %6955 = vst.msk [vmem:[#allocation2 + $0x10] sm:$0xff] %vm2072_vm5, %v6934_v33 }
0x35dd   : > { %v6936_v26 = vpop.permute.xlu1 %6935 }
0x35de   : > { %6956 = vst.msk [vmem:[#allocation2 + $0x18] sm:$0xff] %vm2072_vm5, %v6936_v26 }
0x35df   : > { %v6930_v2 = vpop.permute.xlu0 %6929 }
0x35e0   : > { %6953 = vst.msk [vmem:[#allocation2] sm:$0xff] %vm2072_vm5, %v6930_v2 }
0x35e1   : > { %v6932_v50 = vpop.permute.xlu1 %6931 }
0x35e2   : > { %6954 = vst.msk [vmem:[#allocation2 + $0x8] sm:$0xff] %vm2072_vm5, %v6932_v50 }
0x35e3   : > { %v6608_v51 = vpop.permute.xlu0 %6607  ;;  %v6963_v40 = vld [vmem:[#allocation2 + $0x10] sm:$0xff] }
0x35e4   : > { %6625 = vst.msk [vmem:[#allocation2 + $0x30] sm:$0xff] %vm1737_vm4, %v6608_v51 }
0x35e5   : > { %v6610_v37 = vpop.permute.xlu1 %6609  ;;  %v6964_v48 = vld [vmem:[#allocation2 + $0x18] sm:$0xff] }
0x35e6   : > { %6626 = vst.msk [vmem:[#allocation2 + $0x38] sm:$0xff] %vm1737_vm4, %v6610_v37  ;;  %v6970_v11 = vpack.c.bf16 %v6964_v48, %v6963_v40 }
0x35e7   : > { %v6938_v44 = vpop.permute.xlu0 %6937  ;;  %v6961_v49 = vld [vmem:[#allocation2] sm:$0xff] }
0x35e8   : > { %6957 = vst.msk [vmem:[#allocation2 + $0x20] sm:$0xff] %vm2072_vm5, %v6938_v44 }
0x35e9   : > { %v6940_v38 = vpop.permute.xlu1 %6939  ;;  %v6962_v21 = vld [vmem:[#allocation2 + $0x8] sm:$0xff] }
0x35ea   : > { %6958 = vst.msk [vmem:[#allocation2 + $0x28] sm:$0xff] %vm2072_vm5, %v6940_v38  ;;  %v6969_v14 = vpack.c.bf16 %v6962_v21, %v6961_v49 }
0x35eb   : > { %v6942_v0 = vpop.permute.xlu0 %6941 }
0x35ec   : > { %6959 = vst.msk [vmem:[#allocation2 + $0x30] sm:$0xff] %vm2072_vm5, %v6942_v0  ;;  %8663 = vmatprep.mubr.msk.bf16.mxu1 %vm567_vm0, %v6969_v14 }
0x35ed   : > { %v6944_v27 = vpop.permute.xlu1 %6943  ;;  %8664 = vmatmul.mubr.msk.bf16.vlgmr.msra.gmra.mrb[152].mxu1 %vm567_vm0, %v6970_v11 }
0x35ee   : > { %6960 = vst.msk [vmem:[#allocation2 + $0x38] sm:$0xff] %vm2072_vm5, %v6944_v27 }
0x35ef   : > { %v6965_v32 = vld [vmem:[#allocation2 + $0x20] sm:$0xff] }
0x35f1   : > { %v6966_v39 = vld [vmem:[#allocation2 + $0x28] sm:$0xff] }
0x35f2   : > { %v6971_v28 = vpack.c.bf16 %v6966_v39, %v6965_v32 }
0x35f3   : > { %v6967_v57 = vld [vmem:[#allocation2 + $0x30] sm:$0xff] }
0x35f4   : > { %8667 = vmatprep.mubr.msk.bf16.mxu1 %vm567_vm0, %v6971_v28 }
0x35f5   : > { %v6968_v34 = vld [vmem:[#allocation2 + $0x38] sm:$0xff] }
0x35f6   : > { %v6972_v31 = vpack.c.bf16 %v6968_v34, %v6967_v57 }
0x35f8   : > { %8668 = vmatmul.mubr.msk.bf16.gmra.mrb[156].mxu1 %vm567_vm0, %v6972_v31 }
0x36c0   : > { %v8665_v43 = vpop.f32.mrb[152].mxu1 }
0x36c1   : > { %v7031_v16 = vpop.f32.mrb[153].mxu1  ;;  %v11572_v61 = vadd.f32 %v8665_v43, %v10156_v62  ;;  %v8804_v43 = vld [vmem:[%s11728_s11 + $0x10] sm:$0xff]  }
0x36c2   : > { %v11569_v20 = vadd.f32 %v7031_v16, %v10153_v45  ;;  %v8666_v41 = vpop.f32.mrb[154].mxu1  ;;  %8671 = vmatprep.subr.bf16.mxu0 %v8804_v43  ;;  %v8805_v16 = vld [vmem:[%s11728_s11 + $0x18] sm:$0xff]  }
0x36c3   : > { %v7034_v60 = vpop.f32.mrb[155].mxu1  ;;  %v11582_v12 = vadd.f32 %v8666_v41, %v10164_v9  ;;  %v7090_v45 = vsel %vm567_vm0, %v11572_v61, 0.0  ;;  %8672 = vmatpush3.bf16.msra.mxu0 %v8804_v43 }
0x36c4   : > { %v11575_v30 = vadd.f32 %v7034_v60, %v10159_v7  ;;  %v7084_v15 = vsel %vm567_vm0, %v11569_v20, 0.0  ;;  %8673 = vmatprep.subr.bf16.mxu0 %v8805_v16 }
0x36c5   : > { %7085 = vadd.xlane.f32.xlu0 %v7084_v15  ;;  %v7093_v7 = vsel %vm567_vm0, %v11582_v12, 0.0 }
0x36c6   : > { %v7087_v17 = vsel %vm567_vm0, %v11575_v30, 0.0 }
0x36c7   : > { %7088 = vadd.xlane.f32.xlu1 %v7087_v17  ;;  %8674 = vmatpush3.bf16.msra.mxu0 %v8805_v16 }
0x36c9   : > { %7091 = vadd.xlane.f32.xlu0 %v7090_v45 }
0x36cb   : > { %v8669_v62 = vpop.f32.mrb[156].mxu1 }
0x36cc   : > { %v7047_v8 = vpop.f32.mrb[157].mxu1  ;;  %v11592_v29 = vadd.f32 %v8669_v62, %v10176_v6 }
0x36cd   : > { %v11589_v18 = vadd.f32 %v7047_v8, %v10173_v55  ;;  %7094 = vadd.xlane.f32.xlu0 %v7093_v7  ;;  %v8670_v46 = vpop.f32.mrb[158].mxu1 }
0x36ce   : > { %v7050_v36 = vpop.f32.mrb[159].mxu1  ;;  %v11600_v47 = vadd.f32 %v8670_v46, %v10184_v25  ;;  %v7102_v53 = vsel %vm567_vm0, %v11592_v29, 0.0 }
0x36cf   : > { %v11595_v9 = vadd.f32 %v7050_v36, %v10179_v22  ;;  %v7096_v42 = vsel %vm567_vm0, %v11589_v18, 0.0 }
0x36d0   : > { %7097 = vadd.xlane.f32.xlu1 %v7096_v42  ;;  %v7105_v6 = vsel %vm567_vm0, %v11600_v47, 0.0 }
0x36d1   : > { %v7099_v55 = vsel %vm567_vm0, %v11595_v9, 0.0 }
0x36d2   : > { %7100 = vadd.xlane.f32.xlu0 %v7099_v55 }
0x36d4   : > { %7103 = vadd.xlane.f32.xlu1 %v7102_v53 }
0x36d6   : > { %7106 = vadd.xlane.f32.xlu0 %v7105_v6 }
0x3752   : > { %v7086_v22 = vpop.xlane.xlu0 %7085 }
0x3753   : > { %v7108_v58 = vmul.f32 0.03125, %v7086_v22 }
0x3754   : > { %v7089_v5 = vpop.xlane.xlu1 %7088 }
0x3755   : > { %v11609_v13 = vsub.f32 %v11569_v20, %v7108_v58  ;;  %v7109_v25 = vmul.f32 0.03125, %v7089_v5 }
0x3756   : > { %v7092_v52 = vpop.xlane.xlu0 %7091 }
0x3757   : > { %v11612_v23 = vsub.f32 %v11575_v30, %v7109_v25  ;;  %v7110_v59 = vmul.f32 0.03125, %v7092_v52  ;;  %v7124_v63 = vmul.f32 %v11609_v13, %v11609_v13 }
0x3759   : > { %v11617_v35 = vsub.f32 %v11572_v61, %v7110_v59  ;;  %v7132_v19 = vsel %vm567_vm0, %v7124_v63, 0.0  ;;  %v7125_v56 = vmul.f32 %v11612_v23, %v11612_v23 }
0x375a   : > { %7133 = vadd.xlane.f32.xlu1 %v7132_v19  ;;  %v7095_v4 = vpop.xlane.xlu0 %7094 }
0x375b   : > { %v7111_v3 = vmul.f32 0.03125, %v7095_v4  ;;  %v7135_v10 = vsel %vm567_vm0, %v7125_v56, 0.0  ;;  %v7126_v24 = vmul.f32 %v11617_v35, %v11617_v35 }
0x375c   : > { %7136 = vadd.xlane.f32.xlu0 %v7135_v10 }
0x375d   : > { %v11626_v1 = vsub.f32 %v11582_v12, %v7111_v3  ;;  %v7098_v54 = vpop.xlane.xlu1 %7097  ;;  %v7138_v33 = vsel %vm567_vm0, %v7126_v24, 0.0 }
0x375e   : > { %v7112_v26 = vmul.f32 0.03125, %v7098_v54  ;;  %7139 = vadd.xlane.f32.xlu1 %v7138_v33 }
0x375f   : > { %v7101_v2 = vpop.xlane.xlu0 %7100  ;;  %v7127_v50 = vmul.f32 %v11626_v1, %v11626_v1 }
0x3760   : > { %v11632_v51 = vsub.f32 %v11589_v18, %v7112_v26  ;;  %v7113_v37 = vmul.f32 0.03125, %v7101_v2 }
0x3761   : > { %v7104_v44 = vpop.xlane.xlu1 %7103  ;;  %v7141_v48 = vsel %vm567_vm0, %v7127_v50, 0.0 }
0x3762   : > { %v11636_v38 = vsub.f32 %v11595_v9, %v7113_v37  ;;  %v7114_v49 = vmul.f32 0.03125, %v7104_v44  ;;  %7142 = vadd.xlane.f32.xlu0 %v7141_v48  ;;  %v7128_v21 = vmul.f32 %v11632_v51, %v11632_v51 }
0x3763   : > { %v7107_v14 = vpop.xlane.xlu0 %7106 }
0x3764   : > { %v11641_v40 = vsub.f32 %v11592_v29, %v7114_v49  ;;  %v7115_v0 = vmul.f32 0.03125, %v7107_v14  ;;  %v7144_v11 = vsel %vm567_vm0, %v7128_v21, 0.0  ;;  %v7129_v27 = vmul.f32 %v11636_v38, %v11636_v38 }
0x3765   : > { %7145 = vadd.xlane.f32.xlu1 %v7144_v11 }
0x3766   : > { %v11647_v32 = vsub.f32 %v11600_v47, %v7115_v0  ;;  %v7147_v39 = vsel %vm567_vm0, %v7129_v27, 0.0  ;;  %v7130_v28 = vmul.f32 %v11641_v40, %v11641_v40 }
0x3767   : > { %7148 = vadd.xlane.f32.xlu0 %v7147_v39 }
0x3768   : > { %v7150_v57 = vsel %vm567_vm0, %v7130_v28, 0.0  ;;  %v7131_v34 = vmul.f32 %v11647_v32, %v11647_v32 }
0x3769   : > { %7151 = vadd.xlane.f32.xlu1 %v7150_v57 }
0x376a   : > { %v7153_v31 = vsel %vm567_vm0, %v7131_v34, 0.0 }
0x376b   : > { %7154 = vadd.xlane.f32.xlu0 %v7153_v31 }
0x37e7   : > { %v7134_v41 = vpop.xlane.xlu1 %7133 }
0x37e8   : > { %v7156_v60 = vmul.f32 0.03125, %v7134_v41 }
0x37e9   : > { %v7137_v15 = vpop.xlane.xlu0 %7136 }
0x37ea   : > { %v7164_v17 = vadd.f32 1e-05, %v7156_v60  ;;  %v7157_v45 = vmul.f32 0.03125, %v7137_v15 }
0x37eb   : > { %v7140_v62 = vpop.xlane.xlu1 %7139 }
0x37ec   : > { %9334 = vrsqrt.f32 %v7164_v17  ;;  %v7165_v8 = vadd.f32 1e-05, %v7157_v45  ;;  %v7158_v7 = vmul.f32 0.03125, %v7140_v62 }
0x37ee   : > { %9336 = vrsqrt.f32 %v7165_v8  ;;  %v7166_v46 = vadd.f32 1e-05, %v7158_v7 }
0x37ef   : > { %v7143_v36 = vpop.xlane.xlu0 %7142 }
0x37f0   : > { %v7159_v42 = vmul.f32 0.03125, %v7143_v36  ;;  %9338 = vrsqrt.f32 %v7166_v46 }
0x37f2   : > { %v7167_v55 = vadd.f32 1e-05, %v7159_v42  ;;  %v7146_v53 = vpop.xlane.xlu1 %7145 }
0x37f3   : > { %v7160_v6 = vmul.f32 0.03125, %v7146_v53 }
0x37f4   : > { %9340 = vrsqrt.f32 %v7167_v55  ;;  %v7149_v22 = vpop.xlane.xlu0 %7148 }
0x37f5   : > { %v7168_v58 = vadd.f32 1e-05, %v7160_v6  ;;  %v7161_v5 = vmul.f32 0.03125, %v7149_v22 }
0x37f6   : > { %v9335_v25 = vpop.eup %9334  ;;  %v7152_v52 = vpop.xlane.xlu1 %7151 }
0x37f7   : > { %9342 = vrsqrt.f32 %v7168_v58  ;;  %v7169_v59 = vadd.f32 1e-05, %v7161_v5  ;;  %v7162_v63 = vmul.f32 0.03125, %v7152_v52  ;;  %v7180_v4 = vmul.f32 %v9335_v25, %v11609_v13 }
0x37f8   : > { %v9337_v19 = vpop.eup %9336  ;;  %v7155_v56 = vpop.xlane.xlu0 %7154 }
0x37f9   : > { %9344 = vrsqrt.f32 %v7169_v59  ;;  %v7170_v3 = vadd.f32 1e-05, %v7162_v63  ;;  %v7163_v10 = vmul.f32 0.03125, %v7155_v56  ;;  %v7181_v24 = vmul.f32 %v9337_v19, %v11612_v23 }
0x37fa   : > { %v9339_v26 = vpop.eup %9338 }
0x37fb   : > { %9346 = vrsqrt.f32 %v7170_v3  ;;  %v7171_v54 = vadd.f32 1e-05, %v7163_v10  ;;  %v7188_v33 = vpack.c.bf16 %v7181_v24, %v7180_v4  ;;  %v7182_v50 = vmul.f32 %v9339_v26, %v11617_v35 }
0x37fd   : > { %9348 = vrsqrt.f32 %v7171_v54  ;;  %8675 = vmatprep.mubr.msk.bf16.mxu0 %vm567_vm0, %v7188_v33 }
0x37fe   : > { %v9341_v2 = vpop.eup %9340 }
0x37ff   : > { %v7183_v37 = vmul.f32 %v9341_v2, %v11626_v1  ;;  %v8806_v1 = vld [vmem:[%s11730_s13 + $0x10] sm:$0xff]  }
0x3800   : > { %8683 = vmatprep.subr.bf16.mxu1 %v8806_v1 }
0x3801   : > { %v9343_v44 = vpop.eup %9342  ;;  %v7189_v48 = vpack.c.bf16 %v7183_v37, %v7182_v50  ;;  %8684 = vmatpush3.bf16.msra.mxu1 %v8806_v1 }
0x3802   : > { %v7184_v49 = vmul.f32 %v9343_v44, %v11632_v51  ;;  %v8807_v51 = vld [vmem:[%s11730_s13 + $0x18] sm:$0xff]  }
0x3803   : > { %v9345_v13 = vpop.eup %9344  ;;  %8676 = vmatmul.mubr.msk.bf16.vlgmr.msra.gmra.mrb[164].mxu0 %vm567_vm0, %v7189_v48  ;;  %8685 = vmatprep.subr.bf16.mxu1 %v8807_v51 }
0x3804   : > { %v7185_v23 = vmul.f32 %v9345_v13, %v11636_v38  ;;  %v7749_v38 = vld [vmem:[%s11729_s12 + $0x1] ss:$0 sm:$0xff] }
0x3805   : > { %v9347_v21 = vpop.eup %9346  ;;  %8686 = vmatpush3.bf16.msra.mxu1 %v8807_v51 }
0x3806   : > { %v7190_v14 = vpack.c.bf16 %v7185_v23, %v7184_v49  ;;  %v7186_v11 = vmul.f32 %v9347_v21, %v11641_v40 }
0x3807   : > { %v9349_v0 = vpop.eup %9348 }
0x3808   : > { %8679 = vmatprep.mubr.msk.bf16.mxu0 %vm567_vm0, %v7190_v14  ;;  %v7187_v35 = vmul.f32 %v9349_v0, %v11647_v32 }
0x380a   : > { %v7191_v27 = vpack.c.bf16 %v7187_v35, %v7186_v11 }
0x380c   : > { %8680 = vmatmul.mubr.msk.bf16.gmra.mrb[168].mxu0 %vm567_vm0, %v7191_v27 }
0x38d6   : > { %v8677_v40 = vpop.f32.mrb[164].mxu0 }
0x38d7   : > { %v7265_v32 = vadd.f32 %v8677_v40, %v7749_v38  ;;  %v7256_v39 = vpop.f32.mrb[165].mxu0 }
0x38d8   : > { %v7257_v28 = vadd.f32 %v7749_v38, %v7256_v39  ;;  %v8678_v57 = vpop.f32.mrb[166].mxu0 }
0x38d9   : > { %v7297_v34 = vmul.f32 0.70710677, %v7265_v32  ;;  %v7268_v31 = vadd.f32 %v8678_v57, %v7749_v38  ;;  %v7259_v43 = vpop.f32.mrb[167].mxu0  ;;  %v7289_v19 = vmul.f32 0.5, %v7265_v32  ;;  %v7756_v57 = vld [vmem:[%s11731_s14 + $0x1] ss:$0 sm:$0xff] }
0x38da   : > { %v7295_v16 = vmul.f32 0.70710677, %v7257_v28  ;;  %v7260_v41 = vadd.f32 %v7749_v38, %v7259_v43  ;;  %v7287_v3 = vmul.f32 0.5, %v7257_v28 }
0x38db   : > { %9350 = verf.f32 %v7297_v34  ;;  %v7298_v60 = vmul.f32 0.70710677, %v7268_v31  ;;  %v7290_v56 = vmul.f32 0.5, %v7268_v31 }
0x38dc   : > { %9352 = verf.f32 %v7295_v16  ;;  %v7296_v15 = vmul.f32 0.70710677, %v7260_v41  ;;  %v7288_v10 = vmul.f32 0.5, %v7260_v41 }
0x38dd   : > { %9354 = verf.f32 %v7298_v60 }
0x38de   : > { %9356 = verf.f32 %v7296_v15 }
0x38df   : > { %v8681_v17 = vpop.f32.mrb[168].mxu0 }
0x38e0   : > { %v7281_v45 = vadd.f32 %v8681_v17, %v7749_v38  ;;  %v7272_v62 = vpop.f32.mrb[169].mxu0 }
0x38e1   : > { %v7273_v8 = vadd.f32 %v7749_v38, %v7272_v62  ;;  %v8682_v7 = vpop.f32.mrb[170].mxu0 }
0x38e2   : > { %v7301_v46 = vmul.f32 0.70710677, %v7281_v45  ;;  %v7284_v36 = vadd.f32 %v8682_v7, %v7749_v38  ;;  %v7275_v42 = vpop.f32.mrb[171].mxu0  ;;  %v7293_v14 = vmul.f32 0.5, %v7281_v45 }
0x38e3   : > { %v7299_v55 = vmul.f32 0.70710677, %v7273_v8  ;;  %v7276_v53 = vadd.f32 %v7749_v38, %v7275_v42  ;;  %v7291_v35 = vmul.f32 0.5, %v7273_v8 }
0x38e4   : > { %9358 = verf.f32 %v7301_v46  ;;  %v7302_v6 = vmul.f32 0.70710677, %v7284_v36  ;;  %v7294_v0 = vmul.f32 0.5, %v7284_v36 }
0x38e5   : > { %v9351_v22 = vpop.eup %9350  ;;  %9360 = verf.f32 %v7299_v55  ;;  %v7300_v58 = vmul.f32 0.70710677, %v7276_v53  ;;  %v7292_v27 = vmul.f32 0.5, %v7276_v53 }
0x38e6   : > { %v9353_v5 = vpop.eup %9352  ;;  %v7313_v25 = vadd.f32 1.0, %v9351_v22  ;;  %9362 = verf.f32 %v7302_v6 }
0x38e7   : > { %v9355_v52 = vpop.eup %9354  ;;  %v7311_v59 = vadd.f32 1.0, %v9353_v5  ;;  %9364 = verf.f32 %v7300_v58 }
0x38e8   : > { %v9357_v63 = vpop.eup %9356  ;;  %v7314_v4 = vadd.f32 1.0, %v9355_v52  ;;  %v7321_v54 = vmul.f32 %v7313_v25, %v7289_v19 }
0x38e9   : > { %v7312_v24 = vadd.f32 1.0, %v9357_v63  ;;  %v7319_v26 = vmul.f32 %v7311_v59, %v7287_v3 }
0x38ea   : > { %v7322_v33 = vmul.f32 %v7314_v4, %v7290_v56 }
0x38eb   : > { %v7320_v2 = vmul.f32 %v7312_v24, %v7288_v10 }
0x38ec   : > { %v7328_v50 = vpack.c.bf16 %v7322_v33, %v7321_v54 }
0x38ed   : > { %v7327_v37 = vpack.c.bf16 %v7320_v2, %v7319_v26 }
0x38ee   : > { %v9359_v44 = vpop.eup %9358 }
0x38ef   : > { %v9361_v48 = vpop.eup %9360  ;;  %v7317_v13 = vadd.f32 1.0, %v9359_v44  ;;  %8687 = vmatprep.mubr.msk.bf16.mxu1 %vm567_vm0, %v7327_v37 }
0x38f0   : > { %v9363_v49 = vpop.eup %9362  ;;  %v7315_v23 = vadd.f32 1.0, %v9361_v48  ;;  %8688 = vmatmul.mubr.msk.bf16.vlgmr.msra.gmra.mrb[160].mxu1 %vm567_vm0, %v7328_v50 }
0x38f1   : > { %v9365_v21 = vpop.eup %9364  ;;  %v7318_v11 = vadd.f32 1.0, %v9363_v49  ;;  %v7325_v51 = vmul.f32 %v7317_v13, %v7293_v14 }
0x38f2   : > { %v7316_v1 = vadd.f32 1.0, %v9365_v21  ;;  %v7323_v40 = vmul.f32 %v7315_v23, %v7291_v35 }
0x38f3   : > { %v7326_v38 = vmul.f32 %v7318_v11, %v7294_v0 }
0x38f4   : > { %v7324_v32 = vmul.f32 %v7316_v1, %v7292_v27 }
0x38f5   : > { %v7330_v39 = vpack.c.bf16 %v7326_v38, %v7325_v51 }
0x38f6   : > { %v7329_v28 = vpack.c.bf16 %v7324_v32, %v7323_v40 }
0x38f8   : > { %8691 = vmatprep.mubr.msk.bf16.mxu1 %vm567_vm0, %v7329_v28 }
0x38f9   : > { %8692 = vmatmul.mubr.msk.bf16.gmra.mrb[164].mxu1 %vm567_vm0, %v7330_v39 }
0x39c3   : > { %v8689_v34 = vpop.f32.mrb[160].mxu1 }
0x39c4   : > { %v7404_v31 = vadd.f32 %v8689_v34, %v7756_v57  ;;  %v7395_v43 = vpop.f32.mrb[161].mxu1 }
0x39c5   : > { %v7396_v16 = vadd.f32 %v7756_v57, %v7395_v43  ;;  %v8690_v41 = vpop.f32.mrb[162].mxu1 }
0x39c6   : > { %v7428_v60 = vadd.f32 %v7404_v31, %v11572_v61  ;;  %v7407_v15 = vadd.f32 %v8690_v41, %v7756_v57  ;;  %v7398_v17 = vpop.f32.mrb[163].mxu1 }
0x39c7   : > { %v7426_v45 = vadd.f32 %v7396_v16, %v11569_v20  ;;  %v7399_v62 = vadd.f32 %v7756_v57, %v7398_v17 }
0x39c8   : > { %7446 = vst.msk [vmem:[%s10937_s15 + $0x60] sm:$0xff] %vm567_vm0, %v7428_v60  ;;  %v7429_v8 = vadd.f32 %v7407_v15, %v11582_v12 }
0x39c9   : > { %7444 = vst.msk [vmem:[%s10937_s15 + $0x50] sm:$0xff] %vm567_vm0, %v7426_v45  ;;  %v7427_v7 = vadd.f32 %v7399_v62, %v11575_v30 }
0x39ca   : > { %7447 = vst.msk [vmem:[%s10937_s15 + $0x68] sm:$0xff] %vm567_vm0, %v7429_v8 }
0x39cb   : > { %7445 = vst.msk [vmem:[%s10937_s15 + $0x58] sm:$0xff] %vm567_vm0, %v7427_v7 }
0x39cc   : > { %v8693_v61 = vpop.f32.mrb[164].mxu1 }
0x39cd   : > { %v7420_v46 = vadd.f32 %v8693_v61, %v7756_v57  ;;  %v7411_v20 = vpop.f32.mrb[165].mxu1 }
0x39ce   : > { %v7412_v36 = vadd.f32 %v7756_v57, %v7411_v20  ;;  %v8694_v42 = vpop.f32.mrb[166].mxu1 }
0x39cf   : > { %v7432_v55 = vadd.f32 %v7420_v46, %v11592_v29  ;;  %v7423_v53 = vadd.f32 %v8694_v42, %v7756_v57  ;;  %v7414_v12 = vpop.f32.mrb[167].mxu1 }
0x39d0   : > { %v7430_v6 = vadd.f32 %v7412_v36, %v11589_v18  ;;  %v7415_v22 = vadd.f32 %v7756_v57, %v7414_v12 }
0x39d1   : > { %7450 = vst.msk [vmem:[%s10937_s15 + $0x80] sm:$0xff] %vm567_vm0, %v7432_v55  ;;  %v7433_v30 = vadd.f32 %v7423_v53, %v11600_v47 }
0x39d2   : > { %7448 = vst.msk [vmem:[%s10937_s15 + $0x70] sm:$0xff] %vm567_vm0, %v7430_v6  ;;  %v7431_v58 = vadd.f32 %v7415_v22, %v11595_v9 }
0x39d3   : > { %7451 = vst.msk [vmem:[%s10937_s15 + $0x88] sm:$0xff] %vm567_vm0, %v7433_v30 }
0x39d4   : > { %7449 = vst.msk [vmem:[%s10937_s15 + $0x78] sm:$0xff] %vm567_vm0, %v7431_v58 }
0x39d5 PF: > { %s11797_s5 = sld [smem:[#allocation3_spill]] }
0x39db   : > { %s27_s24 = sadd.s32 1, %s11797_s5  }
0x39dc   : > { %p24_p4 = scmp.ge.s32.totalorder %s27_s24, 4  }
0x39de   :  { %26 = sbr.rel (!%p24_p4) target bundleno = 9 (0x9), region = 132 }

</bundles_post_ra>
